<compile_context>
chip_gen: v7x
topology: tpu7x:2x2x1
jax: 0.10.0
libtpu: 0.0.40
codegen_flags: <defaults>
</compile_context>

<pallas_src>
import jax
import jax.numpy as jnp
import numpy as np
from jax.experimental import pallas as pl
from jax.experimental.pallas import tpu as pltpu

EPS = 1e-5           # PyTorch BatchNorm default eps
H0, W0 = 16, 80      # spatial size implied by fc1.in_features = 2*10*32


# ----------------------------------------------------------------------------
# Fused kernel
# ----------------------------------------------------------------------------
def _fused_kernel(x_ref, l1_ref, cb1_ref, cs1_ref, ct1_ref,
                  cw2_ref, cb2_ref, cs2_ref, ct2_ref,
                  cw3_ref, cb3_ref, cs3_ref, ct3_ref,
                  w1_ref, b1_ref, w2_ref, b2_ref, w3_ref, b3_ref,
                  out_ref,
                  xr, y1s, tt, xp2, y2s, xp3, y3s, feat):
    f32 = jnp.float32
    bf16 = jnp.bfloat16
    b_blk = x_ref.shape[0]

    # ---- per-grid-step constants (hoisted: JAX does not CSE broadcasts) ----
    cb1 = cb1_ref[...]          # (16, 1) conv1 bias (per channel, on sublanes)
    cs1 = cs1_ref[...]
    ct1 = ct1_ref[...]
    cb2 = cb2_ref[...]          # (1, 32)
    cs2 = cs2_ref[...]
    ct2 = ct2_ref[...]
    cb3 = cb3_ref[...]
    cs3 = cs3_ref[...]
    ct3 = ct3_ref[...]

    wpos2 = jax.lax.broadcasted_iota(jnp.int32, (320, 1), 0) % 40
    nl2 = wpos2 > 0             # zero the dx=-1 tap where w == 0
    nr2 = wpos2 < 39            # zero the dx=+1 tap where w == W-1
    wpos3 = jax.lax.broadcasted_iota(jnp.int32, (80, 1), 0) % 20
    nl3 = wpos3 > 0
    nr3 = wpos3 < 19

    # Zero padded scratches every grid step (NOT under pl.when(pid == 0):
    # with "parallel" semantics each core must zero its own halos).
    xr[...] = jnp.zeros_like(xr)
    xp2[...] = jnp.zeros_like(xp2)
    xp3[...] = jnp.zeros_like(xp3)

    def conv_rows(xp_ref, hw, w, nl, nr, cw_ref, bias, scale, shift):
        """3x3/pad=1 conv as one im2col GEMM + bias + ReLU + folded eval BN."""
        base = w + 1
        taps = []
        for dy in (-1, 0, 1):
            for dx in (-1, 0, 1):
                t = xp_ref[pl.ds(base + dy * w + dx, hw), :]
                if dx == -1:
                    t = jnp.where(nl, t, 0.0)
                elif dx == 1:
                    t = jnp.where(nr, t, 0.0)
                taps.append(t)
        slab = jnp.concatenate(taps, axis=1).astype(bf16)      # (hw, 9*Cin)
        acc = jnp.dot(slab, cw_ref[...], preferred_element_type=f32)
        return jnp.maximum(acc + bias, 0.0) * scale + shift

    def body(bi, carry):
        # -------- stage 1: (16, 80, Cin=1) -> conv/bn -> pool -> rows (320,16)
        xs = x_ref[bi]                                          # (16, 80) f32
        zcol = jnp.zeros((16, 1), f32)
        left = jnp.concatenate([zcol, xs[:, 0:79]], axis=1)    # x[h, w-1]
        right = jnp.concatenate([xs[:, 1:80], zcol], axis=1)   # x[h, w+1]
        xr[pl.ds(1, 16), :] = left                              # dx = -1 block
        xr[pl.ds(19, 16), :] = xs                               # dx =  0 block
        xr[pl.ds(37, 16), :] = right                            # dx = +1 block
        # one band-matrix GEMM: rows = h*16 + c, cols = dx-block x padded-row
        y1s[...] = jnp.dot(l1_ref[...], xr[...],
                           preferred_element_type=f32)          # (256, 80)

        for h2 in range(8):
            a = y1s[pl.ds(32 * h2, 16), :]                      # row 2*h2
            b_ = y1s[pl.ds(32 * h2 + 16, 16), :]                # row 2*h2+1
            ya = jnp.maximum(a + cb1, 0.0) * cs1 + ct1
            yb = jnp.maximum(b_ + cb1, 0.0) * cs1 + ct1
            tt[...] = jnp.maximum(ya, yb).T                     # (80w, 16c)
            hm = jnp.maximum(tt[pl.ds(0, 40, stride=2), :],
                             tt[pl.ds(1, 40, stride=2), :])     # (40, 16)
            xp2[pl.ds(41 + 40 * h2, 40), :] = hm

        # -------- stage 2: rows (320,16) -> conv/bn -> pool -> rows (80,32)
        y2s[...] = conv_rows(xp2, 320, 40, nl2, nr2, cw2_ref, cb2, cs2, ct2)
        for h2 in range(4):
            r0 = 80 * h2
            m = jnp.maximum(
                jnp.maximum(y2s[pl.ds(r0, 20, stride=2), :],
                            y2s[pl.ds(r0 + 1, 20, stride=2), :]),
                jnp.maximum(y2s[pl.ds(r0 + 40, 20, stride=2), :],
                            y2s[pl.ds(r0 + 41, 20, stride=2), :]))
            xp3[pl.ds(21 + 20 * h2, 20), :] = m

        # -------- stage 3: rows (80,32) -> conv/bn -> pool -> features (20,32)
        y3s[...] = conv_rows(xp3, 80, 20, nl3, nr3, cw3_ref, cb3, cs3, ct3)
        for h2 in range(2):
            r0 = 40 * h2
            m = jnp.maximum(
                jnp.maximum(y3s[pl.ds(r0, 10, stride=2), :],
                            y3s[pl.ds(r0 + 1, 10, stride=2), :]),
                jnp.maximum(y3s[pl.ds(r0 + 20, 10, stride=2), :],
                            y3s[pl.ds(r0 + 21, 10, stride=2), :]))
            feat[pl.ds(bi * 32 + 16 * h2, 10), :] = m
        return carry

    jax.lax.fori_loop(0, b_blk, body, 0)

    # -------- FC head on the whole batch block (fc_bn1/fc_bn2 folded offline)
    h = jnp.zeros((b_blk, 640), f32)
    for p in range(20):
        r0 = 16 * (p // 10) + (p % 10)
        lhs = feat[pl.ds(r0, b_blk, stride=32), :].astype(bf16)  # (b_blk, 32)
        h = h + jnp.dot(lhs, w1_ref[p], preferred_element_type=f32)
    h = jnp.maximum(h + b1_ref[...], 0.0)                        # relu(fc1)
    h = jnp.maximum(
        jnp.dot(h.astype(bf16), w2_ref[...], preferred_element_type=f32)
        + b2_ref[...], 0.0)                                      # relu(fc2*)
    out_ref[0] = (jnp.dot(h.astype(bf16), w3_ref[...],
                          preferred_element_type=f32) + b3_ref[...])


# ----------------------------------------------------------------------------
# Host-side wrapper
# ----------------------------------------------------------------------------
def _pick_batch_block(n):
    # biggest block that still leaves >=2 grid steps (keeps both v7x cores busy)
    for cand in (32, 16, 8, 4, 2):
        if n >= 2 * cand:
            return cand
    return 1


def _build_pallas_fn(n_pad, b_blk, num_classes):
    steps = n_pad // b_blk
    c2 = lambda shape: pl.BlockSpec(shape, lambda g: (0, 0))
    c3 = lambda shape: pl.BlockSpec(shape, lambda g: (0, 0, 0))
    in_specs = [
        pl.BlockSpec((b_blk, H0, W0), lambda g: (g, 0, 0)),       # x (lane-dense)
        c2((256, 54)),                                            # conv1 band mat
        c2((16, 1)), c2((16, 1)), c2((16, 1)),                    # conv1 b / bn
        c2((144, 32)), c2((1, 32)), c2((1, 32)), c2((1, 32)),     # conv2
        c2((288, 32)), c2((1, 32)), c2((1, 32)), c2((1, 32)),     # conv3
        c3((20, 32, 640)), c2((1, 640)),                          # fc1
        c2((640, 256)), c2((1, 256)),                             # fc2 (folded)
        c2((256, num_classes)), c2((1, num_classes)),             # fc3 (folded)
    ]
    out_specs = pl.BlockSpec((1, b_blk, num_classes), lambda g: (g, 0, 0))
    scratch_shapes = [
        pltpu.VMEM((54, 80), jnp.float32),        # xr: conv1 GEMM rhs (3 dx copies)
        pltpu.VMEM((256, 80), jnp.float32),       # y1s: conv1 output rows (h,c)
        pltpu.VMEM((80, 16), jnp.float32),        # tt: transposed pool-1 tile
        pltpu.VMEM((402, 16), jnp.float32),       # xp2: stage-2 padded rows
        pltpu.VMEM((320, 32), jnp.float32),       # y2s: conv2 output
        pltpu.VMEM((122, 32), jnp.float32),       # xp3: stage-3 padded rows
        pltpu.VMEM((80, 32), jnp.float32),        # y3s: conv3 output
        pltpu.VMEM((b_blk * 32, 32), jnp.float32),  # feat: pooled features
    ]
    return pl.pallas_call(
        _fused_kernel,
        out_shape=jax.ShapeDtypeStruct((steps, b_blk, num_classes),
                                       jnp.float32),
        grid_spec=pltpu.PrefetchScalarGridSpec(
            num_scalar_prefetch=0,
            grid=(steps,),
            in_specs=in_specs,
            out_specs=out_specs,
            scratch_shapes=scratch_shapes),
        compiler_params=pltpu.CompilerParams(
            dimension_semantics=("parallel",),
            vmem_limit_bytes=32 * 1024 * 1024),
    )


def pack_kernel_params(p):
    f32 = jnp.float32
    bf16 = jnp.bfloat16
    row = lambda v: jnp.asarray(v, f32).reshape(1, -1)
    col = lambda v: jnp.asarray(v, f32).reshape(-1, 1)

    # conv1 as a (256, 54) band matrix: L1[h*16 + c, dxi*18 + hp] = w1[dy,dx,c]
    # with hp = h + dy + 1 (padded row index), dxi = dx + 1.
    cw1 = np.asarray(p["cw1"], np.float32)            # (9, 16), tap=(dy+1)*3+(dx+1)
    l1 = np.zeros((256, 54), np.float32)
    for h in range(16):
        for dy in (-1, 0, 1):
            hp = h + dy + 1
            for dxi in range(3):
                t = (dy + 1) * 3 + dxi
                l1[h * 16:(h + 1) * 16, dxi * 18 + hp] = cw1[t, :]
    l1 = jnp.asarray(l1)

    # fc1 weight: torch flatten order (c*20 + h*10 + w) -> kernel order (p, c)
    w1k = (jnp.asarray(p["w1"], f32).reshape(32, 2, 10, 640)
           .transpose(1, 2, 0, 3).reshape(20, 32, 640))
    # Fold fc_bn1 / fc_bn2 (eval-mode scale/shift) into fc2 / fc3.
    w2k = jnp.asarray(p["w2"], f32) * p["s1"][:, None]
    b2k = p["b2"] + p["t1"] @ p["w2"]
    w3k = jnp.asarray(p["w3"], f32) * p["s2"][:, None]
    b3k = p["b3"] + p["t2"] @ p["w3"]

    return [
        l1, col(p["cb1"]), col(p["cs1"]), col(p["ct1"]),
        jnp.asarray(p["cw2"], f32).astype(bf16),
        row(p["cb2"]), row(p["cs2"]), row(p["ct2"]),
        jnp.asarray(p["cw3"], f32).astype(bf16),
        row(p["cb3"]), row(p["cs3"]), row(p["ct3"]),
        w1k.astype(bf16), row(p["b1"]),
        w2k.astype(bf16), row(b2k),
        w3k.astype(bf16), row(b3k),
    ]


def mfcc_cnn_forward(x_nchw, params):
    n = x_nchw.shape[0]
    num_classes = params["w3"].shape[-1]
    b_blk = _pick_batch_block(n)
    n_pad = ((n + b_blk - 1) // b_blk) * b_blk
    # Cin == 1: NCHW -> lane-dense (N, H, W).
    x = x_nchw.reshape(n, H0, W0).astype(jnp.float32)
    if n_pad != n:
        x = jnp.concatenate(
            [x, jnp.zeros((n_pad - n, H0, W0), jnp.float32)], axis=0)
    fn = _build_pallas_fn(n_pad, b_blk, num_classes)
    out = fn(x, *pack_kernel_params(params))
    return out.reshape(n_pad, num_classes)[:n]


# ----------------------------------------------------------------------------
# Deterministic parameter init (shapes from MFCCCNN.__init__); BN folded to
# eval-mode scale/shift from synthetic running stats.
# ----------------------------------------------------------------------------
def bn_fold(gamma, beta, mean, var):
    scale = gamma / jnp.sqrt(var + EPS)
    shift = beta - mean * scale
    return scale, shift


def init_params(key, num_classes=4):
    ks = iter(jax.random.split(key, 32))

    def conv_p(cin, cout):
        bound = 1.0 / np.sqrt(cin * 9)
        w = jax.random.uniform(next(ks), (3, 3, cin, cout), jnp.float32,
                               -bound, bound)
        b = jax.random.uniform(next(ks), (cout,), jnp.float32, -bound, bound)
        return w.reshape(9 * cin, cout), b

    def bn_p(c):
        gamma = jax.random.uniform(next(ks), (c,), jnp.float32, 0.5, 1.5)
        beta = jax.random.uniform(next(ks), (c,), jnp.float32, -0.1, 0.1)
        mean = jax.random.uniform(next(ks), (c,), jnp.float32, -0.1, 0.1)
        var = jax.random.uniform(next(ks), (c,), jnp.float32, 0.5, 1.5)
        return bn_fold(gamma, beta, mean, var)

    def fc_p(cin, cout):
        bound = 1.0 / np.sqrt(cin)
        w = jax.random.uniform(next(ks), (cin, cout), jnp.float32, -bound, bound)
        b = jax.random.uniform(next(ks), (cout,), jnp.float32, -bound, bound)
        return w, b

    p = {}
    p["cw1"], p["cb1"] = conv_p(1, 16);   p["cs1"], p["ct1"] = bn_p(16)
    p["cw2"], p["cb2"] = conv_p(16, 32);  p["cs2"], p["ct2"] = bn_p(32)
    p["cw3"], p["cb3"] = conv_p(32, 32);  p["cs3"], p["ct3"] = bn_p(32)
    p["w1"], p["b1"] = fc_p(2 * 10 * 32, 640);  p["s1"], p["t1"] = bn_p(640)
    p["w2"], p["b2"] = fc_p(640, 256);          p["s2"], p["t2"] = bn_p(256)
    p["w3"], p["b3"] = fc_p(256, num_classes)
    return p


# ----------------------------------------------------------------------------
# Pure-JAX reference (unfolded BN, torch C,H,W flatten order)
# ----------------------------------------------------------------------------
def im2col_3x3(x):
    N, H, W, C = x.shape
    xp = jnp.pad(x, ((0, 0), (1, 1), (1, 1), (0, 0)))
    cols = []
    for dy in range(3):
        for dx in range(3):
            cols.append(xp[:, dy:dy + H, dx:dx + W, :].reshape(N, H * W, C))
    return jnp.concatenate(cols, axis=-1)


def _conv_bn_pool_ref(x, w, b, s, t):
    N, H, W, _ = x.shape
    Cout = w.shape[-1]
    hp = jax.lax.Precision.HIGHEST
    y = jnp.einsum("npk,kd->npd", im2col_3x3(x), w, precision=hp) + b
    y = jnp.maximum(y, 0.0) * s + t
    y = y.reshape(N, H, W, Cout)
    return y.reshape(N, H // 2, 2, W // 2, 2, Cout).max(axis=(2, 4))


def mfcc_cnn_reference(x_nchw, p):
    hp = jax.lax.Precision.HIGHEST
    x = jnp.transpose(x_nchw, (0, 2, 3, 1))
    x = _conv_bn_pool_ref(x, p["cw1"], p["cb1"], p["cs1"], p["ct1"])
    x = _conv_bn_pool_ref(x, p["cw2"], p["cb2"], p["cs2"], p["ct2"])
    x = _conv_bn_pool_ref(x, p["cw3"], p["cb3"], p["cs3"], p["ct3"])
    x = jnp.transpose(x, (0, 3, 1, 2)).reshape(x.shape[0], -1)   # torch flatten
    h = (jnp.maximum(jnp.dot(x, p["w1"], precision=hp) + p["b1"], 0.0)
         * p["s1"] + p["t1"])
    h = (jnp.maximum(jnp.dot(h, p["w2"], precision=hp) + p["b2"], 0.0)
         * p["s2"] + p["t2"])
    return jnp.dot(h, p["w3"], precision=hp) + p["b3"]


if __name__ == "__main__":
    key = jax.random.PRNGKey(0)
    pkey, xkey = jax.random.split(key)
    params = init_params(pkey, num_classes=4)

    # NCHW input consistent with fc1 in_features = 2*10*32 after three pools.
    x = jax.random.normal(xkey, (2, 1, 16, 80), jnp.float32)

    logits = jax.block_until_ready(mfcc_cnn_forward(x, params))
    assert logits.shape == (2, 4), logits.shape
    assert bool(jnp.all(jnp.isfinite(logits)))

    ref = mfcc_cnn_reference(x, params)
    if not bool(jnp.allclose(logits, ref, rtol=5e-2, atol=5e-2)):
        raise AssertionError(
            "mismatch vs reference: max abs diff = "
            f"{float(jnp.max(jnp.abs(logits - ref)))}")

    print("KERNEL_OK")
</pallas_src>

<mosaic_0001>
module attributes {stable_mosaic.version = 11 : i64} {
  func.func @_fused_kernel(%arg0: i32, %arg1: memref<1x16x80xf32, #tpu.memory_space<vmem>>, %arg2: memref<256x54xf32, #tpu.memory_space<vmem>>, %arg3: memref<16x1xf32, #tpu.memory_space<vmem>>, %arg4: memref<16x1xf32, #tpu.memory_space<vmem>>, %arg5: memref<16x1xf32, #tpu.memory_space<vmem>>, %arg6: memref<144x32xbf16, #tpu.memory_space<vmem>>, %arg7: memref<1x32xf32, #tpu.memory_space<vmem>>, %arg8: memref<1x32xf32, #tpu.memory_space<vmem>>, %arg9: memref<1x32xf32, #tpu.memory_space<vmem>>, %arg10: memref<288x32xbf16, #tpu.memory_space<vmem>>, %arg11: memref<1x32xf32, #tpu.memory_space<vmem>>, %arg12: memref<1x32xf32, #tpu.memory_space<vmem>>, %arg13: memref<1x32xf32, #tpu.memory_space<vmem>>, %arg14: memref<20x32x640xbf16, #tpu.memory_space<vmem>>, %arg15: memref<1x640xf32, #tpu.memory_space<vmem>>, %arg16: memref<640x256xbf16, #tpu.memory_space<vmem>>, %arg17: memref<1x256xf32, #tpu.memory_space<vmem>>, %arg18: memref<256x4xbf16, #tpu.memory_space<vmem>>, %arg19: memref<1x4xf32, #tpu.memory_space<vmem>>, %arg20: memref<1x1x4xf32, #tpu.memory_space<vmem>>, %arg21: memref<54x80xf32, #tpu.memory_space<vmem>>, %arg22: memref<256x80xf32, #tpu.memory_space<vmem>>, %arg23: memref<80x16xf32, #tpu.memory_space<vmem>>, %arg24: memref<402x16xf32, #tpu.memory_space<vmem>>, %arg25: memref<320x32xf32, #tpu.memory_space<vmem>>, %arg26: memref<122x32xf32, #tpu.memory_space<vmem>>, %arg27: memref<80x32xf32, #tpu.memory_space<vmem>>, %arg28: memref<32x32xf32, #tpu.memory_space<vmem>>) attributes {dimension_semantics = [#tpu.dimension_semantics<parallel>], iteration_bounds = array<i64: 2>, scalar_prefetch = 0 : i64, scratch_operands = 8 : i64, tpu.core_type = #tpu.core_type<tc>, window_params = [{transform_indices = @transform_0, window_bounds = array<i64: 1, 16, 80>}, {pipeline_mode = #tpu.pipeline_mode<synchronous>, transform_indices = @transform_1, window_bounds = array<i64: 256, 54>}, {pipeline_mode = #tpu.pipeline_mode<synchronous>, transform_indices = @transform_2, window_bounds = array<i64: 16, 1>}, {pipeline_mode = #tpu.pipeline_mode<synchronous>, transform_indices = @transform_3, window_bounds = array<i64: 16, 1>}, {pipeline_mode = #tpu.pipeline_mode<synchronous>, transform_indices = @transform_4, window_bounds = array<i64: 16, 1>}, {pipeline_mode = #tpu.pipeline_mode<synchronous>, transform_indices = @transform_5, window_bounds = array<i64: 144, 32>}, {pipeline_mode = #tpu.pipeline_mode<synchronous>, transform_indices = @transform_6, window_bounds = array<i64: 1, 32>}, {pipeline_mode = #tpu.pipeline_mode<synchronous>, transform_indices = @transform_7, window_bounds = array<i64: 1, 32>}, {pipeline_mode = #tpu.pipeline_mode<synchronous>, transform_indices = @transform_8, window_bounds = array<i64: 1, 32>}, {pipeline_mode = #tpu.pipeline_mode<synchronous>, transform_indices = @transform_9, window_bounds = array<i64: 288, 32>}, {pipeline_mode = #tpu.pipeline_mode<synchronous>, transform_indices = @transform_10, window_bounds = array<i64: 1, 32>}, {pipeline_mode = #tpu.pipeline_mode<synchronous>, transform_indices = @transform_11, window_bounds = array<i64: 1, 32>}, {pipeline_mode = #tpu.pipeline_mode<synchronous>, transform_indices = @transform_12, window_bounds = array<i64: 1, 32>}, {pipeline_mode = #tpu.pipeline_mode<synchronous>, transform_indices = @transform_13, window_bounds = array<i64: 20, 32, 640>}, {pipeline_mode = #tpu.pipeline_mode<synchronous>, transform_indices = @transform_14, window_bounds = array<i64: 1, 640>}, {pipeline_mode = #tpu.pipeline_mode<synchronous>, transform_indices = @transform_15, window_bounds = array<i64: 640, 256>}, {pipeline_mode = #tpu.pipeline_mode<synchronous>, transform_indices = @transform_16, window_bounds = array<i64: 1, 256>}, {pipeline_mode = #tpu.pipeline_mode<synchronous>, transform_indices = @transform_17, window_bounds = array<i64: 256, 4>}, {pipeline_mode = #tpu.pipeline_mode<synchronous>, transform_indices = @transform_18, window_bounds = array<i64: 1, 4>}, {transform_indices = @transform_19, window_bounds = array<i64: 1, 1, 4>}]} {
    %c0 = arith.constant 0 : index
    %c0_0 = arith.constant 0 : index
    %0 = vector.load %arg3[%c0, %c0_0] : memref<16x1xf32, #tpu.memory_space<vmem>>, vector<16x1xf32>
    %c0_1 = arith.constant 0 : index
    %c0_2 = arith.constant 0 : index
    %1 = vector.load %arg4[%c0_1, %c0_2] : memref<16x1xf32, #tpu.memory_space<vmem>>, vector<16x1xf32>
    %c0_3 = arith.constant 0 : index
    %c0_4 = arith.constant 0 : index
    %2 = vector.load %arg5[%c0_3, %c0_4] : memref<16x1xf32, #tpu.memory_space<vmem>>, vector<16x1xf32>
    %c0_5 = arith.constant 0 : index
    %c0_6 = arith.constant 0 : index
    %3 = vector.load %arg7[%c0_5, %c0_6] : memref<1x32xf32, #tpu.memory_space<vmem>>, vector<1x32xf32>
    %c0_7 = arith.constant 0 : index
    %c0_8 = arith.constant 0 : index
    %4 = vector.load %arg8[%c0_7, %c0_8] : memref<1x32xf32, #tpu.memory_space<vmem>>, vector<1x32xf32>
    %c0_9 = arith.constant 0 : index
    %c0_10 = arith.constant 0 : index
    %5 = vector.load %arg9[%c0_9, %c0_10] : memref<1x32xf32, #tpu.memory_space<vmem>>, vector<1x32xf32>
    %c0_11 = arith.constant 0 : index
    %c0_12 = arith.constant 0 : index
    %6 = vector.load %arg11[%c0_11, %c0_12] : memref<1x32xf32, #tpu.memory_space<vmem>>, vector<1x32xf32>
    %c0_13 = arith.constant 0 : index
    %c0_14 = arith.constant 0 : index
    %7 = vector.load %arg12[%c0_13, %c0_14] : memref<1x32xf32, #tpu.memory_space<vmem>>, vector<1x32xf32>
    %c0_15 = arith.constant 0 : index
    %c0_16 = arith.constant 0 : index
    %8 = vector.load %arg13[%c0_15, %c0_16] : memref<1x32xf32, #tpu.memory_space<vmem>>, vector<1x32xf32>
    %9 = tpu.iota {dimensions = array<i32: 0>} : vector<320x1xi32>
    %c40_i32 = arith.constant 40 : i32
    %c0_i32 = arith.constant 0 : i32
    %10 = arith.cmpi eq, %c40_i32, %c0_i32 : i32
    %c1_i32 = arith.constant 1 : i32
    %11 = arith.select %10, %c1_i32, %c40_i32 : i32
    %12 = vector.broadcast %11 : i32 to vector<320x1xi32>
    %13 = arith.remsi %9, %12 : vector<320x1xi32>
    %c0_i32_17 = arith.constant 0 : i32
    %14 = vector.broadcast %c0_i32_17 : i32 to vector<320x1xi32>
    %15 = arith.cmpi ne, %13, %14 : vector<320x1xi32>
    %c0_i32_18 = arith.constant 0 : i32
    %16 = vector.broadcast %c0_i32_18 : i32 to vector<320x1xi32>
    %17 = arith.cmpi slt, %13, %16 : vector<320x1xi32>
    %c0_i32_19 = arith.constant 0 : i32
    %18 = arith.cmpi slt, %11, %c0_i32_19 : i32
    %19 = vector.broadcast %18 : i1 to vector<320x1xi1>
    %20 = vector.broadcast %19 : vector<320x1xi1> to vector<320x1xi1>
    %21 = arith.xori %17, %20 : vector<320x1xi1>
    %22 = arith.andi %21, %15 : vector<320x1xi1>
    %23 = vector.broadcast %11 : i32 to vector<320x1xi32>
    %24 = arith.addi %13, %23 : vector<320x1xi32>
    %25 = arith.select %22, %24, %13 : vector<320x1xi1>, vector<320x1xi32>
    %c0_i32_20 = arith.constant 0 : i32
    %26 = vector.broadcast %c0_i32_20 : i32 to vector<320x1xi32>
    %27 = arith.cmpi sgt, %25, %26 : vector<320x1xi32>
    %c39_i32 = arith.constant 39 : i32
    %28 = vector.broadcast %c39_i32 : i32 to vector<320x1xi32>
    %29 = arith.cmpi slt, %25, %28 : vector<320x1xi32>
    %30 = tpu.iota {dimensions = array<i32: 0>} : vector<80x1xi32>
    %c20_i32 = arith.constant 20 : i32
    %c0_i32_21 = arith.constant 0 : i32
    %31 = arith.cmpi eq, %c20_i32, %c0_i32_21 : i32
    %c1_i32_22 = arith.constant 1 : i32
    %32 = arith.select %31, %c1_i32_22, %c20_i32 : i32
    %33 = vector.broadcast %32 : i32 to vector<80x1xi32>
    %34 = arith.remsi %30, %33 : vector<80x1xi32>
    %c0_i32_23 = arith.constant 0 : i32
    %35 = vector.broadcast %c0_i32_23 : i32 to vector<80x1xi32>
    %36 = arith.cmpi ne, %34, %35 : vector<80x1xi32>
    %c0_i32_24 = arith.constant 0 : i32
    %37 = vector.broadcast %c0_i32_24 : i32 to vector<80x1xi32>
    %38 = arith.cmpi slt, %34, %37 : vector<80x1xi32>
    %c0_i32_25 = arith.constant 0 : i32
    %39 = arith.cmpi slt, %32, %c0_i32_25 : i32
    %40 = vector.broadcast %39 : i1 to vector<80x1xi1>
    %41 = vector.broadcast %40 : vector<80x1xi1> to vector<80x1xi1>
    %42 = arith.xori %38, %41 : vector<80x1xi1>
    %43 = arith.andi %42, %36 : vector<80x1xi1>
    %44 = vector.broadcast %32 : i32 to vector<80x1xi32>
    %45 = arith.addi %34, %44 : vector<80x1xi32>
    %46 = arith.select %43, %45, %34 : vector<80x1xi1>, vector<80x1xi32>
    %c0_i32_26 = arith.constant 0 : i32
    %47 = vector.broadcast %c0_i32_26 : i32 to vector<80x1xi32>
    %48 = arith.cmpi sgt, %46, %47 : vector<80x1xi32>
    %c19_i32 = arith.constant 19 : i32
    %49 = vector.broadcast %c19_i32 : i32 to vector<80x1xi32>
    %50 = arith.cmpi slt, %46, %49 : vector<80x1xi32>
    %cst = arith.constant 0.000000e+00 : f32
    %51 = vector.broadcast %cst : f32 to vector<54x80xf32>
    %c0_27 = arith.constant 0 : index
    %c0_28 = arith.constant 0 : index
    %52 = vector.load %arg21[%c0_27, %c0_28] : memref<54x80xf32, #tpu.memory_space<vmem>>, vector<54x80xf32>
    tpu.vector_store %arg21[%c0_27, %c0_28], %51 {strides = array<i32>} : memref<54x80xf32, #tpu.memory_space<vmem>>, vector<54x80xf32>,
    %cst_29 = arith.constant 0.000000e+00 : f32
    %53 = vector.broadcast %cst_29 : f32 to vector<402x16xf32>
    %c0_30 = arith.constant 0 : index
    %c0_31 = arith.constant 0 : index
    %54 = vector.load %arg24[%c0_30, %c0_31] : memref<402x16xf32, #tpu.memory_space<vmem>>, vector<402x16xf32>
    tpu.vector_store %arg24[%c0_30, %c0_31], %53 {strides = array<i32>} : memref<402x16xf32, #tpu.memory_space<vmem>>, vector<402x16xf32>,
    %cst_32 = arith.constant 0.000000e+00 : f32
    %55 = vector.broadcast %cst_32 : f32 to vector<122x32xf32>
    %c0_33 = arith.constant 0 : index
    %c0_34 = arith.constant 0 : index
    %56 = vector.load %arg26[%c0_33, %c0_34] : memref<122x32xf32, #tpu.memory_space<vmem>>, vector<122x32xf32>
    tpu.vector_store %arg26[%c0_33, %c0_34], %55 {strides = array<i32>} : memref<122x32xf32, #tpu.memory_space<vmem>>, vector<122x32xf32>,
    %c0_i32_35 = arith.constant 0 : i32
    %57 = arith.index_cast %c0_i32_35 : i32 to index
    %c0_36 = arith.constant 0 : index
    %c0_37 = arith.constant 0 : index
    %58 = vector.load %arg1[%57, %c0_36, %c0_37] : memref<1x16x80xf32, #tpu.memory_space<vmem>>, vector<1x16x80xf32>
    %59 = vector.shape_cast %58 : vector<1x16x80xf32> to vector<16x80xf32>
    %cst_38 = arith.constant 0.000000e+00 : f32
    %60 = vector.broadcast %cst_38 : f32 to vector<16x1xf32>
    %61 = vector.extract_strided_slice %59 {offsets = [0, 0], sizes = [16, 79], strides = [1, 1]} : vector<16x80xf32> to vector<16x79xf32>
    %62 = tpu.concatenate %60, %61 in 1 : vector<16x1xf32>, vector<16x79xf32> -> vector<16x80xf32>
    %63 = vector.extract_strided_slice %59 {offsets = [0, 1], sizes = [16, 79], strides = [1, 1]} : vector<16x80xf32> to vector<16x79xf32>
    %64 = tpu.concatenate %63, %60 in 1 : vector<16x79xf32>, vector<16x1xf32> -> vector<16x80xf32>
    %c1 = arith.constant 1 : index
    %c0_39 = arith.constant 0 : index
    %65 = vector.load %arg21[%c1, %c0_39] : memref<54x80xf32, #tpu.memory_space<vmem>>, vector<16x80xf32>
    tpu.vector_store %arg21[%c1, %c0_39], %62 {strides = array<i32>} : memref<54x80xf32, #tpu.memory_space<vmem>>, vector<16x80xf32>,
    %c19 = arith.constant 19 : index
    %c0_40 = arith.constant 0 : index
    %66 = vector.load %arg21[%c19, %c0_40] : memref<54x80xf32, #tpu.memory_space<vmem>>, vector<16x80xf32>
    tpu.vector_store %arg21[%c19, %c0_40], %59 {strides = array<i32>} : memref<54x80xf32, #tpu.memory_space<vmem>>, vector<16x80xf32>,
    %c37 = arith.constant 37 : index
    %c0_41 = arith.constant 0 : index
    %67 = vector.load %arg21[%c37, %c0_41] : memref<54x80xf32, #tpu.memory_space<vmem>>, vector<16x80xf32>
    tpu.vector_store %arg21[%c37, %c0_41], %64 {strides = array<i32>} : memref<54x80xf32, #tpu.memory_space<vmem>>, vector<16x80xf32>,
    %c0_42 = arith.constant 0 : index
    %c0_43 = arith.constant 0 : index
    %68 = vector.load %arg2[%c0_42, %c0_43] : memref<256x54xf32, #tpu.memory_space<vmem>>, vector<256x54xf32>
    %c0_44 = arith.constant 0 : index
    %c0_45 = arith.constant 0 : index
    %69 = vector.load %arg21[%c0_44, %c0_45] : memref<54x80xf32, #tpu.memory_space<vmem>>, vector<54x80xf32>
    %cst_46 = arith.constant dense<0.000000e+00> : vector<256x80xf32>
    %70 = tpu.matmul %68, %69, %cst_46 {dimension_numbers = #tpu.dot_dimension_numbers<[1], [0], [0], [1], [0, 0, 1, 1], [], []>} : vector<256x54xf32>, vector<54x80xf32>, vector<256x80xf32> -> vector<256x80xf32>
    %c0_47 = arith.constant 0 : index
    %c0_48 = arith.constant 0 : index
    %71 = vector.load %arg22[%c0_47, %c0_48] : memref<256x80xf32, #tpu.memory_space<vmem>>, vector<256x80xf32>
    tpu.vector_store %arg22[%c0_47, %c0_48], %70 {strides = array<i32>} : memref<256x80xf32, #tpu.memory_space<vmem>>, vector<256x80xf32>,
    %c0_49 = arith.constant 0 : index
    %c0_50 = arith.constant 0 : index
    %72 = vector.load %arg22[%c0_49, %c0_50] : memref<256x80xf32, #tpu.memory_space<vmem>>, vector<16x80xf32>
    %c16 = arith.constant 16 : index
    %c0_51 = arith.constant 0 : index
    %73 = vector.load %arg22[%c16, %c0_51] : memref<256x80xf32, #tpu.memory_space<vmem>>, vector<16x80xf32>
    %74 = vector.broadcast %0 : vector<16x1xf32> to vector<16x80xf32>
    %75 = arith.addf %72, %74 : vector<16x80xf32>
    %cst_52 = arith.constant 0.000000e+00 : f32
    %76 = vector.broadcast %cst_52 : f32 to vector<16x80xf32>
    %77 = arith.maximumf %75, %76 : vector<16x80xf32>
    %78 = vector.broadcast %1 : vector<16x1xf32> to vector<16x80xf32>
    %79 = arith.mulf %77, %78 : vector<16x80xf32>
    %80 = vector.broadcast %2 : vector<16x1xf32> to vector<16x80xf32>
    %81 = arith.addf %79, %80 : vector<16x80xf32>
    %82 = vector.broadcast %0 : vector<16x1xf32> to vector<16x80xf32>
    %83 = arith.addf %73, %82 : vector<16x80xf32>
    %cst_53 = arith.constant 0.000000e+00 : f32
    %84 = vector.broadcast %cst_53 : f32 to vector<16x80xf32>
    %85 = arith.maximumf %83, %84 : vector<16x80xf32>
    %86 = vector.broadcast %1 : vector<16x1xf32> to vector<16x80xf32>
    %87 = arith.mulf %85, %86 : vector<16x80xf32>
    %88 = vector.broadcast %2 : vector<16x1xf32> to vector<16x80xf32>
    %89 = arith.addf %87, %88 : vector<16x80xf32>
    %90 = arith.maximumf %81, %89 : vector<16x80xf32>
    %91 = tpu.transpose %90, [1, 0] : vector<16x80xf32> -> vector<80x16xf32>
    %c0_54 = arith.constant 0 : index
    %c0_55 = arith.constant 0 : index
    %92 = vector.load %arg23[%c0_54, %c0_55] : memref<80x16xf32, #tpu.memory_space<vmem>>, vector<80x16xf32>
    tpu.vector_store %arg23[%c0_54, %c0_55], %91 {strides = array<i32>} : memref<80x16xf32, #tpu.memory_space<vmem>>, vector<80x16xf32>,
    %c0_56 = arith.constant 0 : index
    %c0_57 = arith.constant 0 : index
    %93 = tpu.strided_load %arg23[%c0_56, %c0_57] {strides = array<i32: 2, 1>} : memref<80x16xf32, #tpu.memory_space<vmem>>, vector<40x16xf32>
    %c1_58 = arith.constant 1 : index
    %c0_59 = arith.constant 0 : index
    %94 = tpu.strided_load %arg23[%c1_58, %c0_59] {strides = array<i32: 2, 1>} : memref<80x16xf32, #tpu.memory_space<vmem>>, vector<40x16xf32>
    %95 = arith.maximumf %93, %94 : vector<40x16xf32>
    %c41 = arith.constant 41 : index
    %c0_60 = arith.constant 0 : index
    %96 = vector.load %arg24[%c41, %c0_60] : memref<402x16xf32, #tpu.memory_space<vmem>>, vector<40x16xf32>
    tpu.vector_store %arg24[%c41, %c0_60], %95 {strides = array<i32>} : memref<402x16xf32, #tpu.memory_space<vmem>>, vector<40x16xf32>,
    %c32 = arith.constant 32 : index
    %c0_61 = arith.constant 0 : index
    %97 = vector.load %arg22[%c32, %c0_61] : memref<256x80xf32, #tpu.memory_space<vmem>>, vector<16x80xf32>
    %c48 = arith.constant 48 : index
    %c0_62 = arith.constant 0 : index
    %98 = vector.load %arg22[%c48, %c0_62] : memref<256x80xf32, #tpu.memory_space<vmem>>, vector<16x80xf32>
    %99 = vector.broadcast %0 : vector<16x1xf32> to vector<16x80xf32>
    %100 = arith.addf %97, %99 : vector<16x80xf32>
    %cst_63 = arith.constant 0.000000e+00 : f32
    %101 = vector.broadcast %cst_63 : f32 to vector<16x80xf32>
    %102 = arith.maximumf %100, %101 : vector<16x80xf32>
    %103 = vector.broadcast %1 : vector<16x1xf32> to vector<16x80xf32>
    %104 = arith.mulf %102, %103 : vector<16x80xf32>
    %105 = vector.broadcast %2 : vector<16x1xf32> to vector<16x80xf32>
    %106 = arith.addf %104, %105 : vector<16x80xf32>
    %107 = vector.broadcast %0 : vector<16x1xf32> to vector<16x80xf32>
    %108 = arith.addf %98, %107 : vector<16x80xf32>
    %cst_64 = arith.constant 0.000000e+00 : f32
    %109 = vector.broadcast %cst_64 : f32 to vector<16x80xf32>
    %110 = arith.maximumf %108, %109 : vector<16x80xf32>
    %111 = vector.broadcast %1 : vector<16x1xf32> to vector<16x80xf32>
    %112 = arith.mulf %110, %111 : vector<16x80xf32>
    %113 = vector.broadcast %2 : vector<16x1xf32> to vector<16x80xf32>
    %114 = arith.addf %112, %113 : vector<16x80xf32>
    %115 = arith.maximumf %106, %114 : vector<16x80xf32>
    %116 = tpu.transpose %115, [1, 0] : vector<16x80xf32> -> vector<80x16xf32>
    %c0_65 = arith.constant 0 : index
    %c0_66 = arith.constant 0 : index
    %117 = vector.load %arg23[%c0_65, %c0_66] : memref<80x16xf32, #tpu.memory_space<vmem>>, vector<80x16xf32>
    tpu.vector_store %arg23[%c0_65, %c0_66], %116 {strides = array<i32>} : memref<80x16xf32, #tpu.memory_space<vmem>>, vector<80x16xf32>,
    %c0_67 = arith.constant 0 : index
    %c0_68 = arith.constant 0 : index
    %118 = tpu.strided_load %arg23[%c0_67, %c0_68] {strides = array<i32: 2, 1>} : memref<80x16xf32, #tpu.memory_space<vmem>>, vector<40x16xf32>
    %c1_69 = arith.constant 1 : index
    %c0_70 = arith.constant 0 : index
    %119 = tpu.strided_load %arg23[%c1_69, %c0_70] {strides = array<i32: 2, 1>} : memref<80x16xf32, #tpu.memory_space<vmem>>, vector<40x16xf32>
    %120 = arith.maximumf %118, %119 : vector<40x16xf32>
    %c81 = arith.constant 81 : index
    %c0_71 = arith.constant 0 : index
    %121 = vector.load %arg24[%c81, %c0_71] : memref<402x16xf32, #tpu.memory_space<vmem>>, vector<40x16xf32>
    tpu.vector_store %arg24[%c81, %c0_71], %120 {strides = array<i32>} : memref<402x16xf32, #tpu.memory_space<vmem>>, vector<40x16xf32>,
    %c64 = arith.constant 64 : index
    %c0_72 = arith.constant 0 : index
    %122 = vector.load %arg22[%c64, %c0_72] : memref<256x80xf32, #tpu.memory_space<vmem>>, vector<16x80xf32>
    %c80 = arith.constant 80 : index
    %c0_73 = arith.constant 0 : index
    %123 = vector.load %arg22[%c80, %c0_73] : memref<256x80xf32, #tpu.memory_space<vmem>>, vector<16x80xf32>
    %124 = vector.broadcast %0 : vector<16x1xf32> to vector<16x80xf32>
    %125 = arith.addf %122, %124 : vector<16x80xf32>
    %cst_74 = arith.constant 0.000000e+00 : f32
    %126 = vector.broadcast %cst_74 : f32 to vector<16x80xf32>
    %127 = arith.maximumf %125, %126 : vector<16x80xf32>
    %128 = vector.broadcast %1 : vector<16x1xf32> to vector<16x80xf32>
    %129 = arith.mulf %127, %128 : vector<16x80xf32>
    %130 = vector.broadcast %2 : vector<16x1xf32> to vector<16x80xf32>
    %131 = arith.addf %129, %130 : vector<16x80xf32>
    %132 = vector.broadcast %0 : vector<16x1xf32> to vector<16x80xf32>
    %133 = arith.addf %123, %132 : vector<16x80xf32>
    %cst_75 = arith.constant 0.000000e+00 : f32
    %134 = vector.broadcast %cst_75 : f32 to vector<16x80xf32>
    %135 = arith.maximumf %133, %134 : vector<16x80xf32>
    %136 = vector.broadcast %1 : vector<16x1xf32> to vector<16x80xf32>
    %137 = arith.mulf %135, %136 : vector<16x80xf32>
    %138 = vector.broadcast %2 : vector<16x1xf32> to vector<16x80xf32>
    %139 = arith.addf %137, %138 : vector<16x80xf32>
    %140 = arith.maximumf %131, %139 : vector<16x80xf32>
    %141 = tpu.transpose %140, [1, 0] : vector<16x80xf32> -> vector<80x16xf32>
    %c0_76 = arith.constant 0 : index
    %c0_77 = arith.constant 0 : index
    %142 = vector.load %arg23[%c0_76, %c0_77] : memref<80x16xf32, #tpu.memory_space<vmem>>, vector<80x16xf32>
    tpu.vector_store %arg23[%c0_76, %c0_77], %141 {strides = array<i32>} : memref<80x16xf32, #tpu.memory_space<vmem>>, vector<80x16xf32>,
    %c0_78 = arith.constant 0 : index
    %c0_79 = arith.constant 0 : index
    %143 = tpu.strided_load %arg23[%c0_78, %c0_79] {strides = array<i32: 2, 1>} : memref<80x16xf32, #tpu.memory_space<vmem>>, vector<40x16xf32>
    %c1_80 = arith.constant 1 : index
    %c0_81 = arith.constant 0 : index
    %144 = tpu.strided_load %arg23[%c1_80, %c0_81] {strides = array<i32: 2, 1>} : memref<80x16xf32, #tpu.memory_space<vmem>>, vector<40x16xf32>
    %145 = arith.maximumf %143, %144 : vector<40x16xf32>
    %c121 = arith.constant 121 : index
    %c0_82 = arith.constant 0 : index
    %146 = vector.load %arg24[%c121, %c0_82] : memref<402x16xf32, #tpu.memory_space<vmem>>, vector<40x16xf32>
    tpu.vector_store %arg24[%c121, %c0_82], %145 {strides = array<i32>} : memref<402x16xf32, #tpu.memory_space<vmem>>, vector<40x16xf32>,
    %c96 = arith.constant 96 : index
    %c0_83 = arith.constant 0 : index
    %147 = vector.load %arg22[%c96, %c0_83] : memref<256x80xf32, #tpu.memory_space<vmem>>, vector<16x80xf32>
    %c112 = arith.constant 112 : index
    %c0_84 = arith.constant 0 : index
    %148 = vector.load %arg22[%c112, %c0_84] : memref<256x80xf32, #tpu.memory_space<vmem>>, vector<16x80xf32>
    %149 = vector.broadcast %0 : vector<16x1xf32> to vector<16x80xf32>
    %150 = arith.addf %147, %149 : vector<16x80xf32>
    %cst_85 = arith.constant 0.000000e+00 : f32
    %151 = vector.broadcast %cst_85 : f32 to vector<16x80xf32>
    %152 = arith.maximumf %150, %151 : vector<16x80xf32>
    %153 = vector.broadcast %1 : vector<16x1xf32> to vector<16x80xf32>
    %154 = arith.mulf %152, %153 : vector<16x80xf32>
    %155 = vector.broadcast %2 : vector<16x1xf32> to vector<16x80xf32>
    %156 = arith.addf %154, %155 : vector<16x80xf32>
    %157 = vector.broadcast %0 : vector<16x1xf32> to vector<16x80xf32>
    %158 = arith.addf %148, %157 : vector<16x80xf32>
    %cst_86 = arith.constant 0.000000e+00 : f32
    %159 = vector.broadcast %cst_86 : f32 to vector<16x80xf32>
    %160 = arith.maximumf %158, %159 : vector<16x80xf32>
    %161 = vector.broadcast %1 : vector<16x1xf32> to vector<16x80xf32>
    %162 = arith.mulf %160, %161 : vector<16x80xf32>
    %163 = vector.broadcast %2 : vector<16x1xf32> to vector<16x80xf32>
    %164 = arith.addf %162, %163 : vector<16x80xf32>
    %165 = arith.maximumf %156, %164 : vector<16x80xf32>
    %166 = tpu.transpose %165, [1, 0] : vector<16x80xf32> -> vector<80x16xf32>
    %c0_87 = arith.constant 0 : index
    %c0_88 = arith.constant 0 : index
    %167 = vector.load %arg23[%c0_87, %c0_88] : memref<80x16xf32, #tpu.memory_space<vmem>>, vector<80x16xf32>
    tpu.vector_store %arg23[%c0_87, %c0_88], %166 {strides = array<i32>} : memref<80x16xf32, #tpu.memory_space<vmem>>, vector<80x16xf32>,
    %c0_89 = arith.constant 0 : index
    %c0_90 = arith.constant 0 : index
    %168 = tpu.strided_load %arg23[%c0_89, %c0_90] {strides = array<i32: 2, 1>} : memref<80x16xf32, #tpu.memory_space<vmem>>, vector<40x16xf32>
    %c1_91 = arith.constant 1 : index
    %c0_92 = arith.constant 0 : index
    %169 = tpu.strided_load %arg23[%c1_91, %c0_92] {strides = array<i32: 2, 1>} : memref<80x16xf32, #tpu.memory_space<vmem>>, vector<40x16xf32>
    %170 = arith.maximumf %168, %169 : vector<40x16xf32>
    %c161 = arith.constant 161 : index
    %c0_93 = arith.constant 0 : index
    %171 = vector.load %arg24[%c161, %c0_93] : memref<402x16xf32, #tpu.memory_space<vmem>>, vector<40x16xf32>
    tpu.vector_store %arg24[%c161, %c0_93], %170 {strides = array<i32>} : memref<402x16xf32, #tpu.memory_space<vmem>>, vector<40x16xf32>,
    %c128 = arith.constant 128 : index
    %c0_94 = arith.constant 0 : index
    %172 = vector.load %arg22[%c128, %c0_94] : memref<256x80xf32, #tpu.memory_space<vmem>>, vector<16x80xf32>
    %c144 = arith.constant 144 : index
    %c0_95 = arith.constant 0 : index
    %173 = vector.load %arg22[%c144, %c0_95] : memref<256x80xf32, #tpu.memory_space<vmem>>, vector<16x80xf32>
    %174 = vector.broadcast %0 : vector<16x1xf32> to vector<16x80xf32>
    %175 = arith.addf %172, %174 : vector<16x80xf32>
    %cst_96 = arith.constant 0.000000e+00 : f32
    %176 = vector.broadcast %cst_96 : f32 to vector<16x80xf32>
    %177 = arith.maximumf %175, %176 : vector<16x80xf32>
    %178 = vector.broadcast %1 : vector<16x1xf32> to vector<16x80xf32>
    %179 = arith.mulf %177, %178 : vector<16x80xf32>
    %180 = vector.broadcast %2 : vector<16x1xf32> to vector<16x80xf32>
    %181 = arith.addf %179, %180 : vector<16x80xf32>
    %182 = vector.broadcast %0 : vector<16x1xf32> to vector<16x80xf32>
    %183 = arith.addf %173, %182 : vector<16x80xf32>
    %cst_97 = arith.constant 0.000000e+00 : f32
    %184 = vector.broadcast %cst_97 : f32 to vector<16x80xf32>
    %185 = arith.maximumf %183, %184 : vector<16x80xf32>
    %186 = vector.broadcast %1 : vector<16x1xf32> to vector<16x80xf32>
    %187 = arith.mulf %185, %186 : vector<16x80xf32>
    %188 = vector.broadcast %2 : vector<16x1xf32> to vector<16x80xf32>
    %189 = arith.addf %187, %188 : vector<16x80xf32>
    %190 = arith.maximumf %181, %189 : vector<16x80xf32>
    %191 = tpu.transpose %190, [1, 0] : vector<16x80xf32> -> vector<80x16xf32>
    %c0_98 = arith.constant 0 : index
    %c0_99 = arith.constant 0 : index
    %192 = vector.load %arg23[%c0_98, %c0_99] : memref<80x16xf32, #tpu.memory_space<vmem>>, vector<80x16xf32>
    tpu.vector_store %arg23[%c0_98, %c0_99], %191 {strides = array<i32>} : memref<80x16xf32, #tpu.memory_space<vmem>>, vector<80x16xf32>,
    %c0_100 = arith.constant 0 : index
    %c0_101 = arith.constant 0 : index
    %193 = tpu.strided_load %arg23[%c0_100, %c0_101] {strides = array<i32: 2, 1>} : memref<80x16xf32, #tpu.memory_space<vmem>>, vector<40x16xf32>
    %c1_102 = arith.constant 1 : index
    %c0_103 = arith.constant 0 : index
    %194 = tpu.strided_load %arg23[%c1_102, %c0_103] {strides = array<i32: 2, 1>} : memref<80x16xf32, #tpu.memory_space<vmem>>, vector<40x16xf32>
    %195 = arith.maximumf %193, %194 : vector<40x16xf32>
    %c201 = arith.constant 201 : index
    %c0_104 = arith.constant 0 : index
    %196 = vector.load %arg24[%c201, %c0_104] : memref<402x16xf32, #tpu.memory_space<vmem>>, vector<40x16xf32>
    tpu.vector_store %arg24[%c201, %c0_104], %195 {strides = array<i32>} : memref<402x16xf32, #tpu.memory_space<vmem>>, vector<40x16xf32>,
    %c160 = arith.constant 160 : index
    %c0_105 = arith.constant 0 : index
    %197 = vector.load %arg22[%c160, %c0_105] : memref<256x80xf32, #tpu.memory_space<vmem>>, vector<16x80xf32>
    %c176 = arith.constant 176 : index
    %c0_106 = arith.constant 0 : index
    %198 = vector.load %arg22[%c176, %c0_106] : memref<256x80xf32, #tpu.memory_space<vmem>>, vector<16x80xf32>
    %199 = vector.broadcast %0 : vector<16x1xf32> to vector<16x80xf32>
    %200 = arith.addf %197, %199 : vector<16x80xf32>
    %cst_107 = arith.constant 0.000000e+00 : f32
    %201 = vector.broadcast %cst_107 : f32 to vector<16x80xf32>
    %202 = arith.maximumf %200, %201 : vector<16x80xf32>
    %203 = vector.broadcast %1 : vector<16x1xf32> to vector<16x80xf32>
    %204 = arith.mulf %202, %203 : vector<16x80xf32>
    %205 = vector.broadcast %2 : vector<16x1xf32> to vector<16x80xf32>
    %206 = arith.addf %204, %205 : vector<16x80xf32>
    %207 = vector.broadcast %0 : vector<16x1xf32> to vector<16x80xf32>
    %208 = arith.addf %198, %207 : vector<16x80xf32>
    %cst_108 = arith.constant 0.000000e+00 : f32
    %209 = vector.broadcast %cst_108 : f32 to vector<16x80xf32>
    %210 = arith.maximumf %208, %209 : vector<16x80xf32>
    %211 = vector.broadcast %1 : vector<16x1xf32> to vector<16x80xf32>
    %212 = arith.mulf %210, %211 : vector<16x80xf32>
    %213 = vector.broadcast %2 : vector<16x1xf32> to vector<16x80xf32>
    %214 = arith.addf %212, %213 : vector<16x80xf32>
    %215 = arith.maximumf %206, %214 : vector<16x80xf32>
    %216 = tpu.transpose %215, [1, 0] : vector<16x80xf32> -> vector<80x16xf32>
    %c0_109 = arith.constant 0 : index
    %c0_110 = arith.constant 0 : index
    %217 = vector.load %arg23[%c0_109, %c0_110] : memref<80x16xf32, #tpu.memory_space<vmem>>, vector<80x16xf32>
    tpu.vector_store %arg23[%c0_109, %c0_110], %216 {strides = array<i32>} : memref<80x16xf32, #tpu.memory_space<vmem>>, vector<80x16xf32>,
    %c0_111 = arith.constant 0 : index
    %c0_112 = arith.constant 0 : index
    %218 = tpu.strided_load %arg23[%c0_111, %c0_112] {strides = array<i32: 2, 1>} : memref<80x16xf32, #tpu.memory_space<vmem>>, vector<40x16xf32>
    %c1_113 = arith.constant 1 : index
    %c0_114 = arith.constant 0 : index
    %219 = tpu.strided_load %arg23[%c1_113, %c0_114] {strides = array<i32: 2, 1>} : memref<80x16xf32, #tpu.memory_space<vmem>>, vector<40x16xf32>
    %220 = arith.maximumf %218, %219 : vector<40x16xf32>
    %c241 = arith.constant 241 : index
    %c0_115 = arith.constant 0 : index
    %221 = vector.load %arg24[%c241, %c0_115] : memref<402x16xf32, #tpu.memory_space<vmem>>, vector<40x16xf32>
    tpu.vector_store %arg24[%c241, %c0_115], %220 {strides = array<i32>} : memref<402x16xf32, #tpu.memory_space<vmem>>, vector<40x16xf32>,
    %c192 = arith.constant 192 : index
    %c0_116 = arith.constant 0 : index
    %222 = vector.load %arg22[%c192, %c0_116] : memref<256x80xf32, #tpu.memory_space<vmem>>, vector<16x80xf32>
    %c208 = arith.constant 208 : index
    %c0_117 = arith.constant 0 : index
    %223 = vector.load %arg22[%c208, %c0_117] : memref<256x80xf32, #tpu.memory_space<vmem>>, vector<16x80xf32>
    %224 = vector.broadcast %0 : vector<16x1xf32> to vector<16x80xf32>
    %225 = arith.addf %222, %224 : vector<16x80xf32>
    %cst_118 = arith.constant 0.000000e+00 : f32
    %226 = vector.broadcast %cst_118 : f32 to vector<16x80xf32>
    %227 = arith.maximumf %225, %226 : vector<16x80xf32>
    %228 = vector.broadcast %1 : vector<16x1xf32> to vector<16x80xf32>
    %229 = arith.mulf %227, %228 : vector<16x80xf32>
    %230 = vector.broadcast %2 : vector<16x1xf32> to vector<16x80xf32>
    %231 = arith.addf %229, %230 : vector<16x80xf32>
    %232 = vector.broadcast %0 : vector<16x1xf32> to vector<16x80xf32>
    %233 = arith.addf %223, %232 : vector<16x80xf32>
    %cst_119 = arith.constant 0.000000e+00 : f32
    %234 = vector.broadcast %cst_119 : f32 to vector<16x80xf32>
    %235 = arith.maximumf %233, %234 : vector<16x80xf32>
    %236 = vector.broadcast %1 : vector<16x1xf32> to vector<16x80xf32>
    %237 = arith.mulf %235, %236 : vector<16x80xf32>
    %238 = vector.broadcast %2 : vector<16x1xf32> to vector<16x80xf32>
    %239 = arith.addf %237, %238 : vector<16x80xf32>
    %240 = arith.maximumf %231, %239 : vector<16x80xf32>
    %241 = tpu.transpose %240, [1, 0] : vector<16x80xf32> -> vector<80x16xf32>
    %c0_120 = arith.constant 0 : index
    %c0_121 = arith.constant 0 : index
    %242 = vector.load %arg23[%c0_120, %c0_121] : memref<80x16xf32, #tpu.memory_space<vmem>>, vector<80x16xf32>
    tpu.vector_store %arg23[%c0_120, %c0_121], %241 {strides = array<i32>} : memref<80x16xf32, #tpu.memory_space<vmem>>, vector<80x16xf32>,
    %c0_122 = arith.constant 0 : index
    %c0_123 = arith.constant 0 : index
    %243 = tpu.strided_load %arg23[%c0_122, %c0_123] {strides = array<i32: 2, 1>} : memref<80x16xf32, #tpu.memory_space<vmem>>, vector<40x16xf32>
    %c1_124 = arith.constant 1 : index
    %c0_125 = arith.constant 0 : index
    %244 = tpu.strided_load %arg23[%c1_124, %c0_125] {strides = array<i32: 2, 1>} : memref<80x16xf32, #tpu.memory_space<vmem>>, vector<40x16xf32>
    %245 = arith.maximumf %243, %244 : vector<40x16xf32>
    %c281 = arith.constant 281 : index
    %c0_126 = arith.constant 0 : index
    %246 = vector.load %arg24[%c281, %c0_126] : memref<402x16xf32, #tpu.memory_space<vmem>>, vector<40x16xf32>
    tpu.vector_store %arg24[%c281, %c0_126], %245 {strides = array<i32>} : memref<402x16xf32, #tpu.memory_space<vmem>>, vector<40x16xf32>,
    %c224 = arith.constant 224 : index
    %c0_127 = arith.constant 0 : index
    %247 = vector.load %arg22[%c224, %c0_127] : memref<256x80xf32, #tpu.memory_space<vmem>>, vector<16x80xf32>
    %c240 = arith.constant 240 : index
    %c0_128 = arith.constant 0 : index
    %248 = vector.load %arg22[%c240, %c0_128] : memref<256x80xf32, #tpu.memory_space<vmem>>, vector<16x80xf32>
    %249 = vector.broadcast %0 : vector<16x1xf32> to vector<16x80xf32>
    %250 = arith.addf %247, %249 : vector<16x80xf32>
    %cst_129 = arith.constant 0.000000e+00 : f32
    %251 = vector.broadcast %cst_129 : f32 to vector<16x80xf32>
    %252 = arith.maximumf %250, %251 : vector<16x80xf32>
    %253 = vector.broadcast %1 : vector<16x1xf32> to vector<16x80xf32>
    %254 = arith.mulf %252, %253 : vector<16x80xf32>
    %255 = vector.broadcast %2 : vector<16x1xf32> to vector<16x80xf32>
    %256 = arith.addf %254, %255 : vector<16x80xf32>
    %257 = vector.broadcast %0 : vector<16x1xf32> to vector<16x80xf32>
    %258 = arith.addf %248, %257 : vector<16x80xf32>
    %cst_130 = arith.constant 0.000000e+00 : f32
    %259 = vector.broadcast %cst_130 : f32 to vector<16x80xf32>
    %260 = arith.maximumf %258, %259 : vector<16x80xf32>
    %261 = vector.broadcast %1 : vector<16x1xf32> to vector<16x80xf32>
    %262 = arith.mulf %260, %261 : vector<16x80xf32>
    %263 = vector.broadcast %2 : vector<16x1xf32> to vector<16x80xf32>
    %264 = arith.addf %262, %263 : vector<16x80xf32>
    %265 = arith.maximumf %256, %264 : vector<16x80xf32>
    %266 = tpu.transpose %265, [1, 0] : vector<16x80xf32> -> vector<80x16xf32>
    %c0_131 = arith.constant 0 : index
    %c0_132 = arith.constant 0 : index
    %267 = vector.load %arg23[%c0_131, %c0_132] : memref<80x16xf32, #tpu.memory_space<vmem>>, vector<80x16xf32>
    tpu.vector_store %arg23[%c0_131, %c0_132], %266 {strides = array<i32>} : memref<80x16xf32, #tpu.memory_space<vmem>>, vector<80x16xf32>,
    %c0_133 = arith.constant 0 : index
    %c0_134 = arith.constant 0 : index
    %268 = tpu.strided_load %arg23[%c0_133, %c0_134] {strides = array<i32: 2, 1>} : memref<80x16xf32, #tpu.memory_space<vmem>>, vector<40x16xf32>
    %c1_135 = arith.constant 1 : index
    %c0_136 = arith.constant 0 : index
    %269 = tpu.strided_load %arg23[%c1_135, %c0_136] {strides = array<i32: 2, 1>} : memref<80x16xf32, #tpu.memory_space<vmem>>, vector<40x16xf32>
    %270 = arith.maximumf %268, %269 : vector<40x16xf32>
    %c321 = arith.constant 321 : index
    %c0_137 = arith.constant 0 : index
    %271 = vector.load %arg24[%c321, %c0_137] : memref<402x16xf32, #tpu.memory_space<vmem>>, vector<40x16xf32>
    tpu.vector_store %arg24[%c321, %c0_137], %270 {strides = array<i32>} : memref<402x16xf32, #tpu.memory_space<vmem>>, vector<40x16xf32>,
    %c0_138 = arith.constant 0 : index
    %c0_139 = arith.constant 0 : index
    %272 = vector.load %arg24[%c0_138, %c0_139] : memref<402x16xf32, #tpu.memory_space<vmem>>, vector<320x16xf32>
    %cst_140 = arith.constant 0.000000e+00 : f32
    %273 = vector.shape_cast %27 : vector<320x1xi1> to vector<320x1xi1>
    %274 = vector.broadcast %273 : vector<320x1xi1> to vector<320x16xi1>
    %275 = vector.broadcast %cst_140 : f32 to vector<320x16xf32>
    %276 = arith.select %274, %272, %275 : vector<320x16xi1>, vector<320x16xf32>
    %c1_141 = arith.constant 1 : index
    %c0_142 = arith.constant 0 : index
    %277 = vector.load %arg24[%c1_141, %c0_142] : memref<402x16xf32, #tpu.memory_space<vmem>>, vector<320x16xf32>
    %c2 = arith.constant 2 : index
    %c0_143 = arith.constant 0 : index
    %278 = vector.load %arg24[%c2, %c0_143] : memref<402x16xf32, #tpu.memory_space<vmem>>, vector<320x16xf32>
    %cst_144 = arith.constant 0.000000e+00 : f32
    %279 = vector.shape_cast %29 : vector<320x1xi1> to vector<320x1xi1>
    %280 = vector.broadcast %279 : vector<320x1xi1> to vector<320x16xi1>
    %281 = vector.broadcast %cst_144 : f32 to vector<320x16xf32>
    %282 = arith.select %280, %278, %281 : vector<320x16xi1>, vector<320x16xf32>
    %c40 = arith.constant 40 : index
    %c0_145 = arith.constant 0 : index
    %283 = vector.load %arg24[%c40, %c0_145] : memref<402x16xf32, #tpu.memory_space<vmem>>, vector<320x16xf32>
    %cst_146 = arith.constant 0.000000e+00 : f32
    %284 = vector.shape_cast %27 : vector<320x1xi1> to vector<320x1xi1>
    %285 = vector.broadcast %284 : vector<320x1xi1> to vector<320x16xi1>
    %286 = vector.broadcast %cst_146 : f32 to vector<320x16xf32>
    %287 = arith.select %285, %283, %286 : vector<320x16xi1>, vector<320x16xf32>
    %c41_147 = arith.constant 41 : index
    %c0_148 = arith.constant 0 : index
    %288 = vector.load %arg24[%c41_147, %c0_148] : memref<402x16xf32, #tpu.memory_space<vmem>>, vector<320x16xf32>
    %c42 = arith.constant 42 : index
    %c0_149 = arith.constant 0 : index
    %289 = vector.load %arg24[%c42, %c0_149] : memref<402x16xf32, #tpu.memory_space<vmem>>, vector<320x16xf32>
    %cst_150 = arith.constant 0.000000e+00 : f32
    %290 = vector.shape_cast %29 : vector<320x1xi1> to vector<320x1xi1>
    %291 = vector.broadcast %290 : vector<320x1xi1> to vector<320x16xi1>
    %292 = vector.broadcast %cst_150 : f32 to vector<320x16xf32>
    %293 = arith.select %291, %289, %292 : vector<320x16xi1>, vector<320x16xf32>
    %c80_151 = arith.constant 80 : index
    %c0_152 = arith.constant 0 : index
    %294 = vector.load %arg24[%c80_151, %c0_152] : memref<402x16xf32, #tpu.memory_space<vmem>>, vector<320x16xf32>
    %cst_153 = arith.constant 0.000000e+00 : f32
    %295 = vector.shape_cast %27 : vector<320x1xi1> to vector<320x1xi1>
    %296 = vector.broadcast %295 : vector<320x1xi1> to vector<320x16xi1>
    %297 = vector.broadcast %cst_153 : f32 to vector<320x16xf32>
    %298 = arith.select %296, %294, %297 : vector<320x16xi1>, vector<320x16xf32>
    %c81_154 = arith.constant 81 : index
    %c0_155 = arith.constant 0 : index
    %299 = vector.load %arg24[%c81_154, %c0_155] : memref<402x16xf32, #tpu.memory_space<vmem>>, vector<320x16xf32>
    %c82 = arith.constant 82 : index
    %c0_156 = arith.constant 0 : index
    %300 = vector.load %arg24[%c82, %c0_156] : memref<402x16xf32, #tpu.memory_space<vmem>>, vector<320x16xf32>
    %cst_157 = arith.constant 0.000000e+00 : f32
    %301 = vector.shape_cast %29 : vector<320x1xi1> to vector<320x1xi1>
    %302 = vector.broadcast %301 : vector<320x1xi1> to vector<320x16xi1>
    %303 = vector.broadcast %cst_157 : f32 to vector<320x16xf32>
    %304 = arith.select %302, %300, %303 : vector<320x16xi1>, vector<320x16xf32>
    %305 = tpu.concatenate %276, %277, %282, %287, %288, %293, %298, %299, %304 in 1 : vector<320x16xf32>, vector<320x16xf32>, vector<320x16xf32>, vector<320x16xf32>, vector<320x16xf32>, vector<320x16xf32>, vector<320x16xf32>, vector<320x16xf32>, vector<320x16xf32> -> vector<320x144xf32>
    %306 = arith.truncf %305 : vector<320x144xf32> to vector<320x144xbf16>
    %c0_158 = arith.constant 0 : index
    %c0_159 = arith.constant 0 : index
    %307 = vector.load %arg6[%c0_158, %c0_159] : memref<144x32xbf16, #tpu.memory_space<vmem>>, vector<144x32xbf16>
    %cst_160 = arith.constant dense<0.000000e+00> : vector<320x32xf32>
    %308 = tpu.matmul %306, %307, %cst_160 {dimension_numbers = #tpu.dot_dimension_numbers<[1], [0], [0], [1], [0, 0, 1, 1], [], []>} : vector<320x144xbf16>, vector<144x32xbf16>, vector<320x32xf32> -> vector<320x32xf32>
    %309 = vector.broadcast %3 : vector<1x32xf32> to vector<320x32xf32>
    %310 = arith.addf %308, %309 : vector<320x32xf32>
    %cst_161 = arith.constant 0.000000e+00 : f32
    %311 = vector.broadcast %cst_161 : f32 to vector<320x32xf32>
    %312 = arith.maximumf %310, %311 : vector<320x32xf32>
    %313 = vector.broadcast %4 : vector<1x32xf32> to vector<320x32xf32>
    %314 = arith.mulf %312, %313 : vector<320x32xf32>
    %315 = vector.broadcast %5 : vector<1x32xf32> to vector<320x32xf32>
    %316 = arith.addf %314, %315 : vector<320x32xf32>
    %c0_162 = arith.constant 0 : index
    %c0_163 = arith.constant 0 : index
    %317 = vector.load %arg25[%c0_162, %c0_163] : memref<320x32xf32, #tpu.memory_space<vmem>>, vector<320x32xf32>
    tpu.vector_store %arg25[%c0_162, %c0_163], %316 {strides = array<i32>} : memref<320x32xf32, #tpu.memory_space<vmem>>, vector<320x32xf32>,
    %c0_164 = arith.constant 0 : index
    %c0_165 = arith.constant 0 : index
    %318 = tpu.strided_load %arg25[%c0_164, %c0_165] {strides = array<i32: 2, 1>} : memref<320x32xf32, #tpu.memory_space<vmem>>, vector<20x32xf32>
    %c1_166 = arith.constant 1 : index
    %c0_167 = arith.constant 0 : index
    %319 = tpu.strided_load %arg25[%c1_166, %c0_167] {strides = array<i32: 2, 1>} : memref<320x32xf32, #tpu.memory_space<vmem>>, vector<20x32xf32>
    %320 = arith.maximumf %318, %319 : vector<20x32xf32>
    %c40_168 = arith.constant 40 : index
    %c0_169 = arith.constant 0 : index
    %321 = tpu.strided_load %arg25[%c40_168, %c0_169] {strides = array<i32: 2, 1>} : memref<320x32xf32, #tpu.memory_space<vmem>>, vector<20x32xf32>
    %c41_170 = arith.constant 41 : index
    %c0_171 = arith.constant 0 : index
    %322 = tpu.strided_load %arg25[%c41_170, %c0_171] {strides = array<i32: 2, 1>} : memref<320x32xf32, #tpu.memory_space<vmem>>, vector<20x32xf32>
    %323 = arith.maximumf %321, %322 : vector<20x32xf32>
    %324 = arith.maximumf %320, %323 : vector<20x32xf32>
    %c21 = arith.constant 21 : index
    %c0_172 = arith.constant 0 : index
    %325 = vector.load %arg26[%c21, %c0_172] : memref<122x32xf32, #tpu.memory_space<vmem>>, vector<20x32xf32>
    tpu.vector_store %arg26[%c21, %c0_172], %324 {strides = array<i32>} : memref<122x32xf32, #tpu.memory_space<vmem>>, vector<20x32xf32>,
    %c80_173 = arith.constant 80 : index
    %c0_174 = arith.constant 0 : index
    %326 = tpu.strided_load %arg25[%c80_173, %c0_174] {strides = array<i32: 2, 1>} : memref<320x32xf32, #tpu.memory_space<vmem>>, vector<20x32xf32>
    %c81_175 = arith.constant 81 : index
    %c0_176 = arith.constant 0 : index
    %327 = tpu.strided_load %arg25[%c81_175, %c0_176] {strides = array<i32: 2, 1>} : memref<320x32xf32, #tpu.memory_space<vmem>>, vector<20x32xf32>
    %328 = arith.maximumf %326, %327 : vector<20x32xf32>
    %c120 = arith.constant 120 : index
    %c0_177 = arith.constant 0 : index
    %329 = tpu.strided_load %arg25[%c120, %c0_177] {strides = array<i32: 2, 1>} : memref<320x32xf32, #tpu.memory_space<vmem>>, vector<20x32xf32>
    %c121_178 = arith.constant 121 : index
    %c0_179 = arith.constant 0 : index
    %330 = tpu.strided_load %arg25[%c121_178, %c0_179] {strides = array<i32: 2, 1>} : memref<320x32xf32, #tpu.memory_space<vmem>>, vector<20x32xf32>
    %331 = arith.maximumf %329, %330 : vector<20x32xf32>
    %332 = arith.maximumf %328, %331 : vector<20x32xf32>
    %c41_180 = arith.constant 41 : index
    %c0_181 = arith.constant 0 : index
    %333 = vector.load %arg26[%c41_180, %c0_181] : memref<122x32xf32, #tpu.memory_space<vmem>>, vector<20x32xf32>
    tpu.vector_store %arg26[%c41_180, %c0_181], %332 {strides = array<i32>} : memref<122x32xf32, #tpu.memory_space<vmem>>, vector<20x32xf32>,
    %c160_182 = arith.constant 160 : index
    %c0_183 = arith.constant 0 : index
    %334 = tpu.strided_load %arg25[%c160_182, %c0_183] {strides = array<i32: 2, 1>} : memref<320x32xf32, #tpu.memory_space<vmem>>, vector<20x32xf32>
    %c161_184 = arith.constant 161 : index
    %c0_185 = arith.constant 0 : index
    %335 = tpu.strided_load %arg25[%c161_184, %c0_185] {strides = array<i32: 2, 1>} : memref<320x32xf32, #tpu.memory_space<vmem>>, vector<20x32xf32>
    %336 = arith.maximumf %334, %335 : vector<20x32xf32>
    %c200 = arith.constant 200 : index
    %c0_186 = arith.constant 0 : index
    %337 = tpu.strided_load %arg25[%c200, %c0_186] {strides = array<i32: 2, 1>} : memref<320x32xf32, #tpu.memory_space<vmem>>, vector<20x32xf32>
    %c201_187 = arith.constant 201 : index
    %c0_188 = arith.constant 0 : index
    %338 = tpu.strided_load %arg25[%c201_187, %c0_188] {strides = array<i32: 2, 1>} : memref<320x32xf32, #tpu.memory_space<vmem>>, vector<20x32xf32>
    %339 = arith.maximumf %337, %338 : vector<20x32xf32>
    %340 = arith.maximumf %336, %339 : vector<20x32xf32>
    %c61 = arith.constant 61 : index
    %c0_189 = arith.constant 0 : index
    %341 = vector.load %arg26[%c61, %c0_189] : memref<122x32xf32, #tpu.memory_space<vmem>>, vector<20x32xf32>
    tpu.vector_store %arg26[%c61, %c0_189], %340 {strides = array<i32>} : memref<122x32xf32, #tpu.memory_space<vmem>>, vector<20x32xf32>,
    %c240_190 = arith.constant 240 : index
    %c0_191 = arith.constant 0 : index
    %342 = tpu.strided_load %arg25[%c240_190, %c0_191] {strides = array<i32: 2, 1>} : memref<320x32xf32, #tpu.memory_space<vmem>>, vector<20x32xf32>
    %c241_192 = arith.constant 241 : index
    %c0_193 = arith.constant 0 : index
    %343 = tpu.strided_load %arg25[%c241_192, %c0_193] {strides = array<i32: 2, 1>} : memref<320x32xf32, #tpu.memory_space<vmem>>, vector<20x32xf32>
    %344 = arith.maximumf %342, %343 : vector<20x32xf32>
    %c280 = arith.constant 280 : index
    %c0_194 = arith.constant 0 : index
    %345 = tpu.strided_load %arg25[%c280, %c0_194] {strides = array<i32: 2, 1>} : memref<320x32xf32, #tpu.memory_space<vmem>>, vector<20x32xf32>
    %c281_195 = arith.constant 281 : index
    %c0_196 = arith.constant 0 : index
    %346 = tpu.strided_load %arg25[%c281_195, %c0_196] {strides = array<i32: 2, 1>} : memref<320x32xf32, #tpu.memory_space<vmem>>, vector<20x32xf32>
    %347 = arith.maximumf %345, %346 : vector<20x32xf32>
    %348 = arith.maximumf %344, %347 : vector<20x32xf32>
    %c81_197 = arith.constant 81 : index
    %c0_198 = arith.constant 0 : index
    %349 = vector.load %arg26[%c81_197, %c0_198] : memref<122x32xf32, #tpu.memory_space<vmem>>, vector<20x32xf32>
    tpu.vector_store %arg26[%c81_197, %c0_198], %348 {strides = array<i32>} : memref<122x32xf32, #tpu.memory_space<vmem>>, vector<20x32xf32>,
    %c0_199 = arith.constant 0 : index
    %c0_200 = arith.constant 0 : index
    %350 = vector.load %arg26[%c0_199, %c0_200] : memref<122x32xf32, #tpu.memory_space<vmem>>, vector<80x32xf32>
    %cst_201 = arith.constant 0.000000e+00 : f32
    %351 = vector.shape_cast %48 : vector<80x1xi1> to vector<80x1xi1>
    %352 = vector.broadcast %351 : vector<80x1xi1> to vector<80x32xi1>
    %353 = vector.broadcast %cst_201 : f32 to vector<80x32xf32>
    %354 = arith.select %352, %350, %353 : vector<80x32xi1>, vector<80x32xf32>
    %c1_202 = arith.constant 1 : index
    %c0_203 = arith.constant 0 : index
    %355 = vector.load %arg26[%c1_202, %c0_203] : memref<122x32xf32, #tpu.memory_space<vmem>>, vector<80x32xf32>
    %c2_204 = arith.constant 2 : index
    %c0_205 = arith.constant 0 : index
    %356 = vector.load %arg26[%c2_204, %c0_205] : memref<122x32xf32, #tpu.memory_space<vmem>>, vector<80x32xf32>
    %cst_206 = arith.constant 0.000000e+00 : f32
    %357 = vector.shape_cast %50 : vector<80x1xi1> to vector<80x1xi1>
    %358 = vector.broadcast %357 : vector<80x1xi1> to vector<80x32xi1>
    %359 = vector.broadcast %cst_206 : f32 to vector<80x32xf32>
    %360 = arith.select %358, %356, %359 : vector<80x32xi1>, vector<80x32xf32>
    %c20 = arith.constant 20 : index
    %c0_207 = arith.constant 0 : index
    %361 = vector.load %arg26[%c20, %c0_207] : memref<122x32xf32, #tpu.memory_space<vmem>>, vector<80x32xf32>
    %cst_208 = arith.constant 0.000000e+00 : f32
    %362 = vector.shape_cast %48 : vector<80x1xi1> to vector<80x1xi1>
    %363 = vector.broadcast %362 : vector<80x1xi1> to vector<80x32xi1>
    %364 = vector.broadcast %cst_208 : f32 to vector<80x32xf32>
    %365 = arith.select %363, %361, %364 : vector<80x32xi1>, vector<80x32xf32>
    %c21_209 = arith.constant 21 : index
    %c0_210 = arith.constant 0 : index
    %366 = vector.load %arg26[%c21_209, %c0_210] : memref<122x32xf32, #tpu.memory_space<vmem>>, vector<80x32xf32>
    %c22 = arith.constant 22 : index
    %c0_211 = arith.constant 0 : index
    %367 = vector.load %arg26[%c22, %c0_211] : memref<122x32xf32, #tpu.memory_space<vmem>>, vector<80x32xf32>
    %cst_212 = arith.constant 0.000000e+00 : f32
    %368 = vector.shape_cast %50 : vector<80x1xi1> to vector<80x1xi1>
    %369 = vector.broadcast %368 : vector<80x1xi1> to vector<80x32xi1>
    %370 = vector.broadcast %cst_212 : f32 to vector<80x32xf32>
    %371 = arith.select %369, %367, %370 : vector<80x32xi1>, vector<80x32xf32>
    %c40_213 = arith.constant 40 : index
    %c0_214 = arith.constant 0 : index
    %372 = vector.load %arg26[%c40_213, %c0_214] : memref<122x32xf32, #tpu.memory_space<vmem>>, vector<80x32xf32>
    %cst_215 = arith.constant 0.000000e+00 : f32
    %373 = vector.shape_cast %48 : vector<80x1xi1> to vector<80x1xi1>
    %374 = vector.broadcast %373 : vector<80x1xi1> to vector<80x32xi1>
    %375 = vector.broadcast %cst_215 : f32 to vector<80x32xf32>
    %376 = arith.select %374, %372, %375 : vector<80x32xi1>, vector<80x32xf32>
    %c41_216 = arith.constant 41 : index
    %c0_217 = arith.constant 0 : index
    %377 = vector.load %arg26[%c41_216, %c0_217] : memref<122x32xf32, #tpu.memory_space<vmem>>, vector<80x32xf32>
    %c42_218 = arith.constant 42 : index
    %c0_219 = arith.constant 0 : index
    %378 = vector.load %arg26[%c42_218, %c0_219] : memref<122x32xf32, #tpu.memory_space<vmem>>, vector<80x32xf32>
    %cst_220 = arith.constant 0.000000e+00 : f32
    %379 = vector.shape_cast %50 : vector<80x1xi1> to vector<80x1xi1>
    %380 = vector.broadcast %379 : vector<80x1xi1> to vector<80x32xi1>
    %381 = vector.broadcast %cst_220 : f32 to vector<80x32xf32>
    %382 = arith.select %380, %378, %381 : vector<80x32xi1>, vector<80x32xf32>
    %383 = tpu.concatenate %354, %355, %360, %365, %366, %371, %376, %377, %382 in 1 : vector<80x32xf32>, vector<80x32xf32>, vector<80x32xf32>, vector<80x32xf32>, vector<80x32xf32>, vector<80x32xf32>, vector<80x32xf32>, vector<80x32xf32>, vector<80x32xf32> -> vector<80x288xf32>
    %384 = arith.truncf %383 : vector<80x288xf32> to vector<80x288xbf16>
    %c0_221 = arith.constant 0 : index
    %c0_222 = arith.constant 0 : index
    %385 = vector.load %arg10[%c0_221, %c0_222] : memref<288x32xbf16, #tpu.memory_space<vmem>>, vector<288x32xbf16>
    %cst_223 = arith.constant dense<0.000000e+00> : vector<80x32xf32>
    %386 = tpu.matmul %384, %385, %cst_223 {dimension_numbers = #tpu.dot_dimension_numbers<[1], [0], [0], [1], [0, 0, 1, 1], [], []>} : vector<80x288xbf16>, vector<288x32xbf16>, vector<80x32xf32> -> vector<80x32xf32>
    %387 = vector.broadcast %6 : vector<1x32xf32> to vector<80x32xf32>
    %388 = arith.addf %386, %387 : vector<80x32xf32>
    %cst_224 = arith.constant 0.000000e+00 : f32
    %389 = vector.broadcast %cst_224 : f32 to vector<80x32xf32>
    %390 = arith.maximumf %388, %389 : vector<80x32xf32>
    %391 = vector.broadcast %7 : vector<1x32xf32> to vector<80x32xf32>
    %392 = arith.mulf %390, %391 : vector<80x32xf32>
    %393 = vector.broadcast %8 : vector<1x32xf32> to vector<80x32xf32>
    %394 = arith.addf %392, %393 : vector<80x32xf32>
    %c0_225 = arith.constant 0 : index
    %c0_226 = arith.constant 0 : index
    %395 = vector.load %arg27[%c0_225, %c0_226] : memref<80x32xf32, #tpu.memory_space<vmem>>, vector<80x32xf32>
    tpu.vector_store %arg27[%c0_225, %c0_226], %394 {strides = array<i32>} : memref<80x32xf32, #tpu.memory_space<vmem>>, vector<80x32xf32>,
    %c0_227 = arith.constant 0 : index
    %c0_228 = arith.constant 0 : index
    %396 = tpu.strided_load %arg27[%c0_227, %c0_228] {strides = array<i32: 2, 1>} : memref<80x32xf32, #tpu.memory_space<vmem>>, vector<10x32xf32>
    %c1_229 = arith.constant 1 : index
    %c0_230 = arith.constant 0 : index
    %397 = tpu.strided_load %arg27[%c1_229, %c0_230] {strides = array<i32: 2, 1>} : memref<80x32xf32, #tpu.memory_space<vmem>>, vector<10x32xf32>
    %398 = arith.maximumf %396, %397 : vector<10x32xf32>
    %c20_231 = arith.constant 20 : index
    %c0_232 = arith.constant 0 : index
    %399 = tpu.strided_load %arg27[%c20_231, %c0_232] {strides = array<i32: 2, 1>} : memref<80x32xf32, #tpu.memory_space<vmem>>, vector<10x32xf32>
    %c21_233 = arith.constant 21 : index
    %c0_234 = arith.constant 0 : index
    %400 = tpu.strided_load %arg27[%c21_233, %c0_234] {strides = array<i32: 2, 1>} : memref<80x32xf32, #tpu.memory_space<vmem>>, vector<10x32xf32>
    %401 = arith.maximumf %399, %400 : vector<10x32xf32>
    %402 = arith.maximumf %398, %401 : vector<10x32xf32>
    %c32_i32 = arith.constant 32 : i32
    %403 = arith.muli %c0_i32_35, %c32_i32 : i32
    %c0_i32_235 = arith.constant 0 : i32
    %404 = arith.addi %403, %c0_i32_235 : i32
    %405 = arith.index_cast %404 : i32 to index
    %c0_236 = arith.constant 0 : index
    %406 = vector.load %arg28[%405, %c0_236] : memref<32x32xf32, #tpu.memory_space<vmem>>, vector<10x32xf32>
    tpu.vector_store %arg28[%405, %c0_236], %402 {strides = array<i32>} : memref<32x32xf32, #tpu.memory_space<vmem>>, vector<10x32xf32>,
    %c40_237 = arith.constant 40 : index
    %c0_238 = arith.constant 0 : index
    %407 = tpu.strided_load %arg27[%c40_237, %c0_238] {strides = array<i32: 2, 1>} : memref<80x32xf32, #tpu.memory_space<vmem>>, vector<10x32xf32>
    %c41_239 = arith.constant 41 : index
    %c0_240 = arith.constant 0 : index
    %408 = tpu.strided_load %arg27[%c41_239, %c0_240] {strides = array<i32: 2, 1>} : memref<80x32xf32, #tpu.memory_space<vmem>>, vector<10x32xf32>
    %409 = arith.maximumf %407, %408 : vector<10x32xf32>
    %c60 = arith.constant 60 : index
    %c0_241 = arith.constant 0 : index
    %410 = tpu.strided_load %arg27[%c60, %c0_241] {strides = array<i32: 2, 1>} : memref<80x32xf32, #tpu.memory_space<vmem>>, vector<10x32xf32>
    %c61_242 = arith.constant 61 : index
    %c0_243 = arith.constant 0 : index
    %411 = tpu.strided_load %arg27[%c61_242, %c0_243] {strides = array<i32: 2, 1>} : memref<80x32xf32, #tpu.memory_space<vmem>>, vector<10x32xf32>
    %412 = arith.maximumf %410, %411 : vector<10x32xf32>
    %413 = arith.maximumf %409, %412 : vector<10x32xf32>
    %c32_i32_244 = arith.constant 32 : i32
    %414 = arith.muli %c0_i32_35, %c32_i32_244 : i32
    %c16_i32 = arith.constant 16 : i32
    %415 = arith.addi %414, %c16_i32 : i32
    %416 = arith.index_cast %415 : i32 to index
    %c0_245 = arith.constant 0 : index
    %417 = vector.load %arg28[%416, %c0_245] : memref<32x32xf32, #tpu.memory_space<vmem>>, vector<10x32xf32>
    tpu.vector_store %arg28[%416, %c0_245], %413 {strides = array<i32>} : memref<32x32xf32, #tpu.memory_space<vmem>>, vector<10x32xf32>,
    %c1_i32_246 = arith.constant 1 : i32
    %cst_247 = arith.constant 0.000000e+00 : f32
    %418 = vector.broadcast %cst_247 : f32 to vector<1x640xf32>
    %c0_248 = arith.constant 0 : index
    %c0_249 = arith.constant 0 : index
    %419 = tpu.strided_load %arg28[%c0_248, %c0_249] {strides = array<i32: 32, 1>} : memref<32x32xf32, #tpu.memory_space<vmem>>, vector<1x32xf32>
    %420 = arith.truncf %419 : vector<1x32xf32> to vector<1x32xbf16>
    %c0_250 = arith.constant 0 : index
    %c0_251 = arith.constant 0 : index
    %c0_252 = arith.constant 0 : index
    %421 = vector.load %arg14[%c0_250, %c0_251, %c0_252] : memref<20x32x640xbf16, #tpu.memory_space<vmem>>, vector<1x32x640xbf16>
    %422 = vector.shape_cast %421 : vector<1x32x640xbf16> to vector<32x640xbf16>
    %cst_253 = arith.constant dense<0.000000e+00> : vector<1x640xf32>
    %423 = tpu.matmul %420, %422, %cst_253 {dimension_numbers = #tpu.dot_dimension_numbers<[1], [0], [0], [1], [0, 0, 1, 1], [], []>} : vector<1x32xbf16>, vector<32x640xbf16>, vector<1x640xf32> -> vector<1x640xf32>
    %424 = arith.addf %418, %423 : vector<1x640xf32>
    %c1_254 = arith.constant 1 : index
    %c0_255 = arith.constant 0 : index
    %425 = tpu.strided_load %arg28[%c1_254, %c0_255] {strides = array<i32: 32, 1>} : memref<32x32xf32, #tpu.memory_space<vmem>>, vector<1x32xf32>
    %426 = arith.truncf %425 : vector<1x32xf32> to vector<1x32xbf16>
    %c1_256 = arith.constant 1 : index
    %c0_257 = arith.constant 0 : index
    %c0_258 = arith.constant 0 : index
    %427 = vector.load %arg14[%c1_256, %c0_257, %c0_258] : memref<20x32x640xbf16, #tpu.memory_space<vmem>>, vector<1x32x640xbf16>
    %428 = vector.shape_cast %427 : vector<1x32x640xbf16> to vector<32x640xbf16>
    %cst_259 = arith.constant dense<0.000000e+00> : vector<1x640xf32>
    %429 = tpu.matmul %426, %428, %cst_259 {dimension_numbers = #tpu.dot_dimension_numbers<[1], [0], [0], [1], [0, 0, 1, 1], [], []>} : vector<1x32xbf16>, vector<32x640xbf16>, vector<1x640xf32> -> vector<1x640xf32>
    %430 = arith.addf %424, %429 : vector<1x640xf32>
    %c2_260 = arith.constant 2 : index
    %c0_261 = arith.constant 0 : index
    %431 = tpu.strided_load %arg28[%c2_260, %c0_261] {strides = array<i32: 32, 1>} : memref<32x32xf32, #tpu.memory_space<vmem>>, vector<1x32xf32>
    %432 = arith.truncf %431 : vector<1x32xf32> to vector<1x32xbf16>
    %c2_262 = arith.constant 2 : index
    %c0_263 = arith.constant 0 : index
    %c0_264 = arith.constant 0 : index
    %433 = vector.load %arg14[%c2_262, %c0_263, %c0_264] : memref<20x32x640xbf16, #tpu.memory_space<vmem>>, vector<1x32x640xbf16>
    %434 = vector.shape_cast %433 : vector<1x32x640xbf16> to vector<32x640xbf16>
    %cst_265 = arith.constant dense<0.000000e+00> : vector<1x640xf32>
    %435 = tpu.matmul %432, %434, %cst_265 {dimension_numbers = #tpu.dot_dimension_numbers<[1], [0], [0], [1], [0, 0, 1, 1], [], []>} : vector<1x32xbf16>, vector<32x640xbf16>, vector<1x640xf32> -> vector<1x640xf32>
    %436 = arith.addf %430, %435 : vector<1x640xf32>
    %c3 = arith.constant 3 : index
    %c0_266 = arith.constant 0 : index
    %437 = tpu.strided_load %arg28[%c3, %c0_266] {strides = array<i32: 32, 1>} : memref<32x32xf32, #tpu.memory_space<vmem>>, vector<1x32xf32>
    %438 = arith.truncf %437 : vector<1x32xf32> to vector<1x32xbf16>
    %c3_267 = arith.constant 3 : index
    %c0_268 = arith.constant 0 : index
    %c0_269 = arith.constant 0 : index
    %439 = vector.load %arg14[%c3_267, %c0_268, %c0_269] : memref<20x32x640xbf16, #tpu.memory_space<vmem>>, vector<1x32x640xbf16>
    %440 = vector.shape_cast %439 : vector<1x32x640xbf16> to vector<32x640xbf16>
    %cst_270 = arith.constant dense<0.000000e+00> : vector<1x640xf32>
    %441 = tpu.matmul %438, %440, %cst_270 {dimension_numbers = #tpu.dot_dimension_numbers<[1], [0], [0], [1], [0, 0, 1, 1], [], []>} : vector<1x32xbf16>, vector<32x640xbf16>, vector<1x640xf32> -> vector<1x640xf32>
    %442 = arith.addf %436, %441 : vector<1x640xf32>
    %c4 = arith.constant 4 : index
    %c0_271 = arith.constant 0 : index
    %443 = tpu.strided_load %arg28[%c4, %c0_271] {strides = array<i32: 32, 1>} : memref<32x32xf32, #tpu.memory_space<vmem>>, vector<1x32xf32>
    %444 = arith.truncf %443 : vector<1x32xf32> to vector<1x32xbf16>
    %c4_272 = arith.constant 4 : index
    %c0_273 = arith.constant 0 : index
    %c0_274 = arith.constant 0 : index
    %445 = vector.load %arg14[%c4_272, %c0_273, %c0_274] : memref<20x32x640xbf16, #tpu.memory_space<vmem>>, vector<1x32x640xbf16>
    %446 = vector.shape_cast %445 : vector<1x32x640xbf16> to vector<32x640xbf16>
    %cst_275 = arith.constant dense<0.000000e+00> : vector<1x640xf32>
    %447 = tpu.matmul %444, %446, %cst_275 {dimension_numbers = #tpu.dot_dimension_numbers<[1], [0], [0], [1], [0, 0, 1, 1], [], []>} : vector<1x32xbf16>, vector<32x640xbf16>, vector<1x640xf32> -> vector<1x640xf32>
    %448 = arith.addf %442, %447 : vector<1x640xf32>
    %c5 = arith.constant 5 : index
    %c0_276 = arith.constant 0 : index
    %449 = tpu.strided_load %arg28[%c5, %c0_276] {strides = array<i32: 32, 1>} : memref<32x32xf32, #tpu.memory_space<vmem>>, vector<1x32xf32>
    %450 = arith.truncf %449 : vector<1x32xf32> to vector<1x32xbf16>
    %c5_277 = arith.constant 5 : index
    %c0_278 = arith.constant 0 : index
    %c0_279 = arith.constant 0 : index
    %451 = vector.load %arg14[%c5_277, %c0_278, %c0_279] : memref<20x32x640xbf16, #tpu.memory_space<vmem>>, vector<1x32x640xbf16>
    %452 = vector.shape_cast %451 : vector<1x32x640xbf16> to vector<32x640xbf16>
    %cst_280 = arith.constant dense<0.000000e+00> : vector<1x640xf32>
    %453 = tpu.matmul %450, %452, %cst_280 {dimension_numbers = #tpu.dot_dimension_numbers<[1], [0], [0], [1], [0, 0, 1, 1], [], []>} : vector<1x32xbf16>, vector<32x640xbf16>, vector<1x640xf32> -> vector<1x640xf32>
    %454 = arith.addf %448, %453 : vector<1x640xf32>
    %c6 = arith.constant 6 : index
    %c0_281 = arith.constant 0 : index
    %455 = tpu.strided_load %arg28[%c6, %c0_281] {strides = array<i32: 32, 1>} : memref<32x32xf32, #tpu.memory_space<vmem>>, vector<1x32xf32>
    %456 = arith.truncf %455 : vector<1x32xf32> to vector<1x32xbf16>
    %c6_282 = arith.constant 6 : index
    %c0_283 = arith.constant 0 : index
    %c0_284 = arith.constant 0 : index
    %457 = vector.load %arg14[%c6_282, %c0_283, %c0_284] : memref<20x32x640xbf16, #tpu.memory_space<vmem>>, vector<1x32x640xbf16>
    %458 = vector.shape_cast %457 : vector<1x32x640xbf16> to vector<32x640xbf16>
    %cst_285 = arith.constant dense<0.000000e+00> : vector<1x640xf32>
    %459 = tpu.matmul %456, %458, %cst_285 {dimension_numbers = #tpu.dot_dimension_numbers<[1], [0], [0], [1], [0, 0, 1, 1], [], []>} : vector<1x32xbf16>, vector<32x640xbf16>, vector<1x640xf32> -> vector<1x640xf32>
    %460 = arith.addf %454, %459 : vector<1x640xf32>
    %c7 = arith.constant 7 : index
    %c0_286 = arith.constant 0 : index
    %461 = tpu.strided_load %arg28[%c7, %c0_286] {strides = array<i32: 32, 1>} : memref<32x32xf32, #tpu.memory_space<vmem>>, vector<1x32xf32>
    %462 = arith.truncf %461 : vector<1x32xf32> to vector<1x32xbf16>
    %c7_287 = arith.constant 7 : index
    %c0_288 = arith.constant 0 : index
    %c0_289 = arith.constant 0 : index
    %463 = vector.load %arg14[%c7_287, %c0_288, %c0_289] : memref<20x32x640xbf16, #tpu.memory_space<vmem>>, vector<1x32x640xbf16>
    %464 = vector.shape_cast %463 : vector<1x32x640xbf16> to vector<32x640xbf16>
    %cst_290 = arith.constant dense<0.000000e+00> : vector<1x640xf32>
    %465 = tpu.matmul %462, %464, %cst_290 {dimension_numbers = #tpu.dot_dimension_numbers<[1], [0], [0], [1], [0, 0, 1, 1], [], []>} : vector<1x32xbf16>, vector<32x640xbf16>, vector<1x640xf32> -> vector<1x640xf32>
    %466 = arith.addf %460, %465 : vector<1x640xf32>
    %c8 = arith.constant 8 : index
    %c0_291 = arith.constant 0 : index
    %467 = tpu.strided_load %arg28[%c8, %c0_291] {strides = array<i32: 32, 1>} : memref<32x32xf32, #tpu.memory_space<vmem>>, vector<1x32xf32>
    %468 = arith.truncf %467 : vector<1x32xf32> to vector<1x32xbf16>
    %c8_292 = arith.constant 8 : index
    %c0_293 = arith.constant 0 : index
    %c0_294 = arith.constant 0 : index
    %469 = vector.load %arg14[%c8_292, %c0_293, %c0_294] : memref<20x32x640xbf16, #tpu.memory_space<vmem>>, vector<1x32x640xbf16>
    %470 = vector.shape_cast %469 : vector<1x32x640xbf16> to vector<32x640xbf16>
    %cst_295 = arith.constant dense<0.000000e+00> : vector<1x640xf32>
    %471 = tpu.matmul %468, %470, %cst_295 {dimension_numbers = #tpu.dot_dimension_numbers<[1], [0], [0], [1], [0, 0, 1, 1], [], []>} : vector<1x32xbf16>, vector<32x640xbf16>, vector<1x640xf32> -> vector<1x640xf32>
    %472 = arith.addf %466, %471 : vector<1x640xf32>
    %c9 = arith.constant 9 : index
    %c0_296 = arith.constant 0 : index
    %473 = tpu.strided_load %arg28[%c9, %c0_296] {strides = array<i32: 32, 1>} : memref<32x32xf32, #tpu.memory_space<vmem>>, vector<1x32xf32>
    %474 = arith.truncf %473 : vector<1x32xf32> to vector<1x32xbf16>
    %c9_297 = arith.constant 9 : index
    %c0_298 = arith.constant 0 : index
    %c0_299 = arith.constant 0 : index
    %475 = vector.load %arg14[%c9_297, %c0_298, %c0_299] : memref<20x32x640xbf16, #tpu.memory_space<vmem>>, vector<1x32x640xbf16>
    %476 = vector.shape_cast %475 : vector<1x32x640xbf16> to vector<32x640xbf16>
    %cst_300 = arith.constant dense<0.000000e+00> : vector<1x640xf32>
    %477 = tpu.matmul %474, %476, %cst_300 {dimension_numbers = #tpu.dot_dimension_numbers<[1], [0], [0], [1], [0, 0, 1, 1], [], []>} : vector<1x32xbf16>, vector<32x640xbf16>, vector<1x640xf32> -> vector<1x640xf32>
    %478 = arith.addf %472, %477 : vector<1x640xf32>
    %c16_301 = arith.constant 16 : index
    %c0_302 = arith.constant 0 : index
    %479 = tpu.strided_load %arg28[%c16_301, %c0_302] {strides = array<i32: 32, 1>} : memref<32x32xf32, #tpu.memory_space<vmem>>, vector<1x32xf32>
    %480 = arith.truncf %479 : vector<1x32xf32> to vector<1x32xbf16>
    %c10 = arith.constant 10 : index
    %c0_303 = arith.constant 0 : index
    %c0_304 = arith.constant 0 : index
    %481 = vector.load %arg14[%c10, %c0_303, %c0_304] : memref<20x32x640xbf16, #tpu.memory_space<vmem>>, vector<1x32x640xbf16>
    %482 = vector.shape_cast %481 : vector<1x32x640xbf16> to vector<32x640xbf16>
    %cst_305 = arith.constant dense<0.000000e+00> : vector<1x640xf32>
    %483 = tpu.matmul %480, %482, %cst_305 {dimension_numbers = #tpu.dot_dimension_numbers<[1], [0], [0], [1], [0, 0, 1, 1], [], []>} : vector<1x32xbf16>, vector<32x640xbf16>, vector<1x640xf32> -> vector<1x640xf32>
    %484 = arith.addf %478, %483 : vector<1x640xf32>
    %c17 = arith.constant 17 : index
    %c0_306 = arith.constant 0 : index
    %485 = tpu.strided_load %arg28[%c17, %c0_306] {strides = array<i32: 32, 1>} : memref<32x32xf32, #tpu.memory_space<vmem>>, vector<1x32xf32>
    %486 = arith.truncf %485 : vector<1x32xf32> to vector<1x32xbf16>
    %c11 = arith.constant 11 : index
    %c0_307 = arith.constant 0 : index
    %c0_308 = arith.constant 0 : index
    %487 = vector.load %arg14[%c11, %c0_307, %c0_308] : memref<20x32x640xbf16, #tpu.memory_space<vmem>>, vector<1x32x640xbf16>
    %488 = vector.shape_cast %487 : vector<1x32x640xbf16> to vector<32x640xbf16>
    %cst_309 = arith.constant dense<0.000000e+00> : vector<1x640xf32>
    %489 = tpu.matmul %486, %488, %cst_309 {dimension_numbers = #tpu.dot_dimension_numbers<[1], [0], [0], [1], [0, 0, 1, 1], [], []>} : vector<1x32xbf16>, vector<32x640xbf16>, vector<1x640xf32> -> vector<1x640xf32>
    %490 = arith.addf %484, %489 : vector<1x640xf32>
    %c18 = arith.constant 18 : index
    %c0_310 = arith.constant 0 : index
    %491 = tpu.strided_load %arg28[%c18, %c0_310] {strides = array<i32: 32, 1>} : memref<32x32xf32, #tpu.memory_space<vmem>>, vector<1x32xf32>
    %492 = arith.truncf %491 : vector<1x32xf32> to vector<1x32xbf16>
    %c12 = arith.constant 12 : index
    %c0_311 = arith.constant 0 : index
    %c0_312 = arith.constant 0 : index
    %493 = vector.load %arg14[%c12, %c0_311, %c0_312] : memref<20x32x640xbf16, #tpu.memory_space<vmem>>, vector<1x32x640xbf16>
    %494 = vector.shape_cast %493 : vector<1x32x640xbf16> to vector<32x640xbf16>
    %cst_313 = arith.constant dense<0.000000e+00> : vector<1x640xf32>
    %495 = tpu.matmul %492, %494, %cst_313 {dimension_numbers = #tpu.dot_dimension_numbers<[1], [0], [0], [1], [0, 0, 1, 1], [], []>} : vector<1x32xbf16>, vector<32x640xbf16>, vector<1x640xf32> -> vector<1x640xf32>
    %496 = arith.addf %490, %495 : vector<1x640xf32>
    %c19_314 = arith.constant 19 : index
    %c0_315 = arith.constant 0 : index
    %497 = tpu.strided_load %arg28[%c19_314, %c0_315] {strides = array<i32: 32, 1>} : memref<32x32xf32, #tpu.memory_space<vmem>>, vector<1x32xf32>
    %498 = arith.truncf %497 : vector<1x32xf32> to vector<1x32xbf16>
    %c13 = arith.constant 13 : index
    %c0_316 = arith.constant 0 : index
    %c0_317 = arith.constant 0 : index
    %499 = vector.load %arg14[%c13, %c0_316, %c0_317] : memref<20x32x640xbf16, #tpu.memory_space<vmem>>, vector<1x32x640xbf16>
    %500 = vector.shape_cast %499 : vector<1x32x640xbf16> to vector<32x640xbf16>
    %cst_318 = arith.constant dense<0.000000e+00> : vector<1x640xf32>
    %501 = tpu.matmul %498, %500, %cst_318 {dimension_numbers = #tpu.dot_dimension_numbers<[1], [0], [0], [1], [0, 0, 1, 1], [], []>} : vector<1x32xbf16>, vector<32x640xbf16>, vector<1x640xf32> -> vector<1x640xf32>
    %502 = arith.addf %496, %501 : vector<1x640xf32>
    %c20_319 = arith.constant 20 : index
    %c0_320 = arith.constant 0 : index
    %503 = tpu.strided_load %arg28[%c20_319, %c0_320] {strides = array<i32: 32, 1>} : memref<32x32xf32, #tpu.memory_space<vmem>>, vector<1x32xf32>
    %504 = arith.truncf %503 : vector<1x32xf32> to vector<1x32xbf16>
    %c14 = arith.constant 14 : index
    %c0_321 = arith.constant 0 : index
    %c0_322 = arith.constant 0 : index
    %505 = vector.load %arg14[%c14, %c0_321, %c0_322] : memref<20x32x640xbf16, #tpu.memory_space<vmem>>, vector<1x32x640xbf16>
    %506 = vector.shape_cast %505 : vector<1x32x640xbf16> to vector<32x640xbf16>
    %cst_323 = arith.constant dense<0.000000e+00> : vector<1x640xf32>
    %507 = tpu.matmul %504, %506, %cst_323 {dimension_numbers = #tpu.dot_dimension_numbers<[1], [0], [0], [1], [0, 0, 1, 1], [], []>} : vector<1x32xbf16>, vector<32x640xbf16>, vector<1x640xf32> -> vector<1x640xf32>
    %508 = arith.addf %502, %507 : vector<1x640xf32>
    %c21_324 = arith.constant 21 : index
    %c0_325 = arith.constant 0 : index
    %509 = tpu.strided_load %arg28[%c21_324, %c0_325] {strides = array<i32: 32, 1>} : memref<32x32xf32, #tpu.memory_space<vmem>>, vector<1x32xf32>
    %510 = arith.truncf %509 : vector<1x32xf32> to vector<1x32xbf16>
    %c15 = arith.constant 15 : index
    %c0_326 = arith.constant 0 : index
    %c0_327 = arith.constant 0 : index
    %511 = vector.load %arg14[%c15, %c0_326, %c0_327] : memref<20x32x640xbf16, #tpu.memory_space<vmem>>, vector<1x32x640xbf16>
    %512 = vector.shape_cast %511 : vector<1x32x640xbf16> to vector<32x640xbf16>
    %cst_328 = arith.constant dense<0.000000e+00> : vector<1x640xf32>
    %513 = tpu.matmul %510, %512, %cst_328 {dimension_numbers = #tpu.dot_dimension_numbers<[1], [0], [0], [1], [0, 0, 1, 1], [], []>} : vector<1x32xbf16>, vector<32x640xbf16>, vector<1x640xf32> -> vector<1x640xf32>
    %514 = arith.addf %508, %513 : vector<1x640xf32>
    %c22_329 = arith.constant 22 : index
    %c0_330 = arith.constant 0 : index
    %515 = tpu.strided_load %arg28[%c22_329, %c0_330] {strides = array<i32: 32, 1>} : memref<32x32xf32, #tpu.memory_space<vmem>>, vector<1x32xf32>
    %516 = arith.truncf %515 : vector<1x32xf32> to vector<1x32xbf16>
    %c16_331 = arith.constant 16 : index
    %c0_332 = arith.constant 0 : index
    %c0_333 = arith.constant 0 : index
    %517 = vector.load %arg14[%c16_331, %c0_332, %c0_333] : memref<20x32x640xbf16, #tpu.memory_space<vmem>>, vector<1x32x640xbf16>
    %518 = vector.shape_cast %517 : vector<1x32x640xbf16> to vector<32x640xbf16>
    %cst_334 = arith.constant dense<0.000000e+00> : vector<1x640xf32>
    %519 = tpu.matmul %516, %518, %cst_334 {dimension_numbers = #tpu.dot_dimension_numbers<[1], [0], [0], [1], [0, 0, 1, 1], [], []>} : vector<1x32xbf16>, vector<32x640xbf16>, vector<1x640xf32> -> vector<1x640xf32>
    %520 = arith.addf %514, %519 : vector<1x640xf32>
    %c23 = arith.constant 23 : index
    %c0_335 = arith.constant 0 : index
    %521 = tpu.strided_load %arg28[%c23, %c0_335] {strides = array<i32: 32, 1>} : memref<32x32xf32, #tpu.memory_space<vmem>>, vector<1x32xf32>
    %522 = arith.truncf %521 : vector<1x32xf32> to vector<1x32xbf16>
    %c17_336 = arith.constant 17 : index
    %c0_337 = arith.constant 0 : index
    %c0_338 = arith.constant 0 : index
    %523 = vector.load %arg14[%c17_336, %c0_337, %c0_338] : memref<20x32x640xbf16, #tpu.memory_space<vmem>>, vector<1x32x640xbf16>
    %524 = vector.shape_cast %523 : vector<1x32x640xbf16> to vector<32x640xbf16>
    %cst_339 = arith.constant dense<0.000000e+00> : vector<1x640xf32>
    %525 = tpu.matmul %522, %524, %cst_339 {dimension_numbers = #tpu.dot_dimension_numbers<[1], [0], [0], [1], [0, 0, 1, 1], [], []>} : vector<1x32xbf16>, vector<32x640xbf16>, vector<1x640xf32> -> vector<1x640xf32>
    %526 = arith.addf %520, %525 : vector<1x640xf32>
    %c24 = arith.constant 24 : index
    %c0_340 = arith.constant 0 : index
    %527 = tpu.strided_load %arg28[%c24, %c0_340] {strides = array<i32: 32, 1>} : memref<32x32xf32, #tpu.memory_space<vmem>>, vector<1x32xf32>
    %528 = arith.truncf %527 : vector<1x32xf32> to vector<1x32xbf16>
    %c18_341 = arith.constant 18 : index
    %c0_342 = arith.constant 0 : index
    %c0_343 = arith.constant 0 : index
    %529 = vector.load %arg14[%c18_341, %c0_342, %c0_343] : memref<20x32x640xbf16, #tpu.memory_space<vmem>>, vector<1x32x640xbf16>
    %530 = vector.shape_cast %529 : vector<1x32x640xbf16> to vector<32x640xbf16>
    %cst_344 = arith.constant dense<0.000000e+00> : vector<1x640xf32>
    %531 = tpu.matmul %528, %530, %cst_344 {dimension_numbers = #tpu.dot_dimension_numbers<[1], [0], [0], [1], [0, 0, 1, 1], [], []>} : vector<1x32xbf16>, vector<32x640xbf16>, vector<1x640xf32> -> vector<1x640xf32>
    %532 = arith.addf %526, %531 : vector<1x640xf32>
    %c25 = arith.constant 25 : index
    %c0_345 = arith.constant 0 : index
    %533 = tpu.strided_load %arg28[%c25, %c0_345] {strides = array<i32: 32, 1>} : memref<32x32xf32, #tpu.memory_space<vmem>>, vector<1x32xf32>
    %534 = arith.truncf %533 : vector<1x32xf32> to vector<1x32xbf16>
    %c19_346 = arith.constant 19 : index
    %c0_347 = arith.constant 0 : index
    %c0_348 = arith.constant 0 : index
    %535 = vector.load %arg14[%c19_346, %c0_347, %c0_348] : memref<20x32x640xbf16, #tpu.memory_space<vmem>>, vector<1x32x640xbf16>
    %536 = vector.shape_cast %535 : vector<1x32x640xbf16> to vector<32x640xbf16>
    %cst_349 = arith.constant dense<0.000000e+00> : vector<1x640xf32>
    %537 = tpu.matmul %534, %536, %cst_349 {dimension_numbers = #tpu.dot_dimension_numbers<[1], [0], [0], [1], [0, 0, 1, 1], [], []>} : vector<1x32xbf16>, vector<32x640xbf16>, vector<1x640xf32> -> vector<1x640xf32>
    %538 = arith.addf %532, %537 : vector<1x640xf32>
    %c0_350 = arith.constant 0 : index
    %c0_351 = arith.constant 0 : index
    %539 = vector.load %arg15[%c0_350, %c0_351] : memref<1x640xf32, #tpu.memory_space<vmem>>, vector<1x640xf32>
    %540 = arith.addf %538, %539 : vector<1x640xf32>
    %cst_352 = arith.constant 0.000000e+00 : f32
    %541 = vector.broadcast %cst_352 : f32 to vector<1x640xf32>
    %542 = arith.maximumf %540, %541 : vector<1x640xf32>
    %543 = arith.truncf %542 : vector<1x640xf32> to vector<1x640xbf16>
    %c0_353 = arith.constant 0 : index
    %c0_354 = arith.constant 0 : index
    %544 = vector.load %arg16[%c0_353, %c0_354] : memref<640x256xbf16, #tpu.memory_space<vmem>>, vector<640x256xbf16>
    %cst_355 = arith.constant dense<0.000000e+00> : vector<1x256xf32>
    %545 = tpu.matmul %543, %544, %cst_355 {dimension_numbers = #tpu.dot_dimension_numbers<[1], [0], [0], [1], [0, 0, 1, 1], [], []>} : vector<1x640xbf16>, vector<640x256xbf16>, vector<1x256xf32> -> vector<1x256xf32>
    %c0_356 = arith.constant 0 : index
    %c0_357 = arith.constant 0 : index
    %546 = vector.load %arg17[%c0_356, %c0_357] : memref<1x256xf32, #tpu.memory_space<vmem>>, vector<1x256xf32>
    %547 = arith.addf %545, %546 : vector<1x256xf32>
    %cst_358 = arith.constant 0.000000e+00 : f32
    %548 = vector.broadcast %cst_358 : f32 to vector<1x256xf32>
    %549 = arith.maximumf %547, %548 : vector<1x256xf32>
    %550 = arith.truncf %549 : vector<1x256xf32> to vector<1x256xbf16>
    %c0_359 = arith.constant 0 : index
    %c0_360 = arith.constant 0 : index
    %551 = vector.load %arg18[%c0_359, %c0_360] : memref<256x4xbf16, #tpu.memory_space<vmem>>, vector<256x4xbf16>
    %cst_361 = arith.constant dense<0.000000e+00> : vector<1x4xf32>
    %552 = tpu.matmul %550, %551, %cst_361 {dimension_numbers = #tpu.dot_dimension_numbers<[1], [0], [0], [1], [0, 0, 1, 1], [], []>} : vector<1x256xbf16>, vector<256x4xbf16>, vector<1x4xf32> -> vector<1x4xf32>
    %c0_362 = arith.constant 0 : index
    %c0_363 = arith.constant 0 : index
    %553 = vector.load %arg19[%c0_362, %c0_363] : memref<1x4xf32, #tpu.memory_space<vmem>>, vector<1x4xf32>
    %554 = arith.addf %552, %553 : vector<1x4xf32>
    %c0_364 = arith.constant 0 : index
    %c0_365 = arith.constant 0 : index
    %c0_366 = arith.constant 0 : index
    %555 = vector.load %arg20[%c0_364, %c0_365, %c0_366] : memref<1x1x4xf32, #tpu.memory_space<vmem>>, vector<1x1x4xf32>
    %556 = vector.shape_cast %555 : vector<1x1x4xf32> to vector<1x4xf32>
    %557 = vector.shape_cast %554 : vector<1x4xf32> to vector<1x1x4xf32>
    tpu.vector_store %arg20[%c0_364, %c0_365, %c0_366], %557 {strides = array<i32>} : memref<1x1x4xf32, #tpu.memory_space<vmem>>, vector<1x1x4xf32>,
    return
  }
  func.func @transform_0(%arg0: i32) -> (i32, i32, i32) {
    %c0_i32 = arith.constant 0 : i32
    %c0_i32_0 = arith.constant 0 : i32
    %c0_i32_1 = arith.constant 0 : i32
    return %arg0, %c0_i32, %c0_i32_0 : i32, i32, i32
  }
  func.func @transform_1(%arg0: i32) -> (i32, i32) {
    %c0_i32 = arith.constant 0 : i32
    %c0_i32_0 = arith.constant 0 : i32
    %c0_i32_1 = arith.constant 0 : i32
    return %c0_i32, %c0_i32_0 : i32, i32
  }
  func.func @transform_2(%arg0: i32) -> (i32, i32) {
    %c0_i32 = arith.constant 0 : i32
    %c0_i32_0 = arith.constant 0 : i32
    %c0_i32_1 = arith.constant 0 : i32
    return %c0_i32, %c0_i32_0 : i32, i32
  }
  func.func @transform_3(%arg0: i32) -> (i32, i32) {
    %c0_i32 = arith.constant 0 : i32
    %c0_i32_0 = arith.constant 0 : i32
    %c0_i32_1 = arith.constant 0 : i32
    return %c0_i32, %c0_i32_0 : i32, i32
  }
  func.func @transform_4(%arg0: i32) -> (i32, i32) {
    %c0_i32 = arith.constant 0 : i32
    %c0_i32_0 = arith.constant 0 : i32
    %c0_i32_1 = arith.constant 0 : i32
    return %c0_i32, %c0_i32_0 : i32, i32
  }
  func.func @transform_5(%arg0: i32) -> (i32, i32) {
    %c0_i32 = arith.constant 0 : i32
    %c0_i32_0 = arith.constant 0 : i32
    %c0_i32_1 = arith.constant 0 : i32
    return %c0_i32, %c0_i32_0 : i32, i32
  }
  func.func @transform_6(%arg0: i32) -> (i32, i32) {
    %c0_i32 = arith.constant 0 : i32
    %c0_i32_0 = arith.constant 0 : i32
    %c0_i32_1 = arith.constant 0 : i32
    return %c0_i32, %c0_i32_0 : i32, i32
  }
  func.func @transform_7(%arg0: i32) -> (i32, i32) {
    %c0_i32 = arith.constant 0 : i32
    %c0_i32_0 = arith.constant 0 : i32
    %c0_i32_1 = arith.constant 0 : i32
    return %c0_i32, %c0_i32_0 : i32, i32
  }
  func.func @transform_8(%arg0: i32) -> (i32, i32) {
    %c0_i32 = arith.constant 0 : i32
    %c0_i32_0 = arith.constant 0 : i32
    %c0_i32_1 = arith.constant 0 : i32
    return %c0_i32, %c0_i32_0 : i32, i32
  }
  func.func @transform_9(%arg0: i32) -> (i32, i32) {
    %c0_i32 = arith.constant 0 : i32
    %c0_i32_0 = arith.constant 0 : i32
    %c0_i32_1 = arith.constant 0 : i32
    return %c0_i32, %c0_i32_0 : i32, i32
  }
  func.func @transform_10(%arg0: i32) -> (i32, i32) {
    %c0_i32 = arith.constant 0 : i32
    %c0_i32_0 = arith.constant 0 : i32
    %c0_i32_1 = arith.constant 0 : i32
    return %c0_i32, %c0_i32_0 : i32, i32
  }
  func.func @transform_11(%arg0: i32) -> (i32, i32) {
    %c0_i32 = arith.constant 0 : i32
    %c0_i32_0 = arith.constant 0 : i32
    %c0_i32_1 = arith.constant 0 : i32
    return %c0_i32, %c0_i32_0 : i32, i32
  }
  func.func @transform_12(%arg0: i32) -> (i32, i32) {
    %c0_i32 = arith.constant 0 : i32
    %c0_i32_0 = arith.constant 0 : i32
    %c0_i32_1 = arith.constant 0 : i32
    return %c0_i32, %c0_i32_0 : i32, i32
  }
  func.func @transform_13(%arg0: i32) -> (i32, i32, i32) {
    %c0_i32 = arith.constant 0 : i32
    %c0_i32_0 = arith.constant 0 : i32
    %c0_i32_1 = arith.constant 0 : i32
    %c0_i32_2 = arith.constant 0 : i32
    return %c0_i32, %c0_i32_0, %c0_i32_1 : i32, i32, i32
  }
  func.func @transform_14(%arg0: i32) -> (i32, i32) {
    %c0_i32 = arith.constant 0 : i32
    %c0_i32_0 = arith.constant 0 : i32
    %c0_i32_1 = arith.constant 0 : i32
    return %c0_i32, %c0_i32_0 : i32, i32
  }
  func.func @transform_15(%arg0: i32) -> (i32, i32) {
    %c0_i32 = arith.constant 0 : i32
    %c0_i32_0 = arith.constant 0 : i32
    %c0_i32_1 = arith.constant 0 : i32
    return %c0_i32, %c0_i32_0 : i32, i32
  }
  func.func @transform_16(%arg0: i32) -> (i32, i32) {
    %c0_i32 = arith.constant 0 : i32
    %c0_i32_0 = arith.constant 0 : i32
    %c0_i32_1 = arith.constant 0 : i32
    return %c0_i32, %c0_i32_0 : i32, i32
  }
  func.func @transform_17(%arg0: i32) -> (i32, i32) {
    %c0_i32 = arith.constant 0 : i32
    %c0_i32_0 = arith.constant 0 : i32
    %c0_i32_1 = arith.constant 0 : i32
    return %c0_i32, %c0_i32_0 : i32, i32
  }
  func.func @transform_18(%arg0: i32) -> (i32, i32) {
    %c0_i32 = arith.constant 0 : i32
    %c0_i32_0 = arith.constant 0 : i32
    %c0_i32_1 = arith.constant 0 : i32
    return %c0_i32, %c0_i32_0 : i32, i32
  }
  func.func @transform_19(%arg0: i32) -> (i32, i32, i32) {
    %c0_i32 = arith.constant 0 : i32
    %c0_i32_0 = arith.constant 0 : i32
    %c0_i32_1 = arith.constant 0 : i32
    return %arg0, %c0_i32, %c0_i32_0 : i32, i32, i32
  }
}

</mosaic_0001>

<bundles_post_ra>
// kernel: tpu_custom_call.1
= control target key start
LH: loop header
LB: loop body
LE: loop exit
PB: predicated region body
PF: predicated region fallthrough
CT: control target
= control target key end

     0   :  { %s19161_s0 = inlined_call_operand.vmem [shape: f32[2,16,80], index: 0, kind: input, shape index: {}]   ;;  %s19162_s1 = inlined_call_operand.vmem [shape: f32[256,54], index: 1, kind: input, shape index: {}]   ;;  %s19163_s2 = inlined_call_operand.vmem [shape: f32[16,1], index: 2, kind: input, shape index: {}]   ;;  %s19164_s3 = inlined_call_operand.vmem [shape: f32[16,1], index: 3, kind: input, shape index: {}]   ;;  %s19165_s4 = inlined_call_operand.vmem [shape: f32[16,1], index: 4, kind: input, shape index: {}]   ;;  %s19166_s5 = inlined_call_operand.vmem [shape: bf16[144,32], index: 5, kind: input, shape index: {}]   ;;  %s19167_s6 = inlined_call_operand.vmem [shape: f32[1,32], index: 6, kind: input, shape index: {}]   ;;  %s19168_s7 = inlined_call_operand.vmem [shape: f32[1,32], index: 7, kind: input, shape index: {}]   ;;  %s19169_s8 = inlined_call_operand.vmem [shape: f32[1,32], index: 8, kind: input, shape index: {}]   ;;  %s19170_s9 = inlined_call_operand.vmem [shape: bf16[288,32], index: 9, kind: input, shape index: {}]   ;;  %s19171_s10 = inlined_call_operand.vmem [shape: f32[1,32], index: 10, kind: input, shape index: {}]   ;;  %s19172_s11 = inlined_call_operand.vmem [shape: f32[1,32], index: 11, kind: input, shape index: {}]   ;;  %s19173_s12 = inlined_call_operand.vmem [shape: f32[1,32], index: 12, kind: input, shape index: {}]   ;;  %s19174_s13 = inlined_call_operand.hbm [shape: bf16[20,32,640], index: 13, kind: input, shape index: {}]   ;;  %s19175_s14 = inlined_call_operand.vmem [shape: f32[1,640], index: 14, kind: input, shape index: {}]   ;;  %s19176_s15 = inlined_call_operand.vmem [shape: bf16[640,256], index: 15, kind: input, shape index: {}]   ;;  %s19177_s16 = inlined_call_operand.vmem [shape: f32[1,256], index: 16, kind: input, shape index: {}]   ;;  %s19178_s17 = inlined_call_operand.vmem [shape: bf16[256,4], index: 17, kind: input, shape index: {}]   ;;  %s19179_s18 = inlined_call_operand.vmem [shape: f32[1,4], index: 18, kind: input, shape index: {}]   ;;  %s19180_s19 = inlined_call_operand.hbm [shape: f32[2,1,4], index: 19, kind: output, shape index: {}]  }
   0x1   :  { %19465 = sst [smem:[#allocation153_spill]] %s19161_s0 }
   0x2   :  { %19466 = sst [smem:[#allocation154_spill]] %s19162_s1 }
   0x3   :  { %19467 = sst [smem:[#allocation155_spill]] %s19163_s2 }
   0x4   :  { %19468 = sst [smem:[#allocation156_spill]] %s19164_s3 }
   0x5   :  { %19469 = sst [smem:[#allocation157_spill]] %s19165_s4 }
   0x6   :  { %19470 = sst [smem:[#allocation158_spill]] %s19174_s13 }
   0x7   :  { %24 = vsyncpa [#allocation11], 0 }
   0x8   :  { %25 = vsyncpa [#allocation12], 0 }
   0x9   :  { %27 = vsyncpa [#allocation12 + $0x1], 0  ;;  %s13700_s0 = smov 0   ;;  %s13702_s30 = smov 0  }
   0xa   :  { %s13704_s20 = smov 0   ;;  %s13706_s21 = smov 0  }
   0xb LB: > { %19471 = sst [smem:[#allocation16_spill]] %s13570_s0  ;;  %s13721_s1 = sadd.s32 4294967295, %s13582_s21   ;;  %s13582_s21 = sphi %s13706_s21, %s20385_s21   ;;  %s13578_s20 = sphi %s13704_s20, %s20387_s20   ;;  %s13574_s30 = sphi %s13702_s30, %s20389_s30   ;;  %s13570_s0 = sphi %s13700_s0, %s20388_s0  }
   0xc   : > { %19472 = sst [smem:[#allocation17_spill]] %s13578_s20  ;;  %s11111_s22 = sadd.s32 4294967294, %s13582_s21  }
   0xd   : > { %s13725_s2 = sadd.s32 1, %s13582_s21   ;;  %s444_s23 = sadd.s32 1, %s13578_s20 }
   0xe   : > { %19473 = sst [smem:[#allocation18_spill]] %s13725_s2  ;;  %s441_s24 = ssub.s32 %s13582_s21, %s13725_s2 }
   0xf   : > { %p454_p0 = scmp.ne.s32.totalorder %s13578_s20, %s13574_s30  ;;  %p442_p1 = scmp.eq.s32.totalorder %s441_s24, 0 }
  0x10   : > { %p455_p2 = scmp.eq.s32.totalorder %s13721_s1, 1  ;;  %p460_p3 = scmp.ne.s32.totalorder %s13574_s30, %s13570_s0 }
  0x11   : > { %p461_p4 = scmp.eq.s32.totalorder %s11111_s22, 1  ;;  %p11112_p7 = scmp.ge.s32.totalorder %s13582_s21, 1 }
  0x12   : > { %s13736_s25 = scalar_select %p442_p1, %s13578_s20, %s444_s23  }
  0x13   : > { %p13738_p5 = por %p455_p2, %p454_p0  ;;  %p13742_p6 = por %p461_p4, %p460_p3 }
  0x14   : > { %19474 = sst [smem:[#allocation19_spill]] %s13736_s25  ;;  %p468_p8 = scmp.lt.s32.totalorder %s13582_s21, 3 }
  0x15   : > { %s19475_s3 = scalar_select %p13738_p5, 1, 0 }
  0x16   : > { %s19476_s26 = scalar_select %p13742_p6, 1, 0 }
  0x17   : > { %p19189_p9 = scmp.eq.s32.totalorder %s13721_s1, 0  ;;  %p13749_p10 = pnand %p11112_p7, %p468_p8 }
  0x18   : > { %19477 = sst [smem:[#allocation20_spill]] %s19476_s26  ;;  %s13584_s28 = smov [#allocation10]  }
  0x19   : > { %s19478_s27 = scalar_select %p13749_p10, 1, 0 }
  0x1a   : > { %s516_s29 = sshll.u32 %s13584_s28, 4  ;;  %p12096_p11 = pneg %p13749_p10  ;;  %s517_s29 = int_to_ptr.vmem [resolvable:$true] %s516_s29 }
  0x1b   : > { %s19480_s13 = sld [smem:[#allocation158_spill]] }
  0x1c   : > { %p13757_p12 = pnand %p19189_p9, %p12096_p11 }
  0x1e   : > { %p13490_p0 = pneg %p13757_p12 }
  0x21   : > { %s13488_s25 = scalar_lea.hbm %s19480_s13, 25600 }
  0x22   : > { %p13489_p13 = scmp.ne.s32.totalorder %s19480_s13, %s13488_s25  ;;  %p13495_p3 = scmp.lt.u32.totalorder %s13488_s25, %s19480_s13 }
  0x24   : > { %p13491_p1 = pnand %p13490_p0, %p13489_p13 }
  0x26   : > { %p13492_p2 = pneg %p13491_p1 }
  0x28   : > { %p13497_p4 = pnand %p13495_p3, %p13492_p2 }
  0x2a   : > { %13500 = shalt.err (!%p13497_p4)
}
  0x2b   : > { %s13501_s0 = scalar_lea.vmem %s517_s29, 25600  ;;  %p13509_p9 = scmp.lt.s32.totalorder %s517_s29, %s517_s29 }
  0x2c   : > { %p13502_p7 = scmp.ne.s32.totalorder %s517_s29, %s13501_s0  ;;  %p13510_p6 = scmp.lt.s32.totalorder %s13501_s0, %s13501_s0 }
  0x2e   : > { %p13504_p8 = pnand %p13502_p7, %p13490_p0  ;;  %p13511_p5 = por %p13510_p6, %p13509_p9 }
  0x30   : > { %p13505_p11 = pneg %p13504_p8 }
  0x32   : > { %p13512_p10 = pnand %p13511_p5, %p13505_p11 }
  0x34   : > { %13515 = shalt.err (!%p13512_p10)
}
  0x35   : > { %s13585_s20 = smov 320   ;;  %s13586_s2 = smov 20  }
  0x36   : > { %12099 = dma.hbm_to_vmem [thread:$0]  (!%p13757_p12), %s19480_s13, 25600, %s517_s29, [#allocation11], %s13585_s20, %s13585_s20, %s13586_s2  }
  0x37   : > { %p19481_p13 = scmp.ne.s32.totalorder %s19478_s27, 0 }
  0x39   : > { %555 = sbr.rel (%p19481_p13) target bundleno = 2678 (0xa76), region = 96 }
  0x40   : > { %p19482_p1 = scmp.eq.s32.totalorder %s13721_s1, 0 }
  0x42   : > { %13561 = dma.done.wait (%p19482_p1), [#allocation11], 25600   ;;  %p19483_p0 = pmov %p19482_p1 }
  0x43   : > { %p610_p5 = scmp.lt.s32.totalorder %s13721_s1, 1  ;;  %vm19194_vm0 = vcmask 654336   ;;  %v19196_v0 = vmov 0.0   ;;  %vm1576_vm1 = vcmask 652288   ;;  %s19484_s29 = sld [smem:[#allocation153_spill]]  ;;  %vm1716_vm2 = vcmask 441344  }
  0x44   : > { %13563 = vsyncadd (%p19483_p0), [#allocation11], 4294941696  ;;  %1572 = vst.msk [vmem:[#allocation2 + $0x10] sm:$0xff] %vm19194_vm0, %v19196_v0  ;;  %s13588_s28 = smov 1   ;;  %s13589_s20 = smov 127   ;;  %v628_v6 = vlaneseq  ;;  %vm1578_vm3 = vcmask 130048  }
  0x45   : > { %1573 = vst.msk [vmem:[#allocation2 + $0x18] sm:$0xff] %vm19194_vm0, %v19196_v0  ;;  %1570 = vst.msk [vmem:[#allocation2] sm:$0xff] %vm19194_vm0, %v19196_v0  ;;  %s611_s0 = scalar_select %p610_p5, %s13721_s1, 1  ;;  %v19198_v7 = vmov 0  }
  0x46   : > { %1571 = vst.msk [vmem:[#allocation2 + $0x8] sm:$0xff] %vm19194_vm0, %v19196_v0  ;;  %1574 = vst.msk [vmem:[#allocation2 + $0x20] sm:$0xff] %vm19194_vm0, %v19196_v0  ;;  %s19485_s24 = sld [smem:[#allocation154_spill]]  ;;  %s19486_s26 = sld [smem:[#allocation155_spill]]  ;;  %12154 = vset.pattern.permute.xlu0 %v19198_v7  ;;  %12155 = vset.pattern.permute.xlu1 %v19198_v7  ;;  %v13921_v10 = vshrl.u32 %v628_v6, 7 }
  0x47   : > { %1575 = vst.msk [vmem:[#allocation2 + $0x28] sm:$0xff] %vm19194_vm0, %v19196_v0  ;;  %s11569_s25 = sshll.u32 %s611_s0, 4  ;;  %4847 = vmatprep.subr.bf16.mxu1 %v19198_v7  ;;  %s19493_s4 = sld [smem:[#allocation157_spill]] }
  0x48   : > { %1577 = vst.msk [vmem:[#allocation2 + $0x30] sm:$0x3f] %vm1576_vm1, %v19196_v0  ;;  %19489 = vst [vmem:[#allocation21_spill] sm:$0xff] %v13921_v10  ;;  %v13925_v11 = vadd.s32 8, %v13921_v10  ;;  %v13928_v12 = vmul.u32.u64.low 3435973837, %v13921_v10  ;;  %v13929_v13 = vmul.u32.u64.high 3435973837, %v13921_v10, %v13928_v12 }
  0x49   : > { %s614_s22 = scalar_lea.vmem %s19484_s29, %s11569_s25  ;;  %1579 = vst.msk [vmem:[#allocation5] sm:$0xff] %vm1578_vm3, %v19196_v0  ;;  %1580 = vst.msk [vmem:[#allocation5 + $0x8] sm:$0xff] %vm1578_vm3, %v19196_v0  ;;  %v13932_v14 = vadd.s32 16, %v13921_v10  ;;  %v13941_v17 = vadd.s32 24, %v13921_v10  ;;  %s19192_s29 = smov 32  }
  0x4a   : > { %v1649_v1 = vld [vmem:[%s614_s22] sm:$0xff]  ;;  %v1650_v2 = vld [vmem:[%s614_s22 + $0x8] sm:$0xff]  ;;  %1581 = vst.msk [vmem:[#allocation5 + $0x10] sm:$0xff] %vm1578_vm3, %v19196_v0  ;;  %1582 = vst.msk [vmem:[#allocation5 + $0x18] sm:$0xff] %vm1578_vm3, %v19196_v0  ;;  %v13944_v18 = vmul.u32.u64.low 3435973837, %v13925_v11  ;;  %v13945_v19 = vmul.u32.u64.high 3435973837, %v13925_v11, %v13944_v18 }
  0x4b   : > { %1653 = vrot.lane.b32.xlu0 %v1649_v1, %s13588_s28  ;;  %1673 = vst.msk [vmem:[#allocation2 + $0x13] sm:$0xff] %vm19194_vm0, %v1649_v1  ;;  %1662 = vrot.lane.b32.xlu1 %v1649_v1, %s13589_s20  ;;  %1674 = vst.msk [vmem:[#allocation2 + $0x1b] sm:$0xff] %vm19194_vm0, %v1650_v2  ;;  %v13948_v20 = vmul.u32.u64.low 3435973837, %v13932_v14  ;;  %v13949_v21 = vmul.u32.u64.high 3435973837, %v13932_v14, %v13948_v20  ;;  %v13952_v22 = vmul.u32.u64.low 3435973837, %v13941_v17  ;;  %v13953_v23 = vmul.u32.u64.high 3435973837, %v13941_v17, %v13952_v22 }
  0x4c   : > { %v1677_v3 = vld [vmem:[%s19485_s24] sm:$0xff]  ;;  %v617_v5 = vld [vmem:[%s19486_s26 + $0x8] sm:$0xff]  ;;  %1583 = vst.msk [vmem:[#allocation5 + $0x20] sm:$0xff] %vm1578_vm3, %v19196_v0  ;;  %1584 = vst.msk [vmem:[#allocation5 + $0x28] sm:$0xff] %vm1578_vm3, %v19196_v0  ;;  %v675_v24 = vshrl.u32 %v13929_v13, 5  ;;  %v686_v26 = vshrl.u32 %v13945_v19, 5 }
  0x4d   : > { %11758 = vmatprep.mubr.msk.f32.mxu0 %vm1716_vm2, %v1677_v3  ;;  %v616_v4 = vld [vmem:[%s19486_s26] sm:$0xff]  ;;  %1585 = vst.msk [vmem:[#allocation5 + $0x30] sm:$0xff] %vm1578_vm3, %v19196_v0  ;;  %1586 = vst.msk [vmem:[#allocation5 + $0x38] sm:$0xff] %vm1578_vm3, %v19196_v0  ;;  %v621_v15 = vld [vmem:[%s19493_s4 + $0x8] sm:$0xff]  ;;  %v697_v27 = vshrl.u32 %v13949_v21, 5  ;;  %v708_v28 = vshrl.u32 %v13953_v23, 5 }
  0x4e   : > { %1587 = vst.msk [vmem:[#allocation5 + $0x40] sm:$0xff] %vm1578_vm3, %v19196_v0  ;;  %1588 = vst.msk [vmem:[#allocation5 + $0x48] sm:$0xff] %vm1578_vm3, %v19196_v0  ;;  %v620_v16 = vld [vmem:[%s19493_s4] sm:$0xff]  ;;  %v676_v25 = vmul.u32 40, %v675_v24  ;;  %v687_v30 = vmul.u32 40, %v686_v26  ;;  %s13592_s22 = smov 16  }
  0x4f   : > { %1655 = vrot.lane.b32.xlu0 %v1650_v2, %s13588_s28  ;;  %1664 = vrot.lane.b32.xlu1 %v1650_v2, %s13589_s20  ;;  %s19487_s20 = sld [smem:[#allocation156_spill]]  ;;  %1589 = vst.msk [vmem:[#allocation5 + $0x50] sm:$0xff] %vm1578_vm3, %v19196_v0  ;;  %1590 = vst.msk [vmem:[#allocation5 + $0x58] sm:$0xff] %vm1578_vm3, %v19196_v0  ;;  %v698_v31 = vmul.u32 40, %v697_v27  ;;  %v709_v33 = vmul.u32 40, %v708_v28  ;;  %v1678_v18 = vld [vmem:[%s19485_s24 + $0x8] sm:$0xff] }
  0x50   : > { %1591 = vst.msk [vmem:[#allocation5 + $0x60] sm:$0xff] %vm1578_vm3, %v19196_v0  ;;  %1592 = vst.msk [vmem:[#allocation5 + $0x68] sm:$0xff] %vm1578_vm3, %v19196_v0  ;;  %v677_v29 = vsub.s32 %v13921_v10, %v676_v25  ;;  %v2985_v32 = vld [vmem:[#allocation5 + $0x2] sm:$0xff]  ;;  %v688_v34 = vsub.s32 %v13925_v11, %v687_v30  ;;  %v1680_v22 = vld [vmem:[%s19485_s24 + $0x18] sm:$0xff]  ;;  %s13594_s23 = smov 112   ;;  %s13595_s28 = smov 80  }
  0x51   : > { %1593 = vst.msk [vmem:[#allocation5 + $0x70] sm:$0xff] %vm1578_vm3, %v19196_v0  ;;  %1594 = vst.msk [vmem:[#allocation5 + $0x78] sm:$0xff] %vm1578_vm3, %v19196_v0  ;;  %v2986_v36 = vld [vmem:[#allocation5 + $0xa] sm:$0xff]  ;;  %v699_v37 = vsub.s32 %v13932_v14, %v698_v31  ;;  %v710_v38 = vsub.s32 %v13941_v17, %v709_v33  ;;  %v2987_v46 = vld [vmem:[#allocation5 + $0x12] sm:$0xff]  ;;  %s13596_s13 = smov 64   ;;  %s13597_s27 = smov 96  }
  0x52   : > { %1595 = vst.msk [vmem:[#allocation5 + $0x80] sm:$0xff] %vm1578_vm3, %v19196_v0  ;;  %1596 = vst.msk [vmem:[#allocation5 + $0x88] sm:$0xff] %vm1578_vm3, %v19196_v0  ;;  %vm1109_vm4 = vcmp.ne.s32.totalorder %v677_v29, 0  ;;  %vm1149_vm5 = vcmp.lt.s32.totalorder %v677_v29, 0  ;;  %v1229_v35 = vadd.s32 40, %v677_v29  ;;  %vm1110_vm7 = vcmp.ne.s32.totalorder %v688_v34, 0 }
  0x53   : > { %1597 = vst.msk [vmem:[#allocation5 + $0x90] sm:$0xff] %vm1578_vm3, %v19196_v0  ;;  %1598 = vst.msk [vmem:[#allocation5 + $0x98] sm:$0xff] %vm1578_vm3, %v19196_v0  ;;  %2080 = vperm.xlu0 %12154, %v616_v4   ;;  %2085 = vperm.xlu1 %12155, %v617_v5   ;;  %vm1150_vm8 = vcmp.lt.s32.totalorder %v688_v34, 0  ;;  %v1230_v39 = vadd.s32 40, %v688_v34  ;;  %vm1111_vm11 = vcmp.ne.s32.totalorder %v699_v37, 0  ;;  %vm1112_vm12 = vcmp.ne.s32.totalorder %v710_v38, 0 }
  0x54   : > { %1599 = vst.msk [vmem:[#allocation5 + $0xa0] sm:$0xff] %vm1578_vm3, %v19196_v0  ;;  %1600 = vst.msk [vmem:[#allocation5 + $0xa8] sm:$0xff] %vm1578_vm3, %v19196_v0  ;;  %vm1151_vm13 = vcmp.lt.s32.totalorder %v699_v37, 0  ;;  %v2947_v43 = vld [vmem:[#allocation5 + $0x11] sm:$0xff]  ;;  %v2948_v44 = vld [vmem:[#allocation5 + $0x19] sm:$0xff]  ;;  %vm1152_vm14 = vcmp.lt.s32.totalorder %v710_v38, 0 }
  0x55   : > { %s19488_s2 = smov %s19487_s20  ;;  %v619_v8 = vld [vmem:[%s19487_s20 + $0x8] sm:$0xff]  ;;  %1601 = vst.msk [vmem:[#allocation5 + $0xb0] sm:$0xff] %vm1578_vm3, %v19196_v0  ;;  %1602 = vst.msk [vmem:[#allocation5 + $0xb8] sm:$0xff] %vm1578_vm3, %v19196_v0  ;;  %v1231_v45 = vadd.s32 40, %v699_v37  ;;  %v1232_v47 = vadd.s32 40, %v710_v38  ;;  %v12166_v53 = vpack.i.bf16 %v2948_v44, %v2947_v43  ;;  %v1712_v2 = vld [vmem:[#allocation2 + $0x18] sm:$0xff] }
  0x56   : > { %v618_v9 = vld [vmem:[%s19488_s2] sm:$0xff]  ;;  %1603 = vst.msk [vmem:[#allocation5 + $0xc0] sm:$0xff] %vm1578_vm3, %v19196_v0  ;;  %1604 = vst.msk [vmem:[#allocation5 + $0xc8] sm:$0xff] %vm1578_vm3, %v19196_v0  ;;  %v1679_v20 = vld [vmem:[%s19485_s24 + $0x10] sm:$0xff]  ;;  %s19551_s20 = smov 32   ;;  %s11566_s0 = sshll.u32 %s13721_s1, 4 }
  0x57   : > { %1605 = vst.msk [vmem:[#allocation5 + $0xd0] sm:$0xff] %vm1578_vm3, %v19196_v0  ;;  %1606 = vst.msk [vmem:[#allocation5 + $0xd8] sm:$0xff] %vm1578_vm3, %v19196_v0  ;;  %2099 = vperm.xlu0 %12154, %v619_v8   ;;  %2094 = vperm.xlu1 %12155, %v618_v9   ;;  %v2988_v48 = vld [vmem:[#allocation5 + $0x1a] sm:$0xff]  ;;  %v1683_v26 = vld [vmem:[%s19485_s24 + $0x30] sm:$0xff]  ;;  %s19119_s2 = scalar_lea.hbm %s19180_s19, %s11566_s0  ;;  %p20381_p9 = scmp.ne.s32.totalorder %s19475_s3, 0 }
  0x58   : > { %1607 = vst.msk [vmem:[#allocation5 + $0xe0] sm:$0xff] %vm1578_vm3, %v19196_v0  ;;  %1608 = vst.msk [vmem:[#allocation5 + $0xe8] sm:$0xff] %vm1578_vm3, %v19196_v0  ;;  %v1681_v24 = vld [vmem:[%s19485_s24 + $0x20] sm:$0xff]  ;;  %v1682_v25 = vld [vmem:[%s19485_s24 + $0x28] sm:$0xff] }
  0x59   : > { %1609 = vst.msk [vmem:[#allocation5 + $0xf0] sm:$0xff] %vm1578_vm3, %v19196_v0  ;;  %1610 = vst.msk [vmem:[#allocation5 + $0xf8] sm:$0xff] %vm1578_vm3, %v19196_v0  ;;  %v1684_v27 = vld [vmem:[%s19485_s24 + $0x38] sm:$0xff]  ;;  %v1685_v28 = vld [vmem:[%s19485_s24 + $0x40] sm:$0xff] }
  0x5a   : > { %1611 = vst.msk [vmem:[#allocation5 + $0x100] sm:$0xff] %vm1578_vm3, %v19196_v0  ;;  %1612 = vst.msk [vmem:[#allocation5 + $0x108] sm:$0xff] %vm1578_vm3, %v19196_v0  ;;  %v1687_v30 = vld [vmem:[%s19485_s24 + $0x50] sm:$0xff]  ;;  %v1688_v31 = vld [vmem:[%s19485_s24 + $0x58] sm:$0xff] }
  0x5b   : > { %1613 = vst.msk [vmem:[#allocation5 + $0x110] sm:$0xff] %vm1578_vm3, %v19196_v0  ;;  %1614 = vst.msk [vmem:[#allocation5 + $0x118] sm:$0xff] %vm1578_vm3, %v19196_v0  ;;  %2111 = vperm.xlu0 %12154, %v621_v15   ;;  %2106 = vperm.xlu1 %12155, %v620_v16   ;;  %v1690_v33 = vld [vmem:[%s19485_s24 + $0x68] sm:$0xff]  ;;  %v1699_v44 = vld [vmem:[%s19485_s24 + $0xb0] sm:$0xff] }
  0x5c   : > { %1615 = vst.msk [vmem:[#allocation5 + $0x120] sm:$0xff] %vm1578_vm3, %v19196_v0  ;;  %1616 = vst.msk [vmem:[#allocation5 + $0x128] sm:$0xff] %vm1578_vm3, %v19196_v0  ;;  %v1698_v43 = vld [vmem:[%s19485_s24 + $0xa8] sm:$0xff] }
  0x5d   : > { %1617 = vst.msk [vmem:[#allocation5 + $0x130] sm:$0xff] %vm1578_vm3, %v19196_v0  ;;  %1618 = vst.msk [vmem:[#allocation5 + $0x138] sm:$0xff] %vm1578_vm3, %v19196_v0 }
  0x5e   : > { %1619 = vst.msk [vmem:[#allocation5 + $0x140] sm:$0xff] %vm1578_vm3, %v19196_v0  ;;  %1620 = vst.msk [vmem:[#allocation5 + $0x148] sm:$0xff] %vm1578_vm3, %v19196_v0 }
  0x5f   : > { %1621 = vst.msk [vmem:[#allocation5 + $0x150] sm:$0xff] %vm1578_vm3, %v19196_v0  ;;  %1622 = vst.msk [vmem:[#allocation5 + $0x158] sm:$0xff] %vm1578_vm3, %v19196_v0 }
  0x60   : > { %1623 = vst.msk [vmem:[#allocation5 + $0x160] sm:$0xff] %vm1578_vm3, %v19196_v0  ;;  %1624 = vst.msk [vmem:[#allocation5 + $0x168] sm:$0xff] %vm1578_vm3, %v19196_v0 }
  0x61   : > { %1625 = vst.msk [vmem:[#allocation5 + $0x170] sm:$0xff] %vm1578_vm3, %v19196_v0  ;;  %1626 = vst.msk [vmem:[#allocation5 + $0x178] sm:$0xff] %vm1578_vm3, %v19196_v0 }
  0x62   : > { %1627 = vst.msk [vmem:[#allocation5 + $0x180] sm:$0xff] %vm1578_vm3, %v19196_v0  ;;  %1628 = vst.msk [vmem:[#allocation5 + $0x188] sm:$0xff] %vm1578_vm3, %v19196_v0 }
  0x63   : > { %19490 = vst [vmem:[#allocation22_spill] sm:$0xff] %v13925_v11  ;;  %19491 = vst [vmem:[#allocation23_spill] sm:$0xff] %v13929_v13 }
  0x64   : > { %19492 = vst [vmem:[#allocation24_spill] sm:$0xff] %v13932_v14  ;;  %19494 = vst [vmem:[#allocation25_spill] sm:$0xff] %v13941_v17 }
  0x65   : > { %19495 = vst [vmem:[#allocation26_spill] sm:$0xff] %v13945_v19  ;;  %19496 = vst [vmem:[#allocation27_spill] sm:$0xff] %v13949_v21 }
  0x66   : > { %19497 = vst [vmem:[#allocation28_spill] sm:$0xff] %v13953_v23  ;;  %vm1189_vm6 = vmand %vm1149_vm5, %vm1109_vm4 }
  0x67   : > { %v13963_v40 = vsel %vm1189_vm6, %v1229_v35, %v677_v29  ;;  %vm1190_vm9 = vmand %vm1150_vm8, %vm1110_vm7  ;;  %vm1659_vm7 = vcmask 7168   ;;  %vm1668_vm8 = vcmask 646144   ;;  %v1686_v29 = vld [vmem:[%s19485_s24 + $0x48] sm:$0xff]  ;;  %v1692_v35 = vld [vmem:[%s19485_s24 + $0x78] sm:$0xff] }
  0x68   : > { %19498 = vst [vmem:[#allocation29_spill] sm:$0xff] %v13963_v40  ;;  %vm1349_vm10 = vcmp.lt.s32.totalorder %v13963_v40, 39  ;;  %v13966_v41 = vsel %vm1190_vm9, %v1230_v39, %v688_v34  ;;  %vm1191_vm15 = vmand %vm1151_vm13, %vm1111_vm11  ;;  %vm1813_vm9 = vcmask 1045504   ;;  %v1691_v34 = vld [vmem:[%s19485_s24 + $0x70] sm:$0xff]  ;;  %v1696_v39 = vld [vmem:[%s19485_s24 + $0x98] sm:$0xff]  ;;  %vm19195_vm11 = vcmask 261120  }
  0x69   : > { %19499 = vst [vmem:[#allocation30_spill] sm:$0xff] %v13966_v41  ;;  %v3105_v42 = vsel %vm1349_vm10, %v2985_v32, 0.0  ;;  %vm1350_vm1 = vcmp.lt.s32.totalorder %v13966_v41, 39  ;;  %vm1192_vm4 = vmand %vm1152_vm14, %vm1112_vm12  ;;  %v13973_v50 = vsel %vm1191_vm15, %v1231_v45, %v699_v37  ;;  %v1689_v32 = vld [vmem:[%s19485_s24 + $0x60] sm:$0xff]  ;;  %v1694_v37 = vld [vmem:[%s19485_s24 + $0x88] sm:$0xff] }
  0x6a   : > { %v3106_v49 = vsel %vm1350_vm1, %v2986_v36, 0.0  ;;  %19500 = vst [vmem:[#allocation31_spill] sm:$0xff] %v13973_v50  ;;  %v13975_v52 = vsel %vm1192_vm4, %v1232_v47, %v710_v38  ;;  %vm19203_vm5 = vcmp.lt.s32.totalorder %v13973_v50, 39  ;;  %v1693_v36 = vld [vmem:[%s19485_s24 + $0x80] sm:$0xff]  ;;  %v1695_v38 = vld [vmem:[%s19485_s24 + $0x90] sm:$0xff]  ;;  %v1700_v45 = vld [vmem:[%s19485_s24 + $0xb8] sm:$0xff] }
  0x6b   : > { %v12161_v51 = vpack.i.bf16 %v3106_v49, %v3105_v42  ;;  %19501 = vst [vmem:[#allocation32_spill] sm:$0xff] %v13975_v52  ;;  %vm19202_vm6 = vcmp.lt.s32.totalorder %v13975_v52, 39  ;;  %v3107_v54 = vsel %vm19203_vm5, %v2987_v46, 0.0  ;;  %v1697_v42 = vld [vmem:[%s19485_s24 + $0xa0] sm:$0xff]  ;;  %v1702_v47 = vld [vmem:[%s19485_s24 + $0xc8] sm:$0xff]  ;;  %v1704_v49 = vld [vmem:[%s19485_s24 + $0xd8] sm:$0xff] }
  0x6c   : > { %v3108_v55 = vsel %vm19202_vm6, %v2988_v48, 0.0  ;;  %v1701_v46 = vld [vmem:[%s19485_s24 + $0xc0] sm:$0xff]  ;;  %v1703_v48 = vld [vmem:[%s19485_s24 + $0xd0] sm:$0xff]  ;;  %1632 = vst.msk [vmem:[#allocation7] sm:$0xff] %vm19195_vm11, %v19196_v0  ;;  %1633 = vst.msk [vmem:[#allocation7 + $0x8] sm:$0xff] %vm19195_vm11, %v19196_v0 }
  0x6d   : > { %12162 = vrot.lane.b32.xlu1 %v12161_v51, %s19192_s29  ;;  %v12171_v56 = vpack.i.bf16 %v3108_v55, %v3107_v54  ;;  %v1705_v51 = vld [vmem:[%s19485_s24 + $0xe0] sm:$0xff]  ;;  %v1707_v54 = vld [vmem:[%s19485_s24 + $0xf0] sm:$0xff]  ;;  %v1708_v55 = vld [vmem:[%s19485_s24 + $0xf8] sm:$0xff]  ;;  %1634 = vst.msk [vmem:[#allocation7 + $0x10] sm:$0xff] %vm19195_vm11, %v19196_v0 }
  0x6e   : > { %1635 = vst.msk [vmem:[#allocation7 + $0x18] sm:$0xff] %vm19195_vm11, %v19196_v0  ;;  %1636 = vst.msk [vmem:[#allocation7 + $0x20] sm:$0xff] %vm19195_vm11, %v19196_v0 }
  0x6f   : > { %1637 = vst.msk [vmem:[#allocation7 + $0x28] sm:$0xff] %vm19195_vm11, %v19196_v0  ;;  %1638 = vst.msk [vmem:[#allocation7 + $0x30] sm:$0xff] %vm19195_vm11, %v19196_v0 }
  0x70   : > { %1639 = vst.msk [vmem:[#allocation7 + $0x38] sm:$0xff] %vm19195_vm11, %v19196_v0  ;;  %1640 = vst.msk [vmem:[#allocation7 + $0x40] sm:$0xff] %vm19195_vm11, %v19196_v0 }
  0x71   : > { %12167 = vrot.lane.b32.xlu1 %v12166_v53, %s13592_s22  ;;  %v1706_v53 = vld [vmem:[%s19485_s24 + $0xe8] sm:$0xff]  ;;  %1641 = vst.msk [vmem:[#allocation7 + $0x48] sm:$0xff] %vm19195_vm11, %v19196_v0  ;;  %1642 = vst.msk [vmem:[#allocation7 + $0x50] sm:$0xff] %vm19195_vm11, %v19196_v0 }
  0x72   : > { %1643 = vst.msk [vmem:[#allocation7 + $0x58] sm:$0xff] %vm19195_vm11, %v19196_v0  ;;  %1644 = vst.msk [vmem:[#allocation7 + $0x60] sm:$0xff] %vm19195_vm11, %v19196_v0 }
  0x73   : > { %1645 = vst.msk [vmem:[#allocation7 + $0x68] sm:$0xff] %vm19195_vm11, %v19196_v0  ;;  %1646 = vst.msk [vmem:[#allocation7 + $0x70] sm:$0xff] %vm19195_vm11, %v19196_v0 }
  0x75   : > { %12172 = vrot.lane.b32.xlu1 %v12171_v56, %s19192_s29  ;;  %v2945_v56 = vld [vmem:[#allocation5 + $0x1] sm:$0xff]  ;;  %s13593_s29 = smov 48  }
  0xbd   : > { %v1654_v57 = vpop.permute.xlu0 %1653  ;;  %v1663_v58 = vpop.permute.xlu1 %1662 }
  0xbe   : > { %v1660_v59 = vsel %vm1659_vm7, 0.0, %v1654_v57  ;;  %v1669_v60 = vsel %vm1668_vm8, %v1663_v58, 0.0  ;;  %v2946_v57 = vld [vmem:[#allocation5 + $0x9] sm:$0xff] }
  0xbf   : > { %1671 = vst.msk [vmem:[#allocation2 + $0x1] sm:$0xff] %vm19194_vm0, %v1660_v59  ;;  %1675 = vst.msk [vmem:[#allocation2 + $0x25] sm:$0xff] %vm19194_vm0, %v1669_v60  ;;  %v12156_v58 = vpack.i.bf16 %v2946_v57, %v2945_v56 }
  0xc1   : > { %v1656_v61 = vpop.permute.xlu0 %1655  ;;  %v1665_v62 = vpop.permute.xlu1 %1664  ;;  %12157 = vrot.lane.b32.xlu0 %v12156_v58, %s13592_s22 }
  0xc2   : > { %v1661_v63 = vsel %vm1659_vm7, 0.0, %v1656_v61  ;;  %v1670_v1 = vsel %vm1668_vm8, %v1665_v62, 0.0 }
  0xc3   : > { %1672 = vst.msk [vmem:[#allocation2 + $0x9] sm:$0xff] %vm19194_vm0, %v1661_v63  ;;  %1676 = vst.msk [vmem:[#allocation2 + $0x2d] sm:$0xff] %vm19194_vm0, %v1670_v1 }
  0xc6   : > { %v1709_v3 = vld [vmem:[#allocation2] sm:$0xff] }
  0xc7   : > { %v1713_v8 = vld [vmem:[#allocation2 + $0x20] sm:$0xff] }
  0xca   : > { %v1710_v4 = vld [vmem:[#allocation2 + $0x8] sm:$0xff]  ;;  %v1711_v5 = vld [vmem:[#allocation2 + $0x10] sm:$0xff] }
  0xcb   : > { %v11990_v6 = vpack.c.bf16 %v1710_v4, %v1709_v3  ;;  %v1714_v9 = vld [vmem:[#allocation2 + $0x28] sm:$0xff]  ;;  %v11994_v12 = vpack.c.bf16 %v1712_v2, %v1711_v5  ;;  %v1715_v16 = vld [vmem:[#allocation2 + $0x30] sm:$0x3f] }
  0xcc   : > { %v11998_v15 = vpack.c.bf16 %v1714_v9, %v1713_v8 }
  0xcd   : > { %11991 = vmatprep.subr.bf16.mxu0 %v11990_v6 }
  0xce   : > { %11993 = vmatpush3.bf16.msra.mxu0 %v11990_v6 }
  0xcf   : > { %11995 = vmatprep.subr.bf16.mxu0 %v11994_v12 }
  0xd2   : > { %11997 = vmatpush3.bf16.msra.mxu0 %v11994_v12  ;;  %v14148_v63 = vpop.permute.xlu1 %2085  ;;  %v14151_v3 = vpop.permute.xlu0 %2080 }
  0xd3   : > { %11999 = vmatprep.subr.bf16.mxu0 %v11998_v15 }
  0xd6   : > { %12001 = vmatpush3.bf16.msra.mxu0 %v11998_v15  ;;  %v14156_v8 = vpop.permute.xlu1 %2094 }
  0xd7   : > { %11756 = vmatprep.subr.msk.mxu0 %vm1813_vm9, %v1715_v16 }
  0xda   : > { %11757 = vmatpush3.msk.msra.mxu0 %vm1813_vm9, %v1715_v16 }
  0xdb   : > { %11759 = vmatmul.mubr.msk.f32.vlgmr.msra.gmra.mrb[0].mxu0 %vm1716_vm2, %v1678_v18 }
  0xdc   : > { %11761 = vmatprep.mubr.msk.f32.mxu0 %vm1716_vm2, %v1679_v20 }
  0xdf   : > { %11762 = vmatmul.mubr.msk.f32.gmra.mrb[2].mxu0 %vm1716_vm2, %v1680_v22 }
  0xe0   : > { %11764 = vmatprep.mubr.msk.f32.mxu0 %vm1716_vm2, %v1681_v24 }
  0xe3   : > { %11765 = vmatmul.mubr.msk.f32.gmra.mrb[4].mxu0 %vm1716_vm2, %v1682_v25  ;;  %v14163_v25 = vpop.permute.xlu0 %2099 }
  0xe4   : > { %11767 = vmatprep.mubr.msk.f32.mxu0 %vm1716_vm2, %v1683_v26 }
  0xe7   : > { %11768 = vmatmul.mubr.msk.f32.gmra.mrb[6].mxu0 %vm1716_vm2, %v1684_v27 }
  0xe8   : > { %11770 = vmatprep.mubr.msk.f32.mxu0 %vm1716_vm2, %v1685_v28 }
  0xeb   : > { %11771 = vmatmul.mubr.msk.f32.gmra.mrb[8].mxu0 %vm1716_vm2, %v1686_v29 }
  0xec   : > { %11773 = vmatprep.mubr.msk.f32.mxu0 %vm1716_vm2, %v1687_v30 }
  0xef   : > { %11774 = vmatmul.mubr.msk.f32.gmra.mrb[10].mxu0 %vm1716_vm2, %v1688_v31  ;;  %v14166_v31 = vpop.permute.xlu1 %2106 }
  0xf0   : > { %11776 = vmatprep.mubr.msk.f32.mxu0 %vm1716_vm2, %v1689_v32 }
  0xf3   : > { %11777 = vmatmul.mubr.msk.f32.gmra.mrb[12].mxu0 %vm1716_vm2, %v1690_v33 }
  0xf4   : > { %11779 = vmatprep.mubr.msk.f32.mxu0 %vm1716_vm2, %v1691_v34 }
  0xf7   : > { %11780 = vmatmul.mubr.msk.f32.gmra.mrb[14].mxu0 %vm1716_vm2, %v1692_v35 }
  0xf8   : > { %11782 = vmatprep.mubr.msk.f32.mxu0 %vm1716_vm2, %v1693_v36 }
  0xfb   : > { %11783 = vmatmul.mubr.msk.f32.gmra.mrb[16].mxu0 %vm1716_vm2, %v1694_v37 }
  0xfc   : > { %11785 = vmatprep.mubr.msk.f32.mxu0 %vm1716_vm2, %v1695_v38 }
  0xff   : > { %11786 = vmatmul.mubr.msk.f32.gmra.mrb[18].mxu0 %vm1716_vm2, %v1696_v39 }
 0x100   : > { %11788 = vmatprep.mubr.msk.f32.mxu0 %vm1716_vm2, %v1697_v42 }
 0x103   : > { %11789 = vmatmul.mubr.msk.f32.gmra.mrb[20].mxu0 %vm1716_vm2, %v1698_v43 }
 0x104   : > { %11791 = vmatprep.mubr.msk.f32.mxu0 %vm1716_vm2, %v1699_v44 }
 0x107   : > { %11792 = vmatmul.mubr.msk.f32.gmra.mrb[22].mxu0 %vm1716_vm2, %v1700_v45 }
 0x108   : > { %11794 = vmatprep.mubr.msk.f32.mxu0 %vm1716_vm2, %v1701_v46 }
 0x10b   : > { %11795 = vmatmul.mubr.msk.f32.gmra.mrb[24].mxu0 %vm1716_vm2, %v1702_v47  ;;  %v14177_v47 = vpop.permute.xlu0 %2111 }
 0x10c   : > { %11797 = vmatprep.mubr.msk.f32.mxu0 %vm1716_vm2, %v1703_v48 }
 0x10f   : > { %11798 = vmatmul.mubr.msk.f32.gmra.mrb[26].mxu0 %vm1716_vm2, %v1704_v49 }
 0x110   : > { %11800 = vmatprep.mubr.msk.f32.mxu0 %vm1716_vm2, %v1705_v51 }
 0x113   : > { %11801 = vmatmul.mubr.msk.f32.gmra.mrb[28].mxu0 %vm1716_vm2, %v1706_v53 }
 0x114   : > { %11803 = vmatprep.mubr.msk.f32.mxu0 %vm1716_vm2, %v1707_v54 }
 0x117   : > { %11804 = vmatmul.mubr.msk.f32.gmra.mrb[30].mxu0 %vm1716_vm2, %v1708_v55 }
 0x1ae   : > { %v11760_v59 = vpop.f32.mrb[0].mxu0 }
 0x1af   : > { %2043 = vst.msk [vmem:[#allocation3 + $0x8] sm:$0xff] %vm19194_vm0, %v11760_v59  ;;  %v1883_v60 = vpop.f32.mrb[1].mxu0 }
 0x1b0   : > { %2042 = vst.msk [vmem:[#allocation3] sm:$0xff] %vm19194_vm0, %v1883_v60 }
 0x1b2   : > { %v11763_v61 = vpop.f32.mrb[2].mxu0 }
 0x1b3   : > { %2045 = vst.msk [vmem:[#allocation3 + $0x18] sm:$0xff] %vm19194_vm0, %v11763_v61  ;;  %v1893_v62 = vpop.f32.mrb[3].mxu0 }
 0x1b4   : > { %2044 = vst.msk [vmem:[#allocation3 + $0x10] sm:$0xff] %vm19194_vm0, %v1893_v62 }
 0x1b6   : > { %v11766_v1 = vpop.f32.mrb[4].mxu0  ;;  %v2075_v2 = vld [vmem:[#allocation3 + $0x8] sm:$0xff] }
 0x1b7   : > { %2047 = vst.msk [vmem:[#allocation3 + $0x28] sm:$0xff] %vm19194_vm0, %v11766_v1  ;;  %v1903_v4 = vpop.f32.mrb[5].mxu0  ;;  %v2074_v5 = vld [vmem:[#allocation3] sm:$0xff]  ;;  %v2089_v9 = vadd.f32 %v14148_v63, %v2075_v2 }
 0x1b8   : > { %2046 = vst.msk [vmem:[#allocation3 + $0x20] sm:$0xff] %vm19194_vm0, %v1903_v4  ;;  %v2088_v6 = vadd.f32 %v14151_v3, %v2074_v5 }
 0x1b9   : > { %v2091_v26 = vmax.f32 %v2089_v9, 0.0 }
 0x1ba   : > { %v11769_v12 = vpop.f32.mrb[6].mxu0  ;;  %v2090_v15 = vmax.f32 %v2088_v6, 0.0  ;;  %v2077_v16 = vld [vmem:[#allocation3 + $0x18] sm:$0xff] }
 0x1bb   : > { %2049 = vst.msk [vmem:[#allocation3 + $0x38] sm:$0xff] %vm19194_vm0, %v11769_v12  ;;  %v1913_v18 = vpop.f32.mrb[7].mxu0  ;;  %v2076_v20 = vld [vmem:[#allocation3 + $0x10] sm:$0xff]  ;;  %v2117_v22 = vadd.f32 %v14148_v63, %v2077_v16  ;;  %v2103_v38 = vmul.f32 %v14163_v25, %v2091_v26 }
 0x1bc   : > { %2048 = vst.msk [vmem:[#allocation3 + $0x30] sm:$0xff] %vm19194_vm0, %v1913_v18  ;;  %v2116_v24 = vadd.f32 %v14151_v3, %v2076_v20  ;;  %v2102_v29 = vmul.f32 %v14156_v8, %v2090_v15 }
 0x1bd   : > { %v2119_v27 = vmax.f32 %v2117_v22, 0.0  ;;  %v2115_v58 = vadd.f32 %v14177_v47, %v2103_v38 }
 0x1be   : > { %v11772_v28 = vpop.f32.mrb[8].mxu0  ;;  %v2118_v30 = vmax.f32 %v2116_v24, 0.0  ;;  %v2198_v34 = vld [vmem:[#allocation3 + $0x28] sm:$0xff]  ;;  %v2114_v42 = vadd.f32 %v14166_v31, %v2102_v29 }
 0x1bf   : > { %2051 = vst.msk [vmem:[#allocation3 + $0x48] sm:$0xff] %vm19194_vm0, %v11772_v28  ;;  %v1923_v32 = vpop.f32.mrb[9].mxu0  ;;  %v2197_v33 = vld [vmem:[#allocation3 + $0x20] sm:$0xff]  ;;  %v2121_v36 = vmul.f32 %v2119_v27, %v14163_v25  ;;  %v2202_v46 = vadd.f32 %v2198_v34, %v14148_v63 }
 0x1c0   : > { %2050 = vst.msk [vmem:[#allocation3 + $0x40] sm:$0xff] %vm19194_vm0, %v1923_v32  ;;  %v2120_v35 = vmul.f32 %v2118_v30, %v14156_v8  ;;  %v2201_v37 = vadd.f32 %v2197_v33, %v14151_v3 }
 0x1c1   : > { %v2123_v54 = vadd.f32 %v2121_v36, %v14177_v47  ;;  %v2204_v61 = vmax.f32 %v2202_v46, 0.0 }
 0x1c2   : > { %v11775_v39 = vpop.f32.mrb[10].mxu0  ;;  %v2122_v43 = vadd.f32 %v2120_v35, %v14166_v31  ;;  %v2203_v44 = vmax.f32 %v2201_v37, 0.0  ;;  %v2200_v45 = vld [vmem:[#allocation3 + $0x38] sm:$0xff] }
 0x1c3   : > { %2053 = vst.msk [vmem:[#allocation3 + $0x58] sm:$0xff] %vm19194_vm0, %v11775_v39  ;;  %v1933_v48 = vpop.f32.mrb[11].mxu0  ;;  %v2199_v49 = vld [vmem:[#allocation3 + $0x30] sm:$0xff]  ;;  %v2210_v51 = vadd.f32 %v2200_v45, %v14148_v63  ;;  %v2125_v1 = vmax.f32 %v2115_v58, %v2123_v54  ;;  %v2206_v12 = vmul.f32 %v2204_v61, %v14163_v25 }
 0x1c4   : > { %2052 = vst.msk [vmem:[#allocation3 + $0x50] sm:$0xff] %vm19194_vm0, %v1933_v48  ;;  %v2124_v53 = vmax.f32 %v2114_v42, %v2122_v43  ;;  %v2209_v55 = vadd.f32 %v2199_v49, %v14151_v3  ;;  %v2205_v59 = vmul.f32 %v2203_v44, %v14156_v8 }
 0x1c5   : > { %v2212_v56 = vmax.f32 %v2210_v51, 0.0  ;;  %v2208_v22 = vadd.f32 %v2206_v12, %v14177_v47 }
 0x1c6   : > { %v11778_v57 = vpop.f32.mrb[12].mxu0  ;;  %2126 = vxpose.xlu1.b32.start [1/2] (short) (narrow) %v2124_v53, 80  ;;  %v2211_v60 = vmax.f32 %v2209_v55, 0.0  ;;  %v2207_v6 = vadd.f32 %v2205_v59, %v14166_v31 }
 0x1c7   : > { %2055 = vst.msk [vmem:[#allocation3 + $0x68] sm:$0xff] %vm19194_vm0, %v11778_v57  ;;  %v1943_v62 = vpop.f32.mrb[13].mxu0  ;;  %v2214_v4 = vmul.f32 %v2212_v56, %v14163_v25  ;;  %v2281_v51 = vld [vmem:[#allocation3 + $0x40] sm:$0xff] }
 0x1c8   : > { %2054 = vst.msk [vmem:[#allocation3 + $0x60] sm:$0xff] %vm19194_vm0, %v1943_v62  ;;  %v2213_v2 = vmul.f32 %v2211_v60, %v14156_v8  ;;  %v2285_v61 = vadd.f32 %v2281_v51, %v14151_v3  ;;  %v2282_v62 = vld [vmem:[#allocation3 + $0x48] sm:$0xff] }
 0x1c9   : > { %v2216_v18 = vadd.f32 %v2214_v4, %v14177_v47 }
 0x1ca   : > { %v11781_v5 = vpop.f32.mrb[14].mxu0  ;;  %2127 = vxpose.xlu1.b32.end [2/2] (short) (narrow) %v2125_v1, 80  ;;  %v2215_v9 = vadd.f32 %v2213_v2, %v14166_v31  ;;  %v2284_v57 = vld [vmem:[#allocation3 + $0x58] sm:$0xff] }
 0x1cb   : > { %2057 = vst.msk [vmem:[#allocation3 + $0x78] sm:$0xff] %vm19194_vm0, %v11781_v5  ;;  %v1953_v15 = vpop.f32.mrb[15].mxu0  ;;  %v2218_v26 = vmax.f32 %v2208_v22, %v2216_v18  ;;  %v2283_v45 = vld [vmem:[#allocation3 + $0x50] sm:$0xff]  ;;  %v2294_v5 = vadd.f32 %v2284_v57, %v14148_v63  ;;  %v2286_v18 = vadd.f32 %v2282_v62, %v14148_v63 }
 0x1cc   : > { %2056 = vst.msk [vmem:[#allocation3 + $0x70] sm:$0xff] %vm19194_vm0, %v1953_v15  ;;  %v2217_v16 = vmax.f32 %v2207_v6, %v2215_v9  ;;  %v2293_v55 = vadd.f32 %v2283_v45, %v14151_v3 }
 0x1ce   : > { %v11784_v20 = vpop.f32.mrb[16].mxu0  ;;  %2219 = vxpose.xlu0.b32.start [1/2] (short) (narrow) %v2217_v16, 80  ;;  %v2366_v39 = vld [vmem:[#allocation3 + $0x68] sm:$0xff]  ;;  %v2295_v4 = vmax.f32 %v2293_v55, 0.0  ;;  %v2287_v16 = vmax.f32 %v2285_v61, 0.0 }
 0x1cf   : > { %2059 = vst.msk [vmem:[#allocation3 + $0x88] sm:$0xff] %vm19194_vm0, %v11784_v20  ;;  %v1963_v24 = vpop.f32.mrb[17].mxu0  ;;  %v2365_v33 = vld [vmem:[#allocation3 + $0x60] sm:$0xff]  ;;  %v2370_v49 = vadd.f32 %v2366_v39, %v14148_v63 }
 0x1d0   : > { %2058 = vst.msk [vmem:[#allocation3 + $0x80] sm:$0xff] %vm19194_vm0, %v1963_v24  ;;  %v2369_v38 = vadd.f32 %v2365_v33, %v14151_v3  ;;  %v2297_v24 = vmul.f32 %v2295_v4, %v14156_v8 }
 0x1d1   : > { %v2372_v60 = vmax.f32 %v2370_v49, 0.0 }
 0x1d2   : > { %v11787_v27 = vpop.f32.mrb[18].mxu0  ;;  %2220 = vxpose.xlu0.b32.end [2/2] (short) (narrow) %v2218_v26, 80  ;;  %v2368_v36 = vld [vmem:[#allocation3 + $0x78] sm:$0xff]  ;;  %v2371_v48 = vmax.f32 %v2369_v38, 0.0  ;;  %v2296_v26 = vmax.f32 %v2294_v5, 0.0 }
 0x1d3   : > { %2061 = vst.msk [vmem:[#allocation3 + $0x98] sm:$0xff] %vm19194_vm0, %v11787_v27  ;;  %v1973_v28 = vpop.f32.mrb[19].mxu0  ;;  %v2367_v30 = vld [vmem:[#allocation3 + $0x70] sm:$0xff]  ;;  %v2378_v43 = vadd.f32 %v2368_v36, %v14148_v63  ;;  %v2374_v15 = vmul.f32 %v2372_v60, %v14163_v25 }
 0x1d4   : > { %2060 = vst.msk [vmem:[#allocation3 + $0x90] sm:$0xff] %vm19194_vm0, %v1973_v28  ;;  %v2377_v34 = vadd.f32 %v2367_v30, %v14151_v3  ;;  %v2373_v59 = vmul.f32 %v2371_v48, %v14156_v8  ;;  %v2289_v30 = vmul.f32 %v2287_v16, %v14156_v8 }
 0x1d5   : > { %v2380_v54 = vmax.f32 %v2378_v43, 0.0 }
 0x1d6   : > { %v11790_v29 = vpop.f32.mrb[20].mxu0  ;;  %v2379_v42 = vmax.f32 %v2377_v34, 0.0  ;;  %v2375_v12 = vadd.f32 %v2373_v59, %v14166_v31  ;;  %v2299_v34 = vadd.f32 %v2297_v24, %v14166_v31  ;;  %v2291_v36 = vadd.f32 %v2289_v30, %v14166_v31  ;;  %v2450_v5 = vld [vmem:[#allocation3 + $0x88] sm:$0xff] }
 0x1d7   : > { %2063 = vst.msk [vmem:[#allocation3 + $0xa8] sm:$0xff] %vm19194_vm0, %v11790_v29  ;;  %v1983_v32 = vpop.f32.mrb[21].mxu0  ;;  %v2382_v2 = vmul.f32 %v2380_v54, %v14163_v25  ;;  %v2376_v29 = vadd.f32 %v2374_v15, %v14177_v47 }
 0x1d8   : > { %2062 = vst.msk [vmem:[#allocation3 + $0xa0] sm:$0xff] %vm19194_vm0, %v1983_v32  ;;  %v2381_v53 = vmul.f32 %v2379_v42, %v14156_v8  ;;  %v2288_v32 = vmax.f32 %v2286_v18, 0.0  ;;  %v2301_v38 = vmax.f32 %v2291_v36, %v2299_v34 }
 0x1d9   : > { %v2384_v22 = vadd.f32 %v2382_v2, %v14177_v47 }
 0x1da   : > { %v11793_v35 = vpop.f32.mrb[22].mxu0  ;;  %v2383_v1 = vadd.f32 %v2381_v53, %v14166_v31  ;;  %v2452_v62 = vld [vmem:[#allocation3 + $0x98] sm:$0xff] }
 0x1db   : > { %2065 = vst.msk [vmem:[#allocation3 + $0xb8] sm:$0xff] %vm19194_vm0, %v11793_v35  ;;  %v1993_v37 = vpop.f32.mrb[23].mxu0  ;;  %v2386_v33 = vmax.f32 %v2376_v29, %v2384_v22  ;;  %v2298_v35 = vmul.f32 %v2296_v26, %v14163_v25  ;;  %v2451_v55 = vld [vmem:[#allocation3 + $0x90] sm:$0xff]  ;;  %v2462_v15 = vadd.f32 %v2452_v62, %v14148_v63  ;;  %v2454_v22 = vadd.f32 %v2450_v5, %v14148_v63 }
 0x1dc   : > { %2064 = vst.msk [vmem:[#allocation3 + $0xb0] sm:$0xff] %vm19194_vm0, %v1993_v37  ;;  %v2385_v20 = vmax.f32 %v2375_v12, %v2383_v1  ;;  %v2290_v37 = vmul.f32 %v2288_v32, %v14163_v25  ;;  %v2461_v61 = vadd.f32 %v2451_v55, %v14151_v3 }
 0x1dd   : > { %v2300_v39 = vadd.f32 %v2298_v35, %v14177_v47  ;;  %v2456_v32 = vmax.f32 %v2454_v22, 0.0 }
 0x1de   : > { %v11796_v44 = vpop.f32.mrb[24].mxu0  ;;  %v2292_v42 = vadd.f32 %v2290_v37, %v14177_v47  ;;  %v2534_v51 = vld [vmem:[#allocation3 + $0xa8] sm:$0xff]  ;;  %v2463_v12 = vmax.f32 %v2461_v61, 0.0 }
 0x1df   : > { %2067 = vst.msk [vmem:[#allocation3 + $0xc8] sm:$0xff] %vm19194_vm0, %v11796_v44  ;;  %v2003_v46 = vpop.f32.mrb[25].mxu0  ;;  %v2533_v45 = vld [vmem:[#allocation3 + $0xa0] sm:$0xff]  ;;  %v2538_v57 = vadd.f32 %v2534_v51, %v14148_v63  ;;  %v2458_v37 = vmul.f32 %v2456_v32, %v14163_v25  ;;  %v14279_v32 = vpop.permute.xlu1 %12162 }
 0x1e0   : > { %2066 = vst.msk [vmem:[#allocation3 + $0xc0] sm:$0xff] %vm19194_vm0, %v2003_v46  ;;  %v2302_v43 = vmax.f32 %v2292_v42, %v2300_v39  ;;  %v2537_v49 = vadd.f32 %v2533_v45, %v14151_v3  ;;  %19502 = vst [vmem:[#allocation33_spill] sm:$0xff] %v14279_v32 }
 0x1e1   : > { %v2540_v2 = vmax.f32 %v2538_v57, 0.0  ;;  %v2460_v42 = vadd.f32 %v2458_v37, %v14177_v47  ;;  %v14286_v37 = vadd.s32 40, %v13921_v10 }
 0x1e2   : > { %v11799_v56 = vpop.f32.mrb[26].mxu0  ;;  %v2536_v48 = vld [vmem:[#allocation3 + $0xb8] sm:$0xff] }
 0x1e3   : > { %2069 = vst.msk [vmem:[#allocation3 + $0xd8] sm:$0xff] %vm19194_vm0, %v11799_v56  ;;  %v2013_v58 = vpop.f32.mrb[27].mxu0  ;;  %v2535_v44 = vld [vmem:[#allocation3 + $0xb0] sm:$0xff]  ;;  %v2546_v54 = vadd.f32 %v2536_v48, %v14148_v63  ;;  %v2539_v56 = vmax.f32 %v2537_v49, 0.0  ;;  %v2542_v18 = vmul.f32 %v2540_v2, %v14163_v25  ;;  %19503 = vst [vmem:[#allocation34_spill] sm:$0xff] %v14286_v37 }
 0x1e4   : > { %2068 = vst.msk [vmem:[#allocation3 + $0xd0] sm:$0xff] %vm19194_vm0, %v2013_v58  ;;  %v2545_v46 = vadd.f32 %v2535_v44, %v14151_v3  ;;  %v2449_v58 = vld [vmem:[#allocation3 + $0x80] sm:$0xff] }
 0x1e5   : > { %v2548_v60 = vmax.f32 %v2546_v54, 0.0  ;;  %v2541_v1 = vmul.f32 %v2539_v56, %v14156_v8  ;;  %v2453_v4 = vadd.f32 %v2449_v58, %v14151_v3  ;;  %v2544_v29 = vadd.f32 %v2542_v18, %v14177_v47 }
 0x1e6   : > { %v11802_v6 = vpop.f32.mrb[28].mxu0  ;;  %v2547_v53 = vmax.f32 %v2545_v46, 0.0  ;;  %v2618_v51 = vld [vmem:[#allocation3 + $0xc8] sm:$0xff] }
 0x1e7   : > { %2071 = vst.msk [vmem:[#allocation3 + $0xe8] sm:$0xff] %vm19194_vm0, %v11802_v6  ;;  %v2023_v9 = vpop.f32.mrb[29].mxu0  ;;  %v2543_v16 = vadd.f32 %v2541_v1, %v14166_v31  ;;  %v2617_v45 = vld [vmem:[#allocation3 + $0xc0] sm:$0xff]  ;;  %v2622_v57 = vadd.f32 %v2618_v51, %v14148_v63 }
 0x1e8   : > { %2070 = vst.msk [vmem:[#allocation3 + $0xe0] sm:$0xff] %vm19194_vm0, %v2023_v9  ;;  %v2549_v59 = vmul.f32 %v2547_v53, %v14156_v8  ;;  %v2550_v9 = vmul.f32 %v2548_v60, %v14163_v25  ;;  %v2621_v49 = vadd.f32 %v2617_v45, %v14151_v3  ;;  %v14297_v45 = vadd.s32 48, %v13921_v10 }
 0x1e9   : > { %v2624_v2 = vmax.f32 %v2622_v57, 0.0  ;;  %v14321_v57 = vadd.s32 56, %v13921_v10 }
 0x1ea   : > { %v11805_v27 = vpop.f32.mrb[30].mxu0  ;;  %v2551_v6 = vadd.f32 %v2549_v59, %v14166_v31  ;;  %v2552_v26 = vadd.f32 %v2550_v9, %v14177_v47  ;;  %v2620_v48 = vld [vmem:[#allocation3 + $0xd8] sm:$0xff]  ;;  %v2623_v56 = vmax.f32 %v2621_v49, 0.0  ;;  %19506 = vst [vmem:[#allocation37_spill] sm:$0xff] %v14297_v45  ;;  %v14306_v49 = vadd.s32 80, %v13921_v10 }
 0x1eb   : > { %2073 = vst.msk [vmem:[#allocation3 + $0xf8] sm:$0xff] %vm19194_vm0, %v11805_v27  ;;  %v2033_v28 = vpop.f32.mrb[31].mxu0  ;;  %2387 = vxpose.xlu1.b32.start [1/2] (short) (narrow) %v2385_v20, 80  ;;  %v2455_v20 = vmax.f32 %v2453_v4, 0.0  ;;  %v2465_v27 = vmul.f32 %v2463_v12, %v14156_v8  ;;  %v2619_v44 = vld [vmem:[#allocation3 + $0xd0] sm:$0xff]  ;;  %v2630_v54 = vadd.f32 %v2620_v48, %v14148_v63  ;;  %v2626_v18 = vmul.f32 %v2624_v2, %v14163_v25 }
 0x1ec   : > { %2072 = vst.msk [vmem:[#allocation3 + $0xf0] sm:$0xff] %vm19194_vm0, %v2033_v28  ;;  %v2553_v24 = vmax.f32 %v2543_v16, %v2551_v6  ;;  %v2464_v28 = vmax.f32 %v2462_v15, 0.0  ;;  %v2629_v46 = vadd.f32 %v2619_v44, %v14151_v3  ;;  %v2625_v1 = vmul.f32 %v2623_v56, %v14156_v8  ;;  %19510 = vst [vmem:[#allocation41_spill] sm:$0xff] %v14321_v57 }
 0x1ed   : > { %v2457_v30 = vmul.f32 %v2455_v20, %v14156_v8  ;;  %v2467_v34 = vadd.f32 %v2465_v27, %v14166_v31  ;;  %v2632_v60 = vmax.f32 %v2630_v54, 0.0  ;;  %v14314_v54 = vadd.s32 32, %v13921_v10 }
 0x1ee   : > { %v2466_v35 = vmul.f32 %v2464_v28, %v14163_v25  ;;  %v2631_v53 = vmax.f32 %v2629_v46, 0.0  ;;  %v2702_v5 = vld [vmem:[#allocation3 + $0xe8] sm:$0xff]  ;;  %v2627_v16 = vadd.f32 %v2625_v1, %v14166_v31  ;;  %v2628_v28 = vadd.f32 %v2626_v18, %v14177_v47 }
 0x1ef   : > { %2388 = vxpose.xlu1.b32.end [2/2] (short) (narrow) %v2386_v33, 80  ;;  %v2554_v33 = vmax.f32 %v2544_v29, %v2552_v26  ;;  %v2459_v36 = vadd.f32 %v2457_v30, %v14166_v31  ;;  %v2701_v58 = vld [vmem:[#allocation3 + $0xe0] sm:$0xff]  ;;  %v2634_v9 = vmul.f32 %v2632_v60, %v14163_v25  ;;  %v2706_v22 = vadd.f32 %v2702_v5, %v14148_v63 }
 0x1f0   : > { %v2468_v39 = vadd.f32 %v2466_v35, %v14177_v47  ;;  %v2633_v59 = vmul.f32 %v2631_v53, %v14156_v8  ;;  %v2705_v4 = vadd.f32 %v2701_v58, %v14151_v3  ;;  %v14310_v53 = vadd.s32 88, %v13921_v10  ;;  %19509 = vst [vmem:[#allocation40_spill] sm:$0xff] %v14314_v54 }
 0x1f1   : > { %v2636_v26 = vadd.f32 %v2634_v9, %v14177_v47  ;;  %v2708_v30 = vmax.f32 %v2706_v22, 0.0  ;;  %v14302_v46 = vmul.u32.u64.low 3435973837, %v14297_v45  ;;  %v14303_v48 = vmul.u32.u64.high 3435973837, %v14297_v45, %v14302_v46 }
 0x1f2   : > { %v2704_v62 = vld [vmem:[#allocation3 + $0xf8] sm:$0xff]  ;;  %v2635_v6 = vadd.f32 %v2633_v59, %v14166_v31  ;;  %v2707_v20 = vmax.f32 %v2705_v4, 0.0  ;;  %v14323_v59 = vpop.permute.xlu0 %12157  ;;  %v14332_v2 = vmul.u32.u64.low 3435973837, %v14314_v54  ;;  %v14333_v4 = vmul.u32.u64.high 3435973837, %v14314_v54, %v14332_v2 }
 0x1f3   : > { %2303 = vxpose.xlu0.b32.start [1/2] (short) (narrow) %v2301_v38, 80  ;;  %v2469_v38 = vmax.f32 %v2459_v36, %v2467_v34  ;;  %v2703_v55 = vld [vmem:[#allocation3 + $0xf0] sm:$0xff]  ;;  %v2714_v15 = vadd.f32 %v2704_v62, %v14148_v63  ;;  %v2710_v36 = vmul.f32 %v2708_v30, %v14163_v25  ;;  %19508 = vst [vmem:[#allocation39_spill] sm:$0xff] %v14303_v48  ;;  %19511 = vst [vmem:[#allocation42_spill] sm:$0xff] %v14323_v59 }
 0x1f4   : > { %v2713_v61 = vadd.f32 %v2703_v55, %v14151_v3  ;;  %v2709_v29 = vmul.f32 %v2707_v20, %v14156_v8  ;;  %v14317_v55 = vmul.u32.u64.low 3435973837, %v14306_v49  ;;  %v14318_v56 = vmul.u32.u64.high 3435973837, %v14306_v49, %v14317_v55  ;;  %19512 = vst [vmem:[#allocation43_spill] sm:$0xff] %v14333_v4 }
 0x1f5   : > { %v2716_v27 = vmax.f32 %v2714_v15, 0.0  ;;  %v14327_v62 = vmul.u32.u64.low 3435973837, %v14310_v53  ;;  %v14328_v1 = vmul.u32.u64.high 3435973837, %v14310_v53, %v14327_v62  ;;  %v14382_v2 = vadd.s32 120, %v13921_v10 }
 0x1f6   : > { %v2715_v12 = vmax.f32 %v2713_v61, 0.0  ;;  %v2711_v63 = vadd.f32 %v2709_v29, %v14166_v31  ;;  %v741_v61 = vshrl.u32 %v14303_v48, 5  ;;  %v785_v20 = vshrl.u32 %v14318_v56, 5 }
 0x1f7   : > { %2304 = vxpose.xlu0.b32.end [2/2] (short) (narrow) %v2302_v43, 80  ;;  %v2470_v43 = vmax.f32 %v2460_v42, %v2468_v39  ;;  %v2718_v35 = vmul.f32 %v2716_v27, %v14163_v25  ;;  %v2712_v42 = vadd.f32 %v2710_v36, %v14177_v47  ;;  %v796_v30 = vshrl.u32 %v14328_v1, 5 }
 0x1f8   : > { %v2717_v3 = vmul.f32 %v2715_v12, %v14156_v8  ;;  %v14289_v8 = vpop.permute.xlu1 %12167  ;;  %v14341_v12 = vadd.s32 64, %v13921_v10  ;;  %v742_v18 = vmul.u32 40, %v741_v61 }
 0x1f9   : > { %v2720_v39 = vadd.f32 %v2718_v35, %v14177_v47  ;;  %19504 = vst [vmem:[#allocation35_spill] sm:$0xff] %v14289_v8  ;;  %v719_v35 = vshrl.u32 %v14333_v4, 5 }
 0x1fa   : > { %v2719_v34 = vadd.f32 %v2717_v3, %v14166_v31  ;;  %19514 = vst [vmem:[#allocation45_spill] sm:$0xff] %v14341_v12  ;;  %v743_v29 = vsub.s32 %v14297_v45, %v742_v18 }
 0x1fb   : > { %v2722_v31 = vmax.f32 %v2712_v42, %v2720_v39  ;;  %v786_v39 = vmul.u32 40, %v785_v20  ;;  %v14366_v42 = vadd.s32 112, %v13921_v10  ;;  %v720_v55 = vmul.u32 40, %v719_v35 }
 0x1fc   : > { %v14299_v25 = vpop.permute.xlu1 %12172  ;;  %vm1115_vm14 = vcmp.ne.s32.totalorder %v743_v29, 0  ;;  %vm1155_vm15 = vcmp.lt.s32.totalorder %v743_v29, 0  ;;  %v1235_v46 = vadd.s32 40, %v743_v29 }
 0x1fd   : > { %19507 = vst [vmem:[#allocation38_spill] sm:$0xff] %v14299_v25  ;;  %vm14393_vm7 = vmand %vm1155_vm15, %vm1115_vm14 }
 0x210   : > { %2555 = vxpose.xlu1.b32.start [1/2] (short) (narrow) %v2553_v24, 80  ;;  %v2637_v24 = vmax.f32 %v2627_v16, %v2635_v6  ;;  %v14336_v5 = vmul.u32.u64.low 3435973837, %v14321_v57  ;;  %v14337_v6 = vmul.u32.u64.high 3435973837, %v14321_v57, %v14336_v5 }
 0x212   : > { %19513 = vst [vmem:[#allocation44_spill] sm:$0xff] %v14337_v6  ;;  %v752_v36 = vshrl.u32 %v14337_v6, 5 }
 0x214   : > { %2556 = vxpose.xlu1.b32.end [2/2] (short) (narrow) %v2554_v33, 80  ;;  %v2638_v33 = vmax.f32 %v2628_v28, %v2636_v26 }
 0x218   : > { %2471 = vxpose.xlu0.b32.start [1/2] (short) (narrow) %v2469_v38, 80  ;;  %v2721_v38 = vmax.f32 %v2711_v63, %v2719_v34  ;;  %v14356_v63 = vadd.s32 72, %v13921_v10 }
 0x21a   : > { %19516 = vst [vmem:[#allocation47_spill] sm:$0xff] %v14356_v63 }
 0x21c   : > { %2472 = vxpose.xlu0.b32.end [2/2] (short) (narrow) %v2470_v43, 80  ;;  %v14293_v43 = vmul.u32.u64.low 3435973837, %v14286_v37  ;;  %v14294_v44 = vmul.u32.u64.high 3435973837, %v14286_v37, %v14293_v43 }
 0x21e   : > { %19505 = vst [vmem:[#allocation36_spill] sm:$0xff] %v14294_v44  ;;  %v730_v47 = vshrl.u32 %v14294_v44, 5 }
 0x220   : > { %v731_v58 = vmul.u32 40, %v730_v47  ;;  %v797_v47 = vmul.u32 40, %v796_v30 }
 0x222   : > { %v732_v9 = vsub.s32 %v14286_v37, %v731_v58  ;;  %v14372_v56 = vmul.u32.u64.low 3435973837, %v14356_v63  ;;  %v14373_v58 = vmul.u32.u64.high 3435973837, %v14356_v63, %v14372_v56 }
 0x223   : > { %v14421_v56 = vsel %vm14393_vm7, %v1235_v46, %v743_v29 }
 0x224   : > { %vm1114_vm2 = vcmp.ne.s32.totalorder %v732_v9, 0  ;;  %vm1154_vm12 = vcmp.lt.s32.totalorder %v732_v9, 0  ;;  %19517 = vst [vmem:[#allocation48_spill] sm:$0xff] %v14373_v58  ;;  %vm19201_vm15 = vcmp.gt.s32.totalorder %v14421_v56, 0 }
 0x225   : > { %vm1194_vm13 = vmand %vm1154_vm12, %vm1114_vm2 }
 0x235   : > { %2639 = vxpose.xlu1.b32.start [1/2] (short) (narrow) %v2637_v24, 80  ;;  %v14346_v22 = vmul.u32.u64.low 3435973837, %v14341_v12  ;;  %v14347_v24 = vmul.u32.u64.high 3435973837, %v14341_v12, %v14346_v22 }
 0x237   : > { %19515 = vst [vmem:[#allocation46_spill] sm:$0xff] %v14347_v24  ;;  %v763_v1 = vshrl.u32 %v14347_v24, 5 }
 0x239   : > { %2640 = vxpose.xlu1.b32.end [2/2] (short) (narrow) %v2638_v33, 80  ;;  %v1234_v33 = vadd.s32 40, %v732_v9 }
 0x23d   : > { %2723 = vxpose.xlu0.b32.start [1/2] (short) (narrow) %v2721_v38, 80  ;;  %v14362_v38 = vadd.s32 96, %v13921_v10 }
 0x23f   : > { %v14377_v61 = vmul.u32.u64.low 3435973837, %v14362_v38  ;;  %v14378_v62 = vmul.u32.u64.high 3435973837, %v14362_v38, %v14377_v61 }
 0x240   : > { %v764_v61 = vmul.u32 40, %v763_v1 }
 0x241   : > { %2724 = vxpose.xlu0.b32.end [2/2] (short) (narrow) %v2722_v31, 80  ;;  %v807_v29 = vshrl.u32 %v14378_v62, 5 }
 0x246   : > { %v2142_v51 = vpop.trf.xlu1 }
 0x247   : > { %2158 = vst.msk [vmem:[#allocation4] sm:$0xff] %vm1578_vm3, %v2142_v51  ;;  %v14369_v51 = vsel %vm1194_vm13, %v1234_v33, %v732_v9  ;;  %v14385_v5 = vmul.u32.u64.low 3435973837, %v14366_v42  ;;  %v14386_v9 = vmul.u32.u64.high 3435973837, %v14366_v42, %v14385_v5 }
 0x248   : > { %vm19200_vm4 = vcmp.gt.s32.totalorder %v14369_v51, 0  ;;  %vm19221_vm5 = vcmp.lt.s32.totalorder %v14369_v51, 39 }
 0x24a   : > { %v2143_v60 = vpop.trf.xlu1 }
 0x24b   : > { %2159 = vst.msk [vmem:[#allocation4 + $0x8] sm:$0xff] %vm1578_vm3, %v2143_v60  ;;  %v753_v60 = vmul.u32 40, %v752_v36 }
 0x24d   : > { %v14404_v35 = vsub.s32 %v14321_v57, %v753_v60  ;;  %v14424_v60 = vsub.s32 %v14306_v49, %v786_v39  ;;  %v829_v49 = vshrl.u32 %v14386_v9, 5 }
 0x24e   : > { %v2144_v15 = vpop.trf.xlu1  ;;  %v2235_v16 = vpop.trf.xlu0 }
 0x24f   : > { %2160 = vst.msk [vmem:[#allocation4 + $0x10] sm:$0xff] %vm1578_vm3, %v2144_v15  ;;  %vm1116_vm13 = vcmp.ne.s32.totalorder %v14404_v35, 0  ;;  %vm1156_vm14 = vcmp.lt.s32.totalorder %v14404_v35, 0 }
 0x252   : > { %v2168_v26 = vld [vmem:[#allocation4] ss:$2 sm:$0xff]  ;;  %v2178_v3 = vld [vmem:[#allocation4 + $0x1] ss:$2 sm:$0xff]  ;;  %v2145_v27 = vpop.trf.xlu1  ;;  %v2236_v28 = vpop.trf.xlu0 }
 0x253   : > { %2251 = vst.msk [vmem:[#allocation4] sm:$0xff] %vm1578_vm3, %v2235_v16  ;;  %2161 = vst.msk [vmem:[#allocation4 + $0x18] sm:$0xff] %vm1578_vm3, %v2145_v27  ;;  %v2187_v34 = vmax.f32 %v2168_v26, %v2178_v3 }
 0x254   : > { %2252 = vst.msk [vmem:[#allocation4 + $0x8] sm:$0xff] %vm1578_vm3, %v2236_v28  ;;  %v798_v28 = vsub.s32 %v14310_v53, %v797_v47  ;;  %v14417_v53 = vadd.s32 104, %v13921_v10 }
 0x255   : > { %2192 = vst.msk [vmem:[#allocation5 + $0x29] sm:$0xff] %vm1578_vm3, %v2187_v34  ;;  %v14401_v34 = vsub.s32 %v14314_v54, %v720_v55 }
 0x256   : > { %v2146_v43 = vpop.trf.xlu1  ;;  %v2237_v31 = vpop.trf.xlu0  ;;  %vm1120_vm8 = vcmp.ne.s32.totalorder %v798_v28, 0  ;;  %vm1160_vm9 = vcmp.lt.s32.totalorder %v798_v28, 0  ;;  %v1240_v5 = vadd.s32 40, %v798_v28 }
 0x257   : > { %2162 = vst.msk [vmem:[#allocation4 + $0x20] sm:$0xff] %vm1578_vm3, %v2146_v43  ;;  %vm1113_vm2 = vcmp.ne.s32.totalorder %v14401_v34, 0  ;;  %vm1153_vm12 = vcmp.lt.s32.totalorder %v14401_v34, 0  ;;  %v14436_v39 = vmul.u32.u64.low 3435973837, %v14417_v53  ;;  %v14437_v46 = vmul.u32.u64.high 3435973837, %v14417_v53, %v14436_v39  ;;  %vm14448_vm7 = vmand %vm1160_vm9, %vm1120_vm8 }
 0x258   : > { %v1233_v9 = vadd.s32 40, %v14401_v34  ;;  %vm14462_vm0 = vmand %vm1153_vm12, %vm1113_vm2  ;;  %vm1119_vm8 = vcmp.ne.s32.totalorder %v14424_v60, 0  ;;  %vm1159_vm9 = vcmp.lt.s32.totalorder %v14424_v60, 0 }
 0x259   : > { %vm14479_vm2 = vmand %vm1156_vm14, %vm1116_vm13  ;;  %vm19220_vm13 = vcmp.gt.s32.totalorder %v13963_v40, 0  ;;  %vm19219_vm14 = vcmp.gt.s32.totalorder %v13966_v41, 0 }
 0x25a   : > { %v2170_v15 = vld [vmem:[#allocation4 + $0x10] ss:$2 sm:$0xff]  ;;  %v2180_v16 = vld [vmem:[#allocation4 + $0x11] ss:$2 sm:$0xff]  ;;  %v2147_v20 = vpop.trf.xlu1  ;;  %v2238_v22 = vpop.trf.xlu0 }
 0x25b   : > { %v2261_v18 = vld [vmem:[#allocation4] ss:$2 sm:$0xff]  ;;  %v2266_v26 = vld [vmem:[#allocation4 + $0x1] ss:$2 sm:$0xff]  ;;  %2253 = vst.msk [vmem:[#allocation4 + $0x10] sm:$0xff] %vm1578_vm3, %v2237_v31  ;;  %2163 = vst.msk [vmem:[#allocation4 + $0x28] sm:$0xff] %vm1578_vm3, %v2147_v20  ;;  %v2188_v27 = vmax.f32 %v2170_v15, %v2180_v16 }
 0x25c   : > { %2254 = vst.msk [vmem:[#allocation4 + $0x18] sm:$0xff] %vm1578_vm3, %v2238_v22  ;;  %v14398_v30 = vld [vmem:[#allocation5 + $0x28] sm:$0xff]  ;;  %v2271_v33 = vmax.f32 %v2261_v18, %v2266_v26  ;;  %v14413_v43 = vmul.u32.u64.low 3435973837, %v14382_v2  ;;  %v14414_v31 = vmul.u32.u64.high 3435973837, %v14382_v2, %v14413_v43  ;;  %v774_v15 = vshrl.u32 %v14373_v58, 5 }
 0x25d   : > { %2193 = vst.msk [vmem:[#allocation5 + $0x31] sm:$0xff] %vm1578_vm3, %v2188_v27  ;;  %v14410_v36 = vsel %vm19200_vm4, %v14398_v30, 0.0  ;;  %v14440_v26 = vsub.s32 %v14341_v12, %v764_v61  ;;  %v1236_v61 = vadd.s32 40, %v14404_v35  ;;  %v2989_v58 = vld [vmem:[#allocation5 + $0x22] sm:$0xff] }
 0x25e   : > { %19520 = vst [vmem:[#allocation49_spill] sm:$0xff] %v14410_v36  ;;  %v2148_v47 = vpop.trf.xlu1  ;;  %v2239_v55 = vpop.trf.xlu0  ;;  %2276 = vst.msk [vmem:[#allocation5 + $0x51] sm:$0xff] %vm1578_vm3, %v2271_v33  ;;  %v14454_v33 = vadd.s32 128, %v13921_v10  ;;  %v775_v39 = vmul.u32 40, %v774_v15  ;;  %v840_v15 = vshrl.u32 %v14414_v31, 5  ;;  %v14495_v31 = vadd.s32 40, %v14424_v60 }
 0x25f   : > { %2164 = vst.msk [vmem:[#allocation4 + $0x30] sm:$0xff] %vm1578_vm3, %v2148_v47  ;;  %vm1117_vm12 = vcmp.ne.s32.totalorder %v14440_v26, 0  ;;  %vm1157_vm11 = vcmp.lt.s32.totalorder %v14440_v26, 0 }
 0x262   : > { %v2172_v1 = vld [vmem:[#allocation4 + $0x20] ss:$2 sm:$0xff]  ;;  %v2182_v16 = vld [vmem:[#allocation4 + $0x21] ss:$2 sm:$0xff]  ;;  %v2149_v20 = vpop.trf.xlu1  ;;  %v2240_v22 = vpop.trf.xlu0 }
 0x263   : > { %v2262_v18 = vld [vmem:[#allocation4 + $0x10] ss:$2 sm:$0xff]  ;;  %v2267_v3 = vld [vmem:[#allocation4 + $0x11] ss:$2 sm:$0xff]  ;;  %2255 = vst.msk [vmem:[#allocation4 + $0x20] sm:$0xff] %vm1578_vm3, %v2239_v55  ;;  %2165 = vst.msk [vmem:[#allocation4 + $0x38] sm:$0xff] %vm1578_vm3, %v2149_v20  ;;  %v2189_v27 = vmax.f32 %v2172_v1, %v2182_v16 }
 0x264   : > { %2256 = vst.msk [vmem:[#allocation4 + $0x28] sm:$0xff] %vm1578_vm3, %v2240_v22  ;;  %v14456_v43 = vld [vmem:[#allocation5 + $0x30] sm:$0xff]  ;;  %v2272_v47 = vmax.f32 %v2262_v18, %v2267_v3  ;;  %v808_v20 = vmul.u32 40, %v807_v29  ;;  %v14486_v22 = vsel %vm14448_vm7, %v1240_v5, %v798_v28  ;;  %v830_v3 = vmul.u32 40, %v829_v49  ;;  %vm14516_vm7 = vmand %vm1157_vm11, %vm1117_vm12 }
 0x265   : > { %v14470_v1 = vsel %vm19201_vm15, %v14456_v43, 0.0  ;;  %2194 = vst.msk [vmem:[#allocation5 + $0x39] sm:$0xff] %vm1578_vm3, %v2189_v27  ;;  %19528 = vst [vmem:[#allocation51_spill] sm:$0xff] %v14486_v22  ;;  %v14500_v28 = vsel %vm14462_vm0, %v1233_v9, %v14401_v34  ;;  %v14503_v5 = vmul.u32.u64.low 3435973837, %v14454_v33  ;;  %v14504_v62 = vmul.u32.u64.high 3435973837, %v14454_v33, %v14503_v5  ;;  %v14629_v4 = vld [vmem:[#allocation5 + $0x2a] sm:$0xff] }
 0x266   : > { %19525 = vst [vmem:[#allocation50_spill] sm:$0xff] %v14470_v1  ;;  %v2150_v29 = vpop.trf.xlu1  ;;  %v2241_v18 = vpop.trf.xlu0  ;;  %2277 = vst.msk [vmem:[#allocation5 + $0x59] sm:$0xff] %vm1578_vm3, %v2272_v47  ;;  %v14509_v49 = vsel %vm14479_vm2, %v1236_v61, %v14404_v35  ;;  %v14512_v27 = vsub.s32 %v14356_v63, %v775_v39  ;;  %v1237_v47 = vadd.s32 40, %v14440_v26  ;;  %v14521_v34 = vadd.s32 136, %v13921_v10 }
 0x267   : > { %2166 = vst.msk [vmem:[#allocation4 + $0x40] sm:$0xff] %vm1578_vm3, %v2150_v29  ;;  %19529 = vst [vmem:[#allocation52_spill] sm:$0xff] %v14500_v28  ;;  %v809_v29 = vsub.s32 %v14362_v38, %v808_v20  ;;  %v841_v9 = vmul.u32 40, %v840_v15  ;;  %vm19218_vm0 = vcmp.gt.s32.totalorder %v14486_v22, 0  ;;  %v818_v35 = vshrl.u32 %v14437_v46, 5 }
 0x268   : > { %v14526_v7 = vsub.s32 %v14366_v42, %v830_v3  ;;  %vm19222_vm11 = vcmp.lt.s32.totalorder %v14500_v28, 39  ;;  %vm19250_vm2 = vcmp.gt.s32.totalorder %v14509_v49, 0  ;;  %v14534_v46 = vadd.s32 168, %v13921_v10 }
 0x269   : > { %vm1118_vm12 = vcmp.ne.s32.totalorder %v14512_v27, 0  ;;  %v14541_v42 = vsel %vm14516_vm7, %v1237_v47, %v14440_v26  ;;  %vm1121_vm15 = vcmp.ne.s32.totalorder %v809_v29, 0  ;;  %vm1161_vm6 = vcmp.lt.s32.totalorder %v809_v29, 0  ;;  %vm14564_vm7 = vmand %vm1159_vm9, %vm1119_vm8 }
 0x26a   : > { %v2174_v61 = vld [vmem:[#allocation4 + $0x30] ss:$2 sm:$0xff]  ;;  %v2184_v16 = vld [vmem:[#allocation4 + $0x31] ss:$2 sm:$0xff]  ;;  %v2151_v5 = vpop.trf.xlu1  ;;  %v2242_v0 = vpop.trf.xlu0  ;;  %19532 = vst [vmem:[#allocation53_spill] sm:$0xff] %v14541_v42  ;;  %v14550_v3 = vadd.s32 40, %v14512_v27  ;;  %v14556_v55 = vsub.s32 %v14382_v2, %v841_v9  ;;  %vm14582_vm9 = vmand %vm1161_vm6, %vm1121_vm15  ;;  %v14619_v54 = vsel %vm14564_vm7, %v14495_v31, %v14424_v60 }
 0x26b   : > { %v2263_v39 = vld [vmem:[#allocation4 + $0x20] ss:$2 sm:$0xff]  ;;  %v2268_v38 = vld [vmem:[#allocation4 + $0x21] ss:$2 sm:$0xff]  ;;  %2257 = vst.msk [vmem:[#allocation4 + $0x30] sm:$0xff] %vm1578_vm3, %v2241_v18  ;;  %2167 = vst.msk [vmem:[#allocation4 + $0x48] sm:$0xff] %vm1578_vm3, %v2151_v5  ;;  %v2190_v20 = vmax.f32 %v2174_v61, %v2184_v16 }
 0x26c   : > { %2258 = vst.msk [vmem:[#allocation4 + $0x38] sm:$0xff] %vm1578_vm3, %v2242_v0  ;;  %v2273_v15 = vmax.f32 %v2263_v39, %v2268_v38  ;;  %v14545_v0 = vld [vmem:[#allocation5 + $0x38] sm:$0xff]  ;;  %v14553_v61 = vadd.s32 160, %v13921_v10  ;;  %v819_v26 = vmul.u32 40, %v818_v35  ;;  %vm1123_vm4 = vcmp.ne.s32.totalorder %v14526_v7, 0  ;;  %19539 = vst [vmem:[#allocation56_spill] sm:$0xff] %v14619_v54 }
 0x26d   : > { %2195 = vst.msk [vmem:[#allocation5 + $0x41] sm:$0xff] %vm1578_vm3, %v2190_v20  ;;  %v14547_v18 = vld [vmem:[#allocation5 + $0x58] sm:$0xff]  ;;  %v14570_v5 = vmul.u32.u64.low 3435973837, %v14521_v34  ;;  %v14571_v38 = vmul.u32.u64.high 3435973837, %v14521_v34, %v14570_v5  ;;  %v1241_v2 = vadd.s32 40, %v809_v29  ;;  %v851_v9 = vshrl.u32 %v14504_v62, 5 }
 0x26e   : > { %v14558_v47 = vpop.trf.xlu1  ;;  %v2243_v16 = vpop.trf.xlu0  ;;  %2278 = vst.msk [vmem:[#allocation5 + $0x61] sm:$0xff] %vm1578_vm3, %v2273_v15  ;;  %v14576_v35 = vmul.u32.u64.low 3435973837, %v14534_v46  ;;  %v14577_v20 = vmul.u32.u64.high 3435973837, %v14534_v46, %v14576_v35  ;;  %vm19249_vm8 = vcmp.gt.s32.totalorder %v14541_v42, 0  ;;  %v14587_v15 = vadd.s32 144, %v13921_v10  ;;  %v14719_v11 = vld [vmem:[#allocation5 + $0x59] sm:$0xff] }
 0x26f   : > { %v3150_v5 = vsel %vm19220_vm13, %v14398_v30, 0.0  ;;  %v3151_v62 = vsel %vm19219_vm14, %v14456_v43, 0.0  ;;  %v14598_v35 = vsel %vm19250_vm2, %v14545_v0, 0.0  ;;  %v14603_v12 = vsel %vm19218_vm0, %v14547_v18, 0.0 }
 0x270   : > { %19537 = vst [vmem:[#allocation54_spill] sm:$0xff] %v14598_v35  ;;  %19538 = vst [vmem:[#allocation55_spill] sm:$0xff] %v14603_v12  ;;  %v14606_v24 = vmul.u32.u64.low 3435973837, %v14553_v61  ;;  %v14607_v45 = vmul.u32.u64.high 3435973837, %v14553_v61, %v14606_v24  ;;  %vm1163_vm6 = vcmp.lt.s32.totalorder %v14526_v7, 0  ;;  %v14611_v30 = vsub.s32 %v14417_v53, %v819_v26  ;;  %v14627_v26 = vld [vmem:[#allocation5 + $0x52] sm:$0xff] }
 0x271   : > { %v14623_v24 = vsel %vm14582_vm9, %v1241_v2, %v809_v29  ;;  %v12186_v53 = vpack.i.bf16 %v3151_v62, %v3150_v5  ;;  %v852_v17 = vmul.u32 40, %v851_v9  ;;  %v1243_v39 = vadd.s32 40, %v14526_v7 }
 0x272   : > { %v2176_v43 = vld [vmem:[#allocation4 + $0x40] ss:$2 sm:$0xff]  ;;  %v2186_v57 = vld [vmem:[#allocation4 + $0x41] ss:$2 sm:$0xff]  ;;  %v14613_v6 = vpop.trf.xlu1  ;;  %v2244_v37 = vpop.trf.xlu0  ;;  %19540 = vst [vmem:[#allocation57_spill] sm:$0xff] %v14623_v24  ;;  %v14637_v29 = vadd.s32 176, %v13921_v10 }
 0x273   : > { %v2264_v48 = vld [vmem:[#allocation4 + $0x30] ss:$2 sm:$0xff]  ;;  %v2269_v44 = vld [vmem:[#allocation4 + $0x31] ss:$2 sm:$0xff]  ;;  %2259 = vst.msk [vmem:[#allocation4 + $0x40] sm:$0xff] %vm1578_vm3, %v2243_v16  ;;  %2260 = vst.msk [vmem:[#allocation4 + $0x48] sm:$0xff] %vm1578_vm3, %v2244_v37  ;;  %v2191_v14 = vmax.f32 %v2176_v43, %v2186_v57  ;;  %v14675_v43 = vsub.s32 %v14454_v33, %v852_v17 }
 0x274   : > { %v2274_v60 = vmax.f32 %v2264_v48, %v2269_v44  ;;  %v14633_v31 = vmul.u32.u64.low 3435973837, %v14587_v15  ;;  %v14634_v63 = vmul.u32.u64.high 3435973837, %v14587_v15, %v14633_v31  ;;  %vm1124_vm15 = vcmp.ne.s32.totalorder %v14556_v55, 0  ;;  %v14664_v62 = vld [vmem:[#allocation5 + $0x40] sm:$0xff]  ;;  %v13006_v17 = vld [vmem:[%s19166_s5] sm:$0xff]  }
 0x275   : > { %v14639_v16 = vld [vmem:[#allocation5 + $0x5a] sm:$0xff]  ;;  %2196 = vst.msk [vmem:[#allocation5 + $0x49] sm:$0xff] %vm1578_vm3, %v2191_v14  ;;  %vm1122_vm7 = vcmp.ne.s32.totalorder %v14611_v30, 0  ;;  %vm1162_vm9 = vcmp.lt.s32.totalorder %v14611_v30, 0  ;;  %vm19238_vm0 = vcmp.gt.s32.totalorder %v14623_v24, 0  ;;  %v3295_v48 = vsel %vm1349_vm10, %v14627_v26, 0.0  ;;  %4848 = vmatpush1.bf16.msra.mxu1 %v13006_v17 }
 0x276   : > { %v14646_v37 = vpop.trf.xlu1  ;;  %v2319_v44 = vpop.trf.xlu0  ;;  %v3296_v57 = vsel %vm1350_vm1, %v14639_v16, 0.0  ;;  %v3109_v14 = vsel %vm19222_vm11, %v2989_v58, 0.0  ;;  %v3110_v2 = vsel %vm19221_vm5, %v14629_v4, 0.0  ;;  %v14659_v9 = vld [vmem:[#allocation5 + $0x60] sm:$0xff]  ;;  %2279 = vst.msk [vmem:[#allocation5 + $0x69] sm:$0xff] %vm1578_vm3, %v2274_v60  ;;  %vm19542_vm14 = vcmp.lt.s32.totalorder %v14512_v27, 0  ;;  %vm14684_vm11 = vmand %vm1163_vm6, %vm1123_vm4 }
 0x277   : > { %19541 = vst [vmem:[#allocation58_spill] sm:$0xff] %v14659_v9  ;;  %2335 = vst.msk [vmem:[#allocation4] sm:$0xff] %vm1578_vm3, %v2319_v44  ;;  %12187 = vrot.lane.b32.xlu1 %v12186_v53, %s13593_s29  ;;  %v4670_v5 = vpack.c.bf16 %v3296_v57, %v3295_v48  ;;  %v862_v60 = vshrl.u32 %v14571_v38, 5  ;;  %vm1164_vm5 = vcmp.lt.s32.totalorder %v14556_v55, 0  ;;  %v906_v53 = vshrl.u32 %v14577_v20, 5  ;;  %v13007_v58 = vld [vmem:[%s19166_s5 + $0x8] sm:$0xff]  }
 0x278   : > { %vm14670_vm13 = vmand %vm19542_vm14, %vm1118_vm12  ;;  %vm19246_vm14 = vcmp.gt.s32.totalorder %v14619_v54, 0  ;;  %v14693_v33 = vmul.u32.u64.low 3435973837, %v14637_v29  ;;  %v14694_v38 = vmul.u32.u64.high 3435973837, %v14637_v29, %v14693_v33  ;;  %v14699_v20 = vsel %vm19249_vm8, %v14664_v62, 0.0 }
 0x279   : > { %19547 = vst [vmem:[#allocation59_spill] sm:$0xff] %v14699_v20  ;;  %11162 = vmatprep.mubr.msk.bf16.mxu1 %vm1578_vm3, %v4670_v5  ;;  %v12191_v44 = vpack.i.bf16 %v3110_v2, %v3109_v14  ;;  %v1244_v48 = vadd.s32 40, %v14556_v55  ;;  %vm14707_vm4 = vmand %vm1162_vm9, %vm1122_vm7  ;;  %v1242_v33 = vadd.s32 40, %v14611_v30  ;;  %v14715_v21 = vsel %vm19238_vm0, %v14659_v9, 0.0 }
 0x27a   : > { %19550 = vst [vmem:[#allocation60_spill] sm:$0xff] %v14715_v21  ;;  %v2265_v23 = vld [vmem:[#allocation4 + $0x40] ss:$2 sm:$0xff]  ;;  %v2270_v5 = vld [vmem:[#allocation4 + $0x41] ss:$2 sm:$0xff]  ;;  %v14717_v14 = vpop.trf.xlu1  ;;  %v2320_v2 = vpop.trf.xlu0  ;;  %v895_v19 = vshrl.u32 %v14607_v45, 5  ;;  %vm14728_vm12 = vmand %vm1164_vm5, %vm1124_vm15  ;;  %v14735_v12 = vsel %vm14684_vm11, %v1243_v39, %v14526_v7  ;;  %v14755_v7 = vsel %vm14670_vm13, %v14550_v3, %v14512_v27 }
 0x27b   : > { %2336 = vst.msk [vmem:[#allocation4 + $0x8] sm:$0xff] %vm1578_vm3, %v2320_v2  ;;  %12192 = vrot.lane.b32.xlu1 %v12191_v44, %s19551_s20  ;;  %v2275_v13 = vmax.f32 %v2265_v23, %v2270_v5  ;;  %v863_v20 = vmul.u32 40, %v862_v60  ;;  %19554 = vst [vmem:[#allocation61_spill] sm:$0xff] %v14735_v12  ;;  %v14738_v45 = vadd.s32 152, %v13921_v10  ;;  %v19555_v17 = vmov 0   ;;  %v14741_v23 = vld [vmem:[#allocation5 + $0x51] sm:$0xff] }
 0x27c   : > { %4849 = vmatprep.subr.bf16.mxu1 %v19555_v17  ;;  %vm1125_vm6 = vcmp.ne.s32.totalorder %v14675_v43, 0  ;;  %vm1165_vm7 = vcmp.lt.s32.totalorder %v14675_v43, 0  ;;  %v907_v60 = vmul.u32 40, %v906_v53  ;;  %v873_v44 = vshrl.u32 %v14634_v63, 5  ;;  %19556 = vst [vmem:[#allocation62_spill] sm:$0xff] %v14755_v7  ;;  %v14767_v2 = vld [vmem:[#allocation5 + $0x39] sm:$0xff] }
 0x27d   : > { %v14748_v5 = vpack.i.bf16 %v14719_v11, %v14741_v23  ;;  %2280 = vst.msk [vmem:[#allocation5 + $0x71] sm:$0xff] %vm1578_vm3, %v2275_v13  ;;  %v14760_v39 = vsel %vm14707_vm4, %v1242_v33, %v14611_v30  ;;  %v14763_v53 = vadd.s32 184, %v13921_v10  ;;  %v1245_v13 = vadd.s32 40, %v14675_v43  ;;  %v14779_v3 = vld [vmem:[#allocation5 + $0x32] sm:$0xff]  ;;  %vm14788_vm13 = vmand %vm1165_vm7, %vm1125_vm6  ;;  %v14816_v1 = vld [vmem:[#allocation5 + $0x68] sm:$0xff]  ;;  %4850 = vmatpush1.bf16.msra.mxu1 %v13007_v58 }
 0x27e   : > { %19557 = vst [vmem:[#allocation63_spill] sm:$0xff] %v14760_v39  ;;  %v14765_v63 = vpop.trf.xlu1  ;;  %v2321_v31 = vpop.trf.xlu0  ;;  %v896_v36 = vmul.u32 40, %v895_v19  ;;  %vm19248_vm5 = vcmp.gt.s32.totalorder %v14755_v7, 0  ;;  %v14774_v27 = vsel %vm14728_vm12, %v1244_v48, %v14556_v55  ;;  %v14782_v30 = vsub.s32 %v14521_v34, %v863_v20  ;;  %v14802_v34 = vld [vmem:[#allocation5 + $0x31] sm:$0xff]  ;;  %v14827_v59 = vld [vmem:[#allocation5 + $0x48] sm:$0xff]  ;;  %4851 = vmatprep.subr.bf16.mxu1 %v19555_v17 }
 0x27f   : > { %19558 = vst [vmem:[#allocation64_spill] sm:$0xff] %v14774_v27  ;;  %2337 = vst.msk [vmem:[#allocation4 + $0x10] sm:$0xff] %vm1578_vm3, %v2321_v31  ;;  %12197 = vrot.lane.b32.xlu1 %v14748_v5, %s13594_s23  ;;  %vm19247_vm11 = vcmp.gt.s32.totalorder %v14735_v12, 0  ;;  %v14794_v21 = vmul.u32.u64.low 3435973837, %v14738_v45  ;;  %v14795_v55 = vmul.u32.u64.high 3435973837, %v14738_v45, %v14794_v21  ;;  %vm19260_vm15 = vcmp.gt.s32.totalorder %v13973_v50, 0 }
 0x280   : > { %vm19261_vm9 = vcmp.gt.s32.totalorder %v13975_v52, 0  ;;  %v14804_v20 = vld [vmem:[#allocation5 + $0x50] sm:$0xff]  ;;  %v14807_v48 = vsub.s32 %v14534_v46, %v907_v60  ;;  %vm19245_vm4 = vcmp.gt.s32.totalorder %v14760_v39, 0  ;;  %v874_v57 = vmul.u32 40, %v873_v44  ;;  %19561 = vst [vmem:[#allocation65_spill] sm:$0xff] %v14827_v59  ;;  %v14844_v8 = vld [vmem:[#allocation5 + $0x62] sm:$0xff] }
 0x281   : > { %v917_v33 = vshrl.u32 %v14694_v38, 5  ;;  %v12201_v31 = vpack.i.bf16 %v14767_v2, %v14802_v34  ;;  %v3200_v21 = vsel %vm1349_vm10, %v14629_v4, 0.0  ;;  %v3201_v38 = vsel %vm1350_vm1, %v14779_v3, 0.0  ;;  %19563 = vst [vmem:[#allocation67_spill] sm:$0xff] %v14844_v8  ;;  %v14888_v39 = vld [vmem:[#allocation5 + $0x41] sm:$0xff] }
 0x282   : > { %v14819_v35 = vmul.u32.u64.low 3435973837, %v14763_v53  ;;  %v14820_v32 = vmul.u32.u64.high 3435973837, %v14763_v53, %v14819_v35  ;;  %v2345_v46 = vld [vmem:[#allocation4] ss:$2 sm:$0xff]  ;;  %v2350_v60 = vld [vmem:[#allocation4 + $0x1] ss:$2 sm:$0xff]  ;;  %v14822_v25 = vpop.trf.xlu1  ;;  %v2322_v44 = vpop.trf.xlu0  ;;  %v14832_v4 = vsel %vm14788_vm13, %v1245_v13, %v14675_v43  ;;  %v14835_v58 = vsub.s32 %v14553_v61, %v896_v36 }
 0x283   : > { %19562 = vst [vmem:[#allocation66_spill] sm:$0xff] %v14832_v4  ;;  %2420 = vst.msk [vmem:[#allocation4 + $0x8] sm:$0xff] %vm1578_vm3, %v14613_v6  ;;  %12202 = vrot.lane.b32.xlu1 %v12201_v31, %s13592_s22  ;;  %v2355_v35 = vmax.f32 %v2345_v46, %v2350_v60  ;;  %vm1126_vm10 = vcmp.ne.s32.totalorder %v14782_v30, 0  ;;  %v13008_v36 = vld [vmem:[%s19166_s5 + $0x10] sm:$0xff]   ;;  %v14853_v6 = vsel %vm19246_vm14, %v14804_v20, 0.0  ;;  %v14856_v61 = vadd.s32 192, %v13921_v10 }
 0x284   : > { %2419 = vst.msk [vmem:[#allocation4] sm:$0xff] %vm1578_vm3, %v14558_v47  ;;  %2338 = vst.msk [vmem:[#allocation4 + $0x18] sm:$0xff] %vm1578_vm3, %v2322_v44  ;;  %v14861_v47 = vsel %vm19248_vm5, %v14827_v59, 0.0  ;;  %v14863_v43 = vld [vmem:[#allocation5 + $0x70] sm:$0xff]  ;;  %vm1166_vm1 = vcmp.lt.s32.totalorder %v14782_v30, 0  ;;  %v14867_v13 = vadd.s32 40, %v14782_v30  ;;  %v12211_v60 = vpack.i.bf16 %v3201_v38, %v3200_v21  ;;  %4852 = vmatpush1.bf16.msra.mxu1 %v13008_v36 }
 0x285   : > { %19564 = vst [vmem:[#allocation68_spill] sm:$0xff] %v14853_v6  ;;  %19565 = vst [vmem:[#allocation69_spill] sm:$0xff] %v14861_v47  ;;  %v2998_v19 = vld [vmem:[#allocation5 + $0x6a] sm:$0xff]  ;;  %vm19259_vm12 = vcmp.gt.s32.totalorder %v14774_v27, 0  ;;  %v14871_v31 = vadd.s32 200, %v13921_v10  ;;  %v14876_v46 = vsel %vm19245_vm4, %v14816_v1, 0.0  ;;  %v14884_v6 = vsub.s32 %v14587_v15, %v874_v57  ;;  %4853 = vmatprep.subr.bf16.mxu1 %v19555_v17 }
 0x286   : > { %19566 = vst [vmem:[#allocation70_spill] sm:$0xff] %v14863_v43  ;;  %19567 = vst [vmem:[#allocation71_spill] sm:$0xff] %v14876_v46  ;;  %v2949_v44 = vld [vmem:[#allocation5 + $0x21] sm:$0xff]  ;;  %v14878_v47 = vld [vmem:[#allocation5 + $0x29] sm:$0xff]  ;;  %vm1130_vm6 = vcmp.ne.s32.totalorder %v14807_v48, 0  ;;  %vm1170_vm7 = vcmp.lt.s32.totalorder %v14807_v48, 0  ;;  %v14886_v24 = vpop.trf.xlu1  ;;  %v2323_v7 = vpop.trf.xlu0 }
 0x287   : > { %2360 = vst.msk [vmem:[#allocation5 + $0x79] sm:$0xff] %vm1578_vm3, %v2355_v35  ;;  %19568 = vst [vmem:[#allocation72_spill] sm:$0xff] %v14888_v39  ;;  %v918_v21 = vmul.u32 40, %v917_v33  ;;  %vm19569_vm13 = vcmp.lt.s32.totalorder %v13973_v50, 39  ;;  %vm19571_vm0 = vcmp.lt.s32.totalorder %v13975_v52, 39  ;;  %v14903_v15 = vsel %vm19247_vm11, %v14863_v43, 0.0  ;;  %12212 = vrot.lane.b32.xlu1 %v12211_v60, %s13595_s28 }
 0x288   : > { %v14894_v38 = vsel %vm19569_vm13, %v14844_v8, 0.0  ;;  %v14898_v35 = vsel %vm19571_vm0, %v2998_v19, 0.0  ;;  %19573 = vst [vmem:[#allocation75_spill] sm:$0xff] %v14903_v15  ;;  %2339 = vst.msk [vmem:[#allocation4 + $0x20] sm:$0xff] %vm1578_vm3, %v2323_v7  ;;  %v884_v57 = vshrl.u32 %v14795_v55, 5  ;;  %v13009_v33 = vld [vmem:[%s19166_s5 + $0x18] sm:$0xff]   ;;  %v12176_v15 = vpack.i.bf16 %v14878_v47, %v2949_v44 }
 0x289   : > { %19570 = vst [vmem:[#allocation73_spill] sm:$0xff] %v14894_v38  ;;  %19572 = vst [vmem:[#allocation74_spill] sm:$0xff] %v14898_v35  ;;  %v14912_v36 = vmul.u32.u64.low 3435973837, %v14856_v61  ;;  %v14913_v19 = vmul.u32.u64.high 3435973837, %v14856_v61, %v14912_v36  ;;  %v14919_v7 = vmul.u32.u64.low 3435973837, %v14871_v31  ;;  %v14920_v43 = vmul.u32.u64.high 3435973837, %v14871_v31, %v14919_v7  ;;  %4854 = vmatpush1.bf16.msra.mxu1 %v13009_v33 }
 0x28a   : > { %v14923_v60 = vadd.s32 208, %v13921_v10  ;;  %v12216_v55 = vpack.i.bf16 %v14888_v39, %v14767_v2  ;;  %v3152_v8 = vsel %vm19260_vm15, %v14545_v0, 0.0  ;;  %v3153_v36 = vsel %vm19261_vm9, %v14664_v62, 0.0  ;;  %v13010_v7 = vld [vmem:[%s19166_s5 + $0x20] sm:$0xff]   ;;  %12177 = vrot.lane.b32.xlu0 %v12176_v15, %s13592_s22  ;;  %v14938_v2 = vpop.trf.xlu1  ;;  %v2324_v35 = vpop.trf.xlu0  ;;  %4855 = vmatprep.subr.bf16.mxu1 %v19555_v17  ;;  %vm14987_vm11 = vmand %vm1166_vm1, %vm1126_vm10 }
 0x28b   : > { %v928_v44 = vshrl.u32 %v14820_v32, 5  ;;  %v2346_v46 = vld [vmem:[#allocation4 + $0x10] ss:$2 sm:$0xff]  ;;  %v2351_v38 = vld [vmem:[#allocation4 + $0x11] ss:$2 sm:$0xff]  ;;  %v14941_v0 = vsub.s32 %v14637_v29, %v918_v21  ;;  %2340 = vst.msk [vmem:[#allocation4 + $0x28] sm:$0xff] %vm1578_vm3, %v2324_v35 }
 0x28c   : > { %v2429_v12 = vld [vmem:[#allocation4] ss:$2 sm:$0xff]  ;;  %2421 = vst.msk [vmem:[#allocation4 + $0x10] sm:$0xff] %vm1578_vm3, %v14646_v37  ;;  %2422 = vst.msk [vmem:[#allocation4 + $0x18] sm:$0xff] %vm1578_vm3, %v14717_v14  ;;  %12217 = vrot.lane.b32.xlu1 %v12216_v55, %s13596_s13  ;;  %v2356_v32 = vmax.f32 %v2346_v46, %v2351_v38  ;;  %v2434_v62 = vld [vmem:[#allocation4 + $0x1] ss:$2 sm:$0xff]  ;;  %v12181_v37 = vpack.i.bf16 %v14802_v34, %v14878_v47  ;;  %v12231_v55 = vpack.i.bf16 %v3153_v36, %v3152_v8 }
 0x28d   : > { %vm19269_vm0 = vcmp.gt.s32.totalorder %v14832_v4, 0  ;;  %v14952_v29 = vadd.s32 40, %v14835_v58  ;;  %v1250_v21 = vadd.s32 40, %v14807_v48  ;;  %v885_v15 = vmul.u32 40, %v884_v57  ;;  %4856 = vmatpush1.bf16.msra.mxu1 %v13010_v7 }
 0x28e   : > { %v2439_v33 = vmax.f32 %v2429_v12, %v2434_v62  ;;  %v14957_v14 = vld [vmem:[#allocation5 + $0x78] sm:$0xff]  ;;  %vm1127_vm13 = vcmp.ne.s32.totalorder %v14884_v6, 0  ;;  %v14961_v46 = vmul.u32.u64.low 3435973837, %v14923_v60  ;;  %v14962_v38 = vmul.u32.u64.high 3435973837, %v14923_v60, %v14961_v46  ;;  %2361 = vst.msk [vmem:[#allocation5 + $0x81] sm:$0xff] %vm1578_vm3, %v2356_v32  ;;  %v13011_v12 = vld [vmem:[%s19166_s5 + $0x28] sm:$0xff]   ;;  %12182 = vrot.lane.b32.xlu0 %v12181_v37, %s13596_s13  ;;  %v14976_v47 = vpop.trf.xlu1  ;;  %v2325_v8 = vpop.trf.xlu0  ;;  %4857 = vmatprep.subr.bf16.mxu1 %v19555_v17 }
 0x28f   : > { %19574 = vst [vmem:[#allocation76_spill] sm:$0xff] %v14957_v14  ;;  %v2999_v35 = vld [vmem:[#allocation5 + $0x72] sm:$0xff]  ;;  %vm1167_vm4 = vcmp.lt.s32.totalorder %v14884_v6, 0  ;;  %v14967_v57 = vadd.s32 40, %v14884_v6  ;;  %v14973_v34 = vadd.s32 216, %v13921_v10  ;;  %v3157_v36 = vsel %vm19250_vm2, %v14659_v9, 0.0  ;;  %vm15000_vm2 = vmand %vm1170_vm7, %vm1130_vm6 }
 0x290   : > { %vm1356_vm14 = vcmp.lt.s32.totalorder %v14509_v49, 39  ;;  %2444 = vst.msk [vmem:[#allocation5 + $0xa1] sm:$0xff] %vm1578_vm3, %v2439_v33  ;;  %v929_v32 = vmul.u32 40, %v928_v44  ;;  %vm1131_vm5 = vcmp.ne.s32.totalorder %v14941_v0, 0  ;;  %vm1171_vm8 = vcmp.lt.s32.totalorder %v14941_v0, 0  ;;  %2341 = vst.msk [vmem:[#allocation4 + $0x30] sm:$0xff] %vm1578_vm3, %v2325_v8  ;;  %12232 = vrot.lane.b32.xlu1 %v12231_v55, %s13593_s29 }
 0x291   : > { %v15005_v44 = vsub.s32 %v14738_v45, %v885_v15  ;;  %v939_v37 = vshrl.u32 %v14913_v19, 5  ;;  %vm19579_vm10 = vcmp.lt.s32.totalorder %v14500_v28, 39  ;;  %v15015_v46 = vsel %vm19259_vm12, %v14957_v14, 0.0  ;;  %v2957_v8 = vld [vmem:[#allocation5 + $0x61] sm:$0xff]  ;;  %4858 = vmatpush1.bf16.msra.mxu1 %v13011_v12  ;;  %vm15120_vm9 = vmand %vm1167_vm4, %vm1127_vm13 }
 0x292   : > { %v15010_v33 = vsel %vm19579_vm10, %v2999_v35, 0.0  ;;  %19581 = vst [vmem:[#allocation78_spill] sm:$0xff] %v15015_v46  ;;  %vm1355_vm1 = vcmp.lt.s32.totalorder %v14421_v56, 39  ;;  %vm19582_vm6 = vcmp.gt.s32.totalorder %v14421_v56, 0  ;;  %v15022_v45 = vadd.s32 40, %v14941_v0  ;;  %v15025_v35 = vld [vmem:[#allocation5 + $0x69] sm:$0xff]  ;;  %12207 = vrot.lane.b32.xlu0 %v14748_v5, %s13592_s22  ;;  %v2326_v59 = vpop.trf.xlu0  ;;  %4859 = vmatprep.subr.bf16.mxu1 %v19555_v17  ;;  %vm15140_vm4 = vmand %vm1171_vm8, %vm1131_vm5 }
 0x293   : > { %19580 = vst [vmem:[#allocation77_spill] sm:$0xff] %v15010_v33  ;;  %v3156_v55 = vsel %vm19582_vm6, %v14547_v18, 0.0  ;;  %v950_v19 = vshrl.u32 %v14920_v43, 5  ;;  %19583 = vst [vmem:[#allocation79_spill] sm:$0xff] %v15025_v35  ;;  %vm1129_vm7 = vcmp.ne.s32.totalorder %v14835_v58, 0  ;;  %vm1169_vm10 = vcmp.lt.s32.totalorder %v14835_v58, 0 }
 0x294   : > { %v12241_v15 = vpack.i.bf16 %v3157_v36, %v3156_v55  ;;  %v15030_v46 = vmul.u32.u64.low 3435973837, %v14973_v34  ;;  %v15031_v14 = vmul.u32.u64.high 3435973837, %v14973_v34, %v15030_v46  ;;  %v15034_v27 = vadd.s32 240, %v13921_v10  ;;  %v2430_v42 = vld [vmem:[#allocation4 + $0x10] ss:$2 sm:$0xff]  ;;  %v15037_v55 = vpop.trf.xlu1  ;;  %2342 = vst.msk [vmem:[#allocation4 + $0x38] sm:$0xff] %vm1578_vm3, %v2326_v59  ;;  %vm15196_vm8 = vmand %vm1169_vm10, %vm1129_vm7 }
 0x295   : > { %vm19271_vm6 = vcmp.lt.s32.totalorder %v14486_v22, 39  ;;  %v2435_v43 = vld [vmem:[#allocation4 + $0x11] ss:$2 sm:$0xff]  ;;  %v2347_v36 = vld [vmem:[#allocation4 + $0x20] ss:$2 sm:$0xff]  ;;  %v15045_v12 = vsel %vm14987_vm11, %v14867_v13, %v14782_v30  ;;  %v15050_v46 = vsel %vm15000_vm2, %v1250_v21, %v14807_v48  ;;  %v15053_v9 = vsub.s32 %v14763_v53, %v929_v32 }
 0x296   : > { %v2352_v39 = vld [vmem:[#allocation4 + $0x21] ss:$2 sm:$0xff]  ;;  %12242 = vrot.lane.b32.xlu1 %v12241_v15, %s13593_s29  ;;  %v2440_v5 = vmax.f32 %v2430_v42, %v2435_v43  ;;  %vm1128_vm12 = vcmp.ne.s32.totalorder %v15005_v44, 0  ;;  %v940_v30 = vmul.u32 40, %v939_v37  ;;  %v15060_v13 = vadd.s32 248, %v13921_v10  ;;  %v15068_v48 = vld [vmem:[#allocation5 + $0x80] sm:$0xff] }
 0x297   : > { %2424 = vst.msk [vmem:[#allocation4 + $0x28] sm:$0xff] %vm1578_vm3, %v14822_v25  ;;  %2423 = vst.msk [vmem:[#allocation4 + $0x20] sm:$0xff] %vm1578_vm3, %v14765_v63  ;;  %v12221_v53 = vpack.i.bf16 %v2957_v8, %v14719_v11  ;;  %v2357_v59 = vmax.f32 %v2347_v36, %v2352_v39  ;;  %v15070_v42 = vld [vmem:[#allocation5 + $0x7a] sm:$0xff]  ;;  %v951_v21 = vmul.u32 40, %v950_v19  ;;  %v961_v7 = vshrl.u32 %v14962_v38, 5  ;;  %v13012_v11 = vld [vmem:[%s19166_s5 + $0x30] sm:$0xff]   ;;  %v2327_v38 = vpop.trf.xlu0 }
 0x298   : > { %19584 = vst [vmem:[#allocation80_spill] sm:$0xff] %v15068_v48  ;;  %19585 = vst [vmem:[#allocation81_spill] sm:$0xff] %v15070_v42  ;;  %v15074_v32 = vpack.i.bf16 %v15025_v35, %v2957_v8  ;;  %v15076_v62 = vld [vmem:[#allocation5 + $0x81] sm:$0xff]  ;;  %vm1168_vm11 = vcmp.lt.s32.totalorder %v15005_v44, 0  ;;  %v15085_v25 = vmul.u32.u64.low 3435973837, %v15034_v27  ;;  %v15086_v39 = vmul.u32.u64.high 3435973837, %v15034_v27, %v15085_v25  ;;  %v15088_v63 = vpop.trf.xlu1  ;;  %4860 = vmatpush1.bf16.msra.mxu1 %v13012_v11 }
 0x299   : > { %2445 = vst.msk [vmem:[#allocation5 + $0xa9] sm:$0xff] %vm1578_vm3, %v2440_v5  ;;  %12222 = vrot.lane.b32.xlu0 %v12221_v53, %s13596_s13  ;;  %v15091_v37 = vld [vmem:[#allocation5 + $0x49] sm:$0xff]  ;;  %v15093_v19 = vld [vmem:[#allocation5 + $0x3a] sm:$0xff]  ;;  %2362 = vst.msk [vmem:[#allocation5 + $0x89] sm:$0xff] %vm1578_vm3, %v2357_v59  ;;  %v15098_v15 = vadd.s32 40, %v15005_v44  ;;  %vm1132_vm15 = vcmp.ne.s32.totalorder %v15053_v9, 0  ;;  %4861 = vmatprep.subr.bf16.mxu1 %v19555_v17  ;;  %v15146_v35 = vsub.s32 %v14856_v61, %v940_v30 }
 0x29a   : > { %vm19586_vm2 = vcmp.lt.s32.totalorder %v14369_v51, 39  ;;  %v15109_v43 = vsel %vm19269_vm0, %v15068_v48, 0.0  ;;  %2343 = vst.msk [vmem:[#allocation4 + $0x40] sm:$0xff] %vm1578_vm3, %v2327_v38  ;;  %12252 = vrot.lane.b32.xlu1 %v15074_v32, %s13594_s23  ;;  %v15114_v36 = vld [vmem:[#allocation5 + $0x79] sm:$0xff]  ;;  %v13013_v53 = vld [vmem:[%s19166_s5 + $0x38] sm:$0xff]   ;;  %v15149_v59 = vsub.s32 %v14871_v31, %v951_v21  ;;  %v12256_v33 = vpack.i.bf16 %v14741_v23, %v15091_v37  ;;  %v2965_v21 = vld [vmem:[#allocation5 + $0xa1] sm:$0xff] }
 0x29b   : > { %v15104_v8 = vsel %vm19586_vm2, %v15070_v42, 0.0  ;;  %19588 = vst [vmem:[#allocation83_spill] sm:$0xff] %v15109_v43  ;;  %19589 = vst [vmem:[#allocation84_spill] sm:$0xff] %v15114_v36  ;;  %vm1172_vm2 = vcmp.lt.s32.totalorder %v15053_v9, 0  ;;  %v15131_v25 = vmul.u32.u64.low 3435973837, %v15060_v13  ;;  %v15132_v38 = vmul.u32.u64.high 3435973837, %v15060_v13, %v15131_v25  ;;  %v2328_v31 = vpop.trf.xlu0 }
 0x29c   : > { %19587 = vst [vmem:[#allocation82_spill] sm:$0xff] %v15104_v8  ;;  %v12226_v43 = vpack.i.bf16 %v15076_v62, %v15114_v36  ;;  %v962_v25 = vmul.u32 40, %v961_v7  ;;  %v3111_v8 = vsel %vm1355_vm1, %v14779_v3, 0.0  ;;  %v3112_v42 = vsel %vm1356_vm14, %v15093_v19, 0.0  ;;  %v2348_v48 = vld [vmem:[#allocation4 + $0x30] ss:$2 sm:$0xff]  ;;  %v15160_v30 = vpop.trf.xlu1  ;;  %4862 = vmatpush1.bf16.msra.mxu1 %v13013_v53  ;;  %vm15220_vm7 = vmand %vm1168_vm11, %vm1128_vm12 }
 0x29d   : > { %v972_v4 = vshrl.u32 %v15031_v14, 5  ;;  %v2353_v61 = vld [vmem:[#allocation4 + $0x31] ss:$2 sm:$0xff]  ;;  %v15167_v23 = vsel %vm15120_vm9, %v14967_v57, %v14884_v6  ;;  %v15170_v3 = vadd.s32 224, %v13921_v10  ;;  %2344 = vst.msk [vmem:[#allocation4 + $0x48] sm:$0xff] %vm1578_vm3, %v2328_v31  ;;  %v15179_v5 = vadd.s32 40, %v15053_v9  ;;  %4863 = vmatprep.subr.bf16.mxu1 %v19555_v17  ;;  %vm15266_vm11 = vmand %vm1172_vm2, %vm1132_vm15 }
 0x29e   : > { %12227 = vrot.lane.b32.xlu0 %v12226_v43, %s13596_s13  ;;  %19594 = vst [vmem:[#allocation85_spill] sm:$0xff] %v15167_v23  ;;  %2426 = vst.msk [vmem:[#allocation4 + $0x38] sm:$0xff] %vm1578_vm3, %v14938_v2  ;;  %12257 = vrot.lane.b32.xlu1 %v12256_v33, %s13596_s13  ;;  %v2431_v14 = vld [vmem:[#allocation4 + $0x20] ss:$2 sm:$0xff]  ;;  %v2436_v7 = vld [vmem:[#allocation4 + $0x21] ss:$2 sm:$0xff]  ;;  %v2358_v43 = vmax.f32 %v2348_v48, %v2353_v61  ;;  %v15185_v6 = vsel %vm15140_vm4, %v15022_v45, %v14941_v0 }
 0x29f   : > { %2425 = vst.msk [vmem:[#allocation4 + $0x30] sm:$0xff] %vm1578_vm3, %v14886_v24  ;;  %19595 = vst [vmem:[#allocation86_spill] sm:$0xff] %v15185_v6  ;;  %v13014_v24 = vld [vmem:[%s19166_s5 + $0x40] sm:$0xff]   ;;  %v12236_v2 = vpack.i.bf16 %v3112_v42, %v3111_v8  ;;  %v2441_v33 = vmax.f32 %v2431_v14, %v2436_v7  ;;  %vm1133_vm5 = vcmp.ne.s32.totalorder %v15146_v35, 0  ;;  %vm1173_vm9 = vcmp.lt.s32.totalorder %v15146_v35, 0  ;;  %v2487_v31 = vpop.trf.xlu0 }
 0x2a0   : > { %v15190_v57 = vld [vmem:[#allocation5 + $0xa9] sm:$0xff]  ;;  %v15203_v0 = vadd.s32 40, %v15146_v35  ;;  %v3116_v45 = vsel %vm19271_vm6, %v14639_v16, 0.0  ;;  %vm19289_vm13 = vcmp.gt.s32.totalorder %v14500_v28, 0  ;;  %2363 = vst.msk [vmem:[#allocation5 + $0x91] sm:$0xff] %vm1578_vm3, %v2358_v43  ;;  %vm19288_vm10 = vcmp.gt.s32.totalorder %v15167_v23, 0  ;;  %v15230_v61 = vpop.trf.xlu1  ;;  %4864 = vmatpush1.bf16.msra.mxu1 %v13014_v24 }
 0x2a1   : > { %19596 = vst [vmem:[#allocation87_spill] sm:$0xff] %v15190_v57  ;;  %v15210_v42 = vpack.i.bf16 %v15190_v57, %v2965_v21  ;;  %v15213_v8 = vld [vmem:[#allocation5 + $0xa8] sm:$0xff]  ;;  %vm1134_vm4 = vcmp.ne.s32.totalorder %v15149_v59, 0  ;;  %vm1174_vm0 = vcmp.lt.s32.totalorder %v15149_v59, 0  ;;  %v15227_v16 = vmul.u32 40, %v972_v4  ;;  %2446 = vst.msk [vmem:[#allocation5 + $0xb1] sm:$0xff] %vm1578_vm3, %v2441_v33 }
 0x2a2   : > { %19599 = vst [vmem:[#allocation88_spill] sm:$0xff] %v15213_v8  ;;  %12237 = vrot.lane.b32.xlu0 %v12236_v2, %s19551_s20  ;;  %vm19602_vm12 = vcmp.gt.s32.totalorder %v13963_v40, 0  ;;  %v15237_v14 = vld [vmem:[#allocation5 + $0x88] sm:$0xff]  ;;  %v15245_v4 = vsub.s32 %v14923_v60, %v962_v25  ;;  %v15248_v2 = vmul.u32.u64.low 3435973837, %v15170_v3  ;;  %v15249_v11 = vmul.u32.u64.high 3435973837, %v15170_v3, %v15248_v2  ;;  %2503 = vst.msk [vmem:[#allocation4] sm:$0xff] %vm1578_vm3, %v2487_v31 }
 0x2a3   : > { %v3245_v21 = vsel %vm19602_vm12, %v14804_v20, 0.0  ;;  %v15239_v7 = vld [vmem:[#allocation5 + $0x82] sm:$0xff]  ;;  %vm19604_vm12 = vcmp.lt.s32.totalorder %v14619_v54, 39  ;;  %12287 = vrot.lane.b32.xlu1 %v15210_v42, %s13592_s22  ;;  %vm19605_vm6 = vcmp.gt.s32.totalorder %v13966_v41, 0  ;;  %v1016_v25 = vshrl.u32 %v15132_v38, 5 }
 0x2a4   : > { %v15241_v43 = vld [vmem:[#allocation5 + $0xa2] sm:$0xff]  ;;  %v3115_v17 = vsel %vm19604_vm12, %v14627_v26, 0.0  ;;  %v3246_v33 = vsel %vm19605_vm6, %v14547_v18, 0.0  ;;  %v15272_v31 = vadd.s32 256, %v13921_v10  ;;  %vm19608_vm6 = vcmp.lt.s32.totalorder %v13973_v50, 39 }
 0x2a5   : > { %19603 = vst [vmem:[#allocation89_spill] sm:$0xff] %v15241_v43  ;;  %v15260_v40 = vld [vmem:[#allocation5 + $0x42] sm:$0xff]  ;;  %v12246_v2 = vpack.i.bf16 %v3116_v45, %v3115_v17  ;;  %v3202_v18 = vsel %vm19608_vm6, %v15093_v19, 0.0  ;;  %vm19609_vm12 = vcmp.lt.s32.totalorder %v13975_v52, 39  ;;  %vm19610_vm15 = vcmp.gt.s32.totalorder %v15050_v46, 0 }
 0x2a6   : > { %v3203_v41 = vsel %vm19609_vm12, %v15260_v40, 0.0  ;;  %v15283_v57 = vsel %vm19610_vm15, %v15213_v8, 0.0  ;;  %v19612_v24 = vmov 0.0   ;;  %v12291_v38 = vpack.i.bf16 %v3246_v33, %v3245_v21  ;;  %v15286_v36 = vld [vmem:[#allocation5 + $0x89] sm:$0xff]  ;;  %v15303_v21 = vpop.trf.xlu1  ;;  %v2488_v33 = vpop.trf.xlu0 }
 0x2a7   : > { %19611 = vst [vmem:[#allocation90_spill] sm:$0xff] %v15283_v57  ;;  %11838 = vmatprep.subr.bf16.mxu1 %v19612_v24  ;;  %19613 = vst [vmem:[#allocation91_spill] sm:$0xff] %v15286_v36  ;;  %vm19614_vm2 = vcmp.gt.s32.totalorder %v15045_v12, 0  ;;  %v15296_v19 = vsel %vm1355_vm1, %v15239_v7, 0.0  ;;  %vm19617_vm6 = vcmp.lt.s32.totalorder %v14619_v54, 39  ;;  %12247 = vrot.lane.b32.xlu0 %v12246_v2, %s19551_s20  ;;  %v15322_v54 = vsel %vm15266_vm11, %v15179_v5, %v15053_v9  ;;  %v15347_v53 = vld [vmem:[#allocation5 + $0x90] sm:$0xff] }
 0x2a8   : > { %v15291_v17 = vsel %vm19614_vm2, %v15237_v14, 0.0  ;;  %19616 = vst [vmem:[#allocation93_spill] sm:$0xff] %v15296_v19  ;;  %v15301_v45 = vsel %vm19617_vm6, %v15241_v43, 0.0  ;;  %v2349_v57 = vld [vmem:[#allocation4 + $0x40] ss:$2 sm:$0xff]  ;;  %v15316_v43 = vsel %vm15220_vm7, %v15098_v15, %v15005_v44  ;;  %2504 = vst.msk [vmem:[#allocation4 + $0x8] sm:$0xff] %vm1578_vm3, %v2488_v33  ;;  %12292 = vrot.lane.b32.xlu1 %v12291_v38, %s13597_s27  ;;  %v12296_v48 = vpack.i.bf16 %v3203_v41, %v3202_v18 }
 0x2a9   : > { %19615 = vst [vmem:[#allocation92_spill] sm:$0xff] %v15291_v17  ;;  %19618 = vst [vmem:[#allocation94_spill] sm:$0xff] %v15301_v45  ;;  %v2354_v24 = vld [vmem:[#allocation4 + $0x41] ss:$2 sm:$0xff]  ;;  %v2432_v8 = vld [vmem:[#allocation4 + $0x30] ss:$2 sm:$0xff]  ;;  %v15310_v17 = vsel %vm15196_vm8, %v14952_v29, %v14835_v58 }
 0x2aa   : > { %19619 = vst [vmem:[#allocation95_spill] sm:$0xff] %v15316_v43  ;;  %2428 = vst.msk [vmem:[#allocation4 + $0x48] sm:$0xff] %vm1578_vm3, %v15037_v55  ;;  %v2437_v58 = vld [vmem:[#allocation4 + $0x31] ss:$2 sm:$0xff]  ;;  %v2359_v29 = vmax.f32 %v2349_v57, %v2354_v24  ;;  %v15331_v44 = vadd.s32 232, %v13921_v10  ;;  %v15339_v55 = vpack.i.bf16 %v15286_v36, %v15076_v62  ;;  %vm1135_vm8 = vcmp.ne.s32.totalorder %v15245_v4, 0  ;;  %v2489_v41 = vpop.trf.xlu0 }
 0x2ab   : > { %2427 = vst.msk [vmem:[#allocation4 + $0x40] sm:$0xff] %vm1578_vm3, %v14976_v47  ;;  %v15334_v15 = vmul.u32.u64.low 3435973837, %v15272_v31  ;;  %v15335_v9 = vmul.u32.u64.high 3435973837, %v15272_v31, %v15334_v15  ;;  %v2442_v5 = vmax.f32 %v2432_v8, %v2437_v58  ;;  %v1254_v47 = vadd.s32 40, %v15149_v59  ;;  %19621 = vst [vmem:[#allocation96_spill] sm:$0xff] %v15347_v53  ;;  %v15349_v60 = vld [vmem:[#allocation5 + $0x8a] sm:$0xff]  ;;  %v15353_v8 = vpop.trf.xlu1 }
 0x2ac   : > { %vm19620_vm7 = vcmp.gt.s32.totalorder %v13975_v52, 0  ;;  %2364 = vst.msk [vmem:[#allocation5 + $0x99] sm:$0xff] %vm1578_vm3, %v2359_v29  ;;  %19622 = vst [vmem:[#allocation97_spill] sm:$0xff] %v15349_v60  ;;  %vm1175_vm11 = vcmp.lt.s32.totalorder %v15245_v4, 0  ;;  %v1255_v62 = vadd.s32 40, %v15245_v4  ;;  %12262 = vrot.lane.b32.xlu0 %v15339_v55, %s13594_s23  ;;  %v15357_v2 = vld [vmem:[#allocation5 + $0xb0] sm:$0xff]  ;;  %12297 = vrot.lane.b32.xlu1 %v12296_v48, %s13595_s28 }
 0x2ad   : > { %v3248_v57 = vsel %vm19620_vm7, %v14816_v1, 0.0  ;;  %v15359_v18 = vld [vmem:[#allocation5 + $0xaa] sm:$0xff]  ;;  %2447 = vst.msk [vmem:[#allocation5 + $0xb9] sm:$0xff] %vm1578_vm3, %v2442_v5  ;;  %v15364_v1 = vsub.s32 %v14973_v34, %v15227_v16  ;;  %v983_v24 = vshrl.u32 %v15249_v11, 5  ;;  %v19623_v38 = vshrl.u32 %v15086_v39, 5  ;;  %2505 = vst.msk [vmem:[#allocation4 + $0x10] sm:$0xff] %vm1578_vm3, %v2489_v41 }
 0x2ae   : > { %v1017_v58 = vmul.u32 40, %v1016_v25  ;;  %v19624_v29 = vld [vmem:[#allocation72_spill] sm:$0xff]  ;;  %v19625_v52 = vld [vmem:[#allocation58_spill] sm:$0xff]  ;;  %vm19626_vm12 = vcmp.gt.s32.totalorder %v13973_v50, 0  ;;  %vm19290_vm15 = vcmp.gt.s32.totalorder %v15310_v17, 0  ;;  %vm15381_vm2 = vmand %vm1173_vm9, %vm1133_vm5  ;;  %v15403_v48 = vsel %vm1356_vm14, %v15349_v60, 0.0 }
 0x2af   : > { %v1006_v33 = vmul.u32 40, %v19623_v38  ;;  %v12266_v15 = vpack.i.bf16 %v15091_v37, %v19624_v29  ;;  %v3247_v5 = vsel %vm19626_vm12, %v19625_v52, 0.0  ;;  %v19629_v37 = vld [vmem:[#allocation65_spill] sm:$0xff]  ;;  %vm15396_vm6 = vmand %vm1174_vm0, %vm1134_vm4  ;;  %19632 = vst [vmem:[#allocation72_spill] sm:$0xff] %v15403_v48  ;;  %vm19634_vm5 = vcmp.gt.s32.totalorder %v14369_v51, 0  ;;  %v19662_v45 = vld [vmem:[#allocation67_spill] sm:$0xff] }
 0x2b0   : > { %v15386_v39 = vmul.u32.u64.low 3435973837, %v15331_v44  ;;  %v15387_v16 = vmul.u32.u64.high 3435973837, %v15331_v44, %v15386_v39  ;;  %v12301_v11 = vpack.i.bf16 %v3248_v57, %v3247_v5  ;;  %v3154_v25 = vsel %vm19289_vm13, %v19629_v37, 0.0  ;;  %vm15417_vm0 = vmand %vm1175_vm11, %vm1135_vm8  ;;  %v2490_v37 = vpop.trf.xlu0  ;;  %v2513_v60 = vld [vmem:[#allocation4] ss:$2 sm:$0xff] }
 0x2b1   : > { %v15408_v57 = vsel %vm19288_vm10, %v15347_v53, 0.0  ;;  %v3155_v41 = vsel %vm19634_vm5, %v14804_v20, 0.0  ;;  %vm19637_vm9 = vcmp.gt.s32.totalorder %v15185_v6, 0  ;;  %vm19639_vm4 = vcmp.lt.s32.totalorder %v14486_v22, 39  ;;  %v15433_v39 = vpop.trf.xlu1  ;;  %12267 = vrot.lane.b32.xlu0 %v12266_v15, %s13592_s22  ;;  %2506 = vst.msk [vmem:[#allocation4 + $0x18] sm:$0xff] %vm1578_vm3, %v2490_v37  ;;  %v15452_v15 = vld [vmem:[#allocation5 + $0x4a] sm:$0xff] }
 0x2b2   : > { %19633 = vst [vmem:[#allocation58_spill] sm:$0xff] %v15408_v57  ;;  %v15426_v5 = vsel %vm19637_vm9, %v15357_v2, 0.0  ;;  %v15431_v20 = vsel %vm19639_vm4, %v15359_v18, 0.0  ;;  %v2433_v57 = vld [vmem:[#allocation4 + $0x40] ss:$2 sm:$0xff]  ;;  %v15440_v29 = vsel %vm15381_vm2, %v15203_v0, %v15146_v35  ;;  %v15446_v19 = vsub.s32 %v15060_v13, %v1017_v58  ;;  %12302 = vrot.lane.b32.xlu1 %v12301_v11, %s13597_s27 }
 0x2b3   : > { %19638 = vst [vmem:[#allocation65_spill] sm:$0xff] %v15426_v5  ;;  %19640 = vst [vmem:[#allocation98_spill] sm:$0xff] %v15431_v20  ;;  %v2438_v50 = vld [vmem:[#allocation4 + $0x41] ss:$2 sm:$0xff]  ;;  %v15443_v5 = vsub.s32 %v15034_v27, %v1006_v33  ;;  %v15459_v27 = vsel %vm15396_vm6, %v1254_v47, %v15149_v59  ;;  %v984_v13 = vmul.u32 40, %v983_v24  ;;  %v1027_v33 = vshrl.u32 %v15335_v9, 5 }
 0x2b4   : > { %v2518_v53 = vld [vmem:[#allocation4 + $0x1] ss:$2 sm:$0xff]  ;;  %v2443_v0 = vmax.f32 %v2433_v57, %v2438_v50  ;;  %vm19292_vm11 = vcmp.gt.s32.totalorder %v15316_v43, 0  ;;  %v15468_v34 = vadd.s32 264, %v13921_v10  ;;  %v12306_v50 = vpack.i.bf16 %v3155_v41, %v3154_v25 }
 0x2b5   : > { %v19641_v6 = vld [vmem:[#allocation53_spill] sm:$0xff]  ;;  %v19642_v35 = vld [vmem:[#allocation62_spill] sm:$0xff]  ;;  %v2523_v58 = vmax.f32 %v2513_v60, %v2518_v53  ;;  %2587 = vst.msk [vmem:[#allocation4] sm:$0xff] %vm1578_vm3, %v15088_v63  ;;  %2588 = vst.msk [vmem:[#allocation4 + $0x8] sm:$0xff] %vm1578_vm3, %v15160_v30  ;;  %vm19316_vm12 = vcmp.gt.s32.totalorder %v15440_v29, 0  ;;  %vm1136_vm2 = vcmp.ne.s32.totalorder %v15364_v1, 0  ;;  %v15477_v63 = vsel %vm15417_vm0, %v1255_v62, %v15245_v4  ;;  %v15479_v59 = vpop.trf.xlu1  ;;  %12272 = vrot.lane.b32.xlu0 %v15210_v42, %s13594_s23  ;;  %v2491_v30 = vpop.trf.xlu0 }
 0x2b6   : > { %vm19319_vm8 = vcmp.lt.s32.totalorder %v19641_v6, 39  ;;  %vm1358_vm7 = vcmp.lt.s32.totalorder %v19642_v35, 39  ;;  %2448 = vst.msk [vmem:[#allocation5 + $0xc1] sm:$0xff] %vm1578_vm3, %v2443_v0  ;;  %vm1176_vm6 = vcmp.lt.s32.totalorder %v15364_v1, 0  ;;  %vm19643_vm5 = vcmp.lt.s32.totalorder %v14500_v28, 39  ;;  %2507 = vst.msk [vmem:[#allocation4 + $0x20] sm:$0xff] %vm1578_vm3, %v2491_v30  ;;  %12307 = vrot.lane.b32.xlu1 %v12306_v50, %s13593_s29 }
 0x2b7   : > { %v3204_v9 = vsel %vm19643_vm5, %v15452_v15, 0.0  ;;  %2528 = vst.msk [vmem:[#allocation5 + $0xc9] sm:$0xff] %vm1578_vm3, %v2523_v58  ;;  %vm19317_vm9 = vcmp.gt.s32.totalorder %v15322_v54, 0  ;;  %vm19315_vm4 = vcmp.gt.s32.totalorder %v15459_v27, 0  ;;  %v15490_v47 = vadd.s32 40, %v15364_v1  ;;  %v15498_v42 = vld [vmem:[#allocation5 + $0xa0] sm:$0xff] }
 0x2b8   : > { %vm1140_vm0 = vcmp.ne.s32.totalorder %v15446_v19, 0  ;;  %v15494_v4 = vadd.s32 40, %v15443_v5  ;;  %19645 = vst [vmem:[#allocation100_spill] sm:$0xff] %v15498_v42  ;;  %v15501_v53 = vsub.s32 %v15170_v3, %v984_v13  ;;  %vm1180_vm5 = vcmp.lt.s32.totalorder %v15446_v19, 0  ;;  %v19647_v11 = vld [vmem:[#allocation57_spill] sm:$0xff]  ;;  %v15517_v3 = vld [vmem:[#allocation5 + $0x92] sm:$0xff] }
 0x2b9   : > { %v15505_v60 = vadd.s32 40, %v15446_v19  ;;  %v15507_v62 = vmul.u32 40, %v1027_v33  ;;  %vm19646_vm10 = vcmp.lt.s32.totalorder %v14369_v51, 39  ;;  %19648 = vst [vmem:[#allocation57_spill] sm:$0xff] %v15517_v3  ;;  %v15519_v41 = vld [vmem:[#allocation5 + $0x9a] sm:$0xff]  ;;  %v994_v38 = vshrl.u32 %v15387_v16, 5  ;;  %12277 = vrot.lane.b32.xlu0 %v15074_v32, %s13592_s22  ;;  %v2492_v13 = vpop.trf.xlu0 }
 0x2ba   : > { %19644 = vst [vmem:[#allocation99_spill] sm:$0xff] %v15494_v4  ;;  %v3205_v24 = vsel %vm19646_vm10, %v14627_v26, 0.0  ;;  %v15514_v25 = vmul.u32.u64.low 3435973837, %v15468_v34  ;;  %v15515_v52 = vmul.u32.u64.high 3435973837, %v15468_v34, %v15514_v25  ;;  %19649 = vst [vmem:[#allocation101_spill] sm:$0xff] %v15519_v41  ;;  %v15523_v37 = vadd.s32 272, %v13921_v10  ;;  %v15528_v26 = vpop.trf.xlu1 }
 0x2bb   : > { %v12311_v57 = vpack.i.bf16 %v3205_v24, %v3204_v9  ;;  %v15526_v0 = vadd.s32 280, %v13921_v10  ;;  %v2514_v33 = vld [vmem:[#allocation4 + $0x10] ss:$2 sm:$0xff]  ;;  %v2519_v58 = vld [vmem:[#allocation4 + $0x11] ss:$2 sm:$0xff]  ;;  %v15532_v50 = vld [vmem:[#allocation5 + $0x98] sm:$0xff] }
 0x2bc   : > { %19650 = vst [vmem:[#allocation102_spill] sm:$0xff] %v15523_v37  ;;  %19652 = vst [vmem:[#allocation104_spill] sm:$0xff] %v15532_v50  ;;  %v19653_v30 = vld [vmem:[#allocation63_spill] sm:$0xff]  ;;  %v19654_v9 = vld [vmem:[#allocation61_spill] sm:$0xff]  ;;  %v15539_v16 = vsel %vm19290_vm15, %v15498_v42, 0.0  ;;  %v2524_v24 = vmax.f32 %v2514_v33, %v2519_v58  ;;  %vm19314_vm13 = vcmp.gt.s32.totalorder %v15477_v63, 0 }
 0x2bd   : > { %19651 = vst [vmem:[#allocation103_spill] sm:$0xff] %v15526_v0  ;;  %19655 = vst [vmem:[#allocation63_spill] sm:$0xff] %v15539_v16  ;;  %12312 = vrot.lane.b32.xlu1 %v12311_v57, %s13595_s28  ;;  %v2597_v32 = vld [vmem:[#allocation4] ss:$2 sm:$0xff]  ;;  %v2602_v25 = vld [vmem:[#allocation4 + $0x1] ss:$2 sm:$0xff]  ;;  %12282 = vrot.lane.b32.xlu0 %v15339_v55, %s13592_s22 }
 0x2be   : > { %2508 = vst.msk [vmem:[#allocation4 + $0x28] sm:$0xff] %vm1578_vm3, %v2492_v13  ;;  %2589 = vst.msk [vmem:[#allocation4 + $0x10] sm:$0xff] %vm1578_vm3, %v15230_v61  ;;  %v15551_v48 = vsel %vm19292_vm11, %v15532_v50, 0.0  ;;  %v15554_v13 = vadd.s32 288, %v13921_v10  ;;  %v15556_v57 = vld [vmem:[#allocation5 + $0x71] sm:$0xff]  ;;  %v2607_v33 = vmax.f32 %v2597_v32, %v2602_v25  ;;  %vm1137_vm15 = vcmp.ne.s32.totalorder %v15501_v53, 0 }
 0x2bf   : > { %2590 = vst.msk [vmem:[#allocation4 + $0x18] sm:$0xff] %vm1578_vm3, %v15303_v21  ;;  %19656 = vst [vmem:[#allocation61_spill] sm:$0xff] %v15551_v48  ;;  %v15563_v61 = vsel %vm19319_vm8, %v15517_v3, 0.0  ;;  %v15568_v21 = vsel %vm1358_vm7, %v15519_v41, 0.0  ;;  %v19660_v58 = vld [vmem:[#allocation84_spill] sm:$0xff]  ;;  %v3207_v32 = vsel %vm1356_vm14, %v19662_v45, 0.0  ;;  %v15593_v3 = vpop.trf.xlu1  ;;  %v2493_v45 = vpop.trf.xlu0 }
 0x2c0   : > { %19657 = vst [vmem:[#allocation105_spill] sm:$0xff] %v15554_v13  ;;  %19658 = vst [vmem:[#allocation106_spill] sm:$0xff] %v15563_v61  ;;  %v15572_v16 = vpack.i.bf16 %v19660_v58, %v15556_v57  ;;  %v19663_v25 = vld [vmem:[#allocation64_spill] sm:$0xff]  ;;  %v15590_v58 = vmul.u32.u64.low 3435973837, %v15523_v37  ;;  %v15591_v41 = vmul.u32.u64.high 3435973837, %v15523_v37, %v15590_v58  ;;  %v15600_v42 = vld [vmem:[#allocation5 + $0xb2] sm:$0xff] }
 0x2c1   : > { %19659 = vst [vmem:[#allocation107_spill] sm:$0xff] %v15568_v21  ;;  %2529 = vst.msk [vmem:[#allocation5 + $0xd1] sm:$0xff] %vm1578_vm3, %v2524_v24  ;;  %vm19318_vm11 = vcmp.lt.s32.totalorder %v19663_v25, 39  ;;  %v15579_v20 = vld [vmem:[#allocation5 + $0xc0] sm:$0xff]  ;;  %v15597_v24 = vld [vmem:[#allocation5 + $0xb1] sm:$0xff]  ;;  %v15604_v4 = vmul.u32 40, %v994_v38 }
 0x2c2   : > { %19661 = vst [vmem:[#allocation84_spill] sm:$0xff] %v15572_v16  ;;  %19664 = vst [vmem:[#allocation67_spill] sm:$0xff] %v15579_v20  ;;  %v15602_v50 = vld [vmem:[#allocation5 + $0xb8] sm:$0xff]  ;;  %v15607_v43 = vmul.u32.u64.low 3435973837, %v15526_v0  ;;  %v15608_v23 = vmul.u32.u64.high 3435973837, %v15526_v0, %v15607_v43  ;;  %12337 = vrot.lane.b32.xlu1 %v15572_v16, %s13594_s23  ;;  %v15624_v38 = vadd.s32 296, %v13921_v10 }
 0x2c3   : > { %vm15585_vm10 = vmand %vm1176_vm6, %vm1136_vm2  ;;  %19667 = vst [vmem:[#allocation64_spill] sm:$0xff] %v15593_v3  ;;  %v13449_v58 = vld [vmem:[#allocation5 + $0x5a] sm:$0xff]  ;;  %v15636_v3 = vld [vmem:[#allocation5 + $0xc8] sm:$0xff]  ;;  %v15643_v37 = vsel %vm19316_vm12, %v15579_v20, 0.0  ;;  %v15659_v0 = vsel %vm19317_vm9, %v15602_v50, 0.0  ;;  %vm19681_vm2 = vcmp.lt.s32.totalorder %v19647_v11, 39  ;;  %v2494_v61 = vpop.trf.xlu0 }
 0x2c4   : > { %19668 = vst [vmem:[#allocation108_spill] sm:$0xff] %v15597_v24  ;;  %2612 = vst.msk [vmem:[#allocation5 + $0xf1] sm:$0xff] %vm1578_vm3, %v2607_v33  ;;  %v3206_v36 = vsel %vm1355_vm1, %v13449_v58, 0.0  ;;  %v15627_v43 = vmul.u32.u64.low 3435973837, %v15554_v13  ;;  %v15628_v33 = vmul.u32.u64.high 3435973837, %v15554_v13, %v15627_v43  ;;  %vm19673_vm1 = vcmp.gt.s32.totalorder %v14509_v49, 0 }
 0x2c5   : > { %19669 = vst [vmem:[#allocation109_spill] sm:$0xff] %v15600_v42  ;;  %19670 = vst [vmem:[#allocation110_spill] sm:$0xff] %v15602_v50  ;;  %v3252_v58 = vsel %vm19673_vm1, %v15237_v14, 0.0  ;;  %v15634_v16 = vld [vmem:[#allocation5 + $0xba] sm:$0xff]  ;;  %v15654_v49 = vsel %vm19315_vm4, %v15636_v3, 0.0  ;;  %vm19685_vm6 = vcmp.gt.s32.totalorder %v14421_v56, 0 }
 0x2c6   : > { %2509 = vst.msk [vmem:[#allocation4 + $0x30] sm:$0xff] %vm1578_vm3, %v2493_v45  ;;  %vm15619_vm14 = vmand %vm1180_vm5, %vm1140_vm0  ;;  %v12316_v45 = vpack.i.bf16 %v3207_v32, %v3206_v36  ;;  %v19677_v13 = vld [vmem:[#allocation87_spill] sm:$0xff]  ;;  %v15647_v36 = vld [vmem:[#allocation5 + $0xc9] sm:$0xff]  ;;  %vm19351_vm0 = vcmp.lt.s32.totalorder %v15050_v46, 39  ;;  %vm19686_vm5 = vcmp.lt.s32.totalorder %v19653_v30, 39  ;;  %v3113_v55 = vsel %vm19319_vm8, %v15260_v40, 0.0 }
 0x2c7   : > { %19674 = vst [vmem:[#allocation111_spill] sm:$0xff] %v15634_v16  ;;  %19675 = vst [vmem:[#allocation112_spill] sm:$0xff] %v15636_v3  ;;  %v12356_v43 = vpack.i.bf16 %v15597_v24, %v19677_v13  ;;  %v15649_v32 = vld [vmem:[#allocation5 + $0xc2] sm:$0xff]  ;;  %v15666_v13 = vpop.trf.xlu1  ;;  %v2515_v21 = vld [vmem:[#allocation4 + $0x20] ss:$2 sm:$0xff]  ;;  %vm19691_vm1 = vcmp.gt.s32.totalorder %v14369_v51, 0  ;;  %v15729_v40 = vsub.s32 %v15272_v31, %v15507_v62  ;;  %v15747_v31 = vsub.s32 %v15331_v44, %v15604_v4 }
 0x2c8   : > { %19676 = vst [vmem:[#allocation113_spill] sm:$0xff] %v15643_v37  ;;  %19678 = vst [vmem:[#allocation87_spill] sm:$0xff] %v15649_v32  ;;  %v15664_v37 = vsel %vm19681_vm2, %v15600_v42, 0.0  ;;  %12317 = vrot.lane.b32.xlu0 %v12316_v45, %s13595_s28  ;;  %v2520_v20 = vld [vmem:[#allocation4 + $0x21] ss:$2 sm:$0xff]  ;;  %v19684_v45 = vld [vmem:[#allocation80_spill] sm:$0xff] }
 0x2c9   : > { %19679 = vst [vmem:[#allocation114_spill] sm:$0xff] %v15654_v49  ;;  %19680 = vst [vmem:[#allocation115_spill] sm:$0xff] %v15659_v0  ;;  %v2598_v24 = vld [vmem:[#allocation4 + $0x10] ss:$2 sm:$0xff]  ;;  %v15673_v49 = vsel %vm15585_vm10, %v15490_v47, %v15364_v1  ;;  %v15679_v0 = vsel %vm15619_vm14, %v15505_v60, %v15446_v19  ;;  %12357 = vrot.lane.b32.xlu1 %v12356_v43, %s13596_s13  ;;  %v3251_v3 = vsel %vm19685_vm6, %v19684_v45, 0.0  ;;  %v15694_v19 = vsel %vm19686_vm5, %v15634_v16, 0.0 }
 0x2ca   : > { %19682 = vst [vmem:[#allocation116_spill] sm:$0xff] %v15664_v37  ;;  %19683 = vst [vmem:[#allocation117_spill] sm:$0xff] %v15679_v0  ;;  %v2525_v50 = vmax.f32 %v2515_v21, %v2520_v20  ;;  %v2603_v1 = vld [vmem:[#allocation4 + $0x11] ss:$2 sm:$0xff]  ;;  %vm19688_vm10 = vcmp.lt.s32.totalorder %v19654_v9, 39  ;;  %v12321_v48 = vpack.i.bf16 %v3252_v58, %v3251_v3  ;;  %v15701_v47 = vld [vmem:[#allocation5 + $0xd1] sm:$0xff]  ;;  %v2495_v58 = vpop.trf.xlu0 }
 0x2cb   : > { %2510 = vst.msk [vmem:[#allocation4 + $0x38] sm:$0xff] %vm1578_vm3, %v2494_v61  ;;  %2591 = vst.msk [vmem:[#allocation4 + $0x20] sm:$0xff] %vm1578_vm3, %v15353_v8  ;;  %v15699_v56 = vsel %vm19688_vm10, %v15649_v32, 0.0  ;;  %v2608_v20 = vmax.f32 %v2598_v24, %v2603_v1  ;;  %v15703_v60 = vld [vmem:[#allocation5 + $0xd0] sm:$0xff]  ;;  %v12361_v21 = vpack.i.bf16 %v15701_v47, %v15647_v36  ;;  %v3114_v3 = vsel %vm1358_vm7, %v15452_v15, 0.0  ;;  %v2655_v24 = vpop.trf.xlu1  ;;  %v19690_v43 = vld [vmem:[#allocation76_spill] sm:$0xff] }
 0x2cc   : > { %2592 = vst.msk [vmem:[#allocation4 + $0x28] sm:$0xff] %vm1578_vm3, %v15433_v39  ;;  %19687 = vst [vmem:[#allocation80_spill] sm:$0xff] %v15694_v19  ;;  %v15705_v8 = vld [vmem:[#allocation5 + $0xca] sm:$0xff]  ;;  %v1038_v39 = vshrl.u32 %v15515_v52, 5  ;;  %vm19329_vm14 = vcmp.lt.s32.totalorder %v15310_v17, 39  ;;  %v1257_v52 = vadd.s32 40, %v15501_v53  ;;  %12322 = vrot.lane.b32.xlu0 %v12321_v48, %s13597_s27 }
 0x2cd   : > { %19689 = vst [vmem:[#allocation118_spill] sm:$0xff] %v15699_v56  ;;  %2530 = vst.msk [vmem:[#allocation5 + $0xd9] sm:$0xff] %vm1578_vm3, %v2525_v50  ;;  %v3250_v45 = vsel %vm19691_vm1, %v19690_v43, 0.0  ;;  %vm19328_vm2 = vcmp.gt.s32.totalorder %v15673_v49, 0  ;;  %v15734_v15 = vsel %vm19318_vm11, %v15705_v8, 0.0  ;;  %v15739_v50 = vsel %vm19314_vm13, %v15703_v60, 0.0  ;;  %12362 = vrot.lane.b32.xlu1 %v12361_v21, %s13596_s13 }
 0x2ce   : > { %2613 = vst.msk [vmem:[#allocation5 + $0xf9] sm:$0xff] %vm1578_vm3, %v2608_v20  ;;  %19692 = vst [vmem:[#allocation76_spill] sm:$0xff] %v15734_v15  ;;  %v19694_v51 = vld [vmem:[#allocation66_spill] sm:$0xff]  ;;  %vm19695_vm5 = vcmp.lt.s32.totalorder %v15501_v53, 0  ;;  %v15758_v1 = vmul.u32.u64.low 3435973837, %v15624_v38  ;;  %v15759_v48 = vmul.u32.u64.high 3435973837, %v15624_v38, %v15758_v1  ;;  %v12326_v21 = vpack.i.bf16 %v3114_v3, %v3113_v55  ;;  %v2496_v55 = vpop.trf.xlu0 }
 0x2cf   : > { %19693 = vst [vmem:[#allocation119_spill] sm:$0xff] %v15739_v50  ;;  %2511 = vst.msk [vmem:[#allocation4 + $0x40] sm:$0xff] %vm1578_vm3, %v2495_v58  ;;  %vm19330_vm6 = vcmp.lt.s32.totalorder %v19694_v51, 39  ;;  %vm19699_vm1 = vcmp.gt.s32.totalorder %v14500_v28, 0  ;;  %v1039_v4 = vmul.u32 40, %v1038_v39  ;;  %v1049_v58 = vshrl.u32 %v15591_v41, 5  ;;  %v2656_v20 = vpop.trf.xlu1 }
 0x2d0   : > { %2671 = vst.msk [vmem:[#allocation4] sm:$0xff] %vm1578_vm3, %v2655_v24  ;;  %vm15753_vm10 = vmand %vm19695_vm5, %vm1137_vm15  ;;  %v19698_v24 = vld [vmem:[#allocation70_spill] sm:$0xff]  ;;  %vm19700_vm15 = vcmp.lt.s32.totalorder %v14486_v22, 39  ;;  %vm19701_vm5 = vcmp.gt.s32.totalorder %v15045_v12, 0  ;;  %v1060_v50 = vshrl.u32 %v15608_v23, 5  ;;  %12327 = vrot.lane.b32.xlu0 %v12326_v21, %s19551_s20  ;;  %vm1179_vm13 = vcmp.lt.s32.totalorder %v15443_v5, 0 }
 0x2d1   : > { %v3249_v44 = vsel %vm19699_vm1, %v19698_v24, 0.0  ;;  %v3211_v61 = vsel %vm19700_vm15, %v15239_v7, 0.0  ;;  %v3167_v1 = vsel %vm19701_vm5, %v15357_v2, 0.0  ;;  %v15778_v41 = vsel %vm15753_vm10, %v1257_v52, %v15501_v53  ;;  %2512 = vst.msk [vmem:[#allocation4 + $0x48] sm:$0xff] %vm1578_vm3, %v2496_v55  ;;  %v19703_v7 = vld [vmem:[#allocation81_spill] sm:$0xff]  ;;  %v19704_v2 = vld [vmem:[#allocation56_spill] sm:$0xff] }
 0x2d2   : > { %v12366_v43 = vpack.i.bf16 %v3250_v45, %v3249_v44  ;;  %v2516_v3 = vld [vmem:[#allocation4 + $0x30] ss:$2 sm:$0xff]  ;;  %v2521_v24 = vld [vmem:[#allocation4 + $0x31] ss:$2 sm:$0xff]  ;;  %19702 = vst [vmem:[#allocation66_spill] sm:$0xff] %v15778_v41  ;;  %vm19705_vm1 = vcmp.lt.s32.totalorder %v19704_v2, 39 }
 0x2d3   : > { %v2599_v39 = vld [vmem:[#allocation4 + $0x20] ss:$2 sm:$0xff]  ;;  %v3210_v23 = vsel %vm19705_vm1, %v19703_v7, 0.0  ;;  %2672 = vst.msk [vmem:[#allocation4 + $0x8] sm:$0xff] %vm1578_vm3, %v2656_v20  ;;  %v2526_v45 = vmax.f32 %v2516_v3, %v2521_v24  ;;  %2593 = vst.msk [vmem:[#allocation4 + $0x30] sm:$0xff] %vm1578_vm3, %v15479_v59  ;;  %vm19327_vm10 = vcmp.gt.s32.totalorder %v15679_v0, 0  ;;  %v2657_v3 = vpop.trf.xlu1  ;;  %v2739_v24 = vpop.trf.xlu0  ;;  %v15813_v7 = vsub.s32 %v15468_v34, %v1039_v4 }
 0x2d4   : > { %12367 = vrot.lane.b32.xlu1 %v12366_v43, %s13597_s27  ;;  %2594 = vst.msk [vmem:[#allocation4 + $0x38] sm:$0xff] %vm1578_vm3, %v15528_v26  ;;  %v2604_v62 = vld [vmem:[#allocation4 + $0x21] ss:$2 sm:$0xff]  ;;  %vm1141_vm15 = vcmp.ne.s32.totalorder %v15729_v40, 0  ;;  %v12331_v53 = vpack.i.bf16 %v3211_v61, %v3210_v23  ;;  %v19706_v52 = vld [vmem:[#allocation88_spill] sm:$0xff]  ;;  %vm19707_vm5 = vcmp.gt.s32.totalorder %v19694_v51, 0 }
 0x2d5   : > { %v3166_v21 = vsel %vm19707_vm5, %v19706_v52, 0.0  ;;  %v15795_v44 = vld [vmem:[#allocation5 + $0xd9] sm:$0xff]  ;;  %v2609_v20 = vmax.f32 %v2599_v39, %v2604_v62  ;;  %vm1139_vm1 = vcmp.ne.s32.totalorder %v15443_v5, 0  ;;  %vm1181_vm4 = vcmp.lt.s32.totalorder %v15729_v40, 0  ;;  %v2975_v26 = vld [vmem:[#allocation5 + $0xf1] sm:$0xff]  ;;  %2531 = vst.msk [vmem:[#allocation5 + $0xe1] sm:$0xff] %vm1578_vm3, %v2526_v45 }
 0x2d6   : > { %v12406_v59 = vpack.i.bf16 %v3167_v1, %v3166_v21  ;;  %v2976_v43 = vld [vmem:[#allocation5 + $0xf9] sm:$0xff]  ;;  %vm1138_vm12 = vcmp.ne.s32.totalorder %v15747_v31, 0  ;;  %vm1178_vm5 = vcmp.lt.s32.totalorder %v15747_v31, 0  ;;  %vm19348_vm9 = vcmp.gt.s32.totalorder %v15778_v41, 0  ;;  %12332 = vrot.lane.b32.xlu0 %v12331_v53, %s13595_s28  ;;  %2673 = vst.msk [vmem:[#allocation4 + $0x10] sm:$0xff] %vm1578_vm3, %v2657_v3  ;;  %vm15830_vm8 = vmand %vm1181_vm4, %vm1141_vm15  ;;  %v19713_v4 = vld [vmem:[#allocation89_spill] sm:$0xff] }
 0x2d7   : > { %v15801_v55 = vld [vmem:[#allocation5 + $0xf2] sm:$0xff]  ;;  %v1261_v61 = vadd.s32 40, %v15729_v40  ;;  %v3126_v1 = vsel %vm19351_vm0, %v15359_v18, 0.0  ;;  %2614 = vst.msk [vmem:[#allocation5 + $0x101] sm:$0xff] %vm1578_vm3, %v2609_v20  ;;  %v1050_v23 = vmul.u32 40, %v1049_v58  ;;  %v1061_v45 = vmul.u32 40, %v1060_v50  ;;  %v2740_v56 = vpop.trf.xlu0 }
 0x2d8   : > { %19708 = vst [vmem:[#allocation70_spill] sm:$0xff] %v15801_v55  ;;  %v2816_v39 = vld [vmem:[#allocation5 + $0xf8] sm:$0xff]  ;;  %12407 = vrot.lane.b32.xlu1 %v12406_v59, %s13593_s29  ;;  %vm19358_vm11 = vcmp.lt.s32.totalorder %v15045_v12, 39  ;;  %v15824_v21 = vpack.i.bf16 %v15795_v44, %v15701_v47  ;;  %v1082_v50 = vshrl.u32 %v15759_v48, 5  ;;  %v3125_v58 = vsel %vm19329_vm14, %v19713_v4, 0.0  ;;  %v2658_v4 = vpop.trf.xlu1 }
 0x2d9   : > { %v19709_v62 = vld [vmem:[#allocation79_spill] sm:$0xff]  ;;  %v15820_v53 = vld [vmem:[#allocation5 + $0xd2] sm:$0xff]  ;;  %v15841_v47 = vpack.i.bf16 %v2976_v43, %v2975_v26  ;;  %v15851_v3 = vsel %vm19329_vm14, %v15801_v55, 0.0  ;;  %v15863_v43 = vsel %vm19327_vm10, %v2816_v39, 0.0  ;;  %2674 = vst.msk [vmem:[#allocation4 + $0x18] sm:$0xff] %vm1578_vm3, %v2658_v4  ;;  %vm1182_vm4 = vcmp.lt.s32.totalorder %v15813_v7, 0  ;;  %vm15912_vm10 = vmand %vm1179_vm13, %vm1139_vm1 }
 0x2da   : > { %v12341_v52 = vpack.i.bf16 %v15556_v57, %v19709_v62  ;;  %19710 = vst [vmem:[#allocation81_spill] sm:$0xff] %v15824_v21  ;;  %v1071_v57 = vshrl.u32 %v15628_v33, 5  ;;  %v15839_v20 = vld [vmem:[#allocation5 + $0xd8] sm:$0xff]  ;;  %v15846_v59 = vsel %vm19330_vm6, %v15820_v53, 0.0  ;;  %19716 = vst [vmem:[#allocation89_spill] sm:$0xff] %v15851_v3  ;;  %v12411_v33 = vpack.i.bf16 %v3126_v1, %v3125_v58 }
 0x2db   : > { %19714 = vst [vmem:[#allocation88_spill] sm:$0xff] %v15841_v47  ;;  %19715 = vst [vmem:[#allocation79_spill] sm:$0xff] %v15846_v59  ;;  %v2963_v48 = vld [vmem:[#allocation5 + $0x91] sm:$0xff]  ;;  %v15854_v62 = vadd.s32 304, %v13921_v10  ;;  %v15859_v26 = vsel %vm19328_vm2, %v15839_v20, 0.0  ;;  %v15869_v58 = vsel %vm15830_vm8, %v1261_v61, %v15729_v40  ;;  %vm1142_vm8 = vcmp.ne.s32.totalorder %v15813_v7, 0 }
 0x2dc   : > { %19717 = vst [vmem:[#allocation120_spill] sm:$0xff] %v15859_v26  ;;  %19718 = vst [vmem:[#allocation121_spill] sm:$0xff] %v15863_v43  ;;  %12342 = vrot.lane.b32.xlu0 %v12341_v52, %s13596_s13  ;;  %v2517_v15 = vld [vmem:[#allocation4 + $0x40] ss:$2 sm:$0xff]  ;;  %v2522_v37 = vld [vmem:[#allocation4 + $0x41] ss:$2 sm:$0xff]  ;;  %12412 = vrot.lane.b32.xlu1 %v12411_v33, %s19551_s20 }
 0x2dd   : > { %v2600_v1 = vld [vmem:[#allocation4 + $0x30] ss:$2 sm:$0xff]  ;;  %19719 = vst [vmem:[#allocation122_spill] sm:$0xff] %v15869_v58  ;;  %v19720_v19 = vld [vmem:[#allocation102_spill] sm:$0xff]  ;;  %v2527_v39 = vmax.f32 %v2517_v15, %v2522_v37  ;;  %2596 = vst.msk [vmem:[#allocation4 + $0x48] sm:$0xff] %vm1578_vm3, %v15666_v13  ;;  %vm19347_vm15 = vcmp.gt.s32.totalorder %v15869_v58, 0  ;;  %v2659_v13 = vpop.trf.xlu1  ;;  %v2741_v15 = vpop.trf.xlu0 }
 0x2de   : > { %v15872_v28 = vsub.s32 %v19720_v19, %v1050_v23  ;;  %v19721_v26 = vld [vmem:[#allocation103_spill] sm:$0xff]  ;;  %v19722_v52 = vld [vmem:[#allocation64_spill] sm:$0xff]  ;;  %v1072_v33 = vmul.u32 40, %v1071_v57  ;;  %vm19726_vm6 = vcmp.gt.s32.totalorder %v19641_v6, 0  ;;  %2675 = vst.msk [vmem:[#allocation4 + $0x20] sm:$0xff] %vm1578_vm3, %v2659_v13  ;;  %v1083_v57 = vmul.u32 40, %v1082_v50  ;;  %vm15928_vm2 = vmand %vm1178_vm5, %vm1138_vm12 }
 0x2df   : > { %v15875_v55 = vsub.s32 %v19721_v26, %v1061_v45  ;;  %2595 = vst.msk [vmem:[#allocation4 + $0x40] sm:$0xff] %vm1578_vm3, %v19722_v52  ;;  %v2605_v34 = vld [vmem:[#allocation4 + $0x31] ss:$2 sm:$0xff]  ;;  %v2681_v40 = vld [vmem:[#allocation4] ss:$2 sm:$0xff]  ;;  %v1258_v45 = vadd.s32 40, %v15747_v31  ;;  %vm15997_vm5 = vmand %vm1182_vm4, %vm1142_vm8 }
 0x2e0   : > { %v2686_v61 = vld [vmem:[#allocation4 + $0x1] ss:$2 sm:$0xff]  ;;  %v2610_v23 = vmax.f32 %v2600_v1, %v2605_v34  ;;  %2532 = vst.msk [vmem:[#allocation5 + $0xe9] sm:$0xff] %vm1578_vm3, %v2527_v39  ;;  %vm1183_vm14 = vcmp.lt.s32.totalorder %v15872_v28, 0  ;;  %12432 = vrot.lane.b32.xlu1 %v15824_v21, %s13594_s23  ;;  %v13450_v26 = vld [vmem:[#allocation5 + $0x68] sm:$0xff]  ;;  %v15905_v4 = vld [vmem:[#allocation5 + $0xe0] sm:$0xff] }
 0x2e1   : > { %v19723_v43 = vld [vmem:[#allocation91_spill] sm:$0xff]  ;;  %v2691_v32 = vmax.f32 %v2681_v40, %v2686_v61  ;;  %2755 = vst.msk [vmem:[#allocation4] sm:$0xff] %vm1578_vm3, %v2739_v24  ;;  %2756 = vst.msk [vmem:[#allocation4 + $0x8] sm:$0xff] %vm1578_vm3, %v2740_v56  ;;  %v15917_v1 = vmul.u32.u64.low 3435973837, %v15854_v62  ;;  %v15918_v39 = vmul.u32.u64.high 3435973837, %v15854_v62, %v15917_v1  ;;  %v13451_v34 = vld [vmem:[#allocation5 + $0x70] sm:$0xff]  ;;  %v15975_v41 = vsel %vm15928_vm2, %v1258_v45, %v15747_v31 }
 0x2e2   : > { %v12346_v19 = vpack.i.bf16 %v2963_v48, %v19723_v43  ;;  %v15888_v37 = vld [vmem:[#allocation5 + $0xda] sm:$0xff]  ;;  %2615 = vst.msk [vmem:[#allocation5 + $0x109] sm:$0xff] %vm1578_vm3, %v2610_v23  ;;  %v3158_v43 = vsel %vm19726_vm6, %v13450_v26, 0.0  ;;  %19727 = vst [vmem:[#allocation64_spill] sm:$0xff] %v15905_v4  ;;  %vm19730_vm6 = vcmp.gt.s32.totalorder %v19642_v35, 0  ;;  %v19737_v21 = vld [vmem:[#allocation84_spill] sm:$0xff] }
 0x2e3   : > { %19724 = vst [vmem:[#allocation102_spill] sm:$0xff] %v15888_v37  ;;  %v15895_v24 = vld [vmem:[#allocation5 + $0x100] sm:$0xff]  ;;  %2696 = vst.msk [vmem:[#allocation5 + $0x119] sm:$0xff] %vm1578_vm3, %v2691_v32  ;;  %v3159_v40 = vsel %vm19730_vm6, %v13451_v34, 0.0  ;;  %v15935_v50 = vsel %vm19358_vm11, %v15888_v37, 0.0  ;;  %v2660_v34 = vpop.trf.xlu1  ;;  %v19738_v37 = vld [vmem:[#allocation85_spill] sm:$0xff] }
 0x2e4   : > { %12347 = vrot.lane.b32.xlu0 %v12346_v19, %s13596_s13  ;;  %19725 = vst [vmem:[#allocation103_spill] sm:$0xff] %v15895_v24  ;;  %v3016_v56 = vld [vmem:[#allocation5 + $0xfa] sm:$0xff]  ;;  %19733 = vst [vmem:[#allocation91_spill] sm:$0xff] %v15935_v50  ;;  %v15940_v19 = vsel %vm19348_vm9, %v15905_v4, 0.0  ;;  %v15954_v1 = vsel %vm19347_vm15, %v15895_v24, 0.0  ;;  %vm1367_vm13 = vcmp.lt.s32.totalorder %v19738_v37, 39  ;;  %v12371_v3 = vpack.i.bf16 %v3159_v40, %v3158_v43 }
 0x2e5   : > { %v15920_v52 = vld [vmem:[#allocation5 + $0x99] sm:$0xff]  ;;  %19734 = vst [vmem:[#allocation123_spill] sm:$0xff] %v15940_v19  ;;  %v15949_v26 = vsel %vm19351_vm0, %v3016_v56, 0.0  ;;  %19736 = vst [vmem:[#allocation125_spill] sm:$0xff] %v15954_v1  ;;  %v2742_v19 = vpop.trf.xlu0  ;;  %v2687_v58 = vld [vmem:[#allocation4 + $0x11] ss:$2 sm:$0xff]  ;;  %v15981_v1 = vsub.s32 %v15624_v38, %v1083_v57 }
 0x2e6   : > { %v15943_v23 = vpack.i.bf16 %v15920_v52, %v2963_v48  ;;  %19735 = vst [vmem:[#allocation124_spill] sm:$0xff] %v15949_v26  ;;  %v19739_v48 = vld [vmem:[#allocation95_spill] sm:$0xff]  ;;  %2676 = vst.msk [vmem:[#allocation4 + $0x28] sm:$0xff] %vm1578_vm3, %v2660_v34  ;;  %v15986_v61 = vld [vmem:[#allocation5 + $0x72] sm:$0xff]  ;;  %vm19356_vm2 = vcmp.gt.s32.totalorder %v15975_v41, 0  ;;  %vm19749_vm6 = vcmp.gt.s32.totalorder %v19663_v25, 0 }
 0x2e7   : > { %vm1368_vm12 = vcmp.lt.s32.totalorder %v19739_v48, 39  ;;  %v2601_v4 = vld [vmem:[#allocation4 + $0x40] ss:$2 sm:$0xff]  ;;  %v2606_v13 = vld [vmem:[#allocation4 + $0x41] ss:$2 sm:$0xff]  ;;  %v3209_v31 = vsel %vm1358_vm7, %v15986_v61, 0.0 }
 0x2e8   : > { %12352 = vrot.lane.b32.xlu0 %v19737_v21, %s13592_s22  ;;  %v2682_v59 = vld [vmem:[#allocation4 + $0x10] ss:$2 sm:$0xff]  ;;  %12437 = vrot.lane.b32.xlu1 %v15943_v23, %s13592_s22  ;;  %v19742_v21 = vld [vmem:[#allocation86_spill] sm:$0xff]  ;;  %v2611_v24 = vmax.f32 %v2601_v4, %v2606_v13  ;;  %vm19747_vm7 = vcmp.gt.s32.totalorder %v19654_v9, 0  ;;  %vm19750_vm8 = vcmp.ne.s32.totalorder %v15872_v28, 0  ;;  %v1264_v40 = vadd.s32 40, %v15875_v55 }
 0x2e9   : > { %v19740_v56 = vld [vmem:[#allocation99_spill] sm:$0xff]  ;;  %vm19357_vm1 = vcmp.lt.s32.totalorder %v19742_v21, 39  ;;  %v2692_v26 = vmax.f32 %v2682_v59, %v2687_v58  ;;  %2757 = vst.msk [vmem:[#allocation4 + $0x10] sm:$0xff] %vm1578_vm3, %v2741_v15  ;;  %2758 = vst.msk [vmem:[#allocation4 + $0x18] sm:$0xff] %vm1578_vm3, %v2742_v19  ;;  %v1262_v59 = vadd.s32 40, %v15813_v7  ;;  %v2661_v58 = vpop.trf.xlu1  ;;  %v2743_v45 = vpop.trf.xlu0  ;;  %v19746_v15 = vld [vmem:[#allocation104_spill] sm:$0xff] }
 0x2ea   : > { %v15964_v50 = vsel %vm15912_vm10, %v19740_v56, %v15443_v5  ;;  %v2765_v32 = vld [vmem:[#allocation4] ss:$2 sm:$0xff]  ;;  %v2770_v5 = vld [vmem:[#allocation4 + $0x1] ss:$2 sm:$0xff]  ;;  %vm1184_vm10 = vcmp.lt.s32.totalorder %v15875_v55, 0  ;;  %2616 = vst.msk [vmem:[#allocation5 + $0x111] sm:$0xff] %vm1578_vm3, %v2611_v24  ;;  %vm16015_vm4 = vmand %vm1183_vm14, %vm19750_vm8 }
 0x2eb   : > { %19741 = vst [vmem:[#allocation84_spill] sm:$0xff] %v15964_v50  ;;  %v19743_v56 = vld [vmem:[#allocation105_spill] sm:$0xff]  ;;  %v2775_v4 = vmax.f32 %v2765_v32, %v2770_v5  ;;  %v3164_v24 = vsel %vm19747_vm7, %v19746_v15, 0.0  ;;  %2697 = vst.msk [vmem:[#allocation5 + $0x121] sm:$0xff] %vm1578_vm3, %v2692_v26  ;;  %vm19753_vm7 = vcmp.lt.s32.totalorder %v19641_v6, 39  ;;  %vm1146_vm15 = vcmp.ne.s32.totalorder %v15981_v1, 0 }
 0x2ec   : > { %v15978_v16 = vsub.s32 %v19743_v56, %v1072_v33  ;;  %12372 = vrot.lane.b32.xlu0 %v12371_v3, %s13593_s29  ;;  %v19748_v33 = vld [vmem:[#allocation100_spill] sm:$0xff]  ;;  %v1263_v3 = vadd.s32 40, %v15872_v28  ;;  %12442 = vrot.lane.b32.xlu1 %v15841_v47, %s13594_s23  ;;  %v13453_v19 = vld [vmem:[#allocation5 + $0x6a] sm:$0xff]  ;;  %2677 = vst.msk [vmem:[#allocation4 + $0x30] sm:$0xff] %vm1578_vm3, %v2661_v58  ;;  %v13455_v47 = vld [vmem:[#allocation5 + $0x78] sm:$0xff]  ;;  %vm19760_vm0 = vcmp.lt.s32.totalorder %v19694_v51, 39 }
 0x2ed   : > { %v3165_v43 = vsel %vm19749_vm6, %v19748_v33, 0.0  ;;  %2780 = vst.msk [vmem:[#allocation5 + $0x141] sm:$0xff] %vm1578_vm3, %v2775_v4  ;;  %v3208_v13 = vsel %vm19753_vm7, %v13453_v19, 0.0  ;;  %vm19754_vm6 = vcmp.ne.s32.totalorder %v15875_v55, 0  ;;  %v13454_v32 = vld [vmem:[#allocation5 + $0x80] sm:$0xff]  ;;  %vm19757_vm7 = vcmp.gt.s32.totalorder %v14486_v22, 0  ;;  %v2662_v22 = vpop.trf.xlu1  ;;  %v2744_v35 = vpop.trf.xlu0 }
 0x2ee   : > { %vm16030_vm14 = vmand %vm1184_vm10, %vm19754_vm6  ;;  %vm1145_vm8 = vcmp.ne.s32.totalorder %v15978_v16, 0  ;;  %vm1185_vm9 = vcmp.lt.s32.totalorder %v15978_v16, 0  ;;  %v12376_v34 = vpack.i.bf16 %v3209_v31, %v3208_v13  ;;  %v3161_v5 = vsel %vm19757_vm7, %v13454_v32, 0.0  ;;  %v16039_v56 = vld [vmem:[#allocation5 + $0xea] sm:$0xff]  ;;  %v16041_v4 = vld [vmem:[#allocation5 + $0xe2] sm:$0xff]  ;;  %2678 = vst.msk [vmem:[#allocation4 + $0x38] sm:$0xff] %vm1578_vm3, %v2662_v22 }
 0x2ef   : > { %19758 = vst [vmem:[#allocation85_spill] sm:$0xff] %v16041_v4  ;;  %vm1186_vm10 = vcmp.lt.s32.totalorder %v15981_v1, 0  ;;  %v16045_v58 = vadd.s32 40, %v15978_v16  ;;  %v12471_v33 = vpack.i.bf16 %v3165_v43, %v3164_v24  ;;  %vm19759_vm6 = vcmp.gt.s32.totalorder %v19704_v2, 0  ;;  %v16052_v13 = vld [vmem:[#allocation5 + $0x102] sm:$0xff]  ;;  %v19784_v22 = vld [vmem:[#allocation57_spill] sm:$0xff] }
 0x2f0   : > { %v3160_v6 = vsel %vm19759_vm6, %v13455_v47, 0.0  ;;  %v3216_v31 = vsel %vm19760_vm0, %v15359_v18, 0.0  ;;  %19761 = vst [vmem:[#allocation95_spill] sm:$0xff] %v16052_v13  ;;  %v1093_v32 = vshrl.u32 %v15918_v39, 5  ;;  %12377 = vrot.lane.b32.xlu0 %v12376_v34, %s13595_s28  ;;  %v3217_v24 = vsel %vm19358_vm11, %v15600_v42, 0.0  ;;  %v16060_v43 = vld [vmem:[#allocation5 + $0xe8] sm:$0xff]  ;;  %vm16141_vm11 = vmand %vm1186_vm10, %vm1146_vm15 }
 0x2f1   : > { %vm1372_vm7 = vcmp.lt.s32.totalorder %v15322_v54, 39  ;;  %vm1373_vm6 = vcmp.lt.s32.totalorder %v15440_v29, 39  ;;  %vm1374_vm0 = vcmp.lt.s32.totalorder %v15459_v27, 39  ;;  %v2683_v18 = vld [vmem:[#allocation4 + $0x20] ss:$2 sm:$0xff]  ;;  %v16067_v39 = vsel %vm15997_vm5, %v1262_v59, %v15813_v7  ;;  %12472 = vrot.lane.b32.xlu1 %v12471_v33, %s13593_s29  ;;  %v2745_v26 = vpop.trf.xlu0  ;;  %v13456_v33 = vld [vmem:[#allocation5 + $0x62] sm:$0xff] }
 0x2f2   : > { %v2688_v47 = vld [vmem:[#allocation4 + $0x21] ss:$2 sm:$0xff]  ;;  %19762 = vst [vmem:[#allocation99_spill] sm:$0xff] %v16067_v39  ;;  %v16072_v34 = vsel %vm16015_vm4, %v1263_v3, %v15872_v28  ;;  %v16077_v42 = vsel %vm16030_vm14, %v1264_v40, %v15875_v55  ;;  %v12381_v2 = vpack.i.bf16 %v3161_v5, %v3160_v6  ;;  %v2766_v7 = vld [vmem:[#allocation4 + $0x10] ss:$2 sm:$0xff]  ;;  %v16086_v28 = vsel %vm1367_vm13, %v16041_v4, 0.0  ;;  %v2663_v40 = vpop.trf.xlu1 }
 0x2f3   : > { %19763 = vst [vmem:[#allocation86_spill] sm:$0xff] %v16072_v34  ;;  %19764 = vst [vmem:[#allocation105_spill] sm:$0xff] %v16077_v42  ;;  %v2693_v15 = vmax.f32 %v2683_v18, %v2688_v47  ;;  %v2771_v38 = vld [vmem:[#allocation4 + $0x11] ss:$2 sm:$0xff]  ;;  %v16091_v55 = vsel %vm1368_vm12, %v16039_v56, 0.0  ;;  %v16103_v59 = vsel %vm19357_vm1, %v16052_v13, 0.0 }
 0x2f4   : > { %2759 = vst.msk [vmem:[#allocation4 + $0x20] sm:$0xff] %vm1578_vm3, %v2743_v45  ;;  %2760 = vst.msk [vmem:[#allocation4 + $0x28] sm:$0xff] %vm1578_vm3, %v2744_v35  ;;  %v2776_v6 = vmax.f32 %v2766_v7, %v2771_v38  ;;  %v16098_v35 = vsel %vm19356_vm2, %v16060_v43, 0.0  ;;  %v12481_v45 = vpack.i.bf16 %v3217_v24, %v3216_v31  ;;  %vm19769_vm5 = vcmp.lt.s32.totalorder %v19653_v30, 39  ;;  %12382 = vrot.lane.b32.xlu0 %v12381_v2, %s13593_s29  ;;  %v19774_v24 = vld [vmem:[#allocation96_spill] sm:$0xff]  ;;  %v16132_v18 = vld [vmem:[#allocation5 + $0x119] sm:$0xff] }
 0x2f5   : > { %19765 = vst [vmem:[#allocation100_spill] sm:$0xff] %v16086_v28  ;;  %19766 = vst [vmem:[#allocation126_spill] sm:$0xff] %v16091_v55  ;;  %v3118_v57 = vsel %vm19769_vm5, %v13453_v19, 0.0  ;;  %vm19398_vm14 = vcmp.gt.s32.totalorder %v16067_v39, 0  ;;  %vm19772_vm5 = vcmp.gt.s32.totalorder %v15045_v12, 0  ;;  %v1266_v19 = vadd.s32 40, %v15981_v1 }
 0x2f6   : > { %19767 = vst [vmem:[#allocation127_spill] sm:$0xff] %v16098_v35  ;;  %19768 = vst [vmem:[#allocation128_spill] sm:$0xff] %v16103_v59  ;;  %v1094_v5 = vmul.u32 40, %v1093_v32  ;;  %12482 = vrot.lane.b32.xlu1 %v12481_v45, %s13595_s28  ;;  %vm1375_vm4 = vcmp.lt.s32.totalorder %v15477_v63, 39  ;;  %vm19389_vm1 = vcmp.gt.s32.totalorder %v16077_v42, 0  ;;  %v16146_v47 = vadd.s32 312, %v13921_v10 }
 0x2f7   : > { %2698 = vst.msk [vmem:[#allocation5 + $0x129] sm:$0xff] %vm1578_vm3, %v2693_v15  ;;  %vm16114_vm2 = vmand %vm1185_vm9, %vm1145_vm8  ;;  %v3262_v15 = vsel %vm19772_vm5, %v15839_v20, 0.0  ;;  %vm19773_vm9 = vcmp.lt.s32.totalorder %v19647_v11, 39  ;;  %vm19775_vm8 = vcmp.gt.s32.totalorder %v19653_v30, 0  ;;  %vm19405_vm5 = vcmp.lt.s32.totalorder %v15964_v50, 39  ;;  %v19785_v10 = vld [vmem:[#allocation101_spill] sm:$0xff] }
 0x2f8   : > { %2781 = vst.msk [vmem:[#allocation5 + $0x149] sm:$0xff] %vm1578_vm3, %v2776_v6  ;;  %v3117_v31 = vsel %vm19773_vm9, %v13456_v33, 0.0  ;;  %v3163_v2 = vsel %vm19775_vm8, %v19774_v24, 0.0  ;;  %19776 = vst [vmem:[#allocation96_spill] sm:$0xff] %v16132_v18  ;;  %vm19779_vm9 = vcmp.gt.s32.totalorder %v19694_v51, 0  ;;  %v13457_v6 = vld [vmem:[#allocation5 + $0x7a] sm:$0xff]  ;;  %v16163_v24 = vsel %vm16114_vm2, %v16045_v58, %v15978_v16  ;;  %v2664_v16 = vpop.trf.xlu1  ;;  %v2746_v58 = vpop.trf.xlu0 }
 0x2f9   : > { %2679 = vst.msk [vmem:[#allocation4 + $0x40] sm:$0xff] %vm1578_vm3, %v2663_v40  ;;  %v12386_v7 = vpack.i.bf16 %v3118_v57, %v3117_v31  ;;  %v3261_v38 = vsel %vm19779_vm9, %v15703_v60, 0.0  ;;  %vm19780_vm8 = vcmp.lt.s32.totalorder %v19663_v25, 39  ;;  %v16155_v40 = vld [vmem:[#allocation5 + $0x10a] sm:$0xff]  ;;  %v16157_v33 = vld [vmem:[#allocation5 + $0x11a] sm:$0xff]  ;;  %19782 = vst [vmem:[#allocation130_spill] sm:$0xff] %v16163_v24  ;;  %v16191_v4 = vsub.s32 %v15854_v62, %v1094_v5 }
 0x2fa   : > { %v16153_v45 = vsel %vm19780_vm8, %v13457_v6, 0.0  ;;  %19781 = vst [vmem:[#allocation129_spill] sm:$0xff] %v16157_v33  ;;  %v12486_v57 = vpack.i.bf16 %v3262_v15, %v3261_v38  ;;  %vm19783_vm15 = vcmp.gt.s32.totalorder %v19647_v11, 0  ;;  %v3123_v6 = vsel %vm1367_vm13, %v19784_v22, 0.0  ;;  %v16174_v28 = vld [vmem:[#allocation5 + $0x108] sm:$0xff]  ;;  %v16176_v55 = vld [vmem:[#allocation5 + $0x111] sm:$0xff] }
 0x2fb   : > { %v3162_v31 = vsel %vm19783_vm15, %v15237_v14, 0.0  ;;  %v3124_v35 = vsel %vm1368_vm12, %v19785_v10, 0.0  ;;  %19786 = vst [vmem:[#allocation57_spill] sm:$0xff] %v16176_v55  ;;  %v16178_v3 = vld [vmem:[#allocation5 + $0x112] sm:$0xff]  ;;  %12387 = vrot.lane.b32.xlu0 %v12386_v7, %s19551_s20  ;;  %v2684_v14 = vld [vmem:[#allocation4 + $0x30] ss:$2 sm:$0xff]  ;;  %v16184_v22 = vsel %vm16141_vm11, %v1266_v19, %v15981_v1  ;;  %v16188_v10 = vpack.i.bf16 %v16132_v18, %v16176_v55 }
 0x2fc   : > { %19787 = vst [vmem:[#allocation101_spill] sm:$0xff] %v16178_v3  ;;  %v12391_v15 = vpack.i.bf16 %v3163_v2, %v3162_v31  ;;  %v2689_v38 = vld [vmem:[#allocation4 + $0x31] ss:$2 sm:$0xff]  ;;  %v2767_v13 = vld [vmem:[#allocation4 + $0x20] ss:$2 sm:$0xff]  ;;  %19788 = vst [vmem:[#allocation131_spill] sm:$0xff] %v16184_v22  ;;  %12487 = vrot.lane.b32.xlu1 %v12486_v57, %s13597_s27  ;;  %v12491_v31 = vpack.i.bf16 %v3124_v35, %v3123_v6 }
 0x2fd   : > { %2680 = vst.msk [vmem:[#allocation4 + $0x48] sm:$0xff] %vm1578_vm3, %v2664_v16  ;;  %v2694_v2 = vmax.f32 %v2684_v14, %v2689_v38  ;;  %2761 = vst.msk [vmem:[#allocation4 + $0x30] sm:$0xff] %vm1578_vm3, %v2745_v26  ;;  %v2772_v7 = vld [vmem:[#allocation4 + $0x21] ss:$2 sm:$0xff]  ;;  %v16200_v1 = vsel %vm1372_vm7, %v16155_v40, 0.0  ;;  %v16205_v62 = vsel %vm1373_vm6, %v16178_v3, 0.0  ;;  %v2747_v38 = vpop.trf.xlu0 }
 0x2fe   : > { %2762 = vst.msk [vmem:[#allocation4 + $0x38] sm:$0xff] %vm1578_vm3, %v2746_v58  ;;  %19789 = vst [vmem:[#allocation132_spill] sm:$0xff] %v16200_v1  ;;  %v16210_v19 = vsel %vm1374_vm0, %v16157_v33, 0.0  ;;  %v2777_v5 = vmax.f32 %v2767_v13, %v2772_v7  ;;  %v16219_v57 = vsel %vm19398_vm14, %v16174_v28, 0.0  ;;  %v16221_v16 = vld [vmem:[#allocation5 + $0xf0] sm:$0xff]  ;;  %vm19396_vm11 = vcmp.gt.s32.totalorder %v16163_v24, 0 }
 0x2ff   : > { %19790 = vst [vmem:[#allocation133_spill] sm:$0xff] %v16205_v62  ;;  %19791 = vst [vmem:[#allocation134_spill] sm:$0xff] %v16210_v19  ;;  %v16226_v13 = vmul.u32.u64.low 3435973837, %v16146_v47  ;;  %v16227_v58 = vmul.u32.u64.high 3435973837, %v16146_v47, %v16226_v13  ;;  %v16229_v14 = vld [vmem:[#allocation5 + $0x142] sm:$0xff]  ;;  %12392 = vrot.lane.b32.xlu0 %v12391_v15, %s13593_s29  ;;  %vm19794_vm2 = vcmp.lt.s32.totalorder %v19654_v9, 39 }
 0x300   : > { %19792 = vst [vmem:[#allocation135_spill] sm:$0xff] %v16219_v57  ;;  %2699 = vst.msk [vmem:[#allocation5 + $0x131] sm:$0xff] %vm1578_vm3, %v2694_v2  ;;  %v3119_v7 = vsel %vm19794_vm2, %v15986_v61, 0.0  ;;  %vm19795_vm10 = vcmp.lt.s32.totalorder %v15050_v46, 39  ;;  %v16238_v6 = vld [vmem:[#allocation5 + $0x110] sm:$0xff]  ;;  %vm19397_vm9 = vcmp.gt.s32.totalorder %v16184_v22, 0  ;;  %12492 = vrot.lane.b32.xlu1 %v12491_v31, %s19551_s20 }
 0x301   : > { %19793 = vst [vmem:[#allocation136_spill] sm:$0xff] %v16229_v14  ;;  %v3221_v35 = vsel %vm19795_vm10, %v15820_v53, 0.0  ;;  %2782 = vst.msk [vmem:[#allocation5 + $0x151] sm:$0xff] %vm1578_vm3, %v2777_v5  ;;  %vm1147_vm8 = vcmp.ne.s32.totalorder %v16191_v4, 0  ;;  %v12396_v15 = vpack.i.bf16 %v16153_v45, %v3119_v7  ;;  %vm19796_vm15 = vcmp.lt.s32.totalorder %v15310_v17, 39  ;;  %v19797_v2 = vld [vmem:[#allocation97_spill] sm:$0xff]  ;;  %v16280_v7 = vpop.permute.xlu1 %12187 }
 0x302   : > { %v3220_v61 = vsel %vm19796_vm15, %v15705_v8, 0.0  ;;  %vm19798_vm2 = vcmp.lt.s32.totalorder %v15045_v12, 39  ;;  %v16251_v32 = vld [vmem:[#allocation5 + $0x120] sm:$0xff]  ;;  %vm1187_vm10 = vcmp.lt.s32.totalorder %v16191_v4, 0  ;;  %v16256_v5 = vld [vmem:[#allocation5 + $0x128] sm:$0xff]  ;;  %v16258_v57 = vld [vmem:[#allocation5 + $0x118] sm:$0xff] }
 0x303   : > { %v3122_v13 = vsel %vm19798_vm2, %v19797_v2, 0.0  ;;  %v16253_v26 = vld [vmem:[#allocation5 + $0x122] sm:$0xff]  ;;  %19800 = vst [vmem:[#allocation137_spill] sm:$0xff] %v16258_v57  ;;  %vm19802_vm15 = vcmp.gt.s32.totalorder %v15964_v50, 0  ;;  %v16273_v8 = vsel %vm19405_vm5, %v16229_v14, 0.0  ;;  %v16278_v31 = vsel %vm19396_vm11, %v16251_v32, 0.0  ;;  %12397 = vrot.lane.b32.xlu0 %v12396_v15, %s19551_s20 }
 0x304   : > { %19799 = vst [vmem:[#allocation97_spill] sm:$0xff] %v16253_v26  ;;  %v16263_v45 = vsel %vm1375_vm4, %v16253_v26, 0.0  ;;  %v16268_v12 = vsel %vm19802_vm15, %v16221_v16, 0.0  ;;  %19804 = vst [vmem:[#allocation140_spill] sm:$0xff] %v16273_v8  ;;  %v12496_v2 = vpack.i.bf16 %v3221_v35, %v3220_v61  ;;  %v16282_v62 = vld [vmem:[#allocation5 + $0xc1] sm:$0xff]  ;;  %v16287_v19 = vsel %vm19397_vm9, %v16256_v5, 0.0  ;;  %v2748_v35 = vpop.trf.xlu0 }
 0x305   : > { %19801 = vst [vmem:[#allocation138_spill] sm:$0xff] %v16263_v45  ;;  %19803 = vst [vmem:[#allocation139_spill] sm:$0xff] %v16268_v12  ;;  %vm19807_vm2 = vcmp.gt.s32.totalorder %v16072_v34, 0  ;;  %v16297_v59 = vsel %vm19389_vm1, %v16258_v57, 0.0  ;;  %v2685_v61 = vld [vmem:[#allocation4 + $0x40] ss:$2 sm:$0xff] }
 0x306   : > { %19805 = vst [vmem:[#allocation141_spill] sm:$0xff] %v16278_v31  ;;  %19806 = vst [vmem:[#allocation142_spill] sm:$0xff] %v16287_v19  ;;  %v16292_v12 = vsel %vm19807_vm2, %v16238_v6, 0.0  ;;  %v2690_v31 = vld [vmem:[#allocation4 + $0x41] ss:$2 sm:$0xff]  ;;  %12497 = vrot.lane.b32.xlu1 %v12496_v2, %s13595_s28  ;;  %v13458_v14 = vld [vmem:[#allocation5 + $0x82] sm:$0xff]  ;;  %v16310_v2 = vpop.permute.xlu1 %12192 }
 0x307   : > { %19808 = vst [vmem:[#allocation143_spill] sm:$0xff] %v16292_v12  ;;  %19809 = vst [vmem:[#allocation144_spill] sm:$0xff] %v16297_v59  ;;  %v2768_v1 = vld [vmem:[#allocation4 + $0x30] ss:$2 sm:$0xff]  ;;  %vm19810_vm15 = vcmp.lt.s32.totalorder %v19694_v51, 39  ;;  %v2695_v24 = vmax.f32 %v2685_v61, %v2690_v31  ;;  %v1267_v59 = vadd.s32 40, %v16191_v4 }
 0x308   : > { %v3121_v19 = vsel %vm19810_vm15, %v13458_v14, 0.0  ;;  %2763 = vst.msk [vmem:[#allocation4 + $0x40] sm:$0xff] %vm1578_vm3, %v2747_v38  ;;  %2764 = vst.msk [vmem:[#allocation4 + $0x48] sm:$0xff] %vm1578_vm3, %v2748_v35  ;;  %v2773_v12 = vld [vmem:[#allocation4 + $0x31] ss:$2 sm:$0xff]  ;;  %v2968_v15 = vld [vmem:[#allocation5 + $0xb9] sm:$0xff] }
 0x309   : > { %v12401_v26 = vpack.i.bf16 %v3122_v13, %v3121_v19  ;;  %v2778_v33 = vmax.f32 %v2768_v1, %v2773_v12  ;;  %vm1227_vm2 = vmand %vm1187_vm10, %vm1147_vm8  ;;  %v12506_v51 = vpack.i.bf16 %v16282_v62, %v2968_v15  ;;  %2700 = vst.msk [vmem:[#allocation5 + $0x139] sm:$0xff] %vm1578_vm3, %v2695_v24  ;;  %v16314_v14 = vld [vmem:[#allocation5 + $0x12a] sm:$0xff]  ;;  %v16319_v19 = vld [vmem:[#allocation5 + $0xe1] sm:$0xff]  ;;  %vm1376_vm8 = vcmp.lt.s32.totalorder %v15673_v49, 39 }
 0x30a   : > { %19811 = vst [vmem:[#allocation145_spill] sm:$0xff] %v16314_v14  ;;  %v16316_v38 = vld [vmem:[#allocation5 + $0x14a] sm:$0xff]  ;;  %vm19434_vm10 = vcmp.lt.s32.totalorder %v15679_v0, 39  ;;  %v16326_v1 = vsel %vm1227_vm2, %v1267_v59, %v16191_v4  ;;  %v16341_v13 = vpop.permute.xlu1 %12197  ;;  %v12511_v4 = vpack.i.bf16 %v16319_v19, %v15795_v44  ;;  %v1104_v44 = vshrl.u32 %v16227_v58, 5  ;;  %v13461_v55 = vld [vmem:[#allocation5 + $0xa0] sm:$0xff] }
 0x30b   : > { %19812 = vst [vmem:[#allocation146_spill] sm:$0xff] %v16316_v38  ;;  %12402 = vrot.lane.b32.xlu0 %v12401_v26, %s19551_s20  ;;  %2783 = vst.msk [vmem:[#allocation5 + $0x159] sm:$0xff] %vm1578_vm3, %v2778_v33  ;;  %12507 = vrot.lane.b32.xlu1 %v12506_v51, %s13596_s13  ;;  %v16328_v24 = vld [vmem:[#allocation5 + $0x130] sm:$0xff]  ;;  %vm19378_vm15 = vcmp.gt.s32.totalorder %v16326_v1, 0  ;;  %v16334_v26 = vsel %vm1376_vm8, %v16314_v14, 0.0  ;;  %v16339_v33 = vsel %vm19434_vm10, %v16316_v38, 0.0  ;;  %v12516_v12 = vpack.i.bf16 %v15647_v36, %v16282_v62 }
 0x30c   : > { %19813 = vst [vmem:[#allocation147_spill] sm:$0xff] %v16326_v1  ;;  %19814 = vst [vmem:[#allocation148_spill] sm:$0xff] %v16328_v24  ;;  %v16352_v31 = vsel %vm19378_vm15, %v16328_v24, 0.0  ;;  %v19818_v38 = vld [vmem:[#allocation108_spill] sm:$0xff]  ;;  %vm19820_vm2 = vcmp.gt.s32.totalorder %v19739_v48, 0  ;;  %vm19822_vm15 = vcmp.gt.s32.totalorder %v19738_v37, 0 }
 0x30d   : > { %19815 = vst [vmem:[#allocation149_spill] sm:$0xff] %v16334_v26  ;;  %19816 = vst [vmem:[#allocation150_spill] sm:$0xff] %v16339_v33  ;;  %v12421_v59 = vpack.i.bf16 %v2968_v15, %v19818_v38  ;;  %v19821_v15 = vld [vmem:[#allocation110_spill] sm:$0xff]  ;;  %v16398_v33 = vpop.permute.xlu0 %12177  ;;  %vm19838_vm1 = vcmp.gt.s32.totalorder %v15050_v46, 0  ;;  %v19842_v24 = vld [vmem:[#allocation56_spill] sm:$0xff]  ;;  %vm19888_vm10 = vcmp.gt.s32.totalorder %v15459_v27, 0 }
 0x30e   : > { %19817 = vst [vmem:[#allocation151_spill] sm:$0xff] %v16352_v31  ;;  %v16359_v45 = vpop.permute.xlu1 %12202  ;;  %v19819_v31 = vld [vmem:[#allocation67_spill] sm:$0xff]  ;;  %v3168_v38 = vsel %vm19822_vm15, %v19821_v15, 0.0  ;;  %v3171_v42 = vsel %vm19838_vm1, %v15703_v60, 0.0  ;;  %vm19843_vm1 = vcmp.gt.s32.totalorder %v19842_v24, 0  ;;  %v13462_v24 = vld [vmem:[#allocation5 + $0xa8] sm:$0xff] }
 0x30f   : > { %12417 = vrot.lane.b32.xlu0 %v15943_v23, %s13594_s23  ;;  %v2769_v35 = vld [vmem:[#allocation4 + $0x40] ss:$2 sm:$0xff]  ;;  %v2774_v61 = vld [vmem:[#allocation4 + $0x41] ss:$2 sm:$0xff]  ;;  %12512 = vrot.lane.b32.xlu1 %v12511_v4, %s13596_s13  ;;  %v3169_v23 = vsel %vm19820_vm2, %v19819_v31, 0.0  ;;  %v1105_v4 = vmul.u32 40, %v1104_v44 }
 0x310   : > { %v2779_v51 = vmax.f32 %v2769_v35, %v2774_v61  ;;  %v13459_v35 = vld [vmem:[#allocation5 + $0xa1] sm:$0xff]  ;;  %v12526_v36 = vpack.i.bf16 %v3169_v23, %v3168_v38  ;;  %v16388_v15 = vld [vmem:[#allocation5 + $0x139] sm:$0xff]  ;;  %vm1378_vm2 = vcmp.lt.s32.totalorder %v15975_v41, 39  ;;  %v3255_v60 = vsel %vm19843_vm1, %v13461_v55, 0.0 }
 0x311   : > { %v12426_v58 = vpack.i.bf16 %v13459_v35, %v15920_v52  ;;  %v16377_v8 = vld [vmem:[#allocation5 + $0x13a] sm:$0xff]  ;;  %v16386_v35 = vld [vmem:[#allocation5 + $0x131] sm:$0xff] }
 0x312   : > { %2784 = vst.msk [vmem:[#allocation5 + $0x161] sm:$0xff] %vm1578_vm3, %v2779_v51  ;;  %v16373_v61 = vpop.permute.xlu1 %12212  ;;  %v16375_v51 = vld [vmem:[#allocation5 + $0x132] sm:$0xff]  ;;  %19824 = vst [vmem:[#allocation67_spill] sm:$0xff] %v16377_v8  ;;  %v19825_v31 = vld [vmem:[#allocation111_spill] sm:$0xff]  ;;  %v16396_v38 = vpack.i.bf16 %v16388_v15, %v16386_v35 }
 0x313   : > { %12422 = vrot.lane.b32.xlu0 %v12421_v59, %s13594_s23  ;;  %12517 = vrot.lane.b32.xlu1 %v12516_v12, %s13592_s22  ;;  %19823 = vst [vmem:[#allocation108_spill] sm:$0xff] %v16375_v51  ;;  %v3218_v12 = vsel %vm1367_vm13, %v19825_v31, 0.0  ;;  %v19826_v44 = vld [vmem:[#allocation87_spill] sm:$0xff]  ;;  %19827 = vst [vmem:[#allocation110_spill] sm:$0xff] %v16386_v35  ;;  %v19829_v23 = vld [vmem:[#allocation66_spill] sm:$0xff] }
 0x314   : > { %v3219_v52 = vsel %vm1368_vm12, %v19826_v44, 0.0  ;;  %19828 = vst [vmem:[#allocation111_spill] sm:$0xff] %v16388_v15  ;;  %vm1377_vm15 = vcmp.lt.s32.totalorder %v19829_v23, 39  ;;  %19830 = vst [vmem:[#allocation87_spill] sm:$0xff] %v16396_v38  ;;  %v19836_v35 = vld [vmem:[#allocation112_spill] sm:$0xff]  ;;  %vm19837_vm12 = vcmp.gt.s32.totalorder %v15310_v17, 0 }
 0x315   : > { %v16403_v44 = vsel %vm1377_vm15, %v16375_v51, 0.0  ;;  %v12531_v1 = vpack.i.bf16 %v3219_v52, %v3218_v12  ;;  %v3170_v22 = vsel %vm19837_vm12, %v19836_v35, 0.0  ;;  %v19839_v51 = vld [vmem:[#allocation53_spill] sm:$0xff]  ;;  %v16425_v52 = vpop.permute.xlu0 %12182  ;;  %vm19431_vm12 = vcmp.lt.s32.totalorder %v16072_v34, 39  ;;  %v19871_v38 = vld [vmem:[#allocation30_spill] sm:$0xff] }
 0x316   : > { %19831 = vst [vmem:[#allocation66_spill] sm:$0xff] %v16403_v44  ;;  %v16410_v26 = vpop.permute.xlu1 %12217  ;;  %vm19840_vm11 = vcmp.gt.s32.totalorder %v19839_v51, 0  ;;  %v12536_v35 = vpack.i.bf16 %v3171_v42, %v3170_v22  ;;  %v3128_v51 = vsel %vm1372_vm7, %v19825_v31, 0.0  ;;  %v19848_v31 = vld [vmem:[#allocation51_spill] sm:$0xff] }
 0x317   : > { %12427 = vrot.lane.b32.xlu0 %v12426_v58, %s13596_s13  ;;  %12527 = vrot.lane.b32.xlu1 %v12526_v36, %s13593_s29  ;;  %v1106_v58 = vsub.s32 %v16146_v47, %v1105_v4  ;;  %v16408_v36 = vsel %vm1378_vm2, %v16377_v8, 0.0  ;;  %v19833_v47 = vld [vmem:[#allocation104_spill] sm:$0xff]  ;;  %v19834_v4 = vld [vmem:[#allocation62_spill] sm:$0xff]  ;;  %vm19849_vm1 = vcmp.gt.s32.totalorder %v19848_v31, 0 }
 0x318   : > { %19832 = vst [vmem:[#allocation152_spill] sm:$0xff] %v16408_v36  ;;  %vm19835_vm13 = vcmp.gt.s32.totalorder %v19834_v4, 0  ;;  %v13460_v8 = vld [vmem:[#allocation5 + $0x90] sm:$0xff] }
 0x319   : > { %v3254_v15 = vsel %vm19835_vm13, %v19833_v47, 0.0  ;;  %v3253_v12 = vsel %vm19840_vm11, %v13460_v8, 0.0  ;;  %vm1148_vm9 = vcmp.ne.s32.totalorder %v1106_v58, 0  ;;  %vm1188_vm14 = vcmp.lt.s32.totalorder %v1106_v58, 0  ;;  %v3198_v4 = vld [vmem:[#allocation5 + $0x15a] sm:$0xff]  ;;  %v3199_v55 = vld [vmem:[#allocation5 + $0x162] sm:$0xff]  ;;  %v16464_v8 = vpop.permute.xlu0 %12207 }
 0x31a   : > { %v12451_v47 = vpack.i.bf16 %v3254_v15, %v3253_v12  ;;  %v16428_v14 = vpop.permute.xlu1 %12232  ;;  %v1268_v18 = vadd.s32 40, %v1106_v58  ;;  %vm19432_vm11 = vcmp.lt.s32.totalorder %v16067_v39, 39  ;;  %vm16444_vm5 = vmand %vm1188_vm14, %vm1148_vm9  ;;  %v3256_v15 = vsel %vm19849_vm1, %v13462_v24, 0.0  ;;  %19852 = vst [vmem:[#allocation56_spill] sm:$0xff] %v16464_v8  ;;  %v19853_v36 = vld [vmem:[#allocation109_spill] sm:$0xff]  ;;  %v13463_v24 = vld [vmem:[#allocation5 + $0x92] sm:$0xff] }
 0x31b   : > { %12447 = vrot.lane.b32.xlu0 %v12421_v59, %s13592_s22  ;;  %12532 = vrot.lane.b32.xlu1 %v12531_v1, %s13595_s28  ;;  %v19841_v59 = vld [vmem:[#allocation122_spill] sm:$0xff]  ;;  %v16458_v12 = vsel %vm19432_vm11, %v3198_v4, 0.0  ;;  %v12456_v44 = vpack.i.bf16 %v3256_v15, %v3255_v60  ;;  %vm19854_vm14 = vcmp.lt.s32.totalorder %v19742_v21, 39  ;;  %vm19855_vm9 = vcmp.lt.s32.totalorder %v19653_v30, 39  ;;  %v19858_v15 = vld [vmem:[#allocation35_spill] sm:$0xff] }
 0x31c   : > { %vm19433_vm13 = vcmp.lt.s32.totalorder %v19841_v59, 39  ;;  %v16432_v1 = vld [vmem:[#allocation5 + $0x152] sm:$0xff]  ;;  %19850 = vst [vmem:[#allocation112_spill] sm:$0xff] %v16458_v12  ;;  %v3213_v4 = vsel %vm19855_vm9, %v13463_v24, 0.0  ;;  %v16475_v34 = vsel %vm16444_vm5, %v1268_v18, %v1106_v58  ;;  %v19861_v58 = vld [vmem:[#allocation31_spill] sm:$0xff]  ;;  %vm19456_vm11 = vcmask 523264  }
 0x31d   : > { %19844 = vst [vmem:[#allocation104_spill] sm:$0xff] %v16432_v1  ;;  %v16451_v22 = vsel %vm19433_vm13, %v16432_v1, 0.0  ;;  %v3127_v1 = vsel %vm19854_vm14, %v19853_v36, 0.0  ;;  %19856 = vst [vmem:[#allocation51_spill] sm:$0xff] %v16475_v34  ;;  %v16478_v60 = vld [vmem:[#allocation5 + $0x138] sm:$0xff]  ;;  %vm19424_vm1 = vcmp.gt.s32.totalorder %v16475_v34, 0  ;;  %v16494_v8 = vpop.permute.xlu0 %12222 }
 0x31e   : > { %19847 = vst [vmem:[#allocation62_spill] sm:$0xff] %v16451_v22  ;;  %v16469_v59 = vpop.permute.xlu1 %12242  ;;  %v12541_v31 = vpack.i.bf16 %v3128_v51, %v3127_v1  ;;  %19857 = vst [vmem:[#allocation109_spill] sm:$0xff] %v16478_v60  ;;  %v12169_v1 = vunpack.i.l.bf16 %v19858_v15  ;;  %v13464_v51 = vld [vmem:[#allocation5 + $0x8a] sm:$0xff]  ;;  %vm19859_vm14 = vcmp.lt.s32.totalorder %v19647_v11, 39  ;;  %v16490_v18 = vsel %vm19424_vm1, %v16478_v60, 0.0  ;;  %v2785_v24 = vld [vmem:[#allocation5] sm:$0xff] }
 0x31f   : > { %12452 = vrot.lane.b32.xlu0 %v12451_v47, %s13597_s27  ;;  %12537 = vrot.lane.b32.xlu1 %v12536_v35, %s13593_s29  ;;  %v16462_v47 = vsel %vm19431_vm12, %v3199_v55, 0.0  ;;  %v2787_v35 = vld [vmem:[#allocation5 + $0x10] sm:$0xff]  ;;  %v2788_v55 = vld [vmem:[#allocation5 + $0x18] sm:$0xff]  ;;  %v3212_v42 = vsel %vm19859_vm14, %v13464_v51, 0.0  ;;  %19860 = vst [vmem:[#allocation35_spill] sm:$0xff] %v16490_v18  ;;  %vm19862_vm5 = vcmp.gt.s32.totalorder %v19861_v58, 0  ;;  %v12170_v51 = vunpack.i.h.bf16 %v19858_v15 }
 0x320   : > { %19851 = vst [vmem:[#allocation53_spill] sm:$0xff] %v16462_v47  ;;  %v2786_v47 = vld [vmem:[#allocation5 + $0x8] sm:$0xff]  ;;  %v12461_v36 = vpack.i.bf16 %v3213_v4, %v3212_v42  ;;  %v13465_v58 = vld [vmem:[#allocation5 + $0xb8] sm:$0xff]  ;;  %vm19865_vm14 = vcmp.gt.s32.totalorder %v19653_v30, 0  ;;  %vm19872_vm1 = vcmp.gt.s32.totalorder %v19871_v38, 0  ;;  %vm19887_vm13 = vcmp.gt.s32.totalorder %v15440_v29, 0 }
 0x321   : > { %v16496_v22 = vld [vmem:[#allocation5 + $0xe9] sm:$0xff]  ;;  %v19866_v34 = vld [vmem:[#allocation42_spill] sm:$0xff]  ;;  %v2906_v30 = vsel %vm19872_vm1, %v2786_v47, 0.0  ;;  %v16527_v57 = vpop.permute.xlu0 %12227  ;;  %vm19877_vm1 = vcmp.lt.s32.totalorder %v19654_v9, 39 }
 0x322   : > { %v16501_v39 = vpop.permute.xlu1 %12252  ;;  %v16505_v18 = vpack.i.bf16 %v16496_v22, %v16319_v19  ;;  %v12160_v60 = vunpack.i.h.bf16 %v19866_v34  ;;  %v12159_v4 = vunpack.i.l.bf16 %v19866_v34  ;;  %v19867_v42 = vld [vmem:[#allocation38_spill] sm:$0xff]  ;;  %v19869_v19 = vld [vmem:[#allocation29_spill] sm:$0xff] }
 0x323   : > { %12457 = vrot.lane.b32.xlu0 %v12456_v44, %s13597_s27  ;;  %12542 = vrot.lane.b32.xlu1 %v12541_v31, %s19551_s20  ;;  %v2907_v44 = vsel %vm19862_vm5, %v2787_v35, 0.0  ;;  %v19863_v31 = vld [vmem:[#allocation32_spill] sm:$0xff]  ;;  %v3258_v35 = vsel %vm19865_vm14, %v13465_v58, 0.0  ;;  %v12174_v50 = vunpack.i.l.bf16 %v19867_v42  ;;  %vm19868_vm5 = vcmp.gt.s32.totalorder %v19739_v48, 0  ;;  %v13466_v34 = vld [vmem:[#allocation5 + $0xb0] sm:$0xff] }
 0x324   : > { %vm19864_vm9 = vcmp.gt.s32.totalorder %v19863_v31, 0  ;;  %v4387_v15 = vsel %vm1578_vm3, %v2907_v44, %v12169_v1  ;;  %vm19873_vm14 = vcmp.gt.s32.totalorder %v19647_v11, 0  ;;  %v19875_v44 = vld [vmem:[#allocation64_spill] sm:$0xff]  ;;  %v12175_v47 = vunpack.i.h.bf16 %v19867_v42  ;;  %v13467_v11 = vld [vmem:[#allocation5 + $0x9a] sm:$0xff] }
 0x325   : > { %v2908_v12 = vsel %vm19864_vm9, %v2788_v55, 0.0  ;;  %v3264_v55 = vsel %vm19868_vm5, %v16060_v43, 0.0  ;;  %vm19870_vm9 = vcmp.gt.s32.totalorder %v19869_v19, 0  ;;  %v3257_v58 = vsel %vm19873_vm14, %v13466_v34, 0.0  ;;  %v13468_v42 = vld [vmem:[#allocation5 + $0xa2] sm:$0xff] }
 0x326   : > { %v2905_v31 = vsel %vm19870_vm9, %v2785_v24, 0.0  ;;  %v12466_v1 = vpack.i.bf16 %v3258_v35, %v3257_v58  ;;  %vm19876_vm5 = vcmp.gt.s32.totalorder %v19738_v37, 0  ;;  %v4388_v38 = vsel %vm1578_vm3, %v2908_v12, %v12170_v51  ;;  %v16534_v19 = vpop.permute.xlu1 %12257 }
 0x327   : > { %12462 = vrot.lane.b32.xlu0 %v12461_v36, %s13595_s28  ;;  %12557 = vrot.lane.b32.xlu1 %v16505_v18, %s13594_s23  ;;  %v19874_v36 = vld [vmem:[#allocation33_spill] sm:$0xff]  ;;  %v3263_v24 = vsel %vm19876_vm5, %v19875_v44, 0.0  ;;  %v3214_v34 = vsel %vm19877_vm1, %v13467_v11, 0.0  ;;  %vm19878_vm9 = vcmask 261120   ;;  %v4385_v35 = vsel %vm1578_vm3, %v2905_v31, %v12159_v4  ;;  %v19881_v31 = vld [vmem:[#allocation103_spill] sm:$0xff] }
 0x328   : > { %v12165_v0 = vunpack.i.h.bf16 %v19874_v36  ;;  %v12164_v48 = vunpack.i.l.bf16 %v19874_v36  ;;  %v12571_v3 = vpack.i.bf16 %v3264_v55, %v3263_v24  ;;  %v16539_v36 = vsel %vm19878_vm9, %v4387_v15, %v12174_v50  ;;  %v16554_v55 = vpop.permute.xlu0 %12237 }
 0x329   : > { %v4386_v58 = vsel %vm1578_vm3, %v2906_v30, %v12160_v60  ;;  %vm19879_vm14 = vcmp.gt.s32.totalorder %v15322_v54, 0  ;;  %vm4465_vm5 = vcmask 392192   ;;  %v12190_v12 = vunpack.i.h.bf16 %v16280_v7 }
 0x32a   : > { %v3268_v37 = vsel %vm19879_vm14, %v16174_v28, 0.0  ;;  %v12189_v51 = vunpack.i.l.bf16 %v16280_v7  ;;  %vm19880_vm1 = vcmp.lt.s32.totalorder %v19663_v25, 39  ;;  %v12185_v4 = vunpack.i.h.bf16 %v16425_v52 }
 0x32b   : > { %12467 = vrot.lane.b32.xlu0 %v12466_v1, %s13597_s27  ;;  %12572 = vrot.lane.b32.xlu1 %v12571_v3, %s13597_s27  ;;  %v3215_v50 = vsel %vm19880_vm1, %v13468_v42, 0.0  ;;  %v12184_v60 = vunpack.i.l.bf16 %v16425_v52  ;;  %vm19882_vm9 = vcmp.gt.s32.totalorder %v19742_v21, 0  ;;  %vm19883_vm14 = vcmask 261120   ;;  %v16561_v3 = vpop.permute.xlu1 %12287 }
 0x32c   : > { %v12476_v15 = vpack.i.bf16 %v3215_v50, %v3214_v34  ;;  %v3267_v30 = vsel %vm19882_vm9, %v19881_v31, 0.0  ;;  %v4428_v1 = vsel %vm19883_vm14, %v4388_v38, %v12175_v47  ;;  %vm19884_vm12 = vmmov %vm19883_vm14  ;;  %19885 = vst [vmem:[#allocation31_spill] sm:$0xff] %v16561_v3  ;;  %v3174_v52 = vsel %vm19887_vm13, %v16060_v43, 0.0  ;;  %v13469_v47 = vld [vmem:[#allocation5 + $0xc9] sm:$0xff]  ;;  %v16577_v43 = vpop.permute.xlu0 %12247 }
 0x32d   : > { %v4425_v7 = vsel %vm19884_vm12, %v4385_v35, %v12164_v48  ;;  %v12591_v24 = vpack.i.bf16 %v3268_v37, %v3267_v30  ;;  %vm19886_vm1 = vmmov %vm19884_vm12  ;;  %v3175_v34 = vsel %vm19888_vm10, %v16221_v16, 0.0  ;;  %vm19454_vm9 = vcmask 785408   ;;  %v13470_v37 = vld [vmem:[#allocation5 + $0xc0] sm:$0xff]  ;;  %v13471_v50 = vld [vmem:[#allocation5 + $0xc8] sm:$0xff] }
 0x32e   : > { %v4426_v11 = vsel %vm19886_vm1, %v4386_v58, %v12165_v0  ;;  %v4466_v38 = vsel %vm4465_vm5, %v4425_v7, %v12189_v51  ;;  %v12501_v0 = vpack.i.bf16 %v13469_v47, %v16282_v62  ;;  %vm4628_vm12 = vcmask 916480  }
 0x32f   : > { %12477 = vrot.lane.b32.xlu0 %v12476_v15, %s13595_s28  ;;  %v4467_v48 = vsel %vm4465_vm5, %v4426_v11, %v12190_v12  ;;  %12592 = vrot.lane.b32.xlu1 %v12591_v24, %s13597_s27  ;;  %v4507_v35 = vsel %vm19456_vm11, %v4466_v38, %v12184_v60  ;;  %vm19889_vm10 = vcmp.gt.s32.totalorder %v19654_v9, 0  ;;  %vm19890_vm13 = vcmp.gt.s32.totalorder %v19663_v25, 0  ;;  %v12293_v62 = vpop.permute.xlu1 %12292 }
 0x330   : > { %v4508_v58 = vsel %vm19456_vm11, %v4467_v48, %v12185_v4  ;;  %v3259_v42 = vsel %vm19889_vm10, %v13470_v37, 0.0  ;;  %v3260_v12 = vsel %vm19890_vm13, %v13471_v50, 0.0  ;;  %v12215_v51 = vunpack.i.h.bf16 %v16373_v61 }
 0x331   : > { %v12214_v15 = vunpack.i.l.bf16 %v16373_v61  ;;  %v12596_v31 = vpack.i.bf16 %v3175_v34, %v3174_v52  ;;  %v3224_v4 = vsel %vm1373_vm6, %v16039_v56, 0.0  ;;  %v12200_v60 = vunpack.i.h.bf16 %v16341_v13  ;;  %v16596_v52 = vpop.permute.xlu0 %12262  ;;  %v19893_v34 = vld [vmem:[#allocation70_spill] sm:$0xff] }
 0x332   : > { %v12235_v30 = vunpack.i.h.bf16 %v16428_v14  ;;  %v12295_v9 = vunpack.i.h.bf16 %v12293_v62  ;;  %v12294_v7 = vunpack.i.l.bf16 %v12293_v62  ;;  %v12199_v25 = vunpack.i.l.bf16 %v16341_v13 }
 0x333   : > { %12502 = vrot.lane.b32.xlu0 %v12501_v0, %s13594_s23  ;;  %v12234_v24 = vunpack.i.l.bf16 %v16428_v14  ;;  %12597 = vrot.lane.b32.xlu1 %v12596_v31, %s13593_s29  ;;  %vm19891_vm14 = vcmask 654336   ;;  %v12521_v56 = vpack.i.bf16 %v3260_v12, %v3259_v42  ;;  %v3225_v38 = vsel %vm1374_vm0, %v19893_v34, 0.0  ;;  %v12298_v13 = vpop.permute.xlu1 %12297  ;;  %v19896_v12 = vld [vmem:[#allocation102_spill] sm:$0xff] }
 0x334   : > { %v4547_v61 = vsel %vm19891_vm14, %v4507_v35, %v12214_v15  ;;  %vm19892_vm1 = vmmov %vm19891_vm14  ;;  %v12601_v0 = vpack.i.bf16 %v3225_v38, %v3224_v4  ;;  %vm19894_vm10 = vcmp.gt.s32.totalorder %v15322_v54, 0  ;;  %vm19895_vm13 = vcmp.gt.s32.totalorder %v19742_v21, 0 }
 0x335   : > { %v4548_v11 = vsel %vm19892_vm1, %v4508_v58, %v12215_v51  ;;  %v4588_v48 = vsel %vm19454_vm9, %v4547_v61, %v12294_v7  ;;  %v3173_v35 = vsel %vm19894_vm10, %v19875_v44, 0.0  ;;  %v4469_v58 = vsel %vm4465_vm5, %v4428_v1, %v12235_v30  ;;  %v16621_v4 = vpop.permute.xlu0 %12267  ;;  %v19899_v7 = vld [vmem:[#allocation73_spill] sm:$0xff]  ;;  %v13472_v61 = vld [vmem:[#allocation5 + $0xc2] sm:$0xff]  ;;  %vm19901_vm10 = vmmov %vm19892_vm1 }
 0x336   : > { %v4589_v47 = vsel %vm19454_vm9, %v4548_v11, %v12295_v9  ;;  %v4629_v14 = vsel %vm4628_vm12, %v4588_v48, %v12199_v25  ;;  %v3172_v50 = vsel %vm19895_vm13, %v15839_v20, 0.0  ;;  %v3132_v51 = vsel %vm1376_vm8, %v19896_v12, 0.0  ;;  %v19898_v9 = vld [vmem:[#allocation74_spill] sm:$0xff]  ;;  %v13473_v11 = vld [vmem:[#allocation5 + $0xca] sm:$0xff] }
 0x337   : > { %v4630_v37 = vsel %vm4628_vm12, %v4589_v47, %v12200_v60  ;;  %12522 = vrot.lane.b32.xlu0 %v12521_v56, %s13597_s27  ;;  %v4468_v15 = vsel %vm4465_vm5, %v16539_v36, %v12234_v24  ;;  %v12300_v62 = vunpack.i.h.bf16 %v12298_v13  ;;  %v12299_v31 = vunpack.i.l.bf16 %v12298_v13  ;;  %12602 = vrot.lane.b32.xlu1 %v12601_v0, %s13595_s28  ;;  %v12303_v36 = vpop.permute.xlu1 %12302 }
 0x338   : > { %v4669_v42 = vpack.c.bf16 %v4630_v37, %v4629_v14  ;;  %vm1629_vm14 = vcmask 123904   ;;  %v12220_v44 = vunpack.i.h.bf16 %v16410_v26  ;;  %v12219_v1 = vunpack.i.l.bf16 %v16410_v26 }
 0x339   : > { %v12546_v20 = vpack.i.bf16 %v3173_v35, %v3172_v50  ;;  %v3131_v60 = vsel %vm1375_vm4, %v15820_v53, 0.0  ;;  %v19897_v30 = vmov 0.0   ;;  %v19900_v25 = vpack.c.bf16 %v19898_v9, %v19899_v7  ;;  %v16643_v37 = vpop.permute.xlu0 %12272  ;;  %v19902_v7 = vld [vmem:[#allocation82_spill] sm:$0xff] }
 0x33a   : > { %4880 = vmatmul.mubr.bf16.vlgmr.msra.gmra.mrb[0].mxu1 %v4669_v42  ;;  %1630 = vst.msk [vmem:[#allocation5 + $0x190] sm:$0x3] %vm1629_vm14, %v19897_v30  ;;  %v12606_v24 = vpack.i.bf16 %v3132_v51, %v3131_v60  ;;  %v3129_v26 = vsel %vm1373_vm6, %v13472_v61, 0.0  ;;  %v3130_v56 = vsel %vm1374_vm0, %v13473_v11, 0.0  ;;  %v4509_v34 = vsel %vm19456_vm11, %v4468_v15, %v12219_v1  ;;  %v13474_v61 = vld [vmem:[#allocation5 + $0xf9] sm:$0xff] }
 0x33b   : > { %11163 = vmatprep.mubr.msk.bf16.mxu1 %vm1578_vm3, %v19900_v25  ;;  %v4510_v53 = vsel %vm19456_vm11, %v4469_v58, %v12220_v44  ;;  %v12305_v38 = vunpack.i.h.bf16 %v12303_v36  ;;  %v12304_v48 = vunpack.i.l.bf16 %v12303_v36  ;;  %12547 = vrot.lane.b32.xlu0 %v12546_v20, %s13593_s29  ;;  %v12255_v47 = vunpack.i.h.bf16 %v16501_v39  ;;  %v16647_v50 = vpop.permute.xlu1 %12307  ;;  %v2789_v44 = vld [vmem:[#allocation5 + $0x20] sm:$0xff]  ;;  %v19903_v25 = vld [vmem:[#allocation77_spill] sm:$0xff] }
 0x33c   : > { %v12254_v13 = vunpack.i.l.bf16 %v16501_v39  ;;  %v4550_v0 = vsel %vm19892_vm1, %v4510_v53, %v12300_v62  ;;  %v4549_v14 = vsel %vm19901_vm10, %v4509_v34, %v12299_v31  ;;  %12607 = vrot.lane.b32.xlu1 %v12606_v24, %s19551_s20  ;;  %v12551_v35 = vpack.i.bf16 %v3130_v56, %v3129_v26  ;;  %v16651_v39 = vld [vmem:[#allocation5 + $0x109] sm:$0xff]  ;;  %v2977_v31 = vld [vmem:[#allocation5 + $0x101] sm:$0xff] }
 0x33d   : > { %v4590_v42 = vsel %vm19454_vm9, %v4549_v14, %v12304_v48  ;;  %v4591_v58 = vsel %vm19454_vm9, %v4550_v0, %v12305_v38  ;;  %v16656_v1 = vpop.permute.xlu0 %12277  ;;  %v16659_v20 = vpack.i.bf16 %v16651_v39, %v2977_v31  ;;  %v12205_v60 = vunpack.i.h.bf16 %v16359_v45  ;;  %v19907_v53 = vld [vmem:[#allocation52_spill] sm:$0xff]  ;;  %v16682_v48 = vld [vmem:[#allocation5 + $0xf8] sm:$0xff] }
 0x33e   : > { %v4631_v51 = vsel %vm4628_vm12, %v4590_v42, %v12254_v13  ;;  %v4632_v15 = vsel %vm4628_vm12, %v4591_v58, %v12255_v47  ;;  %v12204_v36 = vunpack.i.l.bf16 %v16359_v45  ;;  %v19904_v24 = vpack.c.bf16 %v19902_v7, %v19903_v25 }
 0x33f   : > { %12552 = vrot.lane.b32.xlu0 %v12551_v35, %s19551_s20  ;;  %v4671_v62 = vpack.c.bf16 %v4632_v15, %v4631_v51  ;;  %v16663_v9 = vpop.permute.xlu1 %12312  ;;  %v12626_v26 = vpack.i.bf16 %v2977_v31, %v13474_v61  ;;  %v12240_v11 = vunpack.i.h.bf16 %v16554_v55  ;;  %v12239_v56 = vunpack.i.l.bf16 %v16554_v55  ;;  %v13476_v35 = vld [vmem:[#allocation5 + $0xf1] sm:$0xff] }
 0x340   : > { %12612 = vrot.lane.b32.xlu1 %v16188_v10, %s13594_s23  ;;  %vm19905_vm6 = vcmp.gt.s32.totalorder %v15477_v63, 0  ;;  %vm19906_vm0 = vcmp.gt.s32.totalorder %v15673_v49, 0  ;;  %vm19908_vm13 = vcmp.gt.s32.totalorder %v19907_v53, 0  ;;  %vm19909_vm14 = vcmp.gt.s32.totalorder %v15050_v46, 0  ;;  %v19912_v51 = vld [vmem:[#allocation54_spill] sm:$0xff] }
 0x341   : > { %v3271_v45 = vsel %vm19905_vm6, %v16251_v32, 0.0  ;;  %v3272_v34 = vsel %vm19906_vm0, %v16256_v5, 0.0  ;;  %v2909_v38 = vsel %vm19908_vm13, %v2789_v44, 0.0  ;;  %v3266_v55 = vsel %vm19909_vm14, %v16682_v48, 0.0  ;;  %v16692_v14 = vpop.permute.xlu0 %12282  ;;  %v19913_v15 = vld [vmem:[#allocation50_spill] sm:$0xff] }
 0x342   : > { %4888 = vmatmul.mubr.bf16.gmra.mrb[4].mxu1 %v4671_v62  ;;  %vm19910_vm1 = vcmp.lt.s32.totalorder %v19742_v21, 39  ;;  %v12180_v13 = vunpack.i.h.bf16 %v16398_v33  ;;  %v12179_v0 = vunpack.i.l.bf16 %v16398_v33  ;;  %v12566_v42 = vpack.i.bf16 %v13476_v35, %v16496_v22  ;;  %v19916_v22 = vld [vmem:[#allocation85_spill] sm:$0xff] }
 0x343   : > { %11164 = vmatprep.mubr.msk.bf16.mxu1 %vm1578_vm3, %v19904_v24  ;;  %12562 = vrot.lane.b32.xlu0 %v16659_v20, %s13594_s23  ;;  %v3222_v47 = vsel %vm19910_vm1, %v19896_v12, 0.0  ;;  %vm19911_vm10 = vcmp.gt.s32.totalorder %v15310_v17, 0  ;;  %v4392_v46 = vsel %vm1578_vm3, %v19912_v51, %v12205_v60  ;;  %v4391_v21 = vsel %vm1578_vm3, %v19913_v15, %v12204_v36  ;;  %v16702_v12 = vpop.permute.xlu1 %12337  ;;  %v19919_v24 = vld [vmem:[#allocation49_spill] sm:$0xff] }
 0x344   : > { %12627 = vrot.lane.b32.xlu1 %v12626_v26, %s13596_s13  ;;  %v3265_v58 = vsel %vm19911_vm10, %v16221_v16, 0.0  ;;  %v12636_v62 = vpack.i.bf16 %v3272_v34, %v3271_v45  ;;  %vm19914_vm6 = vcmask 261120   ;;  %v3223_v17 = vsel %vm1372_vm7, %v19916_v22, 0.0 }
 0x345   : > { %v4432_v33 = vsel %vm19914_vm6, %v4392_v46, %v12240_v11  ;;  %vm19915_vm0 = vmmov %vm19914_vm6  ;;  %vm19917_vm13 = vcmp.gt.s32.totalorder %v19829_v23, 0  ;;  %v12245_v44 = vunpack.i.h.bf16 %v16469_v59  ;;  %v12244_v60 = vunpack.i.l.bf16 %v16469_v59  ;;  %v12318_v26 = vpop.permute.xlu0 %12317 }
 0x346   : > { %v4431_v31 = vsel %vm19915_vm0, %v4391_v21, %v12239_v56  ;;  %v3178_v16 = vsel %vm19917_vm13, %v16174_v28, 0.0  ;;  %v12576_v36 = vpack.i.bf16 %v3266_v55, %v3265_v58  ;;  %vm19918_vm14 = vcmp.gt.s32.totalorder %v15975_v41, 0  ;;  %vm19921_vm7 = vmmov %vm19915_vm0 }
 0x347   : > { %12567 = vrot.lane.b32.xlu0 %v12566_v42, %s13596_s13  ;;  %v3179_v7 = vsel %vm19918_vm14, %v16238_v6, 0.0  ;;  %v12195_v25 = vunpack.i.h.bf16 %v16310_v2  ;;  %v12194_v54 = vunpack.i.l.bf16 %v16310_v2  ;;  %v4390_v61 = vsel %vm1578_vm3, %v19919_v24, %v12180_v13  ;;  %v16728_v34 = vpop.permute.xlu1 %12357  ;;  %vm19922_vm1 = vmmov %vm19915_vm0 }
 0x348   : > { %12637 = vrot.lane.b32.xlu1 %v12636_v62, %s13597_s27  ;;  %v4389_v28 = vsel %vm1578_vm3, %v2909_v38, %v12179_v0  ;;  %v12225_v11 = vunpack.i.h.bf16 %v16494_v8  ;;  %v12224_v59 = vunpack.i.l.bf16 %v16494_v8  ;;  %v4473_v56 = vsel %vm4465_vm5, %v4432_v33, %v12245_v44  ;;  %v19920_v0 = vld [vmem:[#allocation101_spill] sm:$0xff] }
 0x349   : > { %v4472_v45 = vsel %vm4465_vm5, %v4431_v31, %v12244_v60  ;;  %v12310_v53 = vunpack.i.h.bf16 %v16647_v50  ;;  %v12309_v2 = vunpack.i.l.bf16 %v16647_v50  ;;  %v12320_v55 = vunpack.i.h.bf16 %v12318_v26  ;;  %v12323_v15 = vpop.permute.xlu0 %12322 }
 0x34a   : > { %v12319_v35 = vunpack.i.l.bf16 %v12318_v26  ;;  %v12581_v38 = vpack.i.bf16 %v3223_v17, %v3222_v47  ;;  %v12656_v13 = vpack.i.bf16 %v3179_v7, %v3178_v16  ;;  %v3228_v8 = vsel %vm1377_vm15, %v16155_v40, 0.0 }
 0x34b   : > { %12577 = vrot.lane.b32.xlu0 %v12576_v36, %s13597_s27  ;;  %v3229_v42 = vsel %vm1378_vm2, %v19920_v0, 0.0  ;;  %v4429_v58 = vsel %vm19921_vm7, %v4389_v28, %v12194_v54  ;;  %v4430_v50 = vsel %vm19922_vm1, %v4390_v61, %v12195_v25  ;;  %v4513_v51 = vsel %vm19456_vm11, %v4472_v45, %v12224_v59  ;;  %v16747_v33 = vpop.permute.xlu1 %12362 }
 0x34c   : > { %12647 = vrot.lane.b32.xlu1 %v16505_v18, %s13592_s22  ;;  %v4514_v46 = vsel %vm19456_vm11, %v4473_v56, %v12225_v11  ;;  %v12265_v18 = vunpack.i.h.bf16 %v16596_v52  ;;  %v12264_v47 = vunpack.i.l.bf16 %v16596_v52  ;;  %v12325_v21 = vunpack.i.h.bf16 %v12323_v15  ;;  %19923 = vst [vmem:[#allocation32_spill] sm:$0xff] %v16747_v33  ;;  %v19927_v11 = vld [vmem:[#allocation137_spill] sm:$0xff] }
 0x34d   : > { %v12324_v62 = vunpack.i.l.bf16 %v12323_v15  ;;  %v4470_v31 = vsel %vm4465_vm5, %v4429_v58, %v12309_v2  ;;  %v4471_v22 = vsel %vm4465_vm5, %v4430_v50, %v12310_v53  ;;  %vm19924_vm10 = vcmask 654336   ;;  %v16761_v54 = vpop.permute.xlu0 %12327 }
 0x34e   : > { %v4553_v17 = vsel %vm19924_vm10, %v4513_v51, %v12319_v35  ;;  %vm19925_vm6 = vmmov %vm19924_vm10  ;;  %v12315_v44 = vunpack.i.h.bf16 %v16663_v9  ;;  %v12314_v60 = vunpack.i.l.bf16 %v16663_v9  ;;  %v12260_v7 = vunpack.i.h.bf16 %v16534_v19 }
 0x34f   : > { %v4554_v16 = vsel %vm19925_vm6, %v4514_v46, %v12320_v55  ;;  %12582 = vrot.lane.b32.xlu0 %v12581_v38, %s13595_s28  ;;  %v4594_v52 = vsel %vm19454_vm9, %v4553_v17, %v12324_v62  ;;  %v12259_v25 = vunpack.i.l.bf16 %v16534_v19  ;;  %v12368_v28 = vpop.permute.xlu1 %12367  ;;  %v12666_v26 = vpack.i.bf16 %v3229_v42, %v3228_v8  ;;  %v19929_v55 = vld [vmem:[#allocation81_spill] sm:$0xff]  ;;  %vm19930_vm14 = vmmov %vm19925_vm6  ;;  %v13477_v46 = vld [vmem:[#allocation5 + $0x100] sm:$0xff] }
 0x350   : > { %12657 = vrot.lane.b32.xlu1 %v12656_v13, %s13593_s29  ;;  %v4595_v36 = vsel %vm19454_vm9, %v4554_v16, %v12325_v21  ;;  %v4635_v24 = vsel %vm4628_vm12, %v4594_v52, %v12264_v47  ;;  %vm19926_vm0 = vcmp.gt.s32.totalorder %v15440_v29, 0  ;;  %vm19928_vm13 = vcmp.gt.s32.totalorder %v15459_v27, 0  ;;  %vm19931_vm7 = vmmov %vm19925_vm6  ;;  %v19933_v47 = vld [vmem:[#allocation117_spill] sm:$0xff]  ;;  %v19935_v62 = vld [vmem:[#allocation87_spill] sm:$0xff] }
 0x351   : > { %v4636_v61 = vsel %vm4628_vm12, %v4595_v36, %v12265_v18  ;;  %v3269_v9 = vsel %vm19926_vm0, %v16238_v6, 0.0  ;;  %v3270_v59 = vsel %vm19928_vm13, %v19927_v11, 0.0  ;;  %v4511_v45 = vsel %vm19456_vm11, %v4470_v31, %v12259_v25  ;;  %v16780_v27 = vpop.permute.xlu0 %12332  ;;  %v13478_v18 = vld [vmem:[#allocation5 + $0xfa] sm:$0xff]  ;;  %v13479_v16 = vld [vmem:[#allocation5 + $0xf2] sm:$0xff]  ;;  %v19940_v36 = vld [vmem:[#allocation72_spill] sm:$0xff] }
 0x352   : > { %v4675_v56 = vpack.c.bf16 %v4636_v61, %v4635_v24  ;;  %v4512_v19 = vsel %vm19456_vm11, %v4471_v22, %v12260_v7  ;;  %v12370_v53 = vunpack.i.h.bf16 %v12368_v28  ;;  %v12369_v2 = vunpack.i.l.bf16 %v12368_v28  ;;  %v19941_v7 = vld [vmem:[#allocation93_spill] sm:$0xff]  ;;  %v19943_v61 = vld [vmem:[#allocation95_spill] sm:$0xff] }
 0x353   : > { %12587 = vrot.lane.b32.xlu0 %v19929_v55, %s13592_s22  ;;  %v4551_v35 = vsel %vm19930_vm14, %v4511_v45, %v12314_v60  ;;  %v4552_v38 = vsel %vm19931_vm7, %v4512_v19, %v12315_v44  ;;  %v12340_v29 = vunpack.i.h.bf16 %v16702_v12  ;;  %v12339_v6 = vunpack.i.l.bf16 %v16702_v12  ;;  %v16784_v58 = vpop.permute.xlu1 %12407  ;;  %v19937_v44 = vld [vmem:[#allocation84_spill] sm:$0xff] }
 0x354   : > { %12667 = vrot.lane.b32.xlu1 %v12666_v26, %s13595_s28  ;;  %v12616_v13 = vpack.i.bf16 %v3270_v59, %v3269_v9  ;;  %v4592_v8 = vsel %vm19454_vm9, %v4551_v35, %v12369_v2  ;;  %v4593_v42 = vsel %vm19454_vm9, %v4552_v38, %v12370_v53  ;;  %vm19932_vm1 = vcmp.gt.s32.totalorder %v15673_v49, 0  ;;  %v2981_v28 = vld [vmem:[#allocation5 + $0x121] sm:$0xff]  ;;  %v16822_v55 = vld [vmem:[#allocation5 + $0x129] sm:$0xff] }
 0x355   : > { %v4633_v50 = vsel %vm4628_vm12, %v4592_v8, %v12339_v6  ;;  %v4634_v51 = vsel %vm4628_vm12, %v4593_v42, %v12340_v29  ;;  %v3177_v15 = vsel %vm19932_vm1, %v13477_v46, 0.0  ;;  %vm19934_vm10 = vcmp.lt.s32.totalorder %v19933_v47, 39  ;;  %v16798_v22 = vpop.permute.xlu0 %12342  ;;  %v16815_v9 = vld [vmem:[#allocation5 + $0x140] sm:$0xff]  ;;  %v16824_v49 = vld [vmem:[#allocation5 + $0x148] sm:$0xff]  ;;  %v19949_v8 = vld [vmem:[#allocation106_spill] sm:$0xff] }
 0x356   : > { %v4673_v12 = vpack.c.bf16 %v4634_v51, %v4633_v50  ;;  %v3136_v21 = vsel %vm19934_vm10, %v13478_v18, 0.0  ;;  %vm19936_vm6 = vcmp.gt.s32.totalorder %v15477_v63, 0  ;;  %vm19938_vm0 = vcmp.lt.s32.totalorder %v19937_v44, 39  ;;  %v19944_v53 = vld [vmem:[#allocation96_spill] sm:$0xff] }
 0x357   : > { %12617 = vrot.lane.b32.xlu0 %v12616_v13, %s13597_s27  ;;  %v3176_v31 = vsel %vm19936_vm6, %v16682_v48, 0.0  ;;  %v3135_v60 = vsel %vm19938_vm0, %v13479_v16, 0.0  ;;  %v16802_v52 = vpop.permute.xlu1 %12412  ;;  %v19942_v25 = vpack.c.bf16 %v19940_v36, %v19941_v7  ;;  %v3227_v48 = vsel %vm1376_vm8, %v19943_v61, 0.0  ;;  %v19948_v13 = vld [vmem:[#allocation107_spill] sm:$0xff]  ;;  %v13480_v51 = vld [vmem:[#allocation5 + $0xe2] sm:$0xff] }
 0x358   : > { %12677 = vrot.lane.b32.xlu1 %v19935_v62, %s13594_s23  ;;  %4896 = vmatmul.mubr.bf16.gmra.mrb[8].mxu1 %v4673_v12  ;;  %v12621_v17 = vpack.i.bf16 %v3177_v15, %v3176_v31  ;;  %19939 = vst [vmem:[#allocation42_spill] sm:$0xff] %v16802_v52  ;;  %v12686_v24 = vpack.i.bf16 %v3136_v21, %v3135_v60  ;;  %v3226_v26 = vsel %vm1375_vm4, %v13478_v18, 0.0  ;;  %vm19945_vm8 = vcmp.gt.s32.totalorder %v19937_v44, 0  ;;  %v19952_v31 = vld [vmem:[#allocation122_spill] sm:$0xff]  ;;  %v19954_v16 = vld [vmem:[#allocation148_spill] sm:$0xff]  ;;  %v19955_v60 = vld [vmem:[#allocation99_spill] sm:$0xff] }
 0x359   : > { %11165 = vmatprep.mubr.msk.bf16.mxu1 %vm1578_vm3, %v19942_v25  ;;  %v16817_v59 = vpop.permute.xlu0 %12347  ;;  %v12631_v45 = vpack.i.bf16 %v3227_v48, %v3226_v26  ;;  %v12696_v2 = vpack.i.bf16 %v2981_v28, %v19944_v53  ;;  %v3275_v63 = vsel %vm19945_vm8, %v16815_v9, 0.0  ;;  %v16834_v38 = vpack.i.bf16 %v16822_v55, %v2981_v28  ;;  %v19957_v25 = vld [vmem:[#allocation57_spill] sm:$0xff]  ;;  %v19964_v53 = vld [vmem:[#allocation108_spill] sm:$0xff]  ;;  %vm19969_vm0 = vmmov %vm19945_vm8 }
 0x35a   : > { %vm19947_vm4 = vcmp.gt.s32.totalorder %v19933_v47, 0  ;;  %v19950_v42 = vpack.c.bf16 %v19948_v13, %v19949_v8  ;;  %v3133_v46 = vsel %vm1377_vm15, %v13480_v51, 0.0  ;;  %vm19953_vm13 = vcmp.gt.s32.totalorder %v19952_v31, 0  ;;  %v16891_v13 = vld [vmem:[#allocation5 + $0x159] sm:$0xff] }
 0x35b   : > { %12622 = vrot.lane.b32.xlu0 %v12621_v17, %s13593_s29  ;;  %v16819_v19 = vpop.permute.xlu1 %12432  ;;  %v3276_v29 = vsel %vm19947_vm4, %v16824_v49, 0.0  ;;  %v3182_v17 = vsel %vm19953_vm13, %v16256_v5, 0.0  ;;  %vm19956_vm15 = vcmp.gt.s32.totalorder %v19955_v60, 0  ;;  %v19960_v5 = vld [vmem:[#allocation109_spill] sm:$0xff]  ;;  %vm19961_vm14 = vcmp.gt.s32.totalorder %v15975_v41, 0  ;;  %v19967_v8 = vld [vmem:[#allocation131_spill] sm:$0xff]  ;;  %vm19970_vm8 = vmmov %vm19947_vm4 }
 0x35c   : > { %12687 = vrot.lane.b32.xlu1 %v12686_v24, %s19551_s20  ;;  %v12706_v50 = vpack.i.bf16 %v3276_v29, %v3275_v63  ;;  %v3183_v36 = vsel %vm19956_vm15, %v19954_v16, 0.0  ;;  %v12661_v24 = vpack.i.bf16 %v19957_v25, %v16651_v39  ;;  %v3274_v26 = vsel %vm19961_vm14, %v19960_v5, 0.0  ;;  %v19966_v41 = vld [vmem:[#allocation105_spill] sm:$0xff]  ;;  %v19994_v52 = vld [vmem:[#allocation146_spill] sm:$0xff] }
 0x35d   : > { %v16831_v35 = vpop.permute.xlu0 %12352  ;;  %v12726_v48 = vpack.i.bf16 %v3183_v36, %v3182_v17  ;;  %vm19963_vm7 = vcmp.lt.s32.totalorder %v19952_v31, 39  ;;  %vm19965_vm1 = vcmp.lt.s32.totalorder %v19955_v60, 39  ;;  %vm1384_vm10 = vcmp.lt.s32.totalorder %v19966_v41, 39 }
 0x35e   : > { %19946 = vst [vmem:[#allocation38_spill] sm:$0xff] %v16831_v35  ;;  %v3233_v39 = vsel %vm19965_vm1, %v19964_v53, 0.0  ;;  %vm1386_vm6 = vcmp.lt.s32.totalorder %v19967_v8, 39  ;;  %v3180_v51 = vsel %vm19969_vm0, %v19927_v11, 0.0  ;;  %vm19974_vm13 = vcmp.lt.s32.totalorder %v19937_v44, 39  ;;  %vm19980_vm14 = vmmov %vm19963_vm7  ;;  %v17045_v35 = vld [vmem:[#allocation5 + $0x161] sm:$0xff] }
 0x35f   : > { %12632 = vrot.lane.b32.xlu0 %v12631_v45, %s13595_s28  ;;  %v16839_v6 = vpop.permute.xlu1 %12437  ;;  %v19962_v45 = vld [vmem:[#allocation145_spill] sm:$0xff]  ;;  %vm19976_vm15 = vcmp.lt.s32.totalorder %v19933_v47, 39  ;;  %v19982_v47 = vld [vmem:[#allocation147_spill] sm:$0xff] }
 0x360   : > { %12697 = vrot.lane.b32.xlu1 %v12696_v2, %s13596_s13  ;;  %4904 = vmatmul.mubr.bf16.gmra.mrb[12].mxu1 %v4675_v56  ;;  %v13481_v56 = vld [vmem:[#allocation5 + $0xea] sm:$0xff] }
 0x361   : > { %11166 = vmatprep.mubr.msk.bf16.mxu1 %vm1578_vm3, %v19950_v42  ;;  %v3134_v15 = vsel %vm1378_vm2, %v13481_v56, 0.0  ;;  %v16852_v12 = vpop.permute.xlu0 %12372  ;;  %vm19959_vm2 = vcmp.gt.s32.totalorder %v19829_v23, 0  ;;  %v19971_v56 = vld [vmem:[#allocation86_spill] sm:$0xff] }
 0x362   : > { %v12651_v18 = vpack.i.bf16 %v3134_v15, %v3133_v46  ;;  %v3273_v28 = vsel %vm19959_vm2, %v19954_v16, 0.0  ;;  %v3181_v46 = vsel %vm19970_vm8, %v16251_v32, 0.0  ;;  %vm19972_vm4 = vcmp.lt.s32.totalorder %v19971_v56, 39  ;;  %v3147_v16 = vld [vmem:[#allocation5 + $0x150] sm:$0xff]  ;;  %vm19978_vm2 = vmmov %vm19965_vm1 }
 0x363   : > { %12642 = vrot.lane.b32.xlu0 %v16834_v38, %s13594_s23  ;;  %v16854_v21 = vpop.permute.xlu1 %12442  ;;  %v12671_v23 = vpack.i.bf16 %v3274_v26, %v3273_v28  ;;  %v3139_v15 = vsel %vm19972_vm4, %v19920_v0, 0.0  ;;  %v16923_v0 = vld [vmem:[#allocation5 + $0x149] sm:$0xff]  ;;  %v16928_v28 = vsel %vm19978_vm2, %v16155_v40, 0.0  ;;  %vm1387_vm1 = vcmp.lt.s32.totalorder %v19982_v47, 39 }
 0x364   : > { %12707 = vrot.lane.b32.xlu1 %v12706_v50, %s13597_s27  ;;  %19951 = vst [vmem:[#allocation29_spill] sm:$0xff] %v16854_v21  ;;  %v16897_v50 = vld [vmem:[#allocation5 + $0x151] sm:$0xff]  ;;  %19977 = vst [vmem:[#allocation64_spill] sm:$0xff] %v16923_v0  ;;  %v19979_v26 = vld [vmem:[#allocation88_spill] sm:$0xff]  ;;  %vm19984_vm8 = vcmp.gt.s32.totalorder %v19967_v8, 0  ;;  %vm19998_vm2 = vcmp.gt.s32.totalorder %v19971_v56, 0 }
 0x365   : > { %v16865_v7 = vpop.permute.xlu0 %12377  ;;  %19968 = vst [vmem:[#allocation33_spill] sm:$0xff] %v16897_v50  ;;  %v12746_v25 = vpack.i.bf16 %v16891_v13, %v16897_v50  ;;  %v16942_v40 = vsel %vm19984_vm8, %v3147_v16, 0.0  ;;  %v17008_v3 = vsel %vm19998_vm2, %v19960_v5, 0.0  ;;  %vm20004_vm8 = vcmp.lt.s32.totalorder %v19971_v56, 39 }
 0x366   : > { %19999 = vst [vmem:[#allocation82_spill] sm:$0xff] %v17008_v3  ;;  %v12409_v56 = vunpack.i.l.bf16 %v16784_v58 }
 0x367   : > { %12652 = vrot.lane.b32.xlu0 %v12651_v18, %s19551_s20  ;;  %v16869_v61 = vpop.permute.xlu1 %12472  ;;  %v19973_v18 = vld [vmem:[#allocation129_spill] sm:$0xff] }
 0x368   : > { %12717 = vrot.lane.b32.xlu1 %v16659_v20, %s13592_s22  ;;  %19958 = vst [vmem:[#allocation30_spill] sm:$0xff] %v16869_v61  ;;  %v3232_v20 = vsel %vm19963_vm7, %v19962_v45, 0.0  ;;  %v3140_v17 = vsel %vm1384_vm10, %v19973_v18, 0.0  ;;  %v3230_v11 = vsel %vm19974_vm13, %v19973_v18, 0.0  ;;  %vm19993_vm13 = vcmp.gt.s32.totalorder %v19952_v31, 0  ;;  %v19997_v31 = vld [vmem:[#allocation104_spill] sm:$0xff] }
 0x369   : > { %v16885_v2 = vpop.permute.xlu0 %12382  ;;  %v12736_v29 = vpack.i.bf16 %v3233_v39, %v3232_v20  ;;  %v13482_v20 = vld [vmem:[#allocation5 + $0x102] sm:$0xff]  ;;  %v19981_v39 = vld [vmem:[#allocation130_spill] sm:$0xff]  ;;  %v12756_v30 = vpack.i.bf16 %v3140_v17, %v3139_v15 }
 0x36a   : > { %v16934_v44 = vsel %vm19980_vm14, %v13482_v20, 0.0  ;;  %vm1385_vm7 = vcmp.lt.s32.totalorder %v19981_v39, 39  ;;  %vm19991_vm4 = vcmp.gt.s32.totalorder %v19981_v39, 0  ;;  %v19992_v15 = vld [vmem:[#allocation136_spill] sm:$0xff]  ;;  %vm20002_vm14 = vcmp.gt.s32.totalorder %v19966_v41, 0 }
 0x36b   : > { %12662 = vrot.lane.b32.xlu0 %v12661_v24, %s13596_s13  ;;  %v16887_v63 = vpop.permute.xlu1 %12482  ;;  %v19975_v24 = vld [vmem:[#allocation97_spill] sm:$0xff]  ;;  %v16974_v17 = vsel %vm1384_vm10, %v19992_v15, 0.0  ;;  %v19995_v15 = vld [vmem:[#allocation111_spill] sm:$0xff]  ;;  %v20006_v61 = vld [vmem:[#allocation56_spill] sm:$0xff] }
 0x36c   : > { %12727 = vrot.lane.b32.xlu1 %v12726_v48, %s13593_s29  ;;  %v3231_v32 = vsel %vm19976_vm15, %v19975_v24, 0.0  ;;  %v16921_v48 = vld [vmem:[#allocation5 + $0x141] sm:$0xff]  ;;  %v16947_v18 = vsel %vm1385_vm7, %v19975_v24, 0.0  ;;  %v19990_v24 = vld [vmem:[#allocation110_spill] sm:$0xff]  ;;  %vm19996_vm15 = vcmp.gt.s32.totalorder %v19955_v60, 0  ;;  %v17019_v60 = vsel %vm20002_vm14, %v16815_v9, 0.0 }
 0x36d   : > { %v16895_v42 = vpop.permute.xlu0 %12387  ;;  %19985 = vst [vmem:[#allocation103_spill] sm:$0xff] %v16947_v18  ;;  %v12701_v21 = vpack.i.bf16 %v3231_v32, %v3230_v11  ;;  %v3240_v11 = vld [vmem:[#allocation5 + $0x168] sm:$0xff]  ;;  %v12209_v9 = vunpack.i.l.bf16 %v20006_v61 }
 0x36f   : > { %12672 = vrot.lane.b32.xlu0 %v12671_v23, %s13597_s27  ;;  %v16911_v36 = vpop.permute.xlu1 %12487  ;;  %v19983_v23 = vld [vmem:[#allocation51_spill] sm:$0xff] }
 0x370   : > { %12737 = vrot.lane.b32.xlu1 %v12736_v29, %s13595_s28  ;;  %vm1388_vm0 = vcmp.lt.s32.totalorder %v19983_v23, 39  ;;  %v12691_v29 = vpack.i.bf16 %v3181_v46, %v3180_v51  ;;  %v12711_v51 = vpack.i.bf16 %v16923_v0, %v16921_v48  ;;  %v16981_v46 = vsel %vm19993_vm13, %v3147_v16, 0.0  ;;  %vm20009_vm13 = vmmov %vm20002_vm14  ;;  %v20011_v0 = vld [vmem:[#allocation68_spill] sm:$0xff] }
 0x371   : > { %v16954_v20 = vpop.permute.xlu0 %12392  ;;  %v17001_v16 = vsel %vm1386_vm6, %v19997_v31, 0.0  ;;  %v17024_v31 = vsel %vm1387_vm1, %v19964_v53, 0.0  ;;  %vm20017_vm14 = vcmask 654336  }
 0x372   : > { %19987 = vst [vmem:[#allocation102_spill] sm:$0xff] %v16954_v20  ;;  %v12284_v20 = vunpack.i.l.bf16 %v16692_v14 }
 0x373   : > { %12682 = vrot.lane.b32.xlu0 %v19979_v26, %s13592_s22  ;;  %v16952_v26 = vsel %vm1386_vm6, %v19962_v45, 0.0  ;;  %v16962_v33 = vpop.permute.xlu1 %12492  ;;  %v16969_v45 = vsel %vm19991_vm4, %v16824_v49, 0.0  ;;  %v16986_v49 = vsel %vm1385_vm7, %v19994_v52, 0.0  ;;  %v17003_v52 = vld [vmem:[#allocation5 + $0x171] sm:$0xff]  ;;  %vm20008_vm4 = vmmov %vm19998_vm2 }
 0x374   : > { %12747 = vrot.lane.b32.xlu1 %v12746_v25, %s13594_s23  ;;  %19986 = vst [vmem:[#allocation70_spill] sm:$0xff] %v16952_v26  ;;  %v16960_v25 = vld [vmem:[#allocation5 + $0x158] sm:$0xff]  ;;  %19989 = vst [vmem:[#allocation73_spill] sm:$0xff] %v16962_v33  ;;  %v3280_v26 = vsel %vm20009_vm13, %v3240_v11, 0.0  ;;  %v17047_v33 = vld [vmem:[#allocation5 + $0x169] sm:$0xff]  ;;  %vm20020_vm13 = vcmp.gt.s32.totalorder %v19982_v47, 0 }
 0x375   : > { %19988 = vst [vmem:[#allocation74_spill] sm:$0xff] %v16960_v25  ;;  %v16996_v32 = vsel %vm19996_vm15, %v16960_v25, 0.0  ;;  %v20003_v25 = vld [vmem:[#allocation67_spill] sm:$0xff]  ;;  %vm20014_vm15 = vcmask 261120  }
 0x376   : > { %v17029_v5 = vsel %vm1388_vm0, %v20003_v25, 0.0  ;;  %v17034_v62 = vsel %vm20004_vm8, %v20003_v25, 0.0  ;;  %v12285_v25 = vunpack.i.h.bf16 %v16692_v14  ;;  %v20010_v11 = vld [vmem:[#allocation55_spill] sm:$0xff]  ;;  %vm20015_vm2 = vmmov %vm20014_vm15 }
 0x377   : > { %12692 = vrot.lane.b32.xlu0 %v12691_v29, %s13593_s29  ;;  %v12766_v29 = vpack.i.bf16 %v16921_v48, %v19995_v15  ;;  %v17012_v48 = vld [vmem:[#allocation5 + $0x160] sm:$0xff]  ;;  %20005 = vst [vmem:[#allocation54_spill] sm:$0xff] %v17034_v62  ;;  %vm20018_vm8 = vmmov %vm20017_vm14 }
 0x378   : > { %12757 = vrot.lane.b32.xlu1 %v12756_v30, %s19551_s20  ;;  %v17010_v30 = vpop.permute.xlu0 %12397  ;;  %20001 = vst [vmem:[#allocation52_spill] sm:$0xff] %v17012_v48  ;;  %v17014_v15 = vld [vmem:[#allocation5 + $0x179] sm:$0xff]  ;;  %v17038_v18 = vpop.permute.xlu1 %12497  ;;  %v3279_v53 = vsel %vm20008_vm4, %v17012_v48, 0.0  ;;  %vm20019_vm4 = vcmp.gt.s32.totalorder %v19981_v39, 0 }
 0x379   : > { %20000 = vst [vmem:[#allocation77_spill] sm:$0xff] %v17010_v30  ;;  %v12210_v30 = vunpack.i.h.bf16 %v20006_v61  ;;  %20007 = vst [vmem:[#allocation50_spill] sm:$0xff] %v17038_v18  ;;  %v12776_v48 = vpack.i.bf16 %v3280_v26, %v3279_v53  ;;  %v4395_v18 = vsel %vm1578_vm3, %v20011_v0, %v12209_v9  ;;  %v20012_v26 = vld [vmem:[#allocation92_spill] sm:$0xff]  ;;  %v20013_v61 = vld [vmem:[#allocation83_spill] sm:$0xff]  ;;  %v12359_v0 = vunpack.i.l.bf16 %v16728_v34 }
 0x37a   : > { %v4402_v53 = vsel %vm1578_vm3, %v20012_v26, %v12285_v25  ;;  %v4401_v62 = vsel %vm1578_vm3, %v20013_v61, %v12284_v20  ;;  %v12485_v25 = vunpack.i.h.bf16 %v16887_v63  ;;  %v12484_v20 = vunpack.i.l.bf16 %v16887_v63 }
 0x37b   : > { %12702 = vrot.lane.b32.xlu0 %v12701_v21, %s13595_s28  ;;  %v4396_v41 = vsel %vm1578_vm3, %v20010_v11, %v12210_v30  ;;  %v12360_v30 = vunpack.i.h.bf16 %v16728_v34  ;;  %v12490_v26 = vunpack.i.h.bf16 %v16911_v36  ;;  %v12489_v34 = vunpack.i.l.bf16 %v16911_v36 }
 0x37c   : > { %12767 = vrot.lane.b32.xlu1 %v12766_v29, %s13596_s13  ;;  %v12410_v29 = vunpack.i.h.bf16 %v16784_v58  ;;  %v12435_v63 = vunpack.i.h.bf16 %v16819_v19 }
 0x37d   : > { %v12403_v21 = vpop.permute.xlu0 %12402  ;;  %v17075_v14 = vpop.permute.xlu1 %12507 }
 0x37e   : > { %v12405_v50 = vunpack.i.h.bf16 %v12403_v21  ;;  %v12404_v3 = vunpack.i.l.bf16 %v12403_v21 }
 0x37f   : > { %12712 = vrot.lane.b32.xlu0 %v12711_v51, %s13594_s23  ;;  %v3241_v51 = vld [vmem:[#allocation5 + $0x170] sm:$0xff] }
 0x380   : > { %v4441_v9 = vsel %vm20014_vm15, %v4401_v62, %v12404_v3  ;;  %v4442_v11 = vsel %vm20015_vm2, %v4402_v53, %v12405_v50  ;;  %12777 = vrot.lane.b32.xlu1 %v12776_v48, %s13597_s27  ;;  %v3243_v62 = vld [vmem:[#allocation5 + $0x180] sm:$0xff]  ;;  %v3244_v53 = vld [vmem:[#allocation5 + $0x188] sm:$0xff]  ;;  %vm20021_vm15 = vcmp.gt.s32.totalorder %v19983_v23, 0  ;;  %vm20023_vm2 = vcmp.gt.s32.totalorder %v19967_v8, 0 }
 0x381   : > { %v4482_v61 = vsel %vm4465_vm5, %v4441_v9, %v12409_v56  ;;  %v4483_v58 = vsel %vm4465_vm5, %v4442_v11, %v12410_v29  ;;  %v17093_v21 = vpop.permute.xlu0 %12417  ;;  %v17097_v3 = vpop.permute.xlu1 %12512  ;;  %v12434_v56 = vunpack.i.l.bf16 %v16819_v19  ;;  %v20016_v29 = vpack.i.bf16 %v16928_v28, %v16934_v44 }
 0x382   : > { %v4523_v50 = vsel %vm19456_vm11, %v4482_v61, %v12359_v0  ;;  %v4524_v48 = vsel %vm19456_vm11, %v4483_v58, %v12360_v30  ;;  %v12249_v11 = vunpack.i.l.bf16 %v16577_v43  ;;  %v3242_v30 = vld [vmem:[#allocation5 + $0x178] sm:$0xff]  ;;  %v17114_v0 = vsel %vm20019_vm4, %v3241_v51, 0.0 }
 0x383   : > { %12722 = vrot.lane.b32.xlu0 %v20016_v29, %s19551_s20  ;;  %v4563_v9 = vsel %vm20017_vm14, %v4523_v50, %v12484_v20  ;;  %v4564_v36 = vsel %vm20018_vm8, %v4524_v48, %v12485_v25  ;;  %v12250_v44 = vunpack.i.h.bf16 %v16577_v43  ;;  %v17123_v25 = vsel %vm20020_vm13, %v3243_v62, 0.0 }
 0x384   : > { %12787 = vrot.lane.b32.xlu1 %v16834_v38, %s13592_s22  ;;  %v4604_v19 = vsel %vm19454_vm9, %v4563_v9, %v12489_v34  ;;  %v4605_v28 = vsel %vm19454_vm9, %v4564_v36, %v12490_v26  ;;  %v12270_v58 = vunpack.i.h.bf16 %v16621_v4  ;;  %v12269_v51 = vunpack.i.l.bf16 %v16621_v4 }
 0x385   : > { %v17119_v61 = vpop.permute.xlu0 %12422  ;;  %v17126_v20 = vsel %vm4628_vm12, %v4604_v19, %v12434_v56  ;;  %v17129_v38 = vsel %vm4628_vm12, %v4605_v28, %v12435_v63  ;;  %v17133_v34 = vpop.permute.xlu1 %12517  ;;  %v17137_v43 = vsel %vm20021_vm15, %v3244_v53, 0.0  ;;  %v12230_v62 = vunpack.i.h.bf16 %v16527_v57 }
 0x386   : > { %v12280_v50 = vunpack.i.h.bf16 %v16656_v1  ;;  %v12329_v48 = vunpack.i.l.bf16 %v16761_v54  ;;  %v20022_v63 = vpack.i.bf16 %v19990_v24, %v16822_v55  ;;  %v17150_v4 = vsel %vm20023_vm2, %v3242_v30, 0.0 }
 0x387   : > { %v12229_v56 = vunpack.i.l.bf16 %v16527_v57  ;;  %vm20024_vm14 = vcmask 261120   ;;  %v12330_v53 = vunpack.i.h.bf16 %v16761_v54  ;;  %v12374_v9 = vunpack.i.l.bf16 %v16852_v12 }
 0x388   : > { %12732 = vrot.lane.b32.xlu0 %v20022_v63, %s13596_s13  ;;  %v4435_v29 = vsel %vm20024_vm14, %v4395_v18, %v12249_v11  ;;  %v20025_v36 = vpack.i.bf16 %v16942_v40, %v16969_v45  ;;  %vm20026_vm8 = vmmov %vm20024_vm14  ;;  %v12375_v24 = vunpack.i.h.bf16 %v16852_v12  ;;  %v12384_v30 = vunpack.i.l.bf16 %v16885_v2  ;;  %v20027_v18 = vld [vmem:[#allocation69_spill] sm:$0xff]  ;;  %v20028_v11 = vld [vmem:[#allocation59_spill] sm:$0xff] }
 0x389   : > { %v4436_v55 = vsel %vm20026_vm8, %v4396_v41, %v12250_v44  ;;  %v17163_v19 = vpop.permute.xlu0 %12427  ;;  %v12846_v57 = vpack.i.bf16 %v17137_v43, %v17123_v25  ;;  %v4394_v54 = vsel %vm1578_vm3, %v20027_v18, %v12270_v58  ;;  %v4393_v28 = vsel %vm1578_vm3, %v20028_v11, %v12269_v51  ;;  %v17173_v41 = vpop.permute.xlu1 %12527  ;;  %v20029_v63 = vld [vmem:[#allocation71_spill] sm:$0xff]  ;;  %vm20030_vm4 = vmmov %vm20026_vm8 }
 0x38a   : > { %12797 = vrot.lane.b32.xlu1 %v20025_v36, %s13593_s29  ;;  %v12279_v40 = vunpack.i.l.bf16 %v16656_v1  ;;  %v12385_v45 = vunpack.i.h.bf16 %v16885_v2  ;;  %v12275_v12 = vunpack.i.h.bf16 %v16643_v37  ;;  %v12274_v44 = vunpack.i.l.bf16 %v16643_v37  ;;  %vm20032_vm13 = vmmov %vm20030_vm4 }
 0x38b   : > { %v4398_v36 = vsel %vm1578_vm3, %v20029_v63, %v12280_v50  ;;  %v4433_v26 = vsel %vm20030_vm4, %v4393_v28, %v12329_v48  ;;  %v20031_v58 = vpack.i.bf16 %v16996_v32, %v16981_v46  ;;  %v4434_v1 = vsel %vm20032_vm13, %v4394_v54, %v12330_v53  ;;  %v20034_v54 = vld [vmem:[#allocation60_spill] sm:$0xff]  ;;  %v20037_v63 = vld [vmem:[#allocation58_spill] sm:$0xff]  ;;  %vm20046_vm8 = vmmov %vm20030_vm4 }
 0x38c   : > { %v12440_v2 = vunpack.i.h.bf16 %v16839_v6  ;;  %v12439_v51 = vunpack.i.l.bf16 %v16839_v6  ;;  %v4474_v18 = vsel %vm4465_vm5, %v4433_v26, %v12374_v9  ;;  %v20033_v11 = vpack.i.bf16 %v17001_v16, %v16986_v49 }
 0x38d   : > { %12742 = vrot.lane.b32.xlu0 %v20031_v58, %s13597_s27  ;;  %v4475_v50 = vsel %vm4465_vm5, %v4434_v1, %v12375_v24  ;;  %v12380_v48 = vunpack.i.h.bf16 %v16865_v7  ;;  %v12379_v46 = vunpack.i.l.bf16 %v16865_v7  ;;  %v4476_v32 = vsel %vm4465_vm5, %v4435_v29, %v12384_v30  ;;  %v17196_v53 = vpop.permute.xlu0 %12447  ;;  %v17203_v16 = vpop.permute.xlu1 %12532  ;;  %v20035_v30 = vld [vmem:[#allocation61_spill] sm:$0xff] }
 0x38e   : > { %12807 = vrot.lane.b32.xlu1 %v20033_v11, %s13595_s28  ;;  %v4397_v6 = vsel %vm1578_vm3, %v20034_v54, %v12279_v40  ;;  %v12345_v26 = vunpack.i.h.bf16 %v16798_v22  ;;  %v12344_v9 = vunpack.i.l.bf16 %v16798_v22  ;;  %v4477_v49 = vsel %vm4465_vm5, %v4436_v55, %v12385_v45 }
 0x38f   : > { %v12335_v24 = vunpack.i.h.bf16 %v16780_v27  ;;  %v12334_v28 = vunpack.i.l.bf16 %v16780_v27  ;;  %v12350_v7 = vunpack.i.h.bf16 %v16817_v59  ;;  %v12349_v29 = vunpack.i.l.bf16 %v16817_v59 }
 0x390   : > { %v4404_v40 = vsel %vm1578_vm3, %v20035_v30, %v12440_v2  ;;  %v4515_v22 = vsel %vm19456_vm11, %v4474_v18, %v12344_v9  ;;  %v4516_v55 = vsel %vm19456_vm11, %v4475_v50, %v12345_v26  ;;  %v4517_v45 = vsel %vm19456_vm11, %v4476_v32, %v12229_v56 }
 0x391   : > { %12752 = vrot.lane.b32.xlu0 %v16188_v10, %s13592_s22  ;;  %v20036_v27 = vpack.i.bf16 %v17014_v15, %v17003_v52  ;;  %v4403_v58 = vsel %vm1578_vm3, %v20037_v63, %v12439_v51  ;;  %vm20038_vm15 = vcmask 654336   ;;  %v4518_v2 = vsel %vm19456_vm11, %v4477_v49, %v12230_v62  ;;  %v12453_v11 = vpop.permute.xlu0 %12452  ;;  %v17227_v54 = vpop.permute.xlu1 %12537  ;;  %v20040_v52 = vld [vmem:[#allocation102_spill] sm:$0xff] }
 0x392   : > { %v4555_v1 = vsel %vm20038_vm15, %v4515_v22, %v12379_v46  ;;  %vm20039_vm2 = vmmov %vm20038_vm15  ;;  %v12390_v18 = vunpack.i.h.bf16 %v16895_v42  ;;  %v12389_v50 = vunpack.i.l.bf16 %v16895_v42  ;;  %v12455_v56 = vunpack.i.h.bf16 %v12453_v11  ;;  %v20044_v42 = vld [vmem:[#allocation73_spill] sm:$0xff] }
 0x393   : > { %12817 = vrot.lane.b32.xlu1 %v20036_v27, %s13594_s23  ;;  %v4556_v10 = vsel %vm20039_vm2, %v4516_v55, %v12380_v48  ;;  %v12454_v32 = vunpack.i.l.bf16 %v12453_v11  ;;  %v12394_v15 = vunpack.i.l.bf16 %v20040_v52  ;;  %v12420_v26 = vunpack.i.h.bf16 %v17093_v21  ;;  %v20041_v48 = vld [vmem:[#allocation82_spill] sm:$0xff]  ;;  %vm20043_vm14 = vmmov %vm20039_vm2 }
 0x394   : > { %v12419_v51 = vunpack.i.l.bf16 %v17093_v21  ;;  %v20042_v46 = vpack.i.bf16 %v17019_v60, %v20041_v48  ;;  %v4557_v62 = vsel %vm20043_vm14, %v4517_v45, %v12334_v28  ;;  %v12395_v9 = vunpack.i.h.bf16 %v20040_v52  ;;  %vm20049_vm13 = vmmov %vm20039_vm2 }
 0x395   : > { %v12495_v49 = vunpack.i.h.bf16 %v20044_v42  ;;  %v20045_v30 = vpack.i.bf16 %v17029_v5, %v17024_v31  ;;  %v4596_v22 = vsel %vm19454_vm9, %v4555_v1, %v12454_v32  ;;  %v4597_v21 = vsel %vm19454_vm9, %v4556_v10, %v12455_v56  ;;  %v12458_v27 = vpop.permute.xlu0 %12457  ;;  %v17251_v5 = vpop.permute.xlu1 %12542  ;;  %v20047_v56 = vld [vmem:[#allocation54_spill] sm:$0xff]  ;;  %vm20050_vm15 = vmmov %vm20030_vm4 }
 0x396   : > { %12762 = vrot.lane.b32.xlu0 %v20042_v46, %s13593_s29  ;;  %v12494_v55 = vunpack.i.l.bf16 %v20044_v42  ;;  %v12530_v60 = vunpack.i.h.bf16 %v17173_v41  ;;  %v4637_v28 = vsel %vm4628_vm12, %v4596_v22, %v12419_v51  ;;  %v4638_v45 = vsel %vm4628_vm12, %v4597_v21, %v12420_v26  ;;  %vm20052_vm2 = vmmov %vm20030_vm4  ;;  %v20057_v21 = vld [vmem:[#allocation38_spill] sm:$0xff] }
 0x397   : > { %12827 = vrot.lane.b32.xlu1 %v20045_v30, %s19551_s20  ;;  %v4437_v63 = vsel %vm20046_vm8, %v4397_v6, %v12389_v50  ;;  %v12529_v11 = vunpack.i.l.bf16 %v17173_v41  ;;  %v12460_v52 = vunpack.i.h.bf16 %v12458_v27  ;;  %v12459_v31 = vunpack.i.l.bf16 %v12458_v27  ;;  %vm20058_vm14 = vmmov %vm20049_vm13 }
 0x398   : > { %v4438_v1 = vsel %vm20030_vm4, %v4398_v36, %v12390_v18  ;;  %v4478_v10 = vsel %vm4465_vm5, %v4437_v63, %v12394_v15  ;;  %v20048_v32 = vpack.i.bf16 %v16974_v17, %v20047_v56  ;;  %v4677_v51 = vpack.c.bf16 %v4638_v45, %v4637_v28  ;;  %vm20059_vm8 = vmmov %vm20049_vm13 }
 0x399   : > { %v4558_v26 = vsel %vm20049_vm13, %v4518_v2, %v12335_v24  ;;  %v4479_v6 = vsel %vm4465_vm5, %v4438_v1, %v12395_v9  ;;  %v4444_v41 = vsel %vm20050_vm15, %v4404_v40, %v12495_v49  ;;  %v20051_v50 = vpack.i.bf16 %v17045_v35, %v16891_v13  ;;  %v12463_v48 = vpop.permute.xlu0 %12462  ;;  %v12558_v42 = vpop.permute.xlu1 %12557  ;;  %vm20060_vm4 = vmmov %vm20059_vm8 }
 0x39a   : > { %12772 = vrot.lane.b32.xlu0 %v20048_v32, %s13595_s28  ;;  %v4598_v36 = vsel %vm19454_vm9, %v4557_v62, %v12459_v31  ;;  %v4599_v18 = vsel %vm19454_vm9, %v4558_v26, %v12460_v52  ;;  %v4443_v15 = vsel %vm20052_vm2, %v4403_v58, %v12494_v55  ;;  %v4485_v17 = vsel %vm4465_vm5, %v4444_v41, %v12530_v60  ;;  %v20053_v62 = vld [vmem:[#allocation98_spill] sm:$0xff]  ;;  %vm20061_vm13 = vmmov %vm20060_vm4  ;;  %v20063_v31 = vld [vmem:[#allocation103_spill] sm:$0xff] }
 0x39b   : > { %12837 = vrot.lane.b32.xlu1 %v20051_v50, %s13596_s13  ;;  %4912 = vmatmul.mubr.bf16.gmra.mrb[16].mxu1 %v4677_v51  ;;  %v4639_v24 = vsel %vm4628_vm12, %v4598_v36, %v12274_v44  ;;  %v4640_v40 = vsel %vm4628_vm12, %v4599_v18, %v12275_v12  ;;  %v4484_v13 = vsel %vm4465_vm5, %v4443_v15, %v12529_v11  ;;  %v12535_v2 = vunpack.i.h.bf16 %v17203_v16  ;;  %v20054_v58 = vld [vmem:[#allocation94_spill] sm:$0xff]  ;;  %v20065_v18 = vld [vmem:[#allocation77_spill] sm:$0xff]  ;;  %vm20074_vm15 = vmmov %vm20052_vm2 }
 0x39c   : > { %v12534_v46 = vunpack.i.l.bf16 %v17203_v16  ;;  %v20055_v9 = vpack.c.bf16 %v20053_v62, %v20054_v58  ;;  %v4679_v49 = vpack.c.bf16 %v4640_v40, %v4639_v24  ;;  %v12510_v30 = vunpack.i.h.bf16 %v17075_v14  ;;  %v20067_v24 = vld [vmem:[#allocation116_spill] sm:$0xff]  ;;  %v20069_v62 = vld [vmem:[#allocation33_spill] sm:$0xff] }
 0x39d   : > { %v12509_v44 = vunpack.i.l.bf16 %v17075_v14  ;;  %v12465_v37 = vunpack.i.h.bf16 %v12463_v48  ;;  %v12464_v22 = vunpack.i.l.bf16 %v12463_v48  ;;  %v20056_v12 = vpack.i.bf16 %v17047_v33, %v17045_v35  ;;  %v12468_v45 = vpop.permute.xlu0 %12467  ;;  %v12573_v11 = vpop.permute.xlu1 %12572  ;;  %v20066_v48 = vld [vmem:[#allocation80_spill] sm:$0xff] }
 0x39e   : > { %11167 = vmatprep.mubr.msk.bf16.mxu1 %vm1578_vm3, %v20055_v9  ;;  %v12355_v16 = vunpack.i.h.bf16 %v20057_v21  ;;  %v12354_v55 = vunpack.i.l.bf16 %v20057_v21  ;;  %v4519_v60 = vsel %vm19456_vm11, %v4478_v10, %v12349_v29  ;;  %v4520_v27 = vsel %vm19456_vm11, %v4479_v6, %v12350_v7  ;;  %v20070_v58 = vld [vmem:[#allocation64_spill] sm:$0xff] }
 0x39f   : > { %12782 = vrot.lane.b32.xlu0 %v20056_v12, %s13594_s23  ;;  %12847 = vrot.lane.b32.xlu1 %v12846_v57, %s13597_s27  ;;  %v12425_v33 = vunpack.i.h.bf16 %v17119_v61  ;;  %v12424_v35 = vunpack.i.l.bf16 %v17119_v61  ;;  %v4525_v14 = vsel %vm19456_vm11, %v4484_v13, %v12509_v44  ;;  %v4526_v28 = vsel %vm19456_vm11, %v4485_v17, %v12510_v30  ;;  %v20062_v61 = vld [vmem:[#allocation70_spill] sm:$0xff] }
 0x3a0   : > { %v4565_v29 = vsel %vm20058_vm14, %v4525_v14, %v12534_v46  ;;  %v4566_v59 = vsel %vm20059_vm8, %v4526_v28, %v12535_v2  ;;  %v12470_v63 = vunpack.i.h.bf16 %v12468_v45  ;;  %v12469_v7 = vunpack.i.l.bf16 %v12468_v45  ;;  %v20072_v44 = vld [vmem:[#allocation78_spill] sm:$0xff]  ;;  %vm20081_vm8 = vmmov %vm20060_vm4 }
 0x3a1   : > { %v4559_v52 = vsel %vm20060_vm4, %v4519_v60, %v12464_v22  ;;  %v4560_v25 = vsel %vm20061_vm13, %v4520_v27, %v12465_v37  ;;  %v12575_v43 = vunpack.i.h.bf16 %v12573_v11  ;;  %v12574_v57 = vunpack.i.l.bf16 %v12573_v11  ;;  %v12478_v41 = vpop.permute.xlu0 %12477  ;;  %v17325_v13 = vpop.permute.xlu1 %12592  ;;  %v20073_v22 = vld [vmem:[#allocation75_spill] sm:$0xff] }
 0x3a2   : > { %v20064_v1 = vpack.i.bf16 %v20062_v61, %v20063_v31  ;;  %v12560_v10 = vunpack.i.h.bf16 %v12558_v42  ;;  %v12559_v56 = vunpack.i.l.bf16 %v12558_v42  ;;  %v4600_v32 = vsel %vm19454_vm9, %v4559_v52, %v12469_v7 }
 0x3a3   : > { %v4601_v51 = vsel %vm19454_vm9, %v4560_v25, %v12470_v63  ;;  %v4607_v26 = vsel %vm19454_vm9, %v4566_v59, %v12575_v43  ;;  %v4606_v6 = vsel %vm19454_vm9, %v4565_v29, %v12574_v57  ;;  %4920 = vmatmul.mubr.bf16.gmra.mrb[20].mxu1 %v4679_v49  ;;  %v4641_v50 = vsel %vm4628_vm12, %v4600_v32, %v12424_v35  ;;  %v20075_v35 = vld [vmem:[#allocation30_spill] sm:$0xff]  ;;  %v20076_v63 = vld [vmem:[#allocation52_spill] sm:$0xff] }
 0x3a4   : > { %12792 = vrot.lane.b32.xlu0 %v20064_v1, %s19551_s20  ;;  %v4642_v36 = vsel %vm4628_vm12, %v4601_v51, %v12425_v33  ;;  %v12400_v15 = vunpack.i.h.bf16 %v20065_v18  ;;  %v12399_v17 = vunpack.i.l.bf16 %v20065_v18  ;;  %v20068_v40 = vpack.c.bf16 %v20066_v48, %v20067_v24  ;;  %v20078_v43 = vld [vmem:[#allocation76_spill] sm:$0xff]  ;;  %v20079_v57 = vld [vmem:[#allocation118_spill] sm:$0xff]  ;;  %v20082_v51 = vld [vmem:[#allocation87_spill] sm:$0xff] }
 0x3a5   : > { %v4681_v2 = vpack.c.bf16 %v4642_v36, %v4641_v50  ;;  %v17328_v46 = vsel %vm4628_vm12, %v4606_v6, %v12559_v56  ;;  %v20071_v9 = vpack.i.bf16 %v20069_v62, %v20070_v58  ;;  %v12811_v42 = vpack.i.bf16 %v17150_v4, %v17114_v0  ;;  %v12503_v21 = vpop.permute.xlu0 %12502  ;;  %v17349_v4 = vpop.permute.xlu1 %12597  ;;  %v13484_v62 = vld [vmem:[#allocation5 + $0x162] sm:$0xff] }
 0x3a6   : > { %11168 = vmatprep.mubr.msk.bf16.mxu1 %vm1578_vm3, %v20068_v40  ;;  %v17337_v49 = vsel %vm4628_vm12, %v4607_v26, %v12560_v10  ;;  %v4400_v37 = vsel %vm1578_vm3, %v20072_v44, %v12355_v16  ;;  %v4399_v12 = vsel %vm1578_vm3, %v20073_v22, %v12354_v55  ;;  %v12430_v33 = vunpack.i.h.bf16 %v17163_v19  ;;  %v13483_v40 = vld [vmem:[#allocation5 + $0x15a] sm:$0xff] }
 0x3a7   : > { %v4687_v30 = vpack.c.bf16 %v17337_v49, %v17328_v46  ;;  %v4439_v60 = vsel %vm20074_vm15, %v4399_v12, %v12399_v17  ;;  %v4440_v27 = vsel %vm20052_vm2, %v4400_v37, %v12400_v15  ;;  %v12429_v0 = vunpack.i.l.bf16 %v17163_v19  ;;  %v20085_v44 = vld [vmem:[#allocation31_spill] sm:$0xff]  ;;  %vm20091_vm15 = vmmov %vm20052_vm2 }
 0x3a8   : > { %12802 = vrot.lane.b32.xlu0 %v20071_v9, %s13596_s13  ;;  %v12475_v14 = vunpack.i.h.bf16 %v20075_v35  ;;  %v12474_v28 = vunpack.i.l.bf16 %v20075_v35  ;;  %v12480_v45 = vunpack.i.h.bf16 %v12478_v41  ;;  %v12479_v16 = vunpack.i.l.bf16 %v12478_v41  ;;  %v20083_v41 = vld [vmem:[#allocation74_spill] sm:$0xff]  ;;  %v3288_v9 = vld [vmem:[#allocation5 + $0x181] sm:$0xff] }
 0x3a9   : > { %v12523_v59 = vpop.permute.xlu0 %12522  ;;  %vm20077_vm14 = vcmp.gt.s32.totalorder %v19983_v23, 0  ;;  %v20080_v61 = vpack.c.bf16 %v20078_v43, %v20079_v57  ;;  %v17365_v31 = vpop.permute.xlu1 %12602  ;;  %v12505_v56 = vunpack.i.h.bf16 %v12503_v21  ;;  %v12504_v32 = vunpack.i.l.bf16 %v12503_v21  ;;  %v20086_v21 = vld [vmem:[#allocation42_spill] sm:$0xff] }
 0x3aa   : > { %v4480_v55 = vsel %vm4465_vm5, %v4439_v60, %v12474_v28  ;;  %v4481_v29 = vsel %vm4465_vm5, %v4440_v27, %v12475_v14  ;;  %v3189_v19 = vsel %vm20077_vm14, %v20076_v63, 0.0  ;;  %v12525_v52 = vunpack.i.h.bf16 %v12523_v59  ;;  %v20087_v27 = vld [vmem:[#allocation91_spill] sm:$0xff]  ;;  %vm20103_vm14 = vmmov %vm20052_vm2 }
 0x3ab   : > { %4928 = vmatmul.mubr.bf16.gmra.mrb[24].mxu1 %v4681_v2  ;;  %v4521_v7 = vsel %vm19456_vm11, %v4480_v55, %v12429_v0  ;;  %v4522_v11 = vsel %vm19456_vm11, %v4481_v29, %v12430_v33  ;;  %v12524_v25 = vunpack.i.l.bf16 %v12523_v59  ;;  %vm20084_vm13 = vcmp.gt.s32.totalorder %v19982_v47, 0  ;;  %v20088_v33 = vld [vmem:[#allocation79_spill] sm:$0xff] }
 0x3ac   : > { %12812 = vrot.lane.b32.xlu0 %v12811_v42, %s13597_s27  ;;  %11169 = vmatprep.mubr.msk.bf16.mxu1 %vm1578_vm3, %v20080_v61  ;;  %v4561_v1 = vsel %vm20081_vm8, %v4521_v7, %v12479_v16  ;;  %v4562_v10 = vsel %vm20060_vm4, %v4522_v11, %v12480_v45  ;;  %v3188_v50 = vsel %vm20084_vm13, %v20083_v41, 0.0  ;;  %v3238_v2 = vsel %vm1387_vm1, %v13483_v40, 0.0  ;;  %v3289_v42 = vld [vmem:[#allocation5 + $0x189] sm:$0xff]  ;;  %v20090_v55 = vld [vmem:[#allocation63_spill] sm:$0xff]  ;;  %v20092_v11 = vld [vmem:[#allocation90_spill] sm:$0xff] }
 0x3ad   : > { %v4602_v26 = vsel %vm19454_vm9, %v4561_v1, %v12524_v25  ;;  %v4603_v6 = vsel %vm19454_vm9, %v4562_v10, %v12525_v52  ;;  %v17376_v36 = vpop.permute.xlu0 %12547  ;;  %v12831_v18 = vpack.i.bf16 %v3189_v19, %v3188_v50  ;;  %v3239_v58 = vsel %vm1388_vm0, %v13484_v62, 0.0  ;;  %v20093_v25 = vld [vmem:[#allocation32_spill] sm:$0xff]  ;;  %v20096_v40 = vld [vmem:[#allocation126_spill] sm:$0xff]  ;;  %vm20104_vm8 = vmmov %vm20060_vm4 }
 0x3ae   : > { %v4643_v15 = vsel %vm4628_vm12, %v4602_v26, %v12504_v32  ;;  %v4644_v17 = vsel %vm4628_vm12, %v4603_v6, %v12505_v56  ;;  %v17380_v48 = vpop.permute.xlu1 %12607  ;;  %v12289_v37 = vunpack.i.l.bf16 %v20085_v44  ;;  %v12841_v12 = vpack.i.bf16 %v3239_v58, %v3238_v2  ;;  %v20099_v58 = vld [vmem:[#allocation50_spill] sm:$0xff]  ;;  %vm20105_vm4 = vmmov %vm20052_vm2 }
 0x3af   : > { %v4683_v24 = vpack.c.bf16 %v4644_v17, %v4643_v15  ;;  %v12414_v60 = vunpack.i.l.bf16 %v20086_v21  ;;  %v20089_v0 = vpack.c.bf16 %v20087_v27, %v20088_v33  ;;  %v12290_v14 = vunpack.i.h.bf16 %v20085_v44  ;;  %v20102_v33 = vld [vmem:[#allocation115_spill] sm:$0xff]  ;;  %vm20106_vm13 = vmmov %vm20104_vm8 }
 0x3b0   : > { %12822 = vrot.lane.b32.xlu0 %v20082_v51, %s13592_s22  ;;  %v12539_v28 = vunpack.i.l.bf16 %v17227_v54  ;;  %v12851_v45 = vpack.i.bf16 %v3289_v42, %v3288_v9  ;;  %v12415_v16 = vunpack.i.h.bf16 %v20086_v21  ;;  %v4405_v29 = vsel %vm1578_vm3, %v20090_v55, %v12289_v37  ;;  %v20100_v37 = vld [vmem:[#allocation65_spill] sm:$0xff] }
 0x3b1   : > { %v17388_v22 = vpop.permute.xlu0 %12552  ;;  %v12540_v59 = vunpack.i.h.bf16 %v17227_v54  ;;  %v4445_v19 = vsel %vm20091_vm15, %v4405_v29, %v12414_v60  ;;  %v4406_v52 = vsel %vm1578_vm3, %v20092_v11, %v12290_v14  ;;  %v12365_v43 = vunpack.i.h.bf16 %v20093_v25  ;;  %v20094_v54 = vld [vmem:[#allocation29_spill] sm:$0xff]  ;;  %v20101_v60 = vld [vmem:[#allocation114_spill] sm:$0xff]  ;;  %vm20111_vm15 = vmmov %vm20052_vm2 }
 0x3b2   : > { %v17395_v35 = vpop.permute.xlu1 %12612  ;;  %v4486_v57 = vsel %vm4465_vm5, %v4445_v19, %v12539_v28  ;;  %v12364_v61 = vunpack.i.l.bf16 %v20093_v25  ;;  %v4446_v1 = vsel %vm20052_vm2, %v4406_v52, %v12415_v16  ;;  %v12445_v10 = vunpack.i.h.bf16 %v20094_v54  ;;  %v20107_v52 = vld [vmem:[#allocation113_spill] sm:$0xff] }
 0x3b3   : > { %4936 = vmatmul.mubr.bf16.gmra.mrb[28].mxu1 %v4683_v24  ;;  %v12449_v56 = vunpack.i.l.bf16 %v17196_v53  ;;  %v12520_v32 = vunpack.i.h.bf16 %v17133_v34  ;;  %v12450_v51 = vunpack.i.h.bf16 %v17196_v53  ;;  %v4487_v26 = vsel %vm4465_vm5, %v4446_v1, %v12540_v59  ;;  %v20097_v53 = vld [vmem:[#allocation100_spill] sm:$0xff] }
 0x3b4   : > { %12832 = vrot.lane.b32.xlu0 %v12831_v18, %s13593_s29  ;;  %11170 = vmatprep.mubr.msk.bf16.mxu1 %vm1578_vm3, %v20089_v0  ;;  %v12544_v6 = vunpack.i.l.bf16 %v17251_v5  ;;  %v20095_v41 = vpack.c.bf16 %v17129_v38, %v17126_v20  ;;  %v12444_v18 = vunpack.i.l.bf16 %v20094_v54  ;;  %v4527_v15 = vsel %vm19456_vm11, %v4486_v57, %v12364_v61 }
 0x3b5   : > { %v17404_v63 = vpop.permute.xlu0 %12562  ;;  %v12545_v17 = vunpack.i.h.bf16 %v17251_v5  ;;  %v12549_v24 = vunpack.i.l.bf16 %v17376_v36  ;;  %v20098_v2 = vpack.c.bf16 %v20096_v40, %v20097_v53  ;;  %v12500_v20 = vunpack.i.h.bf16 %v20099_v58 }
 0x3b6   : > { %v17407_v7 = vpop.permute.xlu1 %12627  ;;  %v12499_v38 = vunpack.i.l.bf16 %v20099_v58  ;;  %v12515_v9 = vunpack.i.h.bf16 %v17097_v3  ;;  %v12550_v42 = vunpack.i.h.bf16 %v17376_v36  ;;  %v12514_v44 = vunpack.i.l.bf16 %v17097_v3 }
 0x3b7   : > { %v12519_v5 = vunpack.i.l.bf16 %v17133_v34  ;;  %v4528_v21 = vsel %vm19456_vm11, %v4487_v26, %v12365_v43  ;;  %v4410_v27 = vsel %vm1578_vm3, %v20101_v60, %v12520_v32  ;;  %v4408_v0 = vsel %vm1578_vm3, %v20102_v33, %v12450_v51 }
 0x3b8   : > { %12842 = vrot.lane.b32.xlu0 %v12841_v12, %s13595_s28  ;;  %v4407_v12 = vsel %vm1578_vm3, %v20100_v37, %v12449_v56  ;;  %v4567_v28 = vsel %vm20104_vm8, %v4527_v15, %v12499_v38  ;;  %v4448_v3 = vsel %vm20105_vm4, %v4408_v0, %v12545_v17  ;;  %v12555_v59 = vunpack.i.h.bf16 %v17388_v22  ;;  %v20109_v15 = vld [vmem:[#allocation89_spill] sm:$0xff]  ;;  %vm20116_vm4 = vmmov %vm20104_vm8 }
 0x3b9   : > { %v17425_v50 = vpop.permute.xlu0 %12567  ;;  %v4447_v14 = vsel %vm20103_vm14, %v4407_v12, %v12544_v6  ;;  %v4489_v29 = vsel %vm4465_vm5, %v4448_v3, %v12550_v42  ;;  %v12554_v19 = vunpack.i.l.bf16 %v17388_v22  ;;  %v4568_v11 = vsel %vm20106_vm13, %v4528_v21, %v12500_v20  ;;  %vm20112_vm14 = vmmov %vm20104_vm8  ;;  %v20113_v3 = vld [vmem:[#allocation132_spill] sm:$0xff] }
 0x3ba   : > { %v17435_v62 = vpop.permute.xlu1 %12637  ;;  %v4488_v34 = vsel %vm4465_vm5, %v4447_v14, %v12549_v24  ;;  %v4409_v25 = vsel %vm1578_vm3, %v20107_v52, %v12519_v5  ;;  %v12595_v43 = vunpack.i.h.bf16 %v17325_v13  ;;  %v12594_v1 = vunpack.i.l.bf16 %v17325_v13  ;;  %vm20117_vm13 = vmmov %vm20116_vm4 }
 0x3bb   : > { %4944 = vmatmul.mubr.bf16.gmra.mrb[32].mxu1 %v20095_v41  ;;  %v4529_v22 = vsel %vm19456_vm11, %v4488_v34, %v12514_v44  ;;  %v4530_v6 = vsel %vm19456_vm11, %v4489_v29, %v12515_v9  ;;  %v20108_v41 = vld [vmem:[#allocation124_spill] sm:$0xff]  ;;  %v4450_v49 = vsel %vm20111_vm15, %v4410_v27, %v12555_v59  ;;  %v12570_v24 = vunpack.i.h.bf16 %v17425_v50  ;;  %vm20120_vm15 = vmmov %vm20052_vm2 }
 0x3bc   : > { %12852 = vrot.lane.b32.xlu0 %v12851_v45, %s13594_s23  ;;  %11171 = vmatprep.mubr.msk.bf16.mxu1 %vm1578_vm3, %v20098_v2  ;;  %v20110_v17 = vpack.c.bf16 %v20108_v41, %v20109_v15  ;;  %v12569_v40 = vunpack.i.l.bf16 %v17425_v50  ;;  %v12600_v58 = vunpack.i.h.bf16 %v17349_v4  ;;  %v12599_v20 = vunpack.i.l.bf16 %v17349_v4  ;;  %v20114_v34 = vld [vmem:[#allocation128_spill] sm:$0xff]  ;;  %s13599_s23 = smov [#allocation13]  }
 0x3bd   : > { %v12578_v36 = vpop.permute.xlu0 %12577  ;;  %v12605_v33 = vunpack.i.h.bf16 %v17365_v31  ;;  %v12604_v0 = vunpack.i.l.bf16 %v17365_v31  ;;  %v12615_v29 = vunpack.i.h.bf16 %v17395_v35  ;;  %v12614_v59 = vunpack.i.l.bf16 %v17395_v35  ;;  %v20118_v31 = vld [vmem:[#allocation120_spill] sm:$0xff]  ;;  %s13520_s28 = sshll.u32 %s13599_s23, 4  ;;  %s13521_s28 = int_to_ptr.vmem [resolvable:$false] %s13520_s28 }
 0x3be   : > { %v12580_v45 = vunpack.i.h.bf16 %v12578_v36  ;;  %v12579_v16 = vunpack.i.l.bf16 %v12578_v36  ;;  %v17454_v55 = vpop.permute.xlu1 %12647  ;;  %v4491_v37 = vsel %vm4465_vm5, %v4450_v49, %v12600_v58  ;;  %v12629_v49 = vunpack.i.l.bf16 %v17407_v7  ;;  %s13522_s4 = scalar_lea.vmem %s13521_s28, 32 }
 0x3bf   : > { %v4532_v4 = vsel %vm19456_vm11, %v4491_v37, %v12570_v24  ;;  %v20121_v24 = vld [vmem:[#allocation134_spill] sm:$0xff] }
 0x3c0   : > { %v4609_v57 = vsel %vm19454_vm9, %v4568_v11, %v12580_v45  ;;  %v4608_v61 = vsel %vm19454_vm9, %v4567_v28, %v12579_v16  ;;  %v20115_v45 = vpack.c.bf16 %v20113_v3, %v20114_v34  ;;  %v4572_v11 = vsel %vm20117_vm13, %v4532_v4, %v12605_v33  ;;  %v20127_v3 = vld [vmem:[#allocation138_spill] sm:$0xff]  ;;  %vm20132_vm13 = vmmov %vm20052_vm2 }
 0x3c1   : > { %v12583_v54 = vpop.permute.xlu0 %12582  ;;  %v4649_v56 = vsel %vm4628_vm12, %v4608_v61, %v12444_v18  ;;  %v4650_v32 = vsel %vm4628_vm12, %v4609_v57, %v12445_v10  ;;  %v12565_v18 = vunpack.i.h.bf16 %v17404_v63  ;;  %v12564_v10 = vunpack.i.l.bf16 %v17404_v63 }
 0x3c2   : > { %v12585_v51 = vunpack.i.h.bf16 %v12583_v54  ;;  %v12584_v26 = vunpack.i.l.bf16 %v12583_v54  ;;  %v17477_v13 = vpop.permute.xlu1 %12657  ;;  %v4689_v46 = vpack.c.bf16 %v4650_v32, %v4649_v56  ;;  %v12609_v54 = vunpack.i.l.bf16 %v17380_v48 }
 0x3c3   : > { %4952 = vmatmul.mubr.bf16.gmra.mrb[36].mxu1 %v4687_v30  ;;  %v4449_v30 = vsel %vm20052_vm2, %v4409_v25, %v12554_v19  ;;  %v20119_v25 = vld [vmem:[#allocation119_spill] sm:$0xff] }
 0x3c4   : > { %11172 = vmatprep.mubr.msk.bf16.mxu1 %vm1578_vm3, %v20110_v17  ;;  %v4569_v53 = vsel %vm20112_vm14, %v4529_v22, %v12584_v26  ;;  %v4570_v2 = vsel %vm20104_vm8, %v4530_v6, %v12585_v51  ;;  %v4490_v50 = vsel %vm4465_vm5, %v4449_v30, %v12599_v20  ;;  %vm20124_vm14 = vmmov %vm20116_vm4 }
 0x3c5   : > { %v12588_v38 = vpop.permute.xlu0 %12587  ;;  %v4610_v9 = vsel %vm19454_vm9, %v4569_v53, %v12594_v1  ;;  %v4611_v42 = vsel %vm19454_vm9, %v4570_v2, %v12595_v43  ;;  %v4531_v21 = vsel %vm19456_vm11, %v4490_v50, %v12569_v40  ;;  %v12610_v1 = vunpack.i.h.bf16 %v17380_v48  ;;  %v20122_v40 = vld [vmem:[#allocation133_spill] sm:$0xff]  ;;  %vm20125_vm8 = vmmov %vm20116_vm4 }
 0x3c6   : > { %v17491_v44 = vpop.permute.xlu1 %12667  ;;  %v4651_v63 = vsel %vm4628_vm12, %v4610_v9, %v12564_v10  ;;  %v4652_v5 = vsel %vm4628_vm12, %v4611_v42, %v12565_v18  ;;  %v12590_v60 = vunpack.i.h.bf16 %v12588_v38  ;;  %v12589_v27 = vunpack.i.l.bf16 %v12588_v38 }
 0x3c7   : > { %v4691_v12 = vpack.c.bf16 %v4652_v5, %v4651_v63  ;;  %v4571_v19 = vsel %vm20116_vm4, %v4531_v21, %v12604_v0  ;;  %v12630_v48 = vunpack.i.h.bf16 %v17407_v7  ;;  %v20123_v53 = vpack.c.bf16 %v20121_v24, %v20122_v40  ;;  %vm20131_vm4 = vmmov %vm20052_vm2 }
 0x3c8   : > { %v4412_v52 = vsel %vm1578_vm3, %v20118_v31, %v12590_v60  ;;  %v4411_v43 = vsel %vm1578_vm3, %v20119_v25, %v12589_v27  ;;  %v12640_v7 = vunpack.i.h.bf16 %v17435_v62  ;;  %v12639_v42 = vunpack.i.l.bf16 %v17435_v62 }
 0x3c9   : > { %v12618_v14 = vpop.permute.xlu0 %12617  ;;  %v4451_v41 = vsel %vm20120_vm15, %v4411_v43, %v12609_v54  ;;  %v4452_v15 = vsel %vm20052_vm2, %v4412_v52, %v12610_v1  ;;  %v12649_v21 = vunpack.i.l.bf16 %v17454_v55  ;;  %v12660_v52 = vunpack.i.h.bf16 %v17477_v13  ;;  %vm20136_vm15 = vmmov %vm20125_vm8 }
 0x3ca   : > { %v12620_v28 = vunpack.i.h.bf16 %v12618_v14  ;;  %v12619_v36 = vunpack.i.l.bf16 %v12618_v14  ;;  %v17505_v16 = vpop.permute.xlu1 %12677  ;;  %v12659_v25 = vunpack.i.l.bf16 %v17477_v13  ;;  %vm20137_vm2 = vmmov %vm20125_vm8 }
 0x3cb   : > { %4960 = vmatmul.mubr.bf16.gmra.mrb[40].mxu1 %v4689_v46 }
 0x3cc   : > { %11173 = vmatprep.mubr.msk.bf16.mxu1 %vm1578_vm3, %v20115_v45  ;;  %v4612_v57 = vsel %vm19454_vm9, %v4571_v19, %v12619_v36  ;;  %v4613_v61 = vsel %vm19454_vm9, %v4572_v11, %v12620_v28  ;;  %v20126_v36 = vld [vmem:[#allocation149_spill] sm:$0xff] }
 0x3cd   : > { %v12623_v22 = vpop.permute.xlu0 %12622  ;;  %v4653_v35 = vsel %vm4628_vm12, %v4612_v57, %v12614_v59  ;;  %v4654_v56 = vsel %vm4628_vm12, %v4613_v61, %v12615_v29  ;;  %v20128_v34 = vpack.c.bf16 %v20126_v36, %v20127_v3  ;;  %v20130_v59 = vld [vmem:[#allocation127_spill] sm:$0xff] }
 0x3ce   : > { %v12625_v32 = vunpack.i.h.bf16 %v12623_v22  ;;  %v12624_v51 = vunpack.i.l.bf16 %v12623_v22  ;;  %v17521_v26 = vpop.permute.xlu1 %12687  ;;  %v4693_v6 = vpack.c.bf16 %v4654_v56, %v4653_v35 }
 0x3d0   : > { %v4492_v17 = vsel %vm4465_vm5, %v4451_v41, %v12624_v51  ;;  %v4493_v46 = vsel %vm4465_vm5, %v4452_v15, %v12625_v32  ;;  %v12670_v32 = vunpack.i.h.bf16 %v17491_v44  ;;  %v12669_v51 = vunpack.i.l.bf16 %v17491_v44  ;;  %v20133_v15 = vld [vmem:[#allocation152_spill] sm:$0xff] }
 0x3d1   : > { %v12633_v30 = vpop.permute.xlu0 %12632  ;;  %v4533_v58 = vsel %vm19456_vm11, %v4492_v17, %v12629_v49  ;;  %v4534_v20 = vsel %vm19456_vm11, %v4493_v46, %v12630_v48  ;;  %v20134_v17 = vld [vmem:[#allocation66_spill] sm:$0xff]  ;;  %v12680_v48 = vunpack.i.h.bf16 %v17505_v16  ;;  %v12679_v49 = vunpack.i.l.bf16 %v17505_v16 }
 0x3d2   : > { %v12635_v18 = vunpack.i.h.bf16 %v12633_v30  ;;  %v12634_v10 = vunpack.i.l.bf16 %v12633_v30  ;;  %v17533_v2 = vpop.permute.xlu1 %12697  ;;  %v20135_v46 = vpack.c.bf16 %v20133_v15, %v20134_v17  ;;  %v20147_v17 = vld [vmem:[#allocation135_spill] sm:$0xff] }
 0x3d3   : > { %4968 = vmatmul.mubr.bf16.gmra.mrb[44].mxu1 %v4691_v12  ;;  %v12650_v12 = vunpack.i.h.bf16 %v17454_v55  ;;  %v20129_v55 = vld [vmem:[#allocation123_spill] sm:$0xff]  ;;  %v12699_v3 = vunpack.i.l.bf16 %v17533_v2 }
 0x3d4   : > { %11174 = vmatprep.mubr.msk.bf16.mxu1 %vm1578_vm3, %v20123_v53  ;;  %v4573_v38 = vsel %vm20124_vm14, %v4533_v58, %v12634_v10  ;;  %v4574_v9 = vsel %vm20125_vm8, %v4534_v20, %v12635_v18  ;;  %v4413_v29 = vsel %vm1578_vm3, %v20129_v55, %v12649_v21  ;;  %vm20143_vm14 = vmmov %vm20131_vm4 }
 0x3d5   : > { %v12643_v63 = vpop.permute.xlu0 %12642  ;;  %v4614_v4 = vsel %vm19454_vm9, %v4573_v38, %v12639_v42  ;;  %v4615_v60 = vsel %vm19454_vm9, %v4574_v9, %v12640_v7  ;;  %v4414_v19 = vsel %vm1578_vm3, %v20130_v59, %v12650_v12  ;;  %v20138_v7 = vld [vmem:[#allocation121_spill] sm:$0xff]  ;;  %v20139_v42 = vld [vmem:[#allocation139_spill] sm:$0xff]  ;;  %vm20144_vm8 = vmmov %vm20131_vm4 }
 0x3d6   : > { %v12645_v5 = vunpack.i.h.bf16 %v12643_v63  ;;  %v12644_v50 = vunpack.i.l.bf16 %v12643_v63  ;;  %v17541_v37 = vpop.permute.xlu1 %12707 }
 0x3d8   : > { %v4655_v27 = vsel %vm4628_vm12, %v4614_v4, %v12644_v50  ;;  %v4656_v33 = vsel %vm4628_vm12, %v4615_v60, %v12645_v5  ;;  %v12690_v5 = vunpack.i.h.bf16 %v17521_v26  ;;  %v12689_v50 = vunpack.i.l.bf16 %v17521_v26 }
 0x3d9   : > { %v12653_v0 = vpop.permute.xlu0 %12652  ;;  %v4695_v62 = vpack.c.bf16 %v4656_v33, %v4655_v27  ;;  %v20140_v27 = vld [vmem:[#allocation150_spill] sm:$0xff]  ;;  %v20141_v33 = vld [vmem:[#allocation140_spill] sm:$0xff]  ;;  %v12700_v26 = vunpack.i.h.bf16 %v17533_v2 }
 0x3da   : > { %v12655_v14 = vunpack.i.h.bf16 %v12653_v0  ;;  %v12654_v28 = vunpack.i.l.bf16 %v12653_v0  ;;  %v17553_v45 = vpop.permute.xlu1 %12717  ;;  %v20142_v0 = vpack.c.bf16 %v20140_v27, %v20141_v33  ;;  %v20154_v27 = vld [vmem:[#allocation23_spill] sm:$0xff] }
 0x3db   : > { %4976 = vmatmul.mubr.bf16.gmra.mrb[48].mxu1 %v4693_v6  ;;  %v1395_v33 = vshrl.u32 %v20154_v27, 4 }
 0x3dc   : > { %11175 = vmatprep.mubr.msk.bf16.mxu1 %vm1578_vm3, %v20128_v34  ;;  %v4454_v11 = vsel %vm20131_vm4, %v4414_v19, %v12655_v14  ;;  %v4453_v31 = vsel %vm20132_vm13, %v4413_v29, %v12654_v28  ;;  %vm20145_vm4 = vmmov %vm20137_vm2 }
 0x3dd   : > { %v12663_v43 = vpop.permute.xlu0 %12662  ;;  %v4494_v54 = vsel %vm4465_vm5, %v4453_v31, %v12659_v25  ;;  %v4495_v22 = vsel %vm4465_vm5, %v4454_v11, %v12660_v52  ;;  %vm20146_vm13 = vmmov %vm20137_vm2  ;;  %v12710_v25 = vunpack.i.h.bf16 %v17541_v37 }
 0x3de   : > { %v12665_v57 = vunpack.i.h.bf16 %v12663_v43  ;;  %v12664_v61 = vunpack.i.l.bf16 %v12663_v43  ;;  %v17563_v1 = vpop.permute.xlu1 %12727  ;;  %v12709_v43 = vunpack.i.l.bf16 %v17541_v37 }
 0x3e0   : > { %v4535_v35 = vsel %vm19456_vm11, %v4494_v54, %v12664_v61  ;;  %v4536_v56 = vsel %vm19456_vm11, %v4495_v22, %v12665_v57  ;;  %v12720_v54 = vunpack.i.h.bf16 %v17553_v45  ;;  %v12719_v22 = vunpack.i.l.bf16 %v17553_v45 }
 0x3e1   : > { %v12673_v6 = vpop.permute.xlu0 %12672  ;;  %v4575_v30 = vsel %vm20136_vm15, %v4535_v35, %v12669_v51  ;;  %v4576_v18 = vsel %vm20137_vm2, %v4536_v56, %v12670_v32  ;;  %vm20149_vm15 = vmmov %vm20144_vm8 }
 0x3e2   : > { %v12675_v13 = vunpack.i.h.bf16 %v12673_v6  ;;  %v12674_v41 = vunpack.i.l.bf16 %v12673_v6  ;;  %v17581_v24 = vpop.permute.xlu1 %12737  ;;  %vm20150_vm2 = vmmov %vm20144_vm8 }
 0x3e3   : > { %4984 = vmatmul.mubr.bf16.gmra.mrb[52].mxu1 %v4695_v62 }
 0x3e4   : > { %11176 = vmatprep.mubr.msk.bf16.mxu1 %vm1578_vm3, %v20135_v46  ;;  %v4616_v10 = vsel %vm19454_vm9, %v4575_v30, %v12674_v41  ;;  %v4617_v44 = vsel %vm19454_vm9, %v4576_v18, %v12675_v13  ;;  %v4418_v46 = vsel %vm1578_vm3, %v20147_v17, %v12720_v54  ;;  %v20151_v18 = vld [vmem:[#allocation112_spill] sm:$0xff] }
 0x3e5   : > { %v12683_v40 = vpop.permute.xlu0 %12682  ;;  %v4657_v53 = vsel %vm4628_vm12, %v4616_v10, %v12679_v49  ;;  %v4658_v58 = vsel %vm4628_vm12, %v4617_v44, %v12680_v48  ;;  %v20148_v48 = vld [vmem:[#allocation125_spill] sm:$0xff]  ;;  %v20152_v10 = vld [vmem:[#allocation62_spill] sm:$0xff] }
 0x3e6   : > { %v12685_v20 = vunpack.i.h.bf16 %v12683_v40  ;;  %v12684_v38 = vunpack.i.l.bf16 %v12683_v40  ;;  %v4697_v9 = vpack.c.bf16 %v4658_v58, %v4657_v53  ;;  %v17591_v21 = vpop.permute.xlu1 %12747  ;;  %v4417_v45 = vsel %vm1578_vm3, %v20148_v48, %v12719_v22  ;;  %v20160_v22 = vld [vmem:[#allocation143_spill] sm:$0xff]  ;;  %v3293_v48 = vld [vmem:[#allocation5 + $0x182] sm:$0xff] }
 0x3e7   : > { %v20153_v44 = vpack.c.bf16 %v20151_v18, %v20152_v10  ;;  %v12730_v40 = vunpack.i.h.bf16 %v17563_v1  ;;  %v12729_v53 = vunpack.i.l.bf16 %v17563_v1 }
 0x3e8   : > { %v4416_v16 = vsel %vm1578_vm3, %v20138_v7, %v12685_v20  ;;  %v4415_v63 = vsel %vm1578_vm3, %v20139_v42, %v12684_v38 }
 0x3e9   : > { %v12693_v12 = vpop.permute.xlu0 %12692  ;;  %v4455_v62 = vsel %vm20143_vm14, %v4415_v63, %v12689_v50  ;;  %v4456_v14 = vsel %vm20144_vm8, %v4416_v16, %v12690_v5  ;;  %v12740_v5 = vunpack.i.h.bf16 %v17581_v24  ;;  %v12739_v50 = vunpack.i.l.bf16 %v17581_v24  ;;  %vm20155_vm14 = vmmov %vm20145_vm4 }
 0x3ea   : > { %v12695_v4 = vunpack.i.h.bf16 %v12693_v12  ;;  %v12694_v60 = vunpack.i.l.bf16 %v12693_v12  ;;  %v17605_v11 = vpop.permute.xlu1 %12757  ;;  %vm20156_vm8 = vmmov %vm20145_vm4 }
 0x3eb   : > { %4992 = vmatmul.mubr.bf16.gmra.mrb[56].mxu1 %v4697_v9 }
 0x3ec   : > { %11177 = vmatprep.mubr.msk.bf16.mxu1 %vm1578_vm3, %v20142_v0  ;;  %v4496_v28 = vsel %vm4465_vm5, %v4455_v62, %v12694_v60  ;;  %v4497_v36 = vsel %vm4465_vm5, %v4456_v14, %v12695_v4  ;;  %v3290_v4 = vld [vmem:[#allocation5 + $0x16a] sm:$0xff]  ;;  %v12750_v0 = vunpack.i.h.bf16 %v17591_v21  ;;  %v12749_v62 = vunpack.i.l.bf16 %v17591_v21 }
 0x3ed   : > { %v12703_v34 = vpop.permute.xlu0 %12702  ;;  %v4537_v59 = vsel %vm19456_vm11, %v4496_v28, %v12699_v3  ;;  %v4538_v19 = vsel %vm19456_vm11, %v4497_v36, %v12700_v26  ;;  %v3330_v24 = vsel %vm1384_vm10, %v3290_v4, 0.0  ;;  %vm20161_vm10 = vmmov %vm20150_vm2 }
 0x3ee   : > { %v12705_v55 = vunpack.i.h.bf16 %v12703_v34  ;;  %v12704_v29 = vunpack.i.l.bf16 %v12703_v34  ;;  %v17617_v41 = vpop.permute.xlu1 %12767 }
 0x3ef   : > { %v12770_v18 = vunpack.i.h.bf16 %v17617_v41  ;;  %v12769_v8 = vunpack.i.l.bf16 %v17617_v41 }
 0x3f0   : > { %v4577_v31 = vsel %vm20145_vm4, %v4537_v59, %v12704_v29  ;;  %v4578_v52 = vsel %vm20146_vm13, %v4538_v19, %v12705_v55  ;;  %vm20162_vm4 = vmmov %vm20150_vm2 }
 0x3f1   : > { %v12713_v57 = vpop.permute.xlu0 %12712  ;;  %v4618_v35 = vsel %vm19454_vm9, %v4577_v31, %v12709_v43  ;;  %v4619_v56 = vsel %vm19454_vm9, %v4578_v52, %v12710_v25  ;;  %v20158_v52 = vld [vmem:[#allocation53_spill] sm:$0xff]  ;;  %v3291_v43 = vld [vmem:[#allocation5 + $0x172] sm:$0xff]  ;;  %vm20164_vm13 = vmmov %vm20156_vm8 }
 0x3f2   : > { %v12715_v61 = vunpack.i.h.bf16 %v12713_v57  ;;  %v12714_v2 = vunpack.i.l.bf16 %v12713_v57  ;;  %v17633_v16 = vpop.permute.xlu1 %12777  ;;  %v4704_v25 = vpack.c.bf16 %v3330_v24, %v20158_v52  ;;  %v3292_v57 = vld [vmem:[#allocation5 + $0x17a] sm:$0xff]  ;;  %v17717_v52 = vld [vmem:[%s19169_s8] ss:$0 sm:$0xff] }
 0x3f3   : > { %v12780_v47 = vunpack.i.h.bf16 %v17633_v16 }
 0x3f4   : > { %v4659_v32 = vsel %vm4628_vm12, %v4618_v35, %v12714_v2  ;;  %v4660_v51 = vsel %vm4628_vm12, %v4619_v56, %v12715_v61  ;;  %v1396_v61 = vmul.u32 20, %v1395_v33  ;;  %v20159_v2 = vld [vmem:[#allocation144_spill] sm:$0xff]  ;;  %v12760_v56 = vunpack.i.h.bf16 %v17605_v11 }
 0x3f5   : > { %v12723_v6 = vpop.permute.xlu0 %12722  ;;  %v4699_v13 = vpack.c.bf16 %v4660_v51, %v4659_v32  ;;  %v12759_v32 = vunpack.i.l.bf16 %v17605_v11 }
 0x3f6   : > { %v12725_v37 = vunpack.i.h.bf16 %v12723_v6  ;;  %v12724_v15 = vunpack.i.l.bf16 %v12723_v6  ;;  %v12788_v59 = vpop.permute.xlu1 %12787 }
 0x3f7   : > { %5000 = vmatmul.mubr.bf16.gmra.mrb[60].mxu1 %v4699_v13  ;;  %v12790_v10 = vunpack.i.h.bf16 %v12788_v59 }
 0x3f8   : > { %v4458_v49 = vsel %vm20149_vm15, %v4418_v46, %v12725_v37  ;;  %v4457_v30 = vsel %vm20150_vm2, %v4417_v45, %v12724_v15  ;;  %11178 = vmatprep.mubr.msk.bf16.mxu1 %vm1578_vm3, %v20153_v44  ;;  %v17660_v37 = vsel %vm1385_vm7, %v3291_v43, 0.0  ;;  %v17664_v15 = vsel %vm1386_vm6, %v3292_v57, 0.0  ;;  %v20163_v45 = vld [vmem:[#allocation21_spill] sm:$0xff]  ;;  %vm20165_vm15 = vmmov %vm20156_vm8  ;;  %v5396_v57 = vld [vmem:[#allocation7 + $0x1] sm:$0xff] }
 0x3f9   : > { %v4498_v9 = vsel %vm4465_vm5, %v4457_v30, %v12729_v53  ;;  %v4499_v7 = vsel %vm4465_vm5, %v4458_v49, %v12730_v40  ;;  %v17669_v11 = vsub.s32 %v20163_v45, %v1396_v61  ;;  %v4706_v40 = vpack.c.bf16 %v17664_v15, %v17660_v37  ;;  %v5397_v61 = vld [vmem:[#allocation7 + $0x9] sm:$0xff] }
 0x3fa   : > { %v12733_v58 = vpop.permute.xlu0 %12732  ;;  %v12789_v53 = vunpack.i.l.bf16 %v12788_v59 }
 0x3fb   : > { %v12735_v20 = vunpack.i.h.bf16 %v12733_v58  ;;  %v12734_v38 = vunpack.i.l.bf16 %v12733_v58  ;;  %vm1499_vm6 = vcmp.ne.s32.totalorder %v17669_v11, 0  ;;  %vm1509_vm7 = vcmp.lt.s32.totalorder %v17669_v11, 0 }
 0x3fc   : > { %v17671_v49 = vpop.permute.xlu1 %12797  ;;  %v1529_v4 = vadd.s32 20, %v17669_v11 }
 0x3fd   : > { %v4539_v42 = vsel %vm19456_vm11, %v4498_v9, %v12734_v38  ;;  %v4540_v63 = vsel %vm19456_vm11, %v4499_v7, %v12735_v20  ;;  %v17682_v38 = vld [vmem:[%s19167_s6] ss:$0 sm:$0xff]  ;;  %v17686_v9 = vsel %vm1387_vm1, %v3293_v48, 0.0  ;;  %vm17727_vm1 = vmand %vm1509_vm7, %vm1499_vm6  ;;  %v12799_v15 = vunpack.i.l.bf16 %v17671_v49 }
 0x3fe   : > { %v4579_v14 = vsel %vm20155_vm14, %v4539_v42, %v12739_v50  ;;  %v4580_v28 = vsel %vm20156_vm8, %v4540_v63, %v12740_v5  ;;  %v20166_v50 = vld [vmem:[#allocation26_spill] sm:$0xff]  ;;  %vm20175_vm6 = vmmov %vm20162_vm4 }
 0x3ff   : > { %v12743_v12 = vpop.permute.xlu0 %12742 }
 0x400   : > { %v12745_v1 = vunpack.i.h.bf16 %v12743_v12  ;;  %v12744_v60 = vunpack.i.l.bf16 %v12743_v12  ;;  %v1406_v12 = vshrl.u32 %v20166_v50, 4 }
 0x402   : > { %v4620_v36 = vsel %vm19454_vm9, %v4579_v14, %v12744_v60  ;;  %v4621_v26 = vsel %vm19454_vm9, %v4580_v28, %v12745_v1  ;;  %v12779_v1 = vunpack.i.l.bf16 %v17633_v16  ;;  %v20167_v60 = vld [vmem:[#allocation142_spill] sm:$0xff]  ;;  %v20168_v14 = vld [vmem:[#allocation141_spill] sm:$0xff] }
 0x403   : > { %v12753_v34 = vpop.permute.xlu0 %12752  ;;  %v4661_v55 = vsel %vm4628_vm12, %v4620_v36, %v12749_v62  ;;  %v4662_v29 = vsel %vm4628_vm12, %v4621_v26, %v12750_v0  ;;  %v4422_v27 = vsel %vm1578_vm3, %v20167_v60, %v12790_v10  ;;  %v4421_v28 = vsel %vm1578_vm3, %v20168_v14, %v12789_v53  ;;  %v17703_v36 = vpop.permute.xlu1 %12807  ;;  %v17708_v26 = vld [vmem:[%s19168_s7] ss:$0 sm:$0xff]  ;;  %v3294_v60 = vld [vmem:[#allocation5 + $0x18a] sm:$0xff] }
 0x404   : > { %v12755_v19 = vunpack.i.h.bf16 %v12753_v34  ;;  %v12754_v31 = vunpack.i.l.bf16 %v12753_v34  ;;  %v4701_v21 = vpack.c.bf16 %v4662_v29, %v4661_v55  ;;  %v1407_v34 = vmul.u32 20, %v1406_v12 }
 0x406   : > { %v4420_v54 = vsel %vm1578_vm3, %v20159_v2, %v12755_v19  ;;  %v4419_v35 = vsel %vm1578_vm3, %v20160_v22, %v12754_v31  ;;  %5008 = vmatmul.mubr.bf16.gmra.mrb[64].mxu1 %v4701_v21  ;;  %v12800_v21 = vunpack.i.h.bf16 %v17671_v49  ;;  %v20169_v2 = vld [vmem:[#allocation22_spill] sm:$0xff] }
 0x407   : > { %11179 = vmatprep.mubr.msk.bf16.mxu1 %vm1578_vm3, %v4704_v25  ;;  %v4459_v17 = vsel %vm20161_vm10, %v4419_v35, %v12759_v32  ;;  %v4460_v46 = vsel %vm20162_vm4, %v4420_v54, %v12760_v56  ;;  %v1408_v54 = vsub.s32 %v20169_v2, %v1407_v34  ;;  %vm20174_vm10 = vmmov %vm20162_vm4 }
 0x408   : > { %v12763_v51 = vpop.permute.xlu0 %12762 }
 0x409   : > { %v12765_v6 = vunpack.i.h.bf16 %v12763_v51  ;;  %v12764_v13 = vunpack.i.l.bf16 %v12763_v51  ;;  %v12856_v51 = vpack.i.bf16 %v5397_v61, %v5396_v57  ;;  %vm1500_vm2 = vcmp.ne.s32.totalorder %v1408_v54, 0 }
 0x40a   : > { %vm1510_vm14 = vcmp.lt.s32.totalorder %v1408_v54, 0 }
 0x40b   : > { %v4500_v30 = vsel %vm4465_vm5, %v4459_v17, %v12764_v13  ;;  %v4501_v39 = vsel %vm4465_vm5, %v4460_v46, %v12765_v6  ;;  %12857 = vrot.lane.b32.xlu0 %v12856_v51, %s19551_s20  ;;  %vm17735_vm8 = vmand %vm1510_vm14, %vm1500_vm2 }
 0x40c   : > { %v12773_v44 = vpop.permute.xlu0 %12772  ;;  %v4541_v7 = vsel %vm19456_vm11, %v4500_v30, %v12769_v8  ;;  %v4542_v41 = vsel %vm19456_vm11, %v4501_v39, %v12770_v18  ;;  %v1530_v30 = vadd.s32 20, %v1408_v54  ;;  %v12810_v39 = vunpack.i.h.bf16 %v17703_v36  ;;  %v12818_v18 = vpop.permute.xlu1 %12817  ;;  %vm20179_vm14 = vmmov %vm20162_vm4 }
 0x40d   : > { %v12775_v58 = vunpack.i.h.bf16 %v12773_v44  ;;  %v12774_v20 = vunpack.i.l.bf16 %v12773_v44  ;;  %v4881_v5 = vpop.f32.mrb[0].mxu1  ;;  %v17746_v44 = vsel %vm17727_vm1, %v1529_v4, %v17669_v11  ;;  %vm20177_vm1 = vcmask 654336  }
 0x40e   : > { %v4882_v33 = vadd.f32 %v17682_v38, %v4881_v5  ;;  %v4883_v62 = vpop.f32.mrb[1].mxu1  ;;  %v5407_v5 = vld [vmem:[#allocation7 + $0xa] sm:$0xff]  ;;  %v17755_v11 = vsel %vm17735_vm8, %v1530_v30, %v1408_v54  ;;  %vm1559_vm7 = vcmp.lt.s32.totalorder %v17746_v44, 19  ;;  %vm20178_vm2 = vmmov %vm20177_vm1 }
 0x40f   : > { %v4581_v42 = vsel %vm20164_vm13, %v4541_v7, %v12774_v20  ;;  %v4582_v63 = vsel %vm20165_vm15, %v4542_v41, %v12775_v58  ;;  %v4884_v16 = vpop.f32.mrb[2].mxu1  ;;  %vm20176_vm13 = vmmov %vm20162_vm4  ;;  %vm1560_vm15 = vcmp.lt.s32.totalorder %v17755_v11, 19 }
 0x410   : > { %v5040_v55 = vmax.f32 %v4882_v33, 0.0  ;;  %v4885_v29 = vadd.f32 %v17682_v38, %v4884_v16  ;;  %v4886_v59 = vpop.f32.mrb[3].mxu1  ;;  %v4622_v19 = vsel %vm19454_vm9, %v4581_v42, %v12779_v1  ;;  %v4623_v31 = vsel %vm19454_vm9, %v4582_v63, %v12780_v47  ;;  %v5406_v63 = vld [vmem:[#allocation7 + $0x2] sm:$0xff] }
 0x411   : > { %v12783_v0 = vpop.permute.xlu0 %12782  ;;  %v12809_v33 = vunpack.i.l.bf16 %v17703_v36  ;;  %v5437_v14 = vsel %vm1560_vm15, %v5407_v5, 0.0 }
 0x412   : > { %v12785_v3 = vunpack.i.h.bf16 %v12783_v0  ;;  %v12784_v24 = vunpack.i.l.bf16 %v12783_v0  ;;  %v5086_v22 = vmul.f32 %v17708_v26, %v5040_v55  ;;  %v5041_v35 = vmax.f32 %v4885_v29, 0.0  ;;  %v12828_v55 = vpop.permute.xlu1 %12827 }
 0x413   : > { %v12829_v48 = vunpack.i.l.bf16 %v12828_v55 }
 0x414   : > { %v4663_v25 = vsel %vm4628_vm12, %v4622_v19, %v12784_v24  ;;  %v4664_v43 = vsel %vm4628_vm12, %v4623_v31, %v12785_v3  ;;  %v5132_v17 = vadd.f32 %v17717_v52, %v5086_v22  ;;  %v5087_v46 = vmul.f32 %v17708_v26, %v5041_v35 }
 0x415   : > { %v4703_v32 = vpack.c.bf16 %v4664_v43, %v4663_v25  ;;  %v4889_v49 = vpop.f32.mrb[4].mxu1  ;;  %v12819_v3 = vunpack.i.l.bf16 %v12818_v18  ;;  %v3334_v19 = vsel %vm1388_vm0, %v3294_v60, 0.0  ;;  %vm20180_vm0 = vmmov %vm20162_vm4 }
 0x416   : > { %v12793_v56 = vpop.permute.xlu0 %12792  ;;  %5172 = vst.msk [vmem:[#allocation6] sm:$0xff] %vm20175_vm6, %v5132_v17  ;;  %v5133_v53 = vadd.f32 %v17717_v52, %v5087_v46  ;;  %v4890_v58 = vadd.f32 %v17682_v38, %v4889_v49  ;;  %v4891_v42 = vpop.f32.mrb[5].mxu1  ;;  %v4708_v35 = vpack.c.bf16 %v3334_v19, %v17686_v9  ;;  %v12830_v46 = vunpack.i.h.bf16 %v12828_v55  ;;  %vm20183_vm8 = vmmov %vm20180_vm0 }
 0x417   : > { %v12795_v13 = vunpack.i.h.bf16 %v12793_v56  ;;  %v12794_v37 = vunpack.i.l.bf16 %v12793_v56  ;;  %5016 = vmatmul.mubr.bf16.gmra.mrb[68].mxu1 %v4703_v32  ;;  %v4892_v12 = vpop.f32.mrb[6].mxu1  ;;  %v12838_v6 = vpop.permute.xlu1 %12837  ;;  %vm20189_vm6 = vmmov %vm20180_vm0 }
 0x418   : > { %11180 = vmatprep.mubr.msk.bf16.mxu1 %vm1578_vm3, %v4706_v40  ;;  %5173 = vst.msk [vmem:[#allocation6 + $0x8] sm:$0xff] %vm20176_vm13, %v5133_v53  ;;  %v5042_v4 = vmax.f32 %v4890_v58, 0.0  ;;  %v4893_v47 = vadd.f32 %v17682_v38, %v4892_v12  ;;  %v4894_v1 = vpop.f32.mrb[7].mxu1  ;;  %v12840_v58 = vunpack.i.h.bf16 %v12838_v6  ;;  %vm20190_vm13 = vmmov %vm20180_vm0 }
 0x419   : > { %v4462_v8 = vsel %vm20174_vm10, %v4422_v27, %v12795_v13  ;;  %v4461_v10 = vsel %vm20162_vm4, %v4421_v28, %v12794_v37  ;;  %v5436_v27 = vsel %vm1559_vm7, %v5406_v63, 0.0  ;;  %v12820_v28 = vunpack.i.h.bf16 %v12818_v18  ;;  %v20181_v13 = vld [vmem:[#allocation35_spill] sm:$0xff]  ;;  %vm20184_vm10 = vmmov %vm20180_vm0 }
 0x41a   : > { %v12803_v20 = vpop.permute.xlu0 %12802  ;;  %v4502_v7 = vsel %vm4465_vm5, %v4461_v10, %v12799_v15  ;;  %v4503_v41 = vsel %vm4465_vm5, %v4462_v8, %v12800_v21  ;;  %v5088_v24 = vmul.f32 %v17708_v26, %v5042_v4  ;;  %v5043_v16 = vmax.f32 %v4893_v47, 0.0  ;;  %v20182_v15 = vld [vmem:[#allocation151_spill] sm:$0xff]  ;;  %vm20186_vm4 = vmmov %vm20177_vm1 }
 0x41b   : > { %v12805_v40 = vunpack.i.h.bf16 %v12803_v20  ;;  %v12804_v50 = vunpack.i.l.bf16 %v12803_v20  ;;  %v12861_v36 = vpack.i.bf16 %v5437_v14, %v5436_v27  ;;  %v12848_v53 = vpop.permute.xlu1 %12847  ;;  %v12839_v20 = vunpack.i.l.bf16 %v12838_v6 }
 0x41c   : > { %v5134_v31 = vadd.f32 %v17717_v52, %v5088_v24  ;;  %v5089_v21 = vmul.f32 %v17708_v26, %v5043_v16 }
 0x41d   : > { %v4543_v0 = vsel %vm19456_vm11, %v4502_v7, %v12804_v50  ;;  %v4544_v62 = vsel %vm19456_vm11, %v4503_v41, %v12805_v40  ;;  %12862 = vrot.lane.b32.xlu0 %v12861_v36, %s13596_s13  ;;  %v12850_v40 = vunpack.i.h.bf16 %v12848_v53  ;;  %v12849_v50 = vunpack.i.l.bf16 %v12848_v53 }
 0x41e   : > { %v12813_v34 = vpop.permute.xlu0 %12812  ;;  %v4583_v25 = vsel %vm20177_vm1, %v4543_v0, %v12809_v33  ;;  %v4584_v43 = vsel %vm20178_vm2, %v4544_v62, %v12810_v39  ;;  %5174 = vst.msk [vmem:[#allocation6 + $0x10] sm:$0xff] %vm20179_vm14, %v5134_v31  ;;  %v5135_v23 = vadd.f32 %v17717_v52, %v5089_v21  ;;  %vm20193_vm2 = vmmov %vm20180_vm0 }
 0x41f   : > { %v12815_v29 = vunpack.i.h.bf16 %v12813_v34  ;;  %v12814_v59 = vunpack.i.l.bf16 %v12813_v34  ;;  %v5212_v6 = vld [vmem:[#allocation6] ss:$2 sm:$0xff]  ;;  %vm20194_vm14 = vmmov %vm20180_vm0 }
 0x420   : > { %5175 = vst.msk [vmem:[#allocation6 + $0x18] sm:$0xff] %vm20180_vm0, %v5135_v23 }
 0x421   : > { %v4624_v57 = vsel %vm19454_vm9, %v4583_v25, %v12814_v59  ;;  %v4625_v61 = vsel %vm19454_vm9, %v4584_v43, %v12815_v29 }
 0x422   : > { %v12823_v2 = vpop.permute.xlu0 %12822  ;;  %v4665_v54 = vsel %vm4628_vm12, %v4624_v57, %v12819_v3  ;;  %v4666_v22 = vsel %vm4628_vm12, %v4625_v61, %v12820_v28 }
 0x423   : > { %v12825_v56 = vunpack.i.h.bf16 %v12823_v2  ;;  %v12824_v32 = vunpack.i.l.bf16 %v12823_v2  ;;  %v4705_v51 = vpack.c.bf16 %v4666_v22, %v4665_v54 }
 0x425   : > { %v4424_v37 = vsel %vm1578_vm3, %v20181_v13, %v12825_v56  ;;  %v4423_v17 = vsel %vm1578_vm3, %v20182_v15, %v12824_v32  ;;  %5024 = vmatmul.mubr.bf16.gmra.mrb[72].mxu1 %v4705_v51  ;;  %v5218_v13 = vld [vmem:[#allocation6 + $0x1] ss:$2 sm:$0xff] }
 0x426   : > { %v12833_v30 = vpop.permute.xlu0 %12832  ;;  %11181 = vmatprep.mubr.msk.bf16.mxu1 %vm1578_vm3, %v4708_v35  ;;  %v4463_v18 = vsel %vm20183_vm8, %v4423_v17, %v12829_v48  ;;  %v4464_v8 = vsel %vm20184_vm10, %v4424_v37, %v12830_v46  ;;  %vm20185_vm3 = vmmov %vm20177_vm1  ;;  %v5223_v17 = vmax.f32 %v5212_v6, %v5218_v13  ;;  %vm5246_vm10 = vcmask 257024   ;;  %v20198_v13 = vld [vmem:[#allocation24_spill] sm:$0xff] }
 0x427   : > { %v12835_v39 = vunpack.i.h.bf16 %v12833_v30  ;;  %v12834_v9 = vunpack.i.l.bf16 %v12833_v30  ;;  %vm20191_vm1 = vmmov %vm20180_vm0 }
 0x428   : > { %vm20197_vm8 = vmmov %vm20180_vm0 }
 0x429   : > { %v4504_v10 = vsel %vm4465_vm5, %v4463_v18, %v12834_v9  ;;  %v4505_v49 = vsel %vm4465_vm5, %v4464_v8, %v12835_v39  ;;  %vm20187_vm5 = vmmov %vm20180_vm0 }
 0x42a   : > { %v12843_v7 = vpop.permute.xlu0 %12842  ;;  %v4545_v63 = vsel %vm19456_vm11, %v4504_v10, %v12839_v20  ;;  %v4546_v5 = vsel %vm19456_vm11, %v4505_v49, %v12840_v58 }
 0x42b   : > { %v12845_v41 = vunpack.i.h.bf16 %v12843_v7  ;;  %v12844_v42 = vunpack.i.l.bf16 %v12843_v7  ;;  %v4897_v0 = vpop.f32.mrb[8].mxu1 }
 0x42c   : > { %v4898_v28 = vadd.f32 %v17682_v38, %v4897_v0  ;;  %v4899_v3 = vpop.f32.mrb[9].mxu1 }
 0x42d   : > { %v4585_v12 = vsel %vm20185_vm3, %v4545_v63, %v12844_v42  ;;  %v4586_v4 = vsel %vm20186_vm4, %v4546_v5, %v12845_v41  ;;  %v4900_v16 = vpop.f32.mrb[10].mxu1  ;;  %v20192_v42 = vld [vmem:[#allocation28_spill] sm:$0xff]  ;;  %vm20199_vm3 = vmmov %vm20180_vm0 }
 0x42e   : > { %v12853_v47 = vpop.permute.xlu0 %12852  ;;  %v4626_v27 = vsel %vm19454_vm9, %v4585_v12, %v12849_v50  ;;  %v4627_v33 = vsel %vm19454_vm9, %v4586_v4, %v12850_v40  ;;  %v5044_v34 = vmax.f32 %v4898_v28, 0.0  ;;  %v4901_v55 = vadd.f32 %v17682_v38, %v4900_v16  ;;  %v4902_v29 = vpop.f32.mrb[11].mxu1  ;;  %v5220_v28 = vld [vmem:[#allocation6 + $0x11] ss:$2 sm:$0xff] }
 0x42f   : > { %v12855_v1 = vunpack.i.h.bf16 %v12853_v47  ;;  %v12854_v60 = vunpack.i.l.bf16 %v12853_v47  ;;  %v1428_v63 = vshrl.u32 %v20192_v42, 4 }
 0x430   : > { %v5090_v59 = vmul.f32 %v17708_v26, %v5044_v34  ;;  %v5045_v19 = vmax.f32 %v4901_v55, 0.0 }
 0x431   : > { %v4667_v62 = vsel %vm4628_vm12, %v4626_v27, %v12854_v60  ;;  %v4668_v14 = vsel %vm4628_vm12, %v4627_v33, %v12855_v1  ;;  %vm20188_vm12 = vmmov %vm20180_vm0  ;;  %v20195_v60 = vld [vmem:[#allocation27_spill] sm:$0xff]  ;;  %v1429_v33 = vmul.u32 20, %v1428_v63 }
 0x432   : > { %v4707_v24 = vpack.c.bf16 %v4668_v14, %v4667_v62  ;;  %v5136_v36 = vadd.f32 %v17717_v52, %v5090_v59  ;;  %v5091_v31 = vmul.f32 %v17708_v26, %v5045_v19  ;;  %v1417_v27 = vshrl.u32 %v20195_v60, 4  ;;  %v5214_v14 = vld [vmem:[#allocation6 + $0x10] ss:$2 sm:$0xff] }
 0x433   : > { %v4905_v21 = vpop.f32.mrb[12].mxu1 }
 0x434   : > { %5032 = vmatmul.mubr.bf16.gmra.mrb[76].mxu1 %v4707_v24  ;;  %5176 = vst.msk [vmem:[#allocation6 + $0x20] sm:$0xff] %vm20187_vm5, %v5136_v36  ;;  %v5137_v25 = vadd.f32 %v17717_v52, %v5091_v31  ;;  %v4906_v43 = vadd.f32 %v17682_v38, %v4905_v21  ;;  %v4907_v57 = vpop.f32.mrb[13].mxu1  ;;  %v1418_v19 = vmul.u32 20, %v1417_v27  ;;  %v20196_v36 = vld [vmem:[#allocation25_spill] sm:$0xff]  ;;  %v5224_v21 = vmax.f32 %v5214_v14, %v5220_v28 }
 0x435   : > { %v4908_v61 = vpop.f32.mrb[14].mxu1  ;;  %v1430_v31 = vsub.s32 %v20196_v36, %v1429_v33 }
 0x436   : > { %5177 = vst.msk [vmem:[#allocation6 + $0x28] sm:$0xff] %vm20188_vm12, %v5137_v25  ;;  %v5046_v23 = vmax.f32 %v4906_v43, 0.0  ;;  %v4909_v2 = vadd.f32 %v17682_v38, %v4908_v61  ;;  %v4910_v54 = vpop.f32.mrb[15].mxu1 }
 0x437   : > { %vm1502_vm4 = vcmp.ne.s32.totalorder %v1430_v31, 0  ;;  %vm1512_vm5 = vcmp.lt.s32.totalorder %v1430_v31, 0 }
 0x438   : > { %v5092_v22 = vmul.f32 %v17708_v26, %v5046_v23  ;;  %v5047_v35 = vmax.f32 %v4909_v2, 0.0 }
 0x43a   : > { %v5138_v56 = vadd.f32 %v17717_v52, %v5092_v22  ;;  %v5093_v32 = vmul.f32 %v17708_v26, %v5047_v35 }
 0x43b   : > { %v5216_v3 = vld [vmem:[#allocation6 + $0x20] ss:$2 sm:$0xf]  ;;  %v5222_v24 = vld [vmem:[#allocation6 + $0x21] ss:$2 sm:$0xf] }
 0x43c   : > { %5178 = vst.msk [vmem:[#allocation6 + $0x30] sm:$0xff] %vm20189_vm6, %v5138_v56  ;;  %v5139_v51 = vadd.f32 %v17717_v52, %v5093_v32  ;;  %v5225_v54 = vmax.f32 %v5216_v3, %v5222_v24 }
 0x43e   : > { %5179 = vst.msk [vmem:[#allocation6 + $0x38] sm:$0xff] %vm20190_vm13, %v5139_v51  ;;  %vm1522_vm13 = vmand %vm1512_vm5, %vm1502_vm4 }
 0x43f   : > { %vm20201_vm4 = vmmov %vm20180_vm0 }
 0x443   : > { %v5227_v37 = vld [vmem:[#allocation6 + $0x28] ss:$2 sm:$0xff]  ;;  %v5233_v15 = vld [vmem:[#allocation6 + $0x29] ss:$2 sm:$0xff] }
 0x444   : > { %v5238_v46 = vmax.f32 %v5227_v37, %v5233_v15  ;;  %v1419_v37 = vsub.s32 %v20198_v13, %v1418_v19 }
 0x446   : > { %v5241_v48 = vmax.f32 %v5223_v17, %v5238_v46  ;;  %vm1501_vm12 = vcmp.ne.s32.totalorder %v1419_v37, 0  ;;  %vm1511_vm6 = vcmp.lt.s32.totalorder %v1419_v37, 0 }
 0x448   : > { %5244 = vst.msk [vmem:[#allocation7 + $0x15] sm:$0xff] %vm20191_vm1, %v5241_v48  ;;  %vm20200_vm1 = vmmov %vm20180_vm0 }
 0x44f   : > { %v5408_v19 = vld [vmem:[#allocation7 + $0x12] sm:$0xff] }
 0x46e   : > { %v4913_v30 = vpop.f32.mrb[16].mxu1 }
 0x46f   : > { %v4914_v39 = vadd.f32 %v17682_v38, %v4913_v30  ;;  %v4915_v9 = vpop.f32.mrb[17].mxu1  ;;  %v1532_v30 = vadd.s32 20, %v1430_v31 }
 0x470   : > { %v4916_v18 = vpop.f32.mrb[18].mxu1 }
 0x471   : > { %v5048_v8 = vmax.f32 %v4914_v39, 0.0  ;;  %v4917_v10 = vadd.f32 %v17682_v38, %v4916_v18  ;;  %v4918_v49 = vpop.f32.mrb[19].mxu1  ;;  %v17850_v42 = vsel %vm1522_vm13, %v1532_v30, %v1430_v31  ;;  %vm20204_vm13 = vmmov %vm20180_vm0 }
 0x472   : > { %vm19460_vm9 = vcmp.gt.s32.totalorder %v17850_v42, 0 }
 0x473   : > { %v5094_v53 = vmul.f32 %v17708_v26, %v5048_v8  ;;  %v5049_v58 = vmax.f32 %v4917_v10, 0.0 }
 0x475   : > { %v5140_v20 = vadd.f32 %v17717_v52, %v5094_v53  ;;  %v5095_v7 = vmul.f32 %v17708_v26, %v5049_v58  ;;  %v1531_v53 = vadd.s32 20, %v1419_v37 }
 0x476   : > { %v4921_v41 = vpop.f32.mrb[20].mxu1 }
 0x477   : > { %5180 = vst.msk [vmem:[#allocation6 + $0x40] sm:$0xff] %vm20193_vm2, %v5140_v20  ;;  %v5141_v5 = vadd.f32 %v17717_v52, %v5095_v7  ;;  %v4922_v40 = vadd.f32 %v17682_v38, %v4921_v41  ;;  %v4923_v50 = vpop.f32.mrb[21].mxu1  ;;  %v5398_v41 = vld [vmem:[#allocation7 + $0x11] sm:$0xff]  ;;  %vm1550_vm2 = vcmp.gt.s32.totalorder %v17755_v11, 0 }
 0x478   : > { %v4924_v12 = vpop.f32.mrb[22].mxu1 }
 0x479   : > { %5181 = vst.msk [vmem:[#allocation6 + $0x48] sm:$0xff] %vm20194_vm14, %v5141_v5  ;;  %v5050_v4 = vmax.f32 %v4922_v40, 0.0  ;;  %v4925_v47 = vadd.f32 %v17682_v38, %v4924_v12  ;;  %v4926_v1 = vpop.f32.mrb[23].mxu1  ;;  %vm1521_vm14 = vmand %vm1511_vm6, %vm1501_vm12 }
 0x47a   : > { %v17857_v27 = vsel %vm1521_vm14, %v1531_v53, %v1419_v37  ;;  %vm20202_vm12 = vmmov %vm20180_vm0 }
 0x47b   : > { %v5096_v0 = vmul.f32 %v17708_v26, %v5050_v4  ;;  %v5051_v62 = vmax.f32 %v4925_v47, 0.0  ;;  %v5446_v47 = vld [vmem:[#allocation7 + $0x14] sm:$0xff]  ;;  %vm1561_vm5 = vcmp.lt.s32.totalorder %v17857_v27, 19  ;;  %vm20203_vm6 = vmmov %vm20180_vm0 }
 0x47c   : > { %vm20208_vm14 = vmmov %vm20180_vm0 }
 0x47d   : > { %v5142_v16 = vadd.f32 %v17717_v52, %v5096_v0  ;;  %v5097_v34 = vmul.f32 %v17708_v26, %v5051_v62 }
 0x47e   : > { %v5229_v55 = vld [vmem:[#allocation6 + $0x38] ss:$2 sm:$0xff]  ;;  %v5235_v29 = vld [vmem:[#allocation6 + $0x39] ss:$2 sm:$0xff]  ;;  %v4929_v59 = vpop.f32.mrb[24].mxu1 }
 0x47f   : > { %v5239_v25 = vmax.f32 %v5229_v55, %v5235_v29  ;;  %5182 = vst.msk [vmem:[#allocation6 + $0x50] sm:$0xff] %vm20180_vm0, %v5142_v16  ;;  %v5143_v43 = vadd.f32 %v17717_v52, %v5097_v34  ;;  %v4930_v57 = vadd.f32 %v17682_v38, %v4929_v59  ;;  %v4931_v61 = vpop.f32.mrb[25].mxu1 }
 0x480   : > { %v5231_v23 = vld [vmem:[#allocation6 + $0x48] ss:$2 sm:$0xf]  ;;  %v5237_v2 = vld [vmem:[#allocation6 + $0x49] ss:$2 sm:$0xf] }
 0x481   : > { %v5242_v22 = vmax.f32 %v5224_v21, %v5239_v25  ;;  %v5240_v35 = vmax.f32 %v5231_v23, %v5237_v2  ;;  %5183 = vst.msk [vmem:[#allocation6 + $0x58] sm:$0xff] %vm20197_vm8, %v5143_v43  ;;  %v5052_v56 = vmax.f32 %v4930_v57, 0.0  ;;  %v4932_v32 = vpop.f32.mrb[26].mxu1  ;;  %vm19457_vm8 = vcmp.gt.s32.totalorder %v17746_v44, 0 }
 0x482   : > { %v4933_v51 = vadd.f32 %v17682_v38, %v4932_v32  ;;  %v4934_v6 = vpop.f32.mrb[27].mxu1  ;;  %v5456_v16 = vsel %vm19457_vm8, %v5446_v47, 0.0  ;;  %v5438_v57 = vsel %vm1561_vm5, %v5408_v19, 0.0 }
 0x483   : > { %5245 = vst.msk [vmem:[#allocation7 + $0x1d] sm:$0xff] %vm20199_vm3, %v5242_v22  ;;  %v5243_v15 = vmax.f32 %v5225_v54, %v5240_v35  ;;  %v5098_v17 = vmul.f32 %v17708_v26, %v5052_v56  ;;  %vm1562_vm3 = vcmp.lt.s32.totalorder %v17850_v42, 19 }
 0x484   : > { %v5053_v46 = vmax.f32 %v4933_v51, 0.0 }
 0x485   : > { %v5144_v48 = vadd.f32 %v17717_v52, %v5098_v17  ;;  %5247 = vst.msk [vmem:[#allocation7 + $0x25] sm:$0xf] %vm5246_vm10, %v5243_v15  ;;  %v13015_v17 = vld [vmem:[%s19170_s9 + $0x40] sm:$0xff]  }
 0x486   : > { %v5099_v39 = vmul.f32 %v17708_v26, %v5053_v46  ;;  %v4937_v9 = vpop.f32.mrb[28].mxu1  ;;  %v13016_v46 = vld [vmem:[%s19170_s9] sm:$0xff]   ;;  %11609 = vmatprep.subr.bf16.mxu0 %v13015_v17 }
 0x487   : > { %5184 = vst.msk [vmem:[#allocation6 + $0x60] sm:$0xff] %vm20200_vm1, %v5144_v48  ;;  %v4938_v18 = vadd.f32 %v17682_v38, %v4937_v9  ;;  %v4939_v8 = vpop.f32.mrb[29].mxu1  ;;  %v13017_v48 = vld [vmem:[%s19170_s9 + $0x48] sm:$0xff]   ;;  %11610 = vmatpush3.bf16.msra.mxu0 %v13016_v46  ;;  %vm20206_vm1 = vmmov %vm20180_vm0 }
 0x488   : > { %v5145_v10 = vadd.f32 %v17717_v52, %v5099_v39  ;;  %v4940_v49 = vpop.f32.mrb[30].mxu1  ;;  %v5249_v30 = vld [vmem:[#allocation6 + $0x50] ss:$2 sm:$0xff]  ;;  %v5255_v39 = vld [vmem:[#allocation6 + $0x51] ss:$2 sm:$0xff]  ;;  %11611 = vmatprep.subr.bf16.mxu0 %v13017_v48 }
 0x489   : > { %v5054_v58 = vmax.f32 %v4938_v18, 0.0  ;;  %v4941_v20 = vadd.f32 %v17682_v38, %v4940_v49  ;;  %v4942_v7 = vpop.f32.mrb[31].mxu1 }
 0x48a   : > { %5185 = vst.msk [vmem:[#allocation6 + $0x68] sm:$0xff] %vm20180_vm0, %v5145_v10  ;;  %v5399_v63 = vld [vmem:[#allocation7 + $0x19] sm:$0xff]  ;;  %v5260_v7 = vmax.f32 %v5249_v30, %v5255_v39 }
 0x48b   : > { %v5476_v5 = vld [vmem:[#allocation7 + $0x16] sm:$0xff]  ;;  %v5100_v50 = vmul.f32 %v17708_v26, %v5054_v58  ;;  %v5055_v12 = vmax.f32 %v4941_v20, 0.0  ;;  %v12866_v4 = vpack.i.bf16 %v5399_v63, %v5398_v41  ;;  %v13018_v20 = vld [vmem:[%s19170_s9 + $0x8] sm:$0xff]  }
 0x48c   : > { %v5447_v40 = vld [vmem:[#allocation7 + $0x1c] sm:$0xff]  ;;  %v5486_v62 = vsel %vm1559_vm7, %v5476_v5, 0.0  ;;  %11612 = vmatpush3.bf16.msra.mxu0 %v13018_v20  ;;  %v13025_v20 = vld [vmem:[%s19170_s9 + $0x68] sm:$0xff]  }
 0x48d   : > { %v5477_v1 = vld [vmem:[#allocation7 + $0x1e] sm:$0xff]  ;;  %v5457_v60 = vsel %vm1550_vm2, %v5447_v40, 0.0  ;;  %v5146_v33 = vadd.f32 %v17717_v52, %v5100_v50  ;;  %v5101_v0 = vmul.f32 %v17708_v26, %v5055_v12  ;;  %12867 = vrot.lane.b32.xlu0 %v12866_v4, %s19551_s20  ;;  %v13019_v12 = vld [vmem:[%s19170_s9 + $0x50] sm:$0xff]  }
 0x48e   : > { %v5487_v14 = vsel %vm1560_vm15, %v5477_v1, 0.0  ;;  %v5409_v28 = vld [vmem:[#allocation7 + $0x1a] sm:$0xff]  ;;  %v4945_v3 = vpop.f32.mrb[32].mxu1  ;;  %v12871_v59 = vpack.i.bf16 %v5457_v60, %v5456_v16  ;;  %v20205_v40 = vld [vmem:[#allocation43_spill] sm:$0xff]  ;;  %v20207_v1 = vld [vmem:[#allocation36_spill] sm:$0xff]  ;;  %11613 = vmatprep.subr.bf16.mxu0 %v13019_v12 }
 0x48f   : > { %v12881_v24 = vpack.i.bf16 %v5487_v14, %v5486_v62  ;;  %5186 = vst.msk [vmem:[#allocation6 + $0x70] sm:$0xff] %vm20201_vm4, %v5146_v33  ;;  %v5147_v34 = vadd.f32 %v17717_v52, %v5101_v0  ;;  %v4946_v55 = vadd.f32 %v17682_v38, %v4945_v3  ;;  %v4947_v29 = vpop.f32.mrb[33].mxu1  ;;  %v5439_v31 = vsel %vm1562_vm3, %v5409_v28, 0.0  ;;  %v13020_v28 = vld [vmem:[%s19170_s9 + $0x10] sm:$0xff]   ;;  %vm20209_vm4 = vmmov %vm20180_vm0 }
 0x490   : > { %v4948_v36 = vpop.f32.mrb[34].mxu1  ;;  %v12876_v2 = vpack.i.bf16 %v5439_v31, %v5438_v57  ;;  %v1439_v50 = vshrl.u32 %v20205_v40, 4  ;;  %v1450_v60 = vshrl.u32 %v20207_v1, 4  ;;  %11614 = vmatpush3.bf16.msra.mxu0 %v13020_v28 }
 0x491   : > { %12882 = vrot.lane.b32.xlu1 %v12881_v24, %s19551_s20  ;;  %5187 = vst.msk [vmem:[#allocation6 + $0x78] sm:$0xff] %vm20202_vm12, %v5147_v34  ;;  %v5056_v21 = vmax.f32 %v4946_v55, 0.0  ;;  %v4949_v25 = vadd.f32 %v17682_v38, %v4948_v36  ;;  %v4950_v43 = vpop.f32.mrb[35].mxu1  ;;  %12872 = vrot.lane.b32.xlu0 %v12871_v59, %s13597_s27  ;;  %v13021_v34 = vld [vmem:[%s19170_s9 + $0x58] sm:$0xff]   ;;  %v5251_v55 = vld [vmem:[#allocation6 + $0x60] ss:$2 sm:$0xff]  ;;  %vm20212_vm12 = vmmov %vm20180_vm0 }
 0x492   : > { %v1440_v16 = vmul.u32 20, %v1439_v50  ;;  %v1451_v29 = vmul.u32 20, %v1450_v60  ;;  %v5257_v59 = vld [vmem:[#allocation6 + $0x61] ss:$2 sm:$0xff]  ;;  %v13022_v43 = vld [vmem:[%s19170_s9 + $0x18] sm:$0xff]   ;;  %11615 = vmatprep.subr.bf16.mxu0 %v13021_v34 }
 0x493   : > { %v5102_v61 = vmul.f32 %v17708_v26, %v5056_v21  ;;  %v5057_v23 = vmax.f32 %v4949_v25, 0.0 }
 0x494   : > { %11616 = vmatpush3.bf16.msra.mxu0 %v13022_v43 }
 0x495   : > { %v5148_v54 = vadd.f32 %v17717_v52, %v5102_v61  ;;  %v5103_v22 = vmul.f32 %v17708_v26, %v5057_v23  ;;  %12877 = vrot.lane.b32.xlu0 %v12876_v2, %s13596_s13 }
 0x496   : > { %v4953_v56 = vpop.f32.mrb[36].mxu1  ;;  %v5253_v19 = vld [vmem:[#allocation6 + $0x70] ss:$2 sm:$0xf] }
 0x497   : > { %5188 = vst.msk [vmem:[#allocation6 + $0x80] sm:$0xff] %vm20203_vm6, %v5148_v54  ;;  %v5149_v35 = vadd.f32 %v17717_v52, %v5103_v22  ;;  %v4954_v32 = vadd.f32 %v17682_v38, %v4953_v56  ;;  %v4955_v51 = vpop.f32.mrb[37].mxu1  ;;  %v5259_v21 = vld [vmem:[#allocation6 + $0x71] ss:$2 sm:$0xf]  ;;  %v13023_v56 = vld [vmem:[%s19170_s9 + $0x60] sm:$0xff]  }
 0x498   : > { %v4956_v6 = vpop.f32.mrb[38].mxu1  ;;  %v20210_v22 = vld [vmem:[#allocation40_spill] sm:$0xff]  ;;  %v5262_v48 = vmax.f32 %v5253_v19, %v5259_v21  ;;  %11617 = vmatprep.subr.bf16.mxu0 %v13023_v56 }
 0x499   : > { %5189 = vst.msk [vmem:[#allocation6 + $0x88] sm:$0xff] %vm20204_vm13, %v5149_v35  ;;  %v5058_v13 = vmax.f32 %v4954_v32, 0.0  ;;  %v4957_v37 = vadd.f32 %v17682_v38, %v4956_v6  ;;  %v4958_v15 = vpop.f32.mrb[39].mxu1  ;;  %v1441_v35 = vsub.s32 %v20210_v22, %v1440_v16  ;;  %v5261_v32 = vmax.f32 %v5251_v55, %v5257_v59  ;;  %v13028_v55 = vld [vmem:[%s19170_s9 + $0x30] sm:$0xff]  }
 0x49b   : > { %v5104_v9 = vmul.f32 %v17708_v26, %v5058_v13  ;;  %v5059_v18 = vmax.f32 %v4957_v37, 0.0  ;;  %v20211_v13 = vld [vmem:[#allocation34_spill] sm:$0xff]  ;;  %vm1503_vm6 = vcmp.ne.s32.totalorder %v1441_v35, 0  ;;  %vm1513_vm13 = vcmp.lt.s32.totalorder %v1441_v35, 0 }
 0x49c   : > { %v1452_v37 = vsub.s32 %v20211_v13, %v1451_v29  ;;  %v1533_v12 = vadd.s32 20, %v1441_v35 }
 0x49d   : > { %v5150_v49 = vadd.f32 %v17717_v52, %v5104_v9  ;;  %v5105_v53 = vmul.f32 %v17708_v26, %v5059_v18 }
 0x49e   : > { %v5264_v8 = vld [vmem:[#allocation6 + $0x78] ss:$2 sm:$0xff]  ;;  %v5270_v10 = vld [vmem:[#allocation6 + $0x79] ss:$2 sm:$0xff]  ;;  %v4961_v58 = vpop.f32.mrb[40].mxu1 }
 0x49f   : > { %v5275_v41 = vmax.f32 %v5264_v8, %v5270_v10  ;;  %v4962_v63 = vadd.f32 %v17682_v38, %v4961_v58  ;;  %v4963_v5 = vpop.f32.mrb[41].mxu1  ;;  %5190 = vst.msk [vmem:[#allocation6 + $0x90] sm:$0xff] %vm20206_vm1, %v5150_v49  ;;  %v5151_v4 = vadd.f32 %v17717_v52, %v5105_v53  ;;  %v5400_v8 = vld [vmem:[#allocation7 + $0x21] sm:$0xff]  ;;  %vm20213_vm1 = vmmov %vm20180_vm0 }
 0x4a0   : > { %v4964_v47 = vpop.f32.mrb[42].mxu1  ;;  %v13024_v49 = vld [vmem:[%s19170_s9 + $0x20] sm:$0xff]  }
 0x4a1   : > { %v5278_v33 = vmax.f32 %v5260_v7, %v5275_v41  ;;  %v5060_v0 = vmax.f32 %v4962_v63, 0.0  ;;  %v4965_v62 = vadd.f32 %v17682_v38, %v4964_v47  ;;  %v4966_v14 = vpop.f32.mrb[43].mxu1  ;;  %5191 = vst.msk [vmem:[#allocation6 + $0x98] sm:$0xff] %vm20208_vm14, %v5151_v4  ;;  %vm1504_vm14 = vcmp.ne.s32.totalorder %v1452_v37, 0  ;;  %11618 = vmatpush3.bf16.msra.mxu0 %v13024_v49  ;;  %v13026_v47 = vld [vmem:[%s19170_s9 + $0x28] sm:$0xff]  }
 0x4a2   : > { %v1534_v4 = vadd.s32 20, %v1452_v37  ;;  %11619 = vmatprep.subr.bf16.mxu0 %v13025_v20 }
 0x4a3   : > { %5281 = vst.msk [vmem:[#allocation7 + $0x29] sm:$0xff] %vm20180_vm0, %v5278_v33  ;;  %v5106_v3 = vmul.f32 %v17708_v26, %v5060_v0  ;;  %v5061_v24 = vmax.f32 %v4965_v62, 0.0  ;;  %vm1514_vm0 = vcmp.lt.s32.totalorder %v1452_v37, 0  ;;  %v13027_v0 = vld [vmem:[%s19170_s9 + $0x70] sm:$0xff]  }
 0x4a5   : > { %v5152_v36 = vadd.f32 %v17717_v52, %v5106_v3  ;;  %v5107_v31 = vmul.f32 %v17708_v26, %v5061_v24  ;;  %11620 = vmatpush3.bf16.msra.mxu0 %v13026_v47 }
 0x4a6   : > { %v4969_v25 = vpop.f32.mrb[44].mxu1  ;;  %v5266_v57 = vld [vmem:[#allocation6 + $0x88] ss:$2 sm:$0xff]  ;;  %v5272_v61 = vld [vmem:[#allocation6 + $0x89] ss:$2 sm:$0xff]  ;;  %11621 = vmatprep.subr.bf16.mxu0 %v13027_v0 }
 0x4a7   : > { %5192 = vst.msk [vmem:[#allocation6 + $0xa0] sm:$0xff] %vm20209_vm4, %v5152_v36  ;;  %v5153_v23 = vadd.f32 %v17717_v52, %v5107_v31  ;;  %v4970_v2 = vadd.f32 %v17682_v38, %v4969_v25  ;;  %v4971_v54 = vpop.f32.mrb[45].mxu1  ;;  %v5276_v51 = vmax.f32 %v5266_v57, %v5272_v61  ;;  %vm17953_vm4 = vmand %vm1513_vm13, %vm1503_vm6 }
 0x4a8   : > { %v4972_v6 = vpop.f32.mrb[46].mxu1  ;;  %v5268_v15 = vld [vmem:[#allocation6 + $0x98] ss:$2 sm:$0xf]  ;;  %vm20216_vm6 = vmmov %vm20213_vm1  ;;  %v17973_v16 = vsel %vm17953_vm4, %v1533_v12, %v1441_v35  ;;  %vm19455_vm4 = vcmask 254976  }
 0x4a9   : > { %v5274_v17 = vld [vmem:[#allocation6 + $0x99] ss:$2 sm:$0xf]  ;;  %5193 = vst.msk [vmem:[#allocation6 + $0xa8] sm:$0xff] %vm20212_vm12, %v5153_v23  ;;  %v4973_v46 = vadd.f32 %v17682_v38, %v4972_v6  ;;  %v5279_v30 = vmax.f32 %v5261_v32, %v5276_v51  ;;  %v5062_v9 = vmax.f32 %v4970_v2, 0.0  ;;  %v4974_v18 = vpop.f32.mrb[47].mxu1  ;;  %vm1524_vm12 = vmand %vm1514_vm0, %vm1504_vm14  ;;  %11622 = vmatpush3.bf16.msra.mxu0 %v13028_v55 }
 0x4aa   : > { %v5277_v39 = vmax.f32 %v5268_v15, %v5274_v17  ;;  %v17938_v10 = vld [vmem:[#allocation7 + $0x29] sm:$0xff]  ;;  %vm20217_vm13 = vmmov %vm20213_vm1  ;;  %v17975_v34 = vsel %vm1524_vm12, %v1534_v4, %v1452_v37  ;;  %vm19458_vm14 = vcmp.lt.s32.totalorder %v17973_v16, 19  ;;  %v13029_v23 = vld [vmem:[%s19170_s9 + $0x78] sm:$0xff]   ;;  %v20218_v51 = vmov 0.0  }
 0x4ab   : > { %v5063_v53 = vmax.f32 %v4973_v46, 0.0  ;;  %v12886_v58 = vpack.i.bf16 %v17938_v10, %v5400_v8  ;;  %5282 = vst.msk [vmem:[#allocation7 + $0x31] sm:$0xff] %vm20213_vm1, %v5279_v30  ;;  %v5108_v41 = vmul.f32 %v17708_v26, %v5062_v9  ;;  %v5448_v24 = vld [vmem:[#allocation7 + $0x24] sm:$0xff]  ;;  %vm1551_vm1 = vcmp.gt.s32.totalorder %v17857_v27, 0  ;;  %v13030_v15 = vld [vmem:[%s19170_s9 + $0x38] sm:$0xff]   ;;  %vm20219_vm12 = vmmov %vm20216_vm6  ;;  %11623 = vmatprep.subr.bf16.mxu0 %v13029_v23 }
 0x4ac   : > { %v5280_v7 = vmax.f32 %v5262_v48, %v5277_v39  ;;  %vm19459_vm0 = vcmp.lt.s32.totalorder %v17975_v34, 19  ;;  %v5458_v25 = vsel %vm1551_vm1, %v5448_v24, 0.0  ;;  %v17993_v57 = vld [vmem:[#allocation7 + $0x28] sm:$0xff]  ;;  %1648 = vst.msk [vmem:[#allocation7 + $0x78] sm:$0x3] %vm19455_vm4, %v20218_v51  ;;  %vm1553_vm11 = vcmp.gt.s32.totalorder %v17973_v16, 0 }
 0x4ad   : > { %v5109_v63 = vmul.f32 %v17708_v26, %v5063_v53  ;;  %12887 = vrot.lane.b32.xlu0 %v12886_v58, %s19551_s20  ;;  %v5154_v5 = vadd.f32 %v17717_v52, %v5108_v41  ;;  %v5410_v56 = vld [vmem:[#allocation7 + $0x22] sm:$0xff]  ;;  %v5501_v30 = vsel %vm19457_vm8, %v17993_v57, 0.0  ;;  %11624 = vmatpush3.bf16.msra.mxu0 %v13030_v15 }
 0x4ae   : > { %5283 = vst.msk [vmem:[#allocation7 + $0x39] sm:$0xf] %vm5246_vm10, %v5280_v7  ;;  %v4977_v40 = vpop.f32.mrb[48].mxu1  ;;  %v5440_v18 = vsel %vm19458_vm14, %v5410_v56, 0.0  ;;  %11806 = vmatprep.subr.bf16.mxu0 %v20218_v51 }
 0x4af   : > { %v5155_v1 = vadd.f32 %v17717_v52, %v5109_v63  ;;  %v4978_v60 = vadd.f32 %v17682_v38, %v4977_v40  ;;  %v4979_v33 = vpop.f32.mrb[49].mxu1  ;;  %5194 = vst.msk [vmem:[#allocation6 + $0xb0] sm:$0xff] %vm20216_vm6, %v5154_v5 }
 0x4b0   : > { %v4980_v62 = vpop.f32.mrb[50].mxu1  ;;  %v20221_v33 = vld [vmem:[#allocation44_spill] sm:$0xff] }
 0x4b1   : > { %5195 = vst.msk [vmem:[#allocation6 + $0xb8] sm:$0xff] %vm20217_vm13, %v5155_v1  ;;  %v5064_v14 = vmax.f32 %v4978_v60, 0.0  ;;  %v4981_v28 = vadd.f32 %v17682_v38, %v4980_v62  ;;  %v4982_v3 = vpop.f32.mrb[51].mxu1  ;;  %v1472_v0 = vshrl.u32 %v20221_v33, 4  ;;  %vm20225_vm13 = vmmov %vm20216_vm6 }
 0x4b2   : > { %v17981_v19 = vld [vmem:[#allocation7 + $0x31] sm:$0xff] }
 0x4b3   : > { %v5110_v29 = vmul.f32 %v17708_v26, %v5064_v14  ;;  %v5065_v59 = vmax.f32 %v4981_v28, 0.0  ;;  %v5449_v36 = vld [vmem:[#allocation7 + $0x2c] sm:$0xff]  ;;  %v12891_v21 = vpack.i.bf16 %v17981_v19, %v17938_v10 }
 0x4b4   : > { %v17983_v31 = vld [vmem:[#allocation7 + $0x30] sm:$0xff]  ;;  %v5459_v43 = vsel %vm19460_vm9, %v5449_v36, 0.0  ;;  %v5478_v10 = vld [vmem:[#allocation7 + $0x26] sm:$0xff]  ;;  %v1473_v36 = vmul.u32 20, %v1472_v0 }
 0x4b5   : > { %v5411_v61 = vld [vmem:[#allocation7 + $0x2a] sm:$0xff]  ;;  %v5156_v2 = vadd.f32 %v17717_v52, %v5110_v29  ;;  %v5111_v54 = vmul.f32 %v17708_v26, %v5065_v59  ;;  %v12906_v22 = vpack.i.bf16 %v5459_v43, %v5458_v25  ;;  %v5502_v35 = vsel %vm1550_vm2, %v17983_v31, 0.0  ;;  %12892 = vrot.lane.b32.xlu1 %v12891_v21, %s13597_s27  ;;  %v18008_v37 = vld [vmem:[#allocation7 + $0x32] sm:$0xff]  ;;  %v20223_v29 = vld [vmem:[#allocation39_spill] sm:$0xff] }
 0x4b6   : > { %v5479_v32 = vld [vmem:[#allocation7 + $0x2e] sm:$0xff]  ;;  %v4985_v6 = vpop.f32.mrb[52].mxu1  ;;  %v5441_v13 = vsel %vm19459_vm0, %v5411_v61, 0.0  ;;  %v12896_v9 = vpack.i.bf16 %v5502_v35, %v5501_v30  ;;  %v18024_v8 = vsel %vm1559_vm7, %v5411_v61, 0.0  ;;  %v18033_v41 = vsel %vm1560_vm15, %v18008_v37, 0.0  ;;  %vm20220_vm7 = vmmov %vm20216_vm6 }
 0x4b7   : > { %5196 = vst.msk [vmem:[#allocation6 + $0xc0] sm:$0xff] %vm20219_vm12, %v5156_v2  ;;  %v5157_v17 = vadd.f32 %v17717_v52, %v5111_v54  ;;  %v4986_v46 = vadd.f32 %v17682_v38, %v4985_v6  ;;  %12907 = vrot.lane.b32.xlu0 %v12906_v22, %s13597_s27  ;;  %v4987_v48 = vpop.f32.mrb[53].mxu1  ;;  %v5489_v49 = vsel %vm1562_vm3, %v5479_v32, 0.0  ;;  %v12911_v7 = vpack.i.bf16 %v5441_v13, %v5440_v18  ;;  %vm20222_vm15 = vmmov %vm20216_vm6  ;;  %v5285_v21 = vld [vmem:[#allocation6 + $0xa0] ss:$2 sm:$0xff]  ;;  %v20224_v6 = vld [vmem:[#allocation41_spill] sm:$0xff] }
 0x4b8   : > { %v4988_v39 = vpop.f32.mrb[54].mxu1  ;;  %v5828_v63 = vpack.c.bf16 %v18033_v41, %v18024_v8  ;;  %v5488_v50 = vsel %vm1561_vm5, %v5478_v10, 0.0  ;;  %v1461_v59 = vshrl.u32 %v20223_v29, 4  ;;  %v5291_v25 = vld [vmem:[#allocation6 + $0xa1] ss:$2 sm:$0xff]  ;;  %vm20226_vm12 = vmmov %vm20216_vm6 }
 0x4b9   : > { %5197 = vst.msk [vmem:[#allocation6 + $0xc8] sm:$0xff] %vm20216_vm6, %v5157_v17  ;;  %v5066_v53 = vmax.f32 %v4986_v46, 0.0  ;;  %v4989_v58 = vadd.f32 %v17682_v38, %v4988_v39  ;;  %v4990_v20 = vpop.f32.mrb[55].mxu1  ;;  %12897 = vrot.lane.b32.xlu1 %v12896_v9, %s13596_s13  ;;  %v12901_v12 = vpack.i.bf16 %v5489_v49, %v5488_v50  ;;  %v5296_v56 = vmax.f32 %v5285_v21, %v5291_v25  ;;  %v20227_v17 = vld [vmem:[#allocation37_spill] sm:$0xff]  ;;  %v18065_v18 = vld [vmem:[%s19167_s6] ss:$0 sm:$0xff] }
 0x4ba   : > { %v1462_v35 = vmul.u32 20, %v1461_v59  ;;  %v5287_v48 = vld [vmem:[#allocation6 + $0xb0] ss:$2 sm:$0xff]  ;;  %v5293_v39 = vld [vmem:[#allocation6 + $0xb1] ss:$2 sm:$0xff] }
 0x4bb   : > { %v5112_v5 = vmul.f32 %v17708_v26, %v5066_v53  ;;  %v5067_v40 = vmax.f32 %v4989_v58, 0.0  ;;  %12912 = vrot.lane.b32.xlu0 %v12911_v7, %s13596_s13  ;;  %v5297_v50 = vmax.f32 %v5287_v48, %v5293_v39  ;;  %v18080_v29 = vld [vmem:[%s19169_s8] ss:$0 sm:$0xff]  ;;  %v5450_v21 = vld [vmem:[#allocation7 + $0x34] sm:$0xff] }
 0x4bc   : > { %v1463_v46 = vsub.s32 %v20227_v17, %v1462_v35 }
 0x4bd   : > { %v5158_v4 = vadd.f32 %v17717_v52, %v5112_v5  ;;  %v5113_v47 = vmul.f32 %v17708_v26, %v5067_v40  ;;  %12902 = vrot.lane.b32.xlu1 %v12901_v12, %s19551_s20 }
 0x4be   : > { %v4993_v60 = vpop.f32.mrb[56].mxu1  ;;  %v5289_v9 = vld [vmem:[#allocation6 + $0xc0] ss:$2 sm:$0xf] }
 0x4bf   : > { %5198 = vst.msk [vmem:[#allocation6 + $0xd0] sm:$0xff] %vm20220_vm7, %v5158_v4  ;;  %v5159_v1 = vadd.f32 %v17717_v52, %v5113_v47  ;;  %v4994_v62 = vadd.f32 %v17682_v38, %v4993_v60  ;;  %v4995_v14 = vpop.f32.mrb[57].mxu1  ;;  %v5295_v49 = vld [vmem:[#allocation6 + $0xc1] ss:$2 sm:$0xf]  ;;  %v1535_v4 = vadd.s32 20, %v1463_v46 }
 0x4c0   : > { %v4996_v28 = vpop.f32.mrb[58].mxu1  ;;  %v18072_v60 = vld [vmem:[%s19168_s7] ss:$0 sm:$0xff] }
 0x4c1   : > { %5199 = vst.msk [vmem:[#allocation6 + $0xd8] sm:$0xff] %vm20222_vm15, %v5159_v1  ;;  %v5068_v3 = vmax.f32 %v4994_v62, 0.0  ;;  %v4997_v24 = vadd.f32 %v17682_v38, %v4996_v28  ;;  %v4998_v55 = vpop.f32.mrb[59].mxu1  ;;  %v1474_v38 = vsub.s32 %v20224_v6, %v1473_v36  ;;  %v5298_v62 = vmax.f32 %v5289_v9, %v5295_v49 }
 0x4c3   : > { %v5114_v43 = vmul.f32 %v17708_v26, %v5068_v3  ;;  %v5069_v61 = vmax.f32 %v4997_v24, 0.0  ;;  %vm1506_vm7 = vcmp.ne.s32.totalorder %v1474_v38, 0  ;;  %vm1516_vm15 = vcmp.lt.s32.totalorder %v1474_v38, 0 }
 0x4c4   : > { %v1536_v30 = vadd.s32 20, %v1474_v38 }
 0x4c5   : > { %v5160_v54 = vadd.f32 %v17717_v52, %v5114_v43  ;;  %v5115_v22 = vmul.f32 %v17708_v26, %v5069_v61 }
 0x4c6   : > { %v5300_v23 = vld [vmem:[#allocation6 + $0xc8] ss:$2 sm:$0xff]  ;;  %v5306_v2 = vld [vmem:[#allocation6 + $0xc9] ss:$2 sm:$0xff] }
 0x4c7   : > { %v5311_v32 = vmax.f32 %v5300_v23, %v5306_v2  ;;  %5200 = vst.msk [vmem:[#allocation6 + $0xe0] sm:$0xff] %vm20225_vm13, %v5160_v54  ;;  %v5161_v13 = vadd.f32 %v17717_v52, %v5115_v22  ;;  %vm1505_vm13 = vcmp.ne.s32.totalorder %v1463_v46, 0  ;;  %v5460_v2 = vsel %vm1553_vm11, %v5450_v21, 0.0 }
 0x4c9   : > { %v5314_v15 = vmax.f32 %v5296_v56, %v5311_v32  ;;  %5201 = vst.msk [vmem:[#allocation6 + $0xe8] sm:$0xff] %vm20226_vm12, %v5161_v13  ;;  %vm1526_vm12 = vmand %vm1516_vm15, %vm1506_vm7  ;;  %vm1554_vm7 = vcmp.gt.s32.totalorder %v17975_v34, 0 }
 0x4ca   : > { %v5001_v26 = vpop.f32.mrb[60].mxu1  ;;  %v18075_v0 = vsel %vm1526_vm12, %v1536_v30, %v1474_v38  ;;  %vm20228_vm12 = vcmask 261120  }
 0x4cb   : > { %5317 = vst.msk [vmem:[#allocation7 + $0x3d] sm:$0xff] %vm20216_vm6, %v5314_v15  ;;  %v5002_v52 = vadd.f32 %v18065_v18, %v5001_v26  ;;  %v5003_v10 = vpop.f32.mrb[61].mxu1  ;;  %vm1515_vm6 = vcmp.lt.s32.totalorder %v1463_v46, 0  ;;  %vm20229_vm4 = vmmov %vm20228_vm12  ;;  %vm19463_vm8 = vcmp.lt.s32.totalorder %v18075_v0, 19 }
 0x4cc   : > { %v5004_v53 = vpop.f32.mrb[62].mxu1  ;;  %vm1525_vm15 = vmand %vm1515_vm6, %vm1505_vm13 }
 0x4cd   : > { %v5070_v7 = vmax.f32 %v5002_v52, 0.0  ;;  %v5005_v5 = vadd.f32 %v18065_v18, %v5004_v53  ;;  %v5006_v40 = vpop.f32.mrb[63].mxu1  ;;  %v18099_v54 = vsel %vm1525_vm15, %v1535_v4, %v1463_v46  ;;  %vm20230_vm6 = vmmov %vm20229_vm4 }
 0x4ce   : > { %v5302_v58 = vld [vmem:[#allocation6 + $0xd8] ss:$2 sm:$0xff]  ;;  %v5308_v20 = vld [vmem:[#allocation6 + $0xd9] ss:$2 sm:$0xff]  ;;  %vm1565_vm13 = vcmp.lt.s32.totalorder %v18099_v54, 19  ;;  %vm20231_vm15 = vmmov %vm20229_vm4 }
 0x4cf   : > { %v5312_v12 = vmax.f32 %v5302_v58, %v5308_v20  ;;  %v5116_v33 = vmul.f32 %v18072_v60, %v5070_v7  ;;  %v5071_v3 = vmax.f32 %v5005_v5, 0.0  ;;  %v5442_v38 = vsel %vm1565_vm13, %v18008_v37, 0.0 }
 0x4d0   : > { %v5304_v47 = vld [vmem:[#allocation6 + $0xe8] ss:$2 sm:$0xf]  ;;  %v5310_v1 = vld [vmem:[#allocation6 + $0xe9] ss:$2 sm:$0xf] }
 0x4d1   : > { %v5315_v14 = vmax.f32 %v5297_v50, %v5312_v12  ;;  %v5313_v28 = vmax.f32 %v5304_v47, %v5310_v1  ;;  %v5162_v59 = vadd.f32 %v18080_v29, %v5116_v33  ;;  %v5117_v43 = vmul.f32 %v18072_v60, %v5071_v3 }
 0x4d2   : > { %v5403_v24 = vld [vmem:[#allocation7 + $0x39] sm:$0xff] }
 0x4d3   : > { %v5451_v55 = vld [vmem:[#allocation7 + $0x3c] sm:$0xff]  ;;  %v12916_v36 = vpack.i.bf16 %v5403_v24, %v17981_v19  ;;  %5318 = vst.msk [vmem:[#allocation7 + $0x45] sm:$0xff] %vm20228_vm12, %v5315_v14  ;;  %v5316_v25 = vmax.f32 %v5298_v62, %v5313_v28  ;;  %v5163_v23 = vadd.f32 %v18080_v29, %v5117_v43 }
 0x4d4   : > { %v5461_v61 = vsel %vm1554_vm7, %v5451_v55, 0.0  ;;  %5202 = vst.msk [vmem:[#allocation6 + $0xf0] sm:$0xff] %vm20229_vm4, %v5162_v59  ;;  %v5413_v19 = vld [vmem:[#allocation7 + $0x3a] sm:$0xff] }
 0x4d5   : > { %12917 = vrot.lane.b32.xlu0 %v12916_v36, %s19551_s20  ;;  %5319 = vst.msk [vmem:[#allocation7 + $0x4d] sm:$0xf] %vm5246_vm10, %v5316_v25  ;;  %v12921_v22 = vpack.i.bf16 %v5461_v61, %v5460_v2  ;;  %v5443_v35 = vsel %vm19463_vm8, %v5413_v19, 0.0  ;;  %v18113_v9 = vld [vmem:[#allocation7 + $0x38] sm:$0xff]  ;;  %v18136_v47 = vsel %vm1561_vm5, %v5413_v19, 0.0 }
 0x4d6   : > { %5203 = vst.msk [vmem:[#allocation6 + $0xf8] sm:$0xff] %vm20229_vm4, %v5163_v23  ;;  %v12926_v17 = vpack.i.bf16 %v5443_v35, %v5442_v38  ;;  %v5503_v20 = vsel %vm1551_vm1, %v18113_v9, 0.0  ;;  %v5480_v12 = vld [vmem:[#allocation7 + $0x36] sm:$0xff] }
 0x4d7   : > { %v5490_v14 = vsel %vm19458_vm14, %v5480_v12, 0.0 }
 0x4d9   : > { %12922 = vrot.lane.b32.xlu0 %v12921_v22, %s13597_s27  ;;  %v5009_v56 = vpop.f32.mrb[64].mxu1 }
 0x4da   : > { %v5010_v32 = vadd.f32 %v18065_v18, %v5009_v56  ;;  %v5011_v6 = vpop.f32.mrb[65].mxu1  ;;  %v5404_v15 = vld [vmem:[#allocation7 + $0x41] sm:$0xff] }
 0x4db   : > { %v5012_v13 = vpop.f32.mrb[66].mxu1  ;;  %v18110_v46 = vld [vmem:[#allocation7 + $0x40] sm:$0xff]  ;;  %v12931_v39 = vpack.i.bf16 %v5404_v15, %v5403_v24 }
 0x4dc   : > { %v5072_v48 = vmax.f32 %v5010_v32, 0.0  ;;  %v5013_v26 = vadd.f32 %v18065_v18, %v5012_v13  ;;  %v5014_v30 = vpop.f32.mrb[67].mxu1  ;;  %v5504_v52 = vsel %vm19460_vm9, %v18110_v46, 0.0  ;;  %v18119_v10 = vld [vmem:[#allocation7 + $0x49] sm:$0xff]  ;;  %v5481_v53 = vld [vmem:[#allocation7 + $0x3e] sm:$0xff] }
 0x4dd   : > { %12927 = vrot.lane.b32.xlu0 %v12926_v17, %s13596_s13  ;;  %12932 = vrot.lane.b32.xlu1 %v12931_v39, %s13597_s27  ;;  %v18123_v58 = vld [vmem:[#allocation7 + $0x42] sm:$0xff]  ;;  %v12946_v7 = vpack.i.bf16 %v18119_v10, %v5404_v15  ;;  %v12936_v50 = vpack.i.bf16 %v5504_v52, %v5503_v20  ;;  %v5491_v4 = vsel %vm19459_vm0, %v5481_v53, 0.0 }
 0x4de   : > { %v5118_v37 = vmul.f32 %v18072_v60, %v5072_v48  ;;  %v5073_v49 = vmax.f32 %v5013_v26, 0.0  ;;  %v18141_v1 = vsel %vm1562_vm3, %v18123_v58, 0.0  ;;  %v12941_v28 = vpack.i.bf16 %v5491_v4, %v5490_v14  ;;  %vm20232_vm3 = vmmov %vm20229_vm4  ;;  %v20234_v26 = vld [vmem:[#allocation46_spill] sm:$0xff] }
 0x4df   : > { %v5831_v62 = vpack.c.bf16 %v18141_v1, %v18136_v47  ;;  %vm20233_vm5 = vmmov %vm20232_vm3  ;;  %v1483_v30 = vshrl.u32 %v20234_v26, 4 }
 0x4e0   : > { %v5164_v5 = vadd.f32 %v18080_v29, %v5118_v37  ;;  %v5119_v40 = vmul.f32 %v18072_v60, %v5073_v49  ;;  %v20235_v37 = vld [vmem:[#allocation48_spill] sm:$0xff]  ;;  %vm20236_vm12 = vmmov %vm20232_vm3 }
 0x4e1   : > { %12947 = vrot.lane.b32.xlu0 %v12946_v7, %s19551_s20  ;;  %12937 = vrot.lane.b32.xlu1 %v12936_v50, %s13596_s13  ;;  %v1494_v49 = vshrl.u32 %v20235_v37, 4  ;;  %vm20237_vm4 = vmmov %vm20232_vm3  ;;  %v1484_v53 = vmul.u32 20, %v1483_v30  ;;  %v5321_v7 = vld [vmem:[#allocation6 + $0xf0] ss:$2 sm:$0xff] }
 0x4e2   : > { %5204 = vst.msk [vmem:[#allocation6 + $0x100] sm:$0xff] %vm20230_vm6, %v5164_v5  ;;  %v5165_v33 = vadd.f32 %v18080_v29, %v5119_v40  ;;  %v5327_v5 = vld [vmem:[#allocation6 + $0xf1] ss:$2 sm:$0xff]  ;;  %vm20240_vm14 = vmmov %vm20232_vm3 }
 0x4e3   : > { %v1495_v20 = vmul.u32 20, %v1494_v49  ;;  %v20238_v50 = vld [vmem:[#allocation45_spill] sm:$0xff]  ;;  %vm20241_vm9 = vmmov %vm20232_vm3 }
 0x4e4   : > { %5205 = vst.msk [vmem:[#allocation6 + $0x108] sm:$0xff] %vm20231_vm15, %v5165_v33  ;;  %v1485_v12 = vsub.s32 %v20238_v50, %v1484_v53  ;;  %v18198_v53 = vpop.permute.xlu0 %12857 }
 0x4e5   : > { %12942 = vrot.lane.b32.xlu1 %v12941_v28, %s19551_s20 }
 0x4e6   : > { %vm1507_vm6 = vcmp.ne.s32.totalorder %v1485_v12, 0  ;;  %vm1517_vm15 = vcmp.lt.s32.totalorder %v1485_v12, 0 }
 0x4ea   : > { %v5017_v3 = vpop.f32.mrb[68].mxu1 }
 0x4eb   : > { %v5018_v24 = vadd.f32 %v18065_v18, %v5017_v3  ;;  %v5019_v55 = vpop.f32.mrb[69].mxu1 }
 0x4ec   : > { %v5020_v59 = vpop.f32.mrb[70].mxu1 }
 0x4ed   : > { %v5074_v36 = vmax.f32 %v5018_v24, 0.0  ;;  %v5021_v21 = vadd.f32 %v18065_v18, %v5020_v59  ;;  %v5022_v25 = vpop.f32.mrb[71].mxu1  ;;  %v20239_v24 = vld [vmem:[#allocation47_spill] sm:$0xff]  ;;  %v5332_v59 = vmax.f32 %v5321_v7, %v5327_v5 }
 0x4ee   : > { %v1496_v55 = vsub.s32 %v20239_v24, %v1495_v20 }
 0x4ef   : > { %v5120_v43 = vmul.f32 %v18072_v60, %v5074_v36  ;;  %v5075_v61 = vmax.f32 %v5021_v21, 0.0 }
 0x4f1   : > { %v5166_v19 = vadd.f32 %v18080_v29, %v5120_v43  ;;  %v5121_v23 = vmul.f32 %v18072_v60, %v5075_v61 }
 0x4f3   : > { %5206 = vst.msk [vmem:[#allocation6 + $0x110] sm:$0xff] %vm20232_vm3, %v5166_v19  ;;  %v5167_v2 = vadd.f32 %v18080_v29, %v5121_v23 }
 0x4f5   : > { %5207 = vst.msk [vmem:[#allocation6 + $0x118] sm:$0xff] %vm20233_vm5, %v5167_v2  ;;  %v1537_v2 = vadd.s32 20, %v1485_v12  ;;  %vm1508_vm5 = vcmp.ne.s32.totalorder %v1496_v55, 0 }
 0x4f8   : > { %v5025_v22 = vpop.f32.mrb[72].mxu1 }
 0x4f9   : > { %v5026_v35 = vadd.f32 %v18065_v18, %v5025_v22  ;;  %v5027_v56 = vpop.f32.mrb[73].mxu1 }
 0x4fa   : > { %v5028_v32 = vpop.f32.mrb[74].mxu1  ;;  %v1538_v56 = vadd.s32 20, %v1496_v55  ;;  %v5331_v30 = vld [vmem:[#allocation6 + $0x111] ss:$2 sm:$0xf] }
 0x4fb   : > { %v5029_v6 = vadd.f32 %v18065_v18, %v5028_v32  ;;  %v5076_v38 = vmax.f32 %v5026_v35, 0.0  ;;  %v5030_v13 = vpop.f32.mrb[75].mxu1 }
 0x4fc   : > { %v5329_v13 = vld [vmem:[#allocation6 + $0x101] ss:$2 sm:$0xff] }
 0x4fd   : > { %v5077_v15 = vmax.f32 %v5029_v6, 0.0  ;;  %v5122_v17 = vmul.f32 %v18072_v60, %v5076_v38  ;;  %v5452_v6 = vld [vmem:[#allocation7 + $0x44] sm:$0xff] }
 0x4fe   : > { %v5323_v38 = vld [vmem:[#allocation6 + $0x100] ss:$2 sm:$0xff] }
 0x4ff   : > { %v5123_v48 = vmul.f32 %v18072_v60, %v5077_v15  ;;  %v5168_v39 = vadd.f32 %v18080_v29, %v5122_v17  ;;  %v18183_v15 = vld [vmem:[#allocation7 + $0x48] sm:$0xff]  ;;  %v5333_v50 = vmax.f32 %v5323_v38, %v5329_v13 }
 0x501   : > { %v5169_v52 = vadd.f32 %v18080_v29, %v5123_v48  ;;  %5208 = vst.msk [vmem:[#allocation6 + $0x120] sm:$0xff] %vm20236_vm12, %v5168_v39  ;;  %vm1518_vm12 = vcmp.lt.s32.totalorder %v1496_v55, 0 }
 0x502   : > { %vm1528_vm0 = vmand %vm1518_vm12, %vm1508_vm5 }
 0x503   : > { %5209 = vst.msk [vmem:[#allocation6 + $0x128] sm:$0xff] %vm20237_vm4, %v5169_v52  ;;  %vm1527_vm4 = vmand %vm1517_vm15, %vm1507_vm6  ;;  %v18185_v17 = vsel %vm1528_vm0, %v1538_v56, %v1496_v55  ;;  %vm1556_vm6 = vcmp.gt.s32.totalorder %v18075_v0, 0 }
 0x504   : > { %v18180_v32 = vsel %vm1527_vm4, %v1537_v2, %v1485_v12  ;;  %vm19461_vm15 = vcmp.lt.s32.totalorder %v18185_v17, 19  ;;  %vm1558_vm5 = vcmp.gt.s32.totalorder %v18185_v17, 0  ;;  %vm20245_vm4 = vcmask 523264  }
 0x505   : > { %vm1557_vm0 = vcmp.gt.s32.totalorder %v18180_v32, 0 }
 0x507   : > { %v5033_v40 = vpop.f32.mrb[76].mxu1 }
 0x508   : > { %v5034_v4 = vadd.f32 %v18065_v18, %v5033_v40  ;;  %v5035_v33 = vpop.f32.mrb[77].mxu1  ;;  %v5336_v14 = vld [vmem:[#allocation6 + $0x118] ss:$2 sm:$0xff]  ;;  %v5342_v28 = vld [vmem:[#allocation6 + $0x119] ss:$2 sm:$0xff] }
 0x509   : > { %v5036_v3 = vpop.f32.mrb[78].mxu1  ;;  %v5347_v36 = vmax.f32 %v5336_v14, %v5342_v28 }
 0x50a   : > { %v5078_v21 = vmax.f32 %v5034_v4, 0.0  ;;  %v5037_v25 = vadd.f32 %v18065_v18, %v5036_v3  ;;  %v5038_v43 = vpop.f32.mrb[79].mxu1  ;;  %v5505_v4 = vsel %vm1553_vm11, %v18183_v15, 0.0 }
 0x50b   : > { %v5350_v61 = vmax.f32 %v5332_v59, %v5347_v36  ;;  %v5482_v36 = vld [vmem:[#allocation7 + $0x46] sm:$0xff] }
 0x50c   : > { %v5124_v19 = vmul.f32 %v18072_v60, %v5078_v21  ;;  %v5079_v23 = vmax.f32 %v5037_v25, 0.0 }
 0x50d   : > { %5353 = vst.msk [vmem:[#allocation7 + $0x51] sm:$0xff] %vm20232_vm3, %v5350_v61  ;;  %vm19462_vm3 = vcmp.lt.s32.totalorder %v18180_v32, 19  ;;  %v12863_v61 = vpop.permute.xlu0 %12862 }
 0x50e   : > { %v5170_v22 = vadd.f32 %v18080_v29, %v5124_v19  ;;  %v5125_v35 = vmul.f32 %v18072_v60, %v5079_v23  ;;  %v5325_v60 = vld [vmem:[#allocation6 + $0x110] ss:$2 sm:$0xf]  ;;  %v5492_v19 = vsel %vm1565_vm13, %v5482_v36, 0.0 }
 0x50f   : > { %v5334_v24 = vmax.f32 %v5325_v60, %v5331_v30  ;;  %v12860_v60 = vunpack.i.h.bf16 %v18198_v53 }
 0x510   : > { %5210 = vst.msk [vmem:[#allocation6 + $0x130] sm:$0xff] %vm20240_vm14, %v5170_v22  ;;  %v5171_v18 = vadd.f32 %v18080_v29, %v5125_v35  ;;  %vm1555_vm14 = vcmp.gt.s32.totalorder %v18099_v54, 0  ;;  %v5356_v35 = vld [vmem:[#allocation7] sm:$0xff]  ;;  %v20311_v54 = vmov 0  }
 0x511   : > { %v5462_v52 = vsel %vm1555_vm14, %v5452_v6, 0.0  ;;  %v18222_v2 = vpop.permute.xlu0 %12867 }
 0x512   : > { %5211 = vst.msk [vmem:[#allocation6 + $0x138] sm:$0xff] %vm20241_vm9, %v5171_v18  ;;  %v5357_v18 = vld [vmem:[#allocation7 + $0x8] sm:$0xff] }
 0x514   : > { %v5511_v48 = vld [vmem:[#allocation7 + $0x51] sm:$0xff] }
 0x515   : > { %v5453_v29 = vld [vmem:[#allocation7 + $0x4c] sm:$0xff]  ;;  %v12951_v39 = vpack.i.bf16 %v5511_v48, %v18119_v10  ;;  %v5444_v10 = vsel %vm19462_vm3, %v18123_v58, 0.0 }
 0x516   : > { %v5496_v26 = vld [vmem:[#allocation7 + $0x50] sm:$0xff]  ;;  %v5463_v37 = vsel %vm1556_vm6, %v5453_v29, 0.0 }
 0x517   : > { %v18196_v49 = vld [vmem:[#allocation7 + $0x4a] sm:$0xff]  ;;  %v12966_v5 = vpack.i.bf16 %v5463_v37, %v5462_v52  ;;  %v5506_v40 = vsel %vm1554_vm7, %v5496_v26, 0.0  ;;  %12952 = vrot.lane.b32.xlu1 %v12951_v39, %s13597_s27  ;;  %v5387_v37 = vsel %vm1550_vm2, %v5357_v18, 0.0  ;;  %vm20243_vm2 = vmmov %vm20241_vm9 }
 0x518   : > { %v5338_v20 = vld [vmem:[#allocation6 + $0x128] ss:$2 sm:$0xff]  ;;  %v5344_v7 = vld [vmem:[#allocation6 + $0x129] ss:$2 sm:$0xff]  ;;  %v5445_v33 = vsel %vm19461_vm15, %v18196_v49, 0.0  ;;  %v12956_v59 = vpack.i.bf16 %v5506_v40, %v5505_v4  ;;  %vm20244_vm12 = vmmov %vm20243_vm2 }
 0x519   : > { %v5348_v12 = vmax.f32 %v5338_v20, %v5344_v7  ;;  %v5483_v14 = vld [vmem:[#allocation7 + $0x4e] sm:$0xff]  ;;  %v5340_v28 = vld [vmem:[#allocation6 + $0x138] ss:$2 sm:$0xf]  ;;  %12967 = vrot.lane.b32.xlu0 %v12966_v5, %s13597_s27  ;;  %v12986_v21 = vpack.i.bf16 %v5445_v33, %v5444_v10  ;;  %v12883_v20 = vpop.permute.xlu1 %12882  ;;  %v12859_v10 = vunpack.i.l.bf16 %v18198_v53 }
 0x51a   : > { %v5346_v3 = vld [vmem:[#allocation6 + $0x139] ss:$2 sm:$0xf]  ;;  %v5493_v25 = vsel %vm19463_vm8, %v5483_v14, 0.0  ;;  %v5499_v39 = vld [vmem:[#allocation7 + $0x68] sm:$0xff]  ;;  %v5500_v52 = vld [vmem:[#allocation7 + $0x70] sm:$0xff]  ;;  %v12885_v53 = vunpack.i.h.bf16 %v12883_v20 }
 0x51b   : > { %v5351_v55 = vmax.f32 %v5333_v50, %v5348_v12  ;;  %v5349_v58 = vmax.f32 %v5340_v28, %v5346_v3  ;;  %12957 = vrot.lane.b32.xlu1 %v12956_v59, %s13596_s13  ;;  %v12961_v23 = vpack.i.bf16 %v5493_v25, %v5492_v19  ;;  %v12865_v50 = vunpack.i.h.bf16 %v12863_v61  ;;  %v12873_v12 = vpop.permute.xlu0 %12872  ;;  %v5467_v25 = vld [vmem:[#allocation7 + $0x1d] sm:$0xff] }
 0x51c   : > { %v5509_v4 = vsel %vm1557_vm0, %v5499_v39, 0.0  ;;  %v5510_v33 = vsel %vm1558_vm5, %v5500_v52, 0.0  ;;  %v12864_v28 = vunpack.i.l.bf16 %v12863_v61  ;;  %v5466_v61 = vld [vmem:[#allocation7 + $0x15] sm:$0xff] }
 0x51d   : > { %5354 = vst.msk [vmem:[#allocation7 + $0x59] sm:$0xff] %vm20241_vm9, %v5351_v55  ;;  %v5352_v43 = vmax.f32 %v5334_v24, %v5349_v58  ;;  %12987 = vrot.lane.b32.xlu0 %v12986_v21, %s13596_s13  ;;  %v12884_v55 = vunpack.i.l.bf16 %v12883_v20  ;;  %v12875_v58 = vunpack.i.h.bf16 %v12873_v12  ;;  %v12981_v59 = vpack.i.bf16 %v5510_v33, %v5509_v4  ;;  %vm20246_vm9 = vmmov %vm20245_vm4 }
 0x51f   : > { %5355 = vst.msk [vmem:[#allocation7 + $0x61] sm:$0xf] %vm5246_vm10, %v5352_v43  ;;  %12962 = vrot.lane.b32.xlu1 %v12961_v23, %s19551_s20  ;;  %vm20242_vm10 = vcmp.gt.s32.totalorder %v17746_v44, 0  ;;  %v5767_v44 = vsel %vm20243_vm2, %v5387_v37, %v12860_v60  ;;  %v12874_v43 = vunpack.i.l.bf16 %v12873_v12  ;;  %v12878_v4 = vpop.permute.xlu0 %12877 }
 0x520   : > { %v5386_v40 = vsel %vm20242_vm10, %v5356_v35, 0.0  ;;  %v5777_v21 = vsel %vm20245_vm4, %v5767_v44, %v12865_v50  ;;  %vm20247_vm10 = vmmov %vm20243_vm2  ;;  %v13031_v50 = vld [vmem:[%s19170_s9 + $0x80] sm:$0xff]  }
 0x521   : > { %v5766_v24 = vsel %vm20244_vm12, %v5386_v40, %v12859_v10  ;;  %vm20248_vm12 = vcmask 785408  }
 0x522   : > { %v5776_v23 = vsel %vm20246_vm9, %v5766_v24, %v12864_v28  ;;  %vm20249_vm4 = vmmov %vm20248_vm12  ;;  %v12869_v28 = vunpack.i.l.bf16 %v18222_v2 }
 0x523   : > { %v5786_v39 = vsel %vm20249_vm4, %v5776_v23, %v12874_v43  ;;  %v18275_v33 = vpop.permute.xlu0 %12887 }
 0x524   : > { %v5454_v22 = vld [vmem:[#allocation7 + $0x54] sm:$0xff] }
 0x525   : > { %v5512_v56 = vld [vmem:[#allocation7 + $0x59] sm:$0xff]  ;;  %v5464_v29 = vsel %vm1557_vm0, %v5454_v22, 0.0  ;;  %v5797_v22 = vsel %vm20247_vm10, %v5467_v25, %v12885_v53  ;;  %vm20250_vm10 = vmmov %vm20246_vm9  ;;  %v5358_v53 = vld [vmem:[#allocation7 + $0x10] sm:$0xff] }
 0x526   : > { %v5513_v6 = vld [vmem:[#allocation7 + $0x61] sm:$0xff]  ;;  %v5497_v30 = vld [vmem:[#allocation7 + $0x58] sm:$0xff]  ;;  %v5388_v25 = vsel %vm1551_vm1, %v5358_v53, 0.0 }
 0x527   : > { %v5455_v38 = vld [vmem:[#allocation7 + $0x5c] sm:$0xff]  ;;  %v12971_v48 = vpack.i.bf16 %v5513_v6, %v5512_v56  ;;  %v5507_v11 = vsel %vm1555_vm14, %v5497_v30, 0.0  ;;  %v12893_v3 = vpop.permute.xlu1 %12892  ;;  %v5796_v56 = vsel %vm20243_vm2, %v5466_v61, %v12884_v55  ;;  %v5787_v6 = vsel %vm20248_vm12, %v5777_v21, %v12875_v58  ;;  %v5515_v30 = vld [vmem:[#allocation7 + $0x71] sm:$0xff]  ;;  %vm20251_vm12 = vmmov %vm20249_vm4 }
 0x528   : > { %v5498_v13 = vld [vmem:[#allocation7 + $0x60] sm:$0xff]  ;;  %v5465_v26 = vsel %vm1558_vm5, %v5455_v38, 0.0  ;;  %v5484_v19 = vld [vmem:[#allocation7 + $0x56] sm:$0xff]  ;;  %v12895_v60 = vunpack.i.h.bf16 %v12893_v3  ;;  %vm13598_vm2 = vmmov 0   ;;  %v5826_v12 = vpack.c.bf16 %v5787_v6, %v5786_v39  ;;  %v5469_v6 = vld [vmem:[#allocation7 + $0x2d] sm:$0xff] }
 0x529   : > { %v13001_v7 = vpack.i.bf16 %v5465_v26, %v5464_v29  ;;  %v5508_v5 = vsel %vm1556_vm6, %v5498_v13, 0.0  ;;  %12972 = vrot.lane.b32.xlu1 %v12971_v48, %s13597_s27  ;;  %v5485_v36 = vld [vmem:[#allocation7 + $0x5e] sm:$0xff]  ;;  %v12894_v48 = vunpack.i.l.bf16 %v12893_v3  ;;  %v5494_v29 = vsel %vm19462_vm3, %v5484_v19, 0.0  ;;  %v5514_v26 = vld [vmem:[#allocation7 + $0x69] sm:$0xff]  ;;  %11842 = vmatprep.mubr.msk.bf16.mxu1 %vm13598_vm2, %v20218_v51  ;;  %v12908_v24 = vpop.permute.xlu0 %12907 }
 0x52a   : > { %v12976_v14 = vpack.i.bf16 %v5508_v5, %v5507_v11  ;;  %v5495_v18 = vsel %vm19461_vm15, %v5485_v36, 0.0  ;;  %vm20252_vm15 = vmmov %vm20249_vm4  ;;  %v12996_v10 = vpack.i.bf16 %v5515_v30, %v5514_v26  ;;  %v13032_v11 = vld [vmem:[%s19170_s9 + $0x88] sm:$0xff]   ;;  %v5359_v3 = vld [vmem:[#allocation7 + $0x18] sm:$0xff]  ;;  %v12880_v58 = vunpack.i.h.bf16 %v12878_v4 }
 0x52b   : > { %13002 = vrot.lane.b32.xlu0 %v13001_v7, %s13597_s27  ;;  %v12898_v35 = vpop.permute.xlu1 %12897  ;;  %v12991_v20 = vpack.i.bf16 %v5495_v18, %v5494_v29  ;;  %v12910_v19 = vunpack.i.h.bf16 %v12908_v24  ;;  %v12909_v23 = vunpack.i.l.bf16 %v12908_v24  ;;  %vm20254_vm4 = vcmask 261120  }
 0x52c   : > { %v12900_v38 = vunpack.i.h.bf16 %v12898_v35  ;;  %v12899_v13 = vunpack.i.l.bf16 %v12898_v35  ;;  %vm20257_vm3 = vmmov %vm20254_vm4 }
 0x52d   : > { %12977 = vrot.lane.b32.xlu1 %v12976_v14, %s13596_s13  ;;  %v12870_v14 = vunpack.i.h.bf16 %v18222_v2  ;;  %vm20258_vm1 = vmmov %vm20257_vm3 }
 0x52e   : > { %v5806_v52 = vsel %vm20246_vm9, %v5796_v56, %v12899_v13  ;;  %v5807_v37 = vsel %vm20250_vm10, %v5797_v22, %v12900_v38  ;;  %v5768_v22 = vsel %vm20254_vm4, %v5388_v25, %v12869_v28  ;;  %vm20255_vm9 = vmmov %vm20254_vm4  ;;  %v5468_v56 = vld [vmem:[#allocation7 + $0x25] sm:$0xff] }
 0x52f   : > { %v5816_v7 = vsel %vm20251_vm12, %v5806_v52, %v12894_v48  ;;  %v5817_v5 = vsel %vm20252_vm15, %v5807_v37, %v12895_v60  ;;  %v12903_v44 = vpop.permute.xlu1 %12902  ;;  %vm20253_vm15 = vcmp.gt.s32.totalorder %v17850_v42, 0  ;;  %vm20256_vm12 = vmmov %vm20250_vm10 }
 0x530   : > { %v5827_v40 = vpack.c.bf16 %v5817_v5, %v5816_v7  ;;  %v12905_v36 = vunpack.i.h.bf16 %v12903_v44  ;;  %v12904_v21 = vunpack.i.l.bf16 %v12903_v44  ;;  %v5389_v43 = vsel %vm20253_vm15, %v5359_v3, 0.0  ;;  %vm20259_vm15 = vmmov %vm20250_vm10  ;;  %v12913_v5 = vpop.permute.xlu0 %12912 }
 0x531   : > { %12982 = vrot.lane.b32.xlu1 %v12981_v59, %s13596_s13  ;;  %v12879_v59 = vunpack.i.l.bf16 %v12878_v4  ;;  %v5769_v2 = vsel %vm20255_vm9, %v5389_v43, %v12870_v14  ;;  %vm20260_vm4 = vmmov %vm20250_vm10  ;;  %vm20261_vm9 = vcmask 785408   ;;  %v12889_v4 = vunpack.i.l.bf16 %v18275_v33  ;;  %s608_s13 = sand.u32 1, %s13574_s30  }
 0x532   : > { %6038 = vmatprep.mubr.bf16.mxu0 %v5827_v40  ;;  %v5779_v18 = vsel %vm20256_vm12, %v5769_v2, %v12880_v58  ;;  %v5799_v27 = vsel %vm20257_vm3, %v5469_v6, %v12905_v36  ;;  %v5798_v42 = vsel %vm20258_vm1, %v5468_v56, %v12904_v21  ;;  %vm20262_vm8 = vmmov %vm20261_vm9  ;;  %v5391_v3 = vsel %vm1554_vm7, %v17993_v57, 0.0  ;;  %s11032_s29 = scalar_lea.sflag [#allocation12], %s608_s13 }
 0x533   : > { %6039 = vmatmul.mubr.bf16.vlgmr.msra.gmra.mrb[32].mxu0 %v5826_v12  ;;  %v5778_v35 = vsel %vm20250_vm10, %v5768_v22, %v12879_v59  ;;  %v5789_v39 = vsel %vm20262_vm8, %v5779_v18, %v12910_v19  ;;  %vm20263_vm10 = vmmov %vm20262_vm8  ;;  %v5360_v12 = vld [vmem:[#allocation7 + $0x20] sm:$0xff]  ;;  %v12890_v58 = vunpack.i.h.bf16 %v18275_v33  ;;  %v12914_v59 = vunpack.i.l.bf16 %v12913_v5 }
 0x534   : > { %11807 = vmatpush3.bf16.msra.mxu0 %v13031_v50  ;;  %v5788_v30 = vsel %vm20261_vm9, %v5778_v35, %v12909_v23  ;;  %vm20264_vm12 = vmmov %vm20262_vm8  ;;  %v5390_v53 = vsel %vm1553_vm11, %v5360_v12, 0.0  ;;  %v5392_v36 = vsel %vm1555_vm14, %v17983_v31, 0.0  ;;  %v5393_v21 = vsel %vm1556_vm6, %v18113_v9, 0.0 }
 0x535   : > { %12992 = vrot.lane.b32.xlu1 %v12991_v20, %s19551_s20  ;;  %11808 = vmatprep.subr.bf16.mxu0 %v20218_v51  ;;  %v5829_v7 = vpack.c.bf16 %v5789_v39, %v5788_v30  ;;  %vm20265_vm8 = vmmov %vm20258_vm1  ;;  %v12915_v19 = vunpack.i.h.bf16 %v12913_v5  ;;  %s609_s20 = scalar_lea.vmem [#allocation13], %s608_s13 }
 0x536   : > { %v5770_v43 = vsel %vm20265_vm8, %v5390_v53, %v12889_v4  ;;  %vm20266_vm11 = vmmov %vm20258_vm1 }
 0x537   : > { %vm20267_vm7 = vmmov %vm20258_vm1 }
 0x538   : > { %11809 = vmatpush3.bf16.msra.mxu0 %v13032_v11  ;;  %vm20268_vm3 = vmmov %vm20260_vm4 }
 0x539   : > { %12997 = vrot.lane.b32.xlu1 %v12996_v10, %s13597_s27  ;;  %vm20269_vm14 = vmmov %vm20268_vm3  ;;  %s11044_s27 = sshll.u32 %s609_s20, 4  ;;  %s19121_s27 = int_to_ptr.vmem [resolvable:$true] %s11044_s27 }
 0x53a   : > { %vm20270_vm6 = vmmov %vm20258_vm1  ;;  %s13516_s1 = scalar_lea.vmem %s19121_s27, 16  ;;  %p13523_p2 = scmp.lt.s32.totalorder %s19121_s27, %s13521_s28 }
 0x53b   : > { %v5771_v9 = vsel %vm20270_vm6, %v5391_v3, %v12890_v58  ;;  %vm20271_vm1 = vmmov %vm20268_vm3  ;;  %p13517_p6 = scmp.ne.s32.totalorder %s19121_s27, %s13516_s1  ;;  %p13524_p3 = scmp.lt.s32.totalorder %s13522_s4, %s13516_s1 }
 0x53c   : > { %vm20277_vm8 = vmmov %vm20271_vm1 }
 0x53d   : > { %p13518_p10 = pnand %p13517_p6, %p20381_p9  ;;  %p13525_p4 = por %p13524_p3, %p13523_p2 }
 0x53f   : > { %p13519_p12 = pneg %p13518_p10 }
 0x541   : > { %p13526_p7 = pnand %p13525_p4, %p13519_p12 }
 0x547   : > { %v12918_v40 = vpop.permute.xlu0 %12917 }
 0x548   : > { %v12920_v44 = vunpack.i.h.bf16 %v12918_v40  ;;  %v12919_v14 = vunpack.i.l.bf16 %v12918_v40 }
 0x54a   : > { %v5773_v23 = vsel %vm20266_vm11, %v5393_v21, %v12920_v44  ;;  %v5772_v57 = vsel %vm20267_vm7, %v5392_v36, %v12919_v14  ;;  %vm20278_vm11 = vmmov %vm20271_vm1  ;;  %v5395_v36 = vsel %vm1558_vm5, %v18183_v15, 0.0  ;;  %v5472_v15 = vld [vmem:[#allocation7 + $0x45] sm:$0xff] }
 0x54b   : > { %v12923_v10 = vpop.permute.xlu0 %12922 }
 0x54c   : > { %v12925_v18 = vunpack.i.h.bf16 %v12923_v10  ;;  %v12924_v56 = vunpack.i.l.bf16 %v12923_v10 }
 0x54f   : > { %v12933_v55 = vpop.permute.xlu1 %12932  ;;  %v12928_v50 = vpop.permute.xlu0 %12927 }
 0x550   : > { %v12935_v60 = vunpack.i.h.bf16 %v12933_v55  ;;  %v12934_v48 = vunpack.i.l.bf16 %v12933_v55  ;;  %v12930_v24 = vunpack.i.h.bf16 %v12928_v50  ;;  %v12929_v55 = vunpack.i.l.bf16 %v12928_v50 }
 0x552   : > { %v5782_v31 = vsel %vm20268_vm3, %v5772_v57, %v12929_v55  ;;  %v5783_v6 = vsel %vm20269_vm14, %v5773_v23, %v12930_v24 }
 0x553   : > { %v12938_v61 = vpop.permute.xlu1 %12937  ;;  %v12948_v28 = vpop.permute.xlu0 %12947 }
 0x554   : > { %v12940_v38 = vunpack.i.h.bf16 %v12938_v61  ;;  %v12939_v13 = vunpack.i.l.bf16 %v12938_v61  ;;  %v12950_v3 = vunpack.i.h.bf16 %v12948_v28  ;;  %v12949_v24 = vunpack.i.l.bf16 %v12948_v28 }
 0x556   : > { %v5808_v29 = vsel %vm20259_vm15, %v5798_v42, %v12939_v13  ;;  %v5809_v26 = vsel %vm20260_vm4, %v5799_v27, %v12940_v38  ;;  %v5780_v38 = vsel %vm20271_vm1, %v5770_v43, %v12914_v59  ;;  %vm20272_vm15 = vmmov %vm20261_vm9  ;;  %v5394_v59 = vsel %vm1557_vm0, %v18110_v46, 0.0 }
 0x557   : > { %v5818_v52 = vsel %vm20263_vm10, %v5808_v29, %v12934_v48  ;;  %v5819_v37 = vsel %vm20264_vm12, %v5809_v26, %v12935_v60  ;;  %v12943_v11 = vpop.permute.xlu1 %12942  ;;  %vm20273_vm4 = vmmov %vm20261_vm9  ;;  %v5470_v48 = vld [vmem:[#allocation7 + $0x35] sm:$0xff]  ;;  %v5471_v29 = vld [vmem:[#allocation7 + $0x3d] sm:$0xff] }
 0x558   : > { %v5830_v20 = vpack.c.bf16 %v5819_v37, %v5818_v52  ;;  %v12945_v2 = vunpack.i.h.bf16 %v12943_v11  ;;  %v12944_v33 = vunpack.i.l.bf16 %v12943_v11  ;;  %vm20274_vm9 = vmmov %vm20271_vm1 }
 0x559   : > { %v5781_v60 = vsel %vm20274_vm9, %v5771_v9, %v12915_v19  ;;  %vm20275_vm10 = vmmov %vm20270_vm6 }
 0x55a   : > { %6046 = vmatprep.mubr.bf16.mxu0 %v5830_v20  ;;  %v5801_v52 = vsel %vm20275_vm10, %v5471_v29, %v12945_v2  ;;  %vm20276_vm12 = vmmov %vm20270_vm6 }
 0x55b   : > { %6047 = vmatmul.mubr.bf16.gmra.mrb[36].mxu0 %v5829_v7  ;;  %v5800_v37 = vsel %vm20276_vm12, %v5470_v48, %v12944_v33  ;;  %vm20279_vm7 = vmmov %vm20273_vm4 }
 0x55c   : > { %v5790_v10 = vsel %vm20279_vm7, %v5780_v38, %v12924_v56  ;;  %vm20280_vm3 = vmmov %vm20273_vm4 }
 0x55d   : > { %v5791_v50 = vsel %vm20280_vm3, %v5781_v60, %v12925_v18  ;;  %vm20281_vm14 = vmmov %vm20280_vm3  ;;  %v5473_v18 = vld [vmem:[#allocation7 + $0x4d] sm:$0xff] }
 0x55e   : > { %vm20282_vm6 = vmmov %vm20280_vm3  ;;  %v5832_v44 = vpack.c.bf16 %v5791_v50, %v5790_v10 }
 0x55f   : > { %vm20283_vm1 = vmmov %vm20275_vm10 }
 0x560   : > { %vm20287_vm0 = vmmov %vm20280_vm3 }
 0x561   : > { %vm20288_vm10 = vmmov %vm20287_vm0 }
 0x562   : > { %vm20289_vm5 = vmmov %vm20283_vm1 }
 0x563   : > { %vm20290_vm12 = vmmov %vm20283_vm1 }
 0x564   : > { %vm20293_vm7 = vmmov %vm20287_vm0 }
 0x565   : > { %vm20294_vm3 = vmmov %vm20287_vm0 }
 0x589   : > { %v12953_v25 = vpop.permute.xlu1 %12952 }
 0x58a   : > { %v12955_v20 = vunpack.i.h.bf16 %v12953_v25  ;;  %v12954_v7 = vunpack.i.l.bf16 %v12953_v25  ;;  %v5775_v25 = vsel %vm20283_vm1, %v5395_v36, %v12950_v3  ;;  %v5518_v36 = vld [vmem:[#allocation7 + $0x62] sm:$0xff] }
 0x58b   : > { %v12968_v22 = vpop.permute.xlu0 %12967 }
 0x58c   : > { %v12970_v61 = vunpack.i.h.bf16 %v12968_v22  ;;  %v12969_v35 = vunpack.i.l.bf16 %v12968_v22 }
 0x58d   : > { %v12958_v13 = vpop.permute.xlu1 %12957 }
 0x58e   : > { %v5792_v27 = vsel %vm20272_vm15, %v5782_v31, %v12969_v35  ;;  %v5793_v42 = vsel %vm20273_vm4, %v5783_v6, %v12970_v61  ;;  %v12960_v26 = vunpack.i.h.bf16 %v12958_v13  ;;  %v12959_v30 = vunpack.i.l.bf16 %v12958_v13  ;;  %vm20284_vm15 = vmmov %vm20283_vm1 }
 0x58f   : > { %v5835_v39 = vpack.c.bf16 %v5793_v42, %v5792_v27  ;;  %v12988_v14 = vpop.permute.xlu0 %12987  ;;  %v5774_v43 = vsel %vm20284_vm15, %v5394_v59, %v12949_v24  ;;  %vm20285_vm4 = vmmov %vm20277_vm8 }
 0x590   : > { %v5810_v5 = vsel %vm20277_vm8, %v5800_v37, %v12959_v30  ;;  %v5811_v40 = vsel %vm20278_vm11, %v5801_v52, %v12960_v26  ;;  %v12990_v55 = vunpack.i.h.bf16 %v12988_v14  ;;  %v12989_v58 = vunpack.i.l.bf16 %v12988_v14  ;;  %vm20286_vm9 = vmmov %vm20285_vm4 }
 0x591   : > { %v5820_v12 = vsel %vm20281_vm14, %v5810_v5, %v12954_v7  ;;  %v5821_v11 = vsel %vm20282_vm6, %v5811_v40, %v12955_v20  ;;  %v12963_v53 = vpop.permute.xlu1 %12962  ;;  %vm20291_vm8 = vmmov %vm20285_vm4  ;;  %v5474_v7 = vld [vmem:[#allocation7 + $0x55] sm:$0xff]  ;;  %v5475_v5 = vld [vmem:[#allocation7 + $0x5d] sm:$0xff] }
 0x592   : > { %v5833_v4 = vpack.c.bf16 %v5821_v11, %v5820_v12  ;;  %v12965_v23 = vunpack.i.h.bf16 %v12963_v53  ;;  %v12964_v57 = vunpack.i.l.bf16 %v12963_v53  ;;  %v5784_v2 = vsel %vm20285_vm4, %v5774_v43, %v12989_v58  ;;  %vm20292_vm11 = vmmov %vm20285_vm4  ;;  %v5516_v58 = vld [vmem:[#allocation7 + $0x52] sm:$0xff] }
 0x593   : > { %v5785_v33 = vsel %vm20286_vm9, %v5775_v25, %v12990_v55  ;;  %vm20295_vm14 = vmmov %vm20283_vm1  ;;  %v13033_v55 = vld [vmem:[#allocation10 + $0x10] ss:$20 sps:$4 sm:$0xff]  }
 0x594   : > { %6054 = vmatprep.mubr.bf16.mxu0 %v5833_v4  ;;  %v5803_v9 = vsel %vm20289_vm5, %v5473_v18, %v12965_v23  ;;  %v5802_v38 = vsel %vm20290_vm12, %v5472_v15, %v12964_v57  ;;  %vm20296_vm6 = vmmov %vm20283_vm1  ;;  %11839 = vmatpush3.bf16.msra.mxu1 %v13033_v55  ;;  %vm20304_vm12 = vcmp.lt.s32.totalorder %v17973_v16, 19  ;;  %v13038_v18 = vld [vmem:[#allocation10 + $0x78] ss:$20 sps:$4 sm:$0xff]  }
 0x595   : > { %6055 = vmatmul.mubr.bf16.gmra.mrb[40].mxu0 %v5832_v44  ;;  %vm20297_vm1 = vmmov %vm20285_vm4  ;;  %11840 = vmatprep.subr.bf16.mxu1 %v20218_v51  ;;  %v5525_v8 = vsel %vm20304_vm12, %v18196_v49, 0.0 }
 0x596   : > { %vm20298_vm15 = vmmov %vm20297_vm1 }
 0x597   : > { %vm20299_vm4 = vmmov %vm20287_vm0 }
 0x598   : > { %vm20300_vm9 = vmmov %vm20287_vm0 }
 0x59b   : > { %v12973_v21 = vpop.permute.xlu1 %12972 }
 0x59c   : > { %v12975_v13 = vunpack.i.h.bf16 %v12973_v21  ;;  %v12974_v27 = vunpack.i.l.bf16 %v12973_v21  ;;  %v5520_v21 = vld [vmem:[#allocation7 + $0x72] sm:$0xff] }
 0x59d   : > { %v13003_v19 = vpop.permute.xlu0 %13002 }
 0x59e   : > { %v13005_v22 = vunpack.i.h.bf16 %v13003_v19  ;;  %v13004_v28 = vunpack.i.l.bf16 %v13003_v19 }
 0x59f   : > { %v12978_v61 = vpop.permute.xlu1 %12977 }
 0x5a0   : > { %v5794_v46 = vsel %vm20287_vm0, %v5784_v2, %v13004_v28  ;;  %v5795_v35 = vsel %vm20288_vm10, %v5785_v33, %v13005_v22  ;;  %v12980_v56 = vunpack.i.h.bf16 %v12978_v61  ;;  %v12979_v31 = vunpack.i.l.bf16 %v12978_v61  ;;  %vm20301_vm0 = vmmov %vm20289_vm5  ;;  %v13034_v28 = vld [vmem:[#allocation10 + $0x50] ss:$20 sps:$4 sm:$0xff]   ;;  %v13036_v2 = vld [vmem:[#allocation10 + $0x54] ss:$20 sps:$4 sm:$0xff]  }
 0x5a1   : > { %v5838_v6 = vpack.c.bf16 %v5795_v35, %v5794_v46  ;;  %vm20302_vm10 = vmmov %vm20301_vm0  ;;  %vm20303_vm5 = vcmp.lt.s32.totalorder %v17975_v34, 19  ;;  %6336 = vmatprep.subr.bf16.mxu0 %v13036_v2 }
 0x5a2   : > { %v5812_v42 = vsel %vm20291_vm8, %v5802_v38, %v12979_v31  ;;  %v5813_v60 = vsel %vm20292_vm11, %v5803_v9, %v12980_v56  ;;  %v5526_v59 = vsel %vm20303_vm5, %v5516_v58, 0.0  ;;  %vm20305_vm8 = vmmov %vm20301_vm0  ;;  %vm20306_vm11 = vcmp.lt.s32.totalorder %v18075_v0, 19  ;;  %v13040_v56 = vld [vmem:[#allocation10 + $0x7c] ss:$20 sps:$4 sm:$0xff]  }
 0x5a3   : > { %v12983_v48 = vpop.permute.xlu1 %12982  ;;  %v5822_v29 = vsel %vm20293_vm7, %v5812_v42, %v12974_v27  ;;  %v5823_v26 = vsel %vm20294_vm3, %v5813_v60, %v12975_v13  ;;  %v5834_v41 = vpack.c.bf16 %v5526_v59, %v5525_v8  ;;  %v5528_v1 = vsel %vm20306_vm11, %v5518_v36, 0.0  ;;  %vm20307_vm7 = vmmov %vm20301_vm0  ;;  %v13043_v31 = vld [vmem:[#allocation10 + $0x5c] ss:$20 sps:$4 sm:$0xff]  }
 0x5a4   : > { %v5836_v30 = vpack.c.bf16 %v5823_v26, %v5822_v29  ;;  %v12985_v50 = vunpack.i.h.bf16 %v12983_v48  ;;  %v12984_v12 = vunpack.i.l.bf16 %v12983_v48  ;;  %vm20308_vm3 = vcmp.lt.s32.totalorder %v18180_v32, 19  ;;  %v13037_v32 = vld [vmem:[#allocation10 + $0x38] ss:$20 sps:$4 sm:$0xff]   ;;  %v18405_v59 = vld [vmem:[%s19173_s12] ss:$0 sm:$0xff]  ;;  %vm20318_vm5 = vmmov %vm20301_vm0 }
 0x5a5   : > { %11841 = vmatpush3.bf16.msra.mxu1 %v13037_v32  ;;  %vm20319_vm12 = vmmov %vm20301_vm0 }
 0x5a6   : > { %6062 = vmatprep.mubr.bf16.mxu0 %v5836_v30  ;;  %vm20321_vm11 = vmmov %vm20301_vm0 }
 0x5a7   : > { %v12993_v52 = vpop.permute.xlu1 %12992  ;;  %6063 = vmatmul.mubr.bf16.gmra.mrb[44].mxu0 %v5835_v39 }
 0x5a8   : > { %v12995_v37 = vunpack.i.h.bf16 %v12993_v52  ;;  %v12994_v20 = vunpack.i.l.bf16 %v12993_v52 }
 0x5aa   : > { %v5805_v40 = vsel %vm20295_vm14, %v5475_v5, %v12995_v37  ;;  %v5804_v10 = vsel %vm20296_vm6, %v5474_v7, %v12994_v20  ;;  %vm20309_vm14 = vcmp.lt.s32.totalorder %v18185_v17, 19  ;;  %vm20310_vm6 = vmmov %vm20301_vm0 }
 0x5ab   : > { %v12998_v11 = vpop.permute.xlu1 %12997  ;;  %v5814_v14 = vsel %vm20297_vm1, %v5804_v10, %v12984_v12  ;;  %v5815_v53 = vsel %vm20298_vm15, %v5805_v40, %v12985_v50  ;;  %v5530_v49 = vsel %vm20309_vm14, %v5520_v21, 0.0  ;;  %v18393_v12 = vld [vmem:[%s19171_s10] ss:$0 sm:$0xff]  ;;  %vm20313_vm1 = vmmov %vm20301_vm0 }
 0x5ac   : > { %v13000_v4 = vunpack.i.h.bf16 %v12998_v11  ;;  %v12999_v44 = vunpack.i.l.bf16 %v12998_v11  ;;  %vm20314_vm15 = vmmov %vm20301_vm0 }
 0x5ad   : > { %vm20324_vm14 = vmmov %vm20301_vm0 }
 0x5ae   : > { %v5824_v3 = vsel %vm20299_vm4, %v5814_v14, %v12999_v44  ;;  %v5825_v39 = vsel %vm20300_vm9, %v5815_v53, %v13000_v4  ;;  %vm20315_vm4 = vmmov %vm20301_vm0 }
 0x5af   : > { %v5839_v24 = vpack.c.bf16 %v5825_v39, %v5824_v3  ;;  %v18400_v3 = vld [vmem:[%s19172_s11] ss:$0 sm:$0xff]  ;;  %vm20316_vm9 = vmmov %vm20301_vm0 }
 0x5b1   : > { %6070 = vmatprep.mubr.bf16.mxu0 %v5839_v24 }
 0x5b2   : > { %6071 = vmatmul.mubr.bf16.gmra.mrb[48].mxu0 %v5838_v6  ;;  %v13046_v6 = vld [vmem:[#allocation10 + $0xac] ss:$20 sps:$4 sm:$0xff]  }
 0x5b3   : > { %11810 = vmatprep.mubr.msk.bf16.mxu0 %vm13598_vm2, %v20218_v51  ;;  %6747 = vmatprep.subr.bf16.mxu1 %v13046_v6 }
 0x5ba   : > { %11811 = vmatmul.mubr.msk.bf16.vlgmr.msra.gmra.mrb[52].mxu0 %vm20301_vm0, %v5828_v63  ;;  %v5517_v63 = vld [vmem:[#allocation7 + $0x5a] sm:$0xff] }
 0x5bb   : > { %11814 = vmatprep.mubr.msk.bf16.mxu0 %vm13598_vm2, %v20218_v51  ;;  %v5527_v47 = vsel %vm1565_vm13, %v5517_v63, 0.0  ;;  %6337 = vmatpush1.bf16.msra.mxu0 %v13034_v28  ;;  %vm20312_vm13 = vmmov %vm20301_vm0 }
 0x5bc   : > { %v5837_v34 = vpack.c.bf16 %v5528_v1, %v5527_v47  ;;  %6338 = vmatprep.subr.bf16.mxu0 %v13040_v56 }
 0x5bf   : > { %6339 = vmatpush1.bf16.msra.mxu0 %v13038_v18 }
 0x5c0   : > { %6377 = vmatprep.subr.bf16.mxu0 %v13043_v31 }
 0x5c2   : > { %11815 = vmatmul.mubr.msk.bf16.gmra.mrb[56].mxu0 %vm20302_vm10, %v5831_v62  ;;  %v5519_v62 = vld [vmem:[#allocation7 + $0x6a] sm:$0xff]  ;;  %vm20317_vm10 = vmmov %vm20301_vm0 }
 0x5c3   : > { %11818 = vmatprep.mubr.msk.bf16.mxu0 %vm13598_vm2, %v20218_v51  ;;  %v5529_v16 = vsel %vm20308_vm3, %v5519_v62, 0.0  ;;  %vm20323_vm3 = vmmov %vm20301_vm0 }
 0x5c4   : > { %v5840_v25 = vpack.c.bf16 %v5530_v49, %v5529_v16 }
 0x5ca   : > { %11819 = vmatmul.mubr.msk.bf16.gmra.mrb[60].mxu0 %vm20305_vm8, %v5834_v41  ;;  %vm20320_vm8 = vcmask 254976  }
 0x5cb   : > { %11822 = vmatprep.mubr.msk.bf16.mxu0 %vm13598_vm2, %v20218_v51 }
 0x5d2   : > { %11823 = vmatmul.mubr.msk.bf16.gmra.mrb[64].mxu0 %vm20307_vm7, %v5837_v34  ;;  %vm20322_vm7 = vmmov %vm20301_vm0 }
 0x5d3   : > { %11826 = vmatprep.mubr.msk.bf16.mxu0 %vm13598_vm2, %v20218_v51 }
 0x5da   : > { %11827 = vmatmul.mubr.msk.bf16.gmra.mrb[68].mxu0 %vm20310_vm6, %v5840_v25  ;;  %vm20325_vm6 = vmmov %vm20301_vm0 }
 0x5db   : > { %6368 = vmatprep.mubr.bf16.mxu0 %v20311_v54 }
 0x606   : > { %v11625_v0 = vpop.f32.mrb[32].mxu0 }
 0x607   : > { %v11626_v43 = vpop.f32.mrb[33].mxu0 }
 0x608   : > { %v11627_v19 = vadd.f32 %v11626_v43, %v11625_v0  ;;  %v11628_v23 = vpop.f32.mrb[34].mxu0 }
 0x609   : > { %v11629_v57 = vpop.f32.mrb[35].mxu0 }
 0x60a   : > { %v11630_v22 = vadd.f32 %v11629_v57, %v11628_v23  ;;  %v6041_v11 = vadd.f32 %v11627_v19, %v18393_v12 }
 0x60c   : > { %v6044_v53 = vadd.f32 %v11630_v22, %v18393_v12 }
 0x62e   : > { %v11631_v33 = vpop.f32.mrb[36].mxu0 }
 0x62f   : > { %v11632_v17 = vpop.f32.mrb[37].mxu0 }
 0x630   : > { %v11633_v61 = vadd.f32 %v11632_v17, %v11631_v33  ;;  %v11634_v46 = vpop.f32.mrb[38].mxu0 }
 0x631   : > { %v11635_v35 = vpop.f32.mrb[39].mxu0 }
 0x632   : > { %v11636_v15 = vadd.f32 %v11635_v35, %v11634_v46  ;;  %v6049_v47 = vadd.f32 %v11633_v61, %v18393_v12 }
 0x634   : > { %v6052_v16 = vadd.f32 %v11636_v15, %v18393_v12 }
 0x668   : > { %v11637_v9 = vpop.f32.mrb[40].mxu0 }
 0x669   : > { %v11638_v38 = vpop.f32.mrb[41].mxu0 }
 0x66a   : > { %v11639_v13 = vadd.f32 %v11638_v38, %v11637_v9  ;;  %v11640_v27 = vpop.f32.mrb[42].mxu0 }
 0x66b   : > { %v11641_v42 = vpop.f32.mrb[43].mxu0 }
 0x66c   : > { %v11642_v60 = vadd.f32 %v11641_v42, %v11640_v27  ;;  %v6057_v28 = vadd.f32 %v11639_v13, %v18393_v12 }
 0x66e   : > { %v6060_v61 = vadd.f32 %v11642_v60, %v18393_v12 }
 0x67a   : > { %v11643_v48 = vpop.f32.mrb[44].mxu0 }
 0x67b   : > { %v11644_v29 = vpop.f32.mrb[45].mxu0 }
 0x67c   : > { %v11645_v26 = vadd.f32 %v11644_v29, %v11643_v48  ;;  %v11646_v30 = vpop.f32.mrb[46].mxu0 }
 0x67d   : > { %v11647_v52 = vpop.f32.mrb[47].mxu0 }
 0x67e   : > { %v11648_v37 = vadd.f32 %v11647_v52, %v11646_v30  ;;  %v6065_v38 = vadd.f32 %v11645_v26, %v18393_v12 }
 0x680   : > { %v6068_v48 = vadd.f32 %v11648_v37, %v18393_v12 }
 0x685   : > { %v11649_v20 = vpop.f32.mrb[48].mxu0 }
 0x686   : > { %v11650_v7 = vpop.f32.mrb[49].mxu0 }
 0x687   : > { %v18386_v5 = vadd.f32 %v11650_v7, %v11649_v20  ;;  %v11652_v40 = vpop.f32.mrb[50].mxu0 }
 0x688   : > { %v11653_v10 = vpop.f32.mrb[51].mxu0 }
 0x689   : > { %v18388_v50 = vadd.f32 %v11653_v10, %v11652_v40 }
 0x68d   : > { %v6113_v4 = vpop.f32.mrb[52].mxu0 }
 0x68e   : > { %v6114_v44 = vadd.f32 %v6113_v4, %v6041_v11  ;;  %v11812_v14 = vpop.f32.mrb[53].mxu0 }
 0x68f   : > { %v6116_v39 = vpop.f32.mrb[54].mxu0 }
 0x690   : > { %v6152_v24 = vmax.f32 %v6114_v44, 0.0  ;;  %v6117_v55 = vadd.f32 %v6116_v39, %v6044_v53  ;;  %v11813_v58 = vpop.f32.mrb[55].mxu0  ;;  %v6073_v44 = vadd.f32 %v18386_v5, %v18393_v12 }
 0x692   : > { %v6168_v8 = vmul.f32 %v18400_v3, %v6152_v24  ;;  %v6153_v41 = vmax.f32 %v6117_v55, 0.0 }
 0x694   : > { %v6184_v63 = vadd.f32 %v18405_v59, %v6168_v8  ;;  %v6169_v36 = vmul.f32 %v18400_v3, %v6153_v41 }
 0x695   : > { %v6121_v1 = vpop.f32.mrb[56].mxu0 }
 0x696   : > { %6194 = vst.msk [vmem:[#allocation8] sm:$0xff] %vm20312_vm13, %v6184_v63  ;;  %v6185_v34 = vadd.f32 %v18405_v59, %v6169_v36  ;;  %v6122_v62 = vadd.f32 %v6121_v1, %v6049_v47  ;;  %v11816_v21 = vpop.f32.mrb[57].mxu0  ;;  %v6076_v36 = vadd.f32 %v18388_v50, %v18393_v12  ;;  %vm20326_vm13 = vmmov %vm20320_vm8 }
 0x697   : > { %v6124_v49 = vpop.f32.mrb[58].mxu0 }
 0x698   : > { %6195 = vst.msk [vmem:[#allocation8 + $0x8] sm:$0xff] %vm20313_vm1, %v6185_v34  ;;  %v6154_v25 = vmax.f32 %v6122_v62, 0.0  ;;  %v6125_v0 = vadd.f32 %v6124_v49, %v6052_v16  ;;  %v11817_v43 = vpop.f32.mrb[59].mxu0  ;;  %vm20327_vm1 = vmmov %vm20301_vm0 }
 0x69a   : > { %v6170_v19 = vmul.f32 %v18400_v3, %v6154_v25  ;;  %v6155_v23 = vmax.f32 %v6125_v0, 0.0 }
 0x69c   : > { %v6186_v57 = vadd.f32 %v18405_v59, %v6170_v19  ;;  %v6171_v22 = vmul.f32 %v18400_v3, %v6155_v23 }
 0x69d   : > { %v6129_v2 = vpop.f32.mrb[60].mxu0 }
 0x69e   : > { %6196 = vst.msk [vmem:[#allocation8 + $0x10] sm:$0xff] %vm20314_vm15, %v6186_v57  ;;  %v6187_v32 = vadd.f32 %v18405_v59, %v6171_v22  ;;  %v6130_v33 = vadd.f32 %v6129_v2, %v6057_v28  ;;  %v11820_v17 = vpop.f32.mrb[61].mxu0  ;;  %v13041_v57 = vld [vmem:[#allocation10 + $0x58] ss:$20 sps:$4 sm:$0xff]   ;;  %v13044_v22 = vld [vmem:[#allocation10 + $0xa8] ss:$20 sps:$4 sm:$0xff]   ;;  %vm20328_vm15 = vmmov %vm20301_vm0 }
 0x69f   : > { %v6132_v46 = vpop.f32.mrb[62].mxu0  ;;  %v6204_v7 = vld [vmem:[#allocation8] ss:$2 sm:$0xff]  ;;  %v6208_v40 = vld [vmem:[#allocation8 + $0x1] ss:$2 sm:$0xff] }
 0x6a0   : > { %6197 = vst.msk [vmem:[#allocation8 + $0x18] sm:$0xff] %vm20315_vm4, %v6187_v32  ;;  %v6156_v35 = vmax.f32 %v6130_v33, 0.0  ;;  %v6133_v15 = vadd.f32 %v6132_v46, %v6060_v61  ;;  %v11821_v18 = vpop.f32.mrb[63].mxu0  ;;  %v6211_v55 = vmax.f32 %v6204_v7, %v6208_v40  ;;  %v13049_v17 = vld [vmem:[#allocation10 + $0x84] ss:$20 sps:$4 sm:$0xff]   ;;  %vm20329_vm4 = vmmov %vm20301_vm0 }
 0x6a1   : > { %v13052_v61 = vld [vmem:[#allocation10 + $0xd4] ss:$20 sps:$4 sm:$0xff]   ;;  %v13060_v40 = vld [vmem:[#allocation10 + $0x11c] ss:$20 sps:$4 sm:$0xff]  }
 0x6a2   : > { %v6172_v56 = vmul.f32 %v18400_v3, %v6156_v35  ;;  %v6157_v31 = vmax.f32 %v6133_v15, 0.0  ;;  %v13047_v35 = vld [vmem:[#allocation10 + $0x80] ss:$20 sps:$4 sm:$0xff]   ;;  %v13050_v15 = vld [vmem:[#allocation10 + $0xd0] ss:$20 sps:$4 sm:$0xff]  }
 0x6a4   : > { %v6188_v6 = vadd.f32 %v18405_v59, %v6172_v56  ;;  %v6173_v9 = vmul.f32 %v18400_v3, %v6157_v31 }
 0x6a5   : > { %v6137_v27 = vpop.f32.mrb[64].mxu0  ;;  %v6206_v11 = vld [vmem:[#allocation8 + $0x10] ss:$2 sm:$0x3] }
 0x6a6   : > { %6198 = vst.msk [vmem:[#allocation8 + $0x20] sm:$0xff] %vm20316_vm9, %v6188_v6  ;;  %v6189_v13 = vadd.f32 %v18405_v59, %v6173_v9  ;;  %v6138_v42 = vadd.f32 %v6137_v27, %v6065_v38  ;;  %v11824_v60 = vpop.f32.mrb[65].mxu0  ;;  %v6210_v4 = vld [vmem:[#allocation8 + $0x11] ss:$2 sm:$0x3]  ;;  %vm20330_vm9 = vmmov %vm20301_vm0 }
 0x6a7   : > { %v6140_v29 = vpop.f32.mrb[66].mxu0  ;;  %v6212_v47 = vmax.f32 %v6206_v11, %v6210_v4  ;;  %v13063_v11 = vld [vmem:[#allocation10 + $0x4] ss:$20 sps:$4 sm:$0xff]  }
 0x6a8   : > { %6199 = vst.msk [vmem:[#allocation8 + $0x28] sm:$0xff] %vm20301_vm0, %v6189_v13  ;;  %v6158_v30 = vmax.f32 %v6138_v42, 0.0  ;;  %v6141_v52 = vadd.f32 %v6140_v29, %v6068_v48  ;;  %v11825_v20 = vpop.f32.mrb[67].mxu0  ;;  %v13053_v29 = vld [vmem:[#allocation10 + $0x60] ss:$20 sps:$4 sm:$0xff]  }
 0x6aa   : > { %v6174_v10 = vmul.f32 %v18400_v3, %v6158_v30  ;;  %v6159_v26 = vmax.f32 %v6141_v52, 0.0  ;;  %v13054_v30 = vld [vmem:[#allocation10 + $0xf0] ss:$20 sps:$4 sm:$0xff]  }
 0x6ac   : > { %v6190_v37 = vadd.f32 %v18405_v59, %v6174_v10  ;;  %v6175_v39 = vmul.f32 %v18400_v3, %v6159_v26  ;;  %v13057_v10 = vld [vmem:[#allocation10 + $0x88] ss:$20 sps:$4 sm:$0xff]   ;;  %v13058_v26 = vld [vmem:[#allocation10 + $0x118] ss:$20 sps:$4 sm:$0xff]  }
 0x6ad   : > { %v6214_v14 = vld [vmem:[#allocation8 + $0x14] ss:$2 sm:$0xff]  ;;  %v6216_v53 = vld [vmem:[#allocation8 + $0x24] ss:$2 sm:$0x3]  ;;  %v6145_v24 = vpop.f32.mrb[68].mxu0 }
 0x6ae   : > { %v6218_v58 = vld [vmem:[#allocation8 + $0x15] ss:$2 sm:$0xff]  ;;  %v6220_v8 = vld [vmem:[#allocation8 + $0x25] ss:$2 sm:$0x3]  ;;  %v6146_v41 = vadd.f32 %v6145_v24, %v6073_v44  ;;  %v11828_v63 = vpop.f32.mrb[69].mxu0  ;;  %v6191_v5 = vadd.f32 %v18405_v59, %v6175_v39 }
 0x6af   : > { %v6221_v1 = vmax.f32 %v6214_v14, %v6218_v58  ;;  %v6222_v34 = vmax.f32 %v6216_v53, %v6220_v8  ;;  %6200 = vst.msk [vmem:[#allocation8 + $0x30] sm:$0xff] %vm20317_vm10, %v6190_v37  ;;  %v6148_v62 = vpop.f32.mrb[70].mxu0  ;;  %v13061_v44 = vld [vmem:[#allocation10] ss:$20 sps:$4 sm:$0xff]   ;;  %v13065_v39 = vld [vmem:[#allocation10 + $0x28] ss:$20 sps:$4 sm:$0xff]   ;;  %vm20331_vm10 = vmmov %vm20301_vm0 }
 0x6b0   : > { %v6160_v21 = vmax.f32 %v6146_v41, 0.0  ;;  %v6149_v16 = vadd.f32 %v6148_v62, %v6076_v36  ;;  %v11829_v49 = vpop.f32.mrb[71].mxu0  ;;  %6201 = vst.msk [vmem:[#allocation8 + $0x38] sm:$0xff] %vm20318_vm5, %v6191_v5  ;;  %v13064_v14 = vld [vmem:[#allocation10 + $0x100] ss:$20 sps:$4 sm:$0xff]   ;;  %vm20332_vm5 = vmmov %vm20301_vm0 }
 0x6b1   : > { %v6223_v25 = vmax.f32 %v6211_v55, %v6221_v1  ;;  %v6224_v0 = vmax.f32 %v6212_v47, %v6222_v34  ;;  %v13067_v37 = vld [vmem:[#allocation10 + $0x2c] ss:$20 sps:$4 sm:$0xff]   ;;  %v13068_v24 = vld [vmem:[#allocation10 + $0x128] ss:$20 sps:$4 sm:$0xff]   ;;  %v13075_v47 = vld [vmem:[#allocation10 + $0x30] ss:$20 sps:$4 sm:$0xff]  }
 0x6b2   : > { %v6176_v43 = vmul.f32 %v18400_v3, %v6160_v21  ;;  %v6161_v19 = vmax.f32 %v6149_v16, 0.0  ;;  %v13071_v55 = vld [vmem:[#allocation10 + $0xc] ss:$20 sps:$4 sm:$0xff]   ;;  %v13069_v8 = vld [vmem:[#allocation10 + $0x8] ss:$20 sps:$4 sm:$0xff]  }
 0x6b3   : > { %6225 = vst.msk [vmem:[#allocation9] sm:$0xff] %vm20319_vm12, %v6223_v25  ;;  %v13074_v58 = vld [vmem:[#allocation10 + $0x14c] ss:$20 sps:$4 sm:$0xff]   ;;  %v13072_v41 = vld [vmem:[#allocation10 + $0x148] ss:$20 sps:$4 sm:$0xff]   ;;  %vm20333_vm12 = vmmov %vm20301_vm0 }
 0x6b4   : > { %6226 = vst.msk [vmem:[#allocation9 + $0x8] sm:$0x3] %vm20320_vm8, %v6224_v0  ;;  %v6192_v50 = vadd.f32 %v18405_v59, %v6176_v43  ;;  %v6177_v12 = vmul.f32 %v18400_v3, %v6161_v19  ;;  %v13077_v63 = vld [vmem:[#allocation10 + $0x34] ss:$20 sps:$4 sm:$0xff]   ;;  %v13078_v1 = vld [vmem:[#allocation10 + $0x170] ss:$20 sps:$4 sm:$0xff]   ;;  %vm20334_vm8 = vmmov %vm20301_vm0 }
 0x6b5   : > { %v13080_v36 = vld [vmem:[#allocation10 + $0x174] ss:$20 sps:$4 sm:$0xff]   ;;  %v13083_v34 = vld [vmem:[#allocation10 + $0xa4] ss:$20 sps:$4 sm:$0xff]   ;;  %v13089_v25 = vld [vmem:[#allocation10 + $0xcc] ss:$20 sps:$4 sm:$0xff]  }
 0x6b6   : > { %6202 = vst.msk [vmem:[#allocation8 + $0x40] sm:$0xff] %vm20321_vm11, %v6192_v50  ;;  %v6193_v23 = vadd.f32 %v18405_v59, %v6177_v12  ;;  %v6228_v46 = vld [vmem:[#allocation8 + $0x28] ss:$2 sm:$0xff]  ;;  %v6232_v18 = vld [vmem:[#allocation8 + $0x29] ss:$2 sm:$0xff]  ;;  %vm20335_vm11 = vmmov %vm20301_vm0 }
 0x6b7   : > { %v6230_v3 = vld [vmem:[#allocation8 + $0x38] ss:$2 sm:$0x3]  ;;  %v6234_v56 = vld [vmem:[#allocation8 + $0x39] ss:$2 sm:$0x3]  ;;  %v6235_v27 = vmax.f32 %v6228_v46, %v6232_v18 }
 0x6b8   : > { %6203 = vst.msk [vmem:[#allocation8 + $0x48] sm:$0xff] %vm20322_vm7, %v6193_v23  ;;  %v13056_v59 = vld [vmem:[#allocation10 + $0xf4] ss:$20 sps:$4 sm:$0xff]   ;;  %v6236_v42 = vmax.f32 %v6230_v3, %v6234_v56  ;;  %v13084_v16 = vld [vmem:[#allocation10 + $0x190] ss:$20 sps:$4 sm:$0xff]   ;;  %vm20336_vm7 = vmmov %vm20301_vm0 }
 0x6b9   : > { %v13086_v5 = vld [vmem:[#allocation10 + $0x194] ss:$20 sps:$4 sm:$0xff]   ;;  %v13092_v0 = vld [vmem:[#allocation10 + $0x1bc] ss:$20 sps:$4 sm:$0xff]   ;;  %v13090_v19 = vld [vmem:[#allocation10 + $0x1b8] ss:$20 sps:$4 sm:$0xff]  }
 0x6ba   : > { %v6266_v28 = vld [vmem:[#allocation9 + $0x1] ss:$32 sm:$0x1]  ;;  %v6251_v2 = vld [vmem:[#allocation9] ss:$32 sm:$0x1] }
 0x6bb   : > { %v6267_v32 = vpack.c.bf16 %v6266_v28, %v6266_v28  ;;  %v18449_v33 = vpack.c.bf16 %v6251_v2, %v6251_v2  ;;  %v6636_v31 = vld [vmem:[#allocation9 + $0x2] ss:$32 sm:$0x1]  ;;  %v6834_v4 = vld [vmem:[#allocation9 + $0x3] ss:$32 sm:$0x1] }
 0x6bc   : > { %v18457_v7 = vpack.c.bf16 %v6636_v31, %v6636_v31  ;;  %v18468_v53 = vpack.c.bf16 %v6834_v4, %v6834_v4  ;;  %v7032_v62 = vld [vmem:[#allocation9 + $0x4] ss:$32 sm:$0x1]  ;;  %v13081_v21 = vld [vmem:[#allocation10 + $0xa0] ss:$20 sps:$4 sm:$0xff]  }
 0x6bd   : > { %11220 = vmatmul.mubr.msk.bf16.vlgmr.msra.gmra.mrb[72].mxu0 %vm20323_vm3, %v6267_v32  ;;  %11843 = vmatmul.mubr.msk.bf16.vlgmr.msra.gmra.mrb[80].mxu1 %vm20324_vm14, %v18449_v33  ;;  %v18484_v49 = vpack.c.bf16 %v7032_v62, %v7032_v62  ;;  %v13087_v43 = vld [vmem:[#allocation10 + $0xc8] ss:$20 sps:$4 sm:$0xff]   ;;  %v7230_v50 = vld [vmem:[#allocation9 + $0x5] ss:$32 sm:$0x1]  ;;  %vm20337_vm3 = vmmov %vm20301_vm0 }
 0x6be   : > { %6378 = vmatpush1.bf16.msra.mxu0 %v13041_v57  ;;  %6748 = vmatpush1.bf16.msra.mxu1 %v13044_v22  ;;  %v13093_v12 = vld [vmem:[#allocation10 + $0xb0] ss:$20 sps:$4 sm:$0xff]   ;;  %v13094_v23 = vld [vmem:[#allocation10 + $0x1a0] ss:$20 sps:$4 sm:$0xff]   ;;  %v18493_v57 = vpack.c.bf16 %v7230_v50, %v7230_v50  ;;  %v13095_v22 = vld [vmem:[#allocation10 + $0xd8] ss:$20 sps:$4 sm:$0xff]  }
 0x6bf   : > { %v6238_v6 = vld [vmem:[#allocation8 + $0x3c] ss:$2 sm:$0xff]  ;;  %v6240_v9 = vld [vmem:[#allocation8 + $0x4c] ss:$2 sm:$0x3]  ;;  %6379 = vmatprep.subr.bf16.mxu0 %v13049_v17  ;;  %6749 = vmatprep.subr.bf16.mxu1 %v13052_v61  ;;  %vm20338_vm14 = vmmov %vm20301_vm0 }
 0x6c0   : > { %v6242_v38 = vld [vmem:[#allocation8 + $0x3d] ss:$2 sm:$0xff]  ;;  %v6244_v13 = vld [vmem:[#allocation8 + $0x4d] ss:$2 sm:$0x3]  ;;  %6409 = vmatprep.mubr.bf16.mxu0 %v20311_v54  ;;  %6779 = vmatprep.mubr.bf16.mxu1 %v20311_v54 }
 0x6c1   : > { %v6245_v60 = vmax.f32 %v6238_v6, %v6242_v38  ;;  %v6246_v48 = vmax.f32 %v6240_v9, %v6244_v13  ;;  %v13096_v28 = vld [vmem:[#allocation10 + $0x1c8] ss:$20 sps:$4 sm:$0xff]   ;;  %v13105_v61 = vld [vmem:[#allocation10 + $0x124] ss:$20 sps:$4 sm:$0xff]   ;;  %v13109_v56 = vld [vmem:[#allocation10 + $0x140] ss:$20 sps:$4 sm:$0xff]  }
 0x6c2   : > { %6380 = vmatpush1.bf16.msra.mxu0 %v13047_v35  ;;  %6750 = vmatpush1.bf16.msra.mxu1 %v13050_v15  ;;  %v13099_v2 = vld [vmem:[#allocation10 + $0xfc] ss:$20 sps:$4 sm:$0xff]   ;;  %v13108_v46 = vld [vmem:[#allocation10 + $0x214] ss:$20 sps:$4 sm:$0xff]   ;;  %v13111_v18 = vld [vmem:[#allocation10 + $0x144] ss:$20 sps:$4 sm:$0xff]  }
 0x6c3   : > { %v6247_v52 = vmax.f32 %v6235_v27, %v6245_v60  ;;  %v6248_v20 = vmax.f32 %v6236_v42, %v6246_v48  ;;  %11830 = vmatprep.subr.bf16.mxu0 %v20218_v51  ;;  %6904 = vmatprep.subr.bf16.mxu1 %v13056_v59  ;;  %v13100_v17 = vld [vmem:[#allocation10 + $0x1e8] ss:$20 sps:$4 sm:$0xff]   ;;  %v13103_v35 = vld [vmem:[#allocation10 + $0x120] ss:$20 sps:$4 sm:$0xff]   ;;  %v13106_v15 = vld [vmem:[#allocation10 + $0x210] ss:$20 sps:$4 sm:$0xff]  }
 0x6c4   : > { %v13114_v3 = vld [vmem:[#allocation10 + $0x234] ss:$20 sps:$4 sm:$0xff]   ;;  %v7428_v59 = vld [vmem:[#allocation9 + $0x6] ss:$32 sm:$0x1] }
 0x6c5   : > { %6249 = vst.msk [vmem:[#allocation9 + $0x10] sm:$0xff] %vm20325_vm6, %v6247_v52  ;;  %11221 = vmatmul.mubr.msk.bf16.vlgmr.msra.gmra.mrb[76].mxu0 %vm20327_vm1, %v6267_v32  ;;  %11247 = vmatmul.mubr.msk.bf16.vlgmr.msra.gmra.mrb[84].mxu1 %vm20328_vm15, %v18457_v7  ;;  %v13112_v31 = vld [vmem:[#allocation10 + $0x230] ss:$20 sps:$4 sm:$0xff]   ;;  %v18512_v6 = vpack.c.bf16 %v7428_v59, %v7428_v59  ;;  %v13117_v9 = vld [vmem:[#allocation10 + $0x16c] ss:$20 sps:$4 sm:$0xff]   ;;  %vm20339_vm6 = vmmov %vm20301_vm0 }
 0x6c6   : > { %6250 = vst.msk [vmem:[#allocation9 + $0x18] sm:$0x3] %vm20326_vm13, %v6248_v20  ;;  %11831 = vmatpush3.bf16.msra.mxu0 %v13053_v29  ;;  %6905 = vmatpush1.bf16.msra.mxu1 %v13054_v30  ;;  %v13120_v38 = vld [vmem:[#allocation10 + $0x25c] ss:$20 sps:$4 sm:$0xff]   ;;  %v13118_v27 = vld [vmem:[#allocation10 + $0x258] ss:$20 sps:$4 sm:$0xff]   ;;  %vm20340_vm13 = vmmov %vm20301_vm0 }
 0x6c7   : > { %11832 = vmatprep.subr.bf16.mxu0 %v20218_v51  ;;  %6906 = vmatprep.subr.bf16.mxu1 %v13060_v40  ;;  %v13115_v13 = vld [vmem:[#allocation10 + $0x168] ss:$20 sps:$4 sm:$0xff]   ;;  %v7626_v42 = vld [vmem:[#allocation9 + $0x7] ss:$32 sm:$0x1]  ;;  %vm20341_vm1 = vmmov %vm20301_vm0 }
 0x6c8   : > { %11834 = vmatprep.mubr.msk.bf16.mxu0 %vm13598_vm2, %v20218_v51  ;;  %6936 = vmatprep.mubr.bf16.mxu1 %v20311_v54  ;;  %v13121_v60 = vld [vmem:[#allocation10 + $0x150] ss:$20 sps:$4 sm:$0xff]   ;;  %v13122_v48 = vld [vmem:[#allocation10 + $0x240] ss:$20 sps:$4 sm:$0xff]   ;;  %v18521_v29 = vpack.c.bf16 %v7626_v42, %v7626_v42  ;;  %v13123_v30 = vld [vmem:[#allocation10 + $0x178] ss:$20 sps:$4 sm:$0xff]  }
 0x6c9   : > { %v13124_v52 = vld [vmem:[#allocation10 + $0x268] ss:$20 sps:$4 sm:$0xff]   ;;  %v13125_v40 = vld [vmem:[#allocation10 + $0x198] ss:$20 sps:$4 sm:$0xff]   ;;  %vm20342_vm15 = vmmov %vm20301_vm0 }
 0x6ca   : > { %11833 = vmatpush3.bf16.msra.mxu0 %v13057_v10  ;;  %6907 = vmatpush1.bf16.msra.mxu1 %v13058_v26  ;;  %v13127_v20 = vld [vmem:[#allocation10 + $0x19c] ss:$20 sps:$4 sm:$0xff]   ;;  %v13133_v26 = vld [vmem:[#allocation10 + $0x1c4] ss:$20 sps:$4 sm:$0xff]   ;;  %v13131_v4 = vld [vmem:[#allocation10 + $0x1c0] ss:$20 sps:$4 sm:$0xff]  }
 0x6cb   : > { %6513 = vmatprep.subr.bf16.mxu0 %v13063_v11  ;;  %11854 = vmatprep.subr.bf16.mxu1 %v20218_v51  ;;  %v13128_v10 = vld [vmem:[#allocation10 + $0x288] ss:$20 sps:$4 sm:$0xff]   ;;  %v13162_v50 = vld [vmem:[#allocation10 + $0x350] ss:$20 sps:$4 sm:$0xff]  }
 0x6cc   : > { %v13136_v11 = vld [vmem:[#allocation10 + $0x2b4] ss:$20 sps:$4 sm:$0xff]   ;;  %v13190_v42 = vld [vmem:[#allocation10 + $0x3f0] ss:$20 sps:$4 sm:$0xff]  }
 0x6cd   : > { %11835 = vmatmul.mubr.msk.bf16.vlgmr.msra.gmra.mrb[80].mxu0 %vm20329_vm4, %v6267_v32  ;;  %11259 = vmatmul.mubr.msk.bf16.vlgmr.msra.gmra.mrb[88].mxu1 %vm20330_vm9, %v18468_v53  ;;  %v13102_v32 = vld [vmem:[#allocation10 + $0x1ec] ss:$20 sps:$4 sm:$0xff]   ;;  %vm20343_vm4 = vmmov %vm20301_vm0  ;;  %v13152_v62 = vld [vmem:[#allocation10 + $0x308] ss:$20 sps:$4 sm:$0xff]  }
 0x6ce   : > { %6514 = vmatpush1.bf16.msra.mxu0 %v13061_v44  ;;  %11855 = vmatpush3.bf16.msra.mxu1 %v13064_v14  ;;  %v13134_v44 = vld [vmem:[#allocation10 + $0x2b0] ss:$20 sps:$4 sm:$0xff]   ;;  %vm20344_vm9 = vmmov %vm20301_vm0  ;;  %v13180_v59 = vld [vmem:[#allocation10 + $0x3a8] ss:$20 sps:$4 sm:$0xff]  }
 0x6cf   : > { %6515 = vmatprep.subr.bf16.mxu0 %v13067_v37  ;;  %11856 = vmatprep.subr.bf16.mxu1 %v20218_v51  ;;  %v13139_v14 = vld [vmem:[#allocation10 + $0x1e4] ss:$20 sps:$4 sm:$0xff]   ;;  %v7824_v37 = vld [vmem:[#allocation9 + $0x8] ss:$32 sm:$0x1] }
 0x6d0   : > { %6545 = vmatprep.mubr.bf16.mxu0 %v20311_v54  ;;  %11858 = vmatprep.mubr.msk.bf16.mxu1 %vm13598_vm2, %v20218_v51 }
 0x6d2   : > { %6516 = vmatpush1.bf16.msra.mxu0 %v13065_v39  ;;  %11857 = vmatpush3.bf16.msra.mxu1 %v13068_v24  ;;  %v13137_v39 = vld [vmem:[#allocation10 + $0x1e0] ss:$20 sps:$4 sm:$0xff]   ;;  %v13140_v24 = vld [vmem:[#allocation10 + $0x2d0] ss:$20 sps:$4 sm:$0xff]  }
 0x6d3   : > { %6554 = vmatprep.subr.bf16.mxu0 %v13071_v55  ;;  %7143 = vmatprep.subr.bf16.mxu1 %v13074_v58  ;;  %v18540_v55 = vpack.c.bf16 %v7824_v37, %v7824_v37  ;;  %v13145_v58 = vld [vmem:[#allocation10 + $0x20c] ss:$20 sps:$4 sm:$0xff]   ;;  %v13208_v37 = vld [vmem:[#allocation10 + $0x448] ss:$20 sps:$4 sm:$0xff]  }
 0x6d5   : > { %11233 = vmatmul.mubr.msk.bf16.vlgmr.msra.gmra.mrb[84].mxu0 %vm20301_vm0, %v18449_v33  ;;  %11859 = vmatmul.mubr.msk.bf16.vlgmr.msra.gmra.mrb[92].mxu1 %vm20331_vm10, %v18468_v53  ;;  %vm20345_vm10 = vmmov %vm20301_vm0 }
 0x6d6   : > { %6555 = vmatpush1.bf16.msra.mxu0 %v13069_v8  ;;  %7144 = vmatpush1.bf16.msra.mxu1 %v13072_v41  ;;  %v13148_v8 = vld [vmem:[#allocation10 + $0x2fc] ss:$20 sps:$4 sm:$0xff]  }
 0x6d7   : > { %6556 = vmatprep.subr.bf16.mxu0 %v13077_v63  ;;  %7145 = vmatprep.subr.bf16.mxu1 %v13080_v36  ;;  %v13143_v41 = vld [vmem:[#allocation10 + $0x208] ss:$20 sps:$4 sm:$0xff]   ;;  %v13146_v63 = vld [vmem:[#allocation10 + $0x2f8] ss:$20 sps:$4 sm:$0xff]  }
 0x6d8   : > { %6586 = vmatprep.mubr.bf16.mxu0 %v20311_v54  ;;  %7175 = vmatprep.mubr.bf16.mxu1 %v20311_v54  ;;  %v8022_v36 = vld [vmem:[#allocation9 + $0x9] ss:$32 sm:$0x1] }
 0x6da   : > { %6557 = vmatpush1.bf16.msra.mxu0 %v13075_v47  ;;  %7146 = vmatpush1.bf16.msra.mxu1 %v13078_v1  ;;  %v13149_v47 = vld [vmem:[#allocation10 + $0x1f0] ss:$20 sps:$4 sm:$0xff]   ;;  %v13150_v1 = vld [vmem:[#allocation10 + $0x2e0] ss:$20 sps:$4 sm:$0xff]  }
 0x6db   : > { %6706 = vmatprep.subr.bf16.mxu0 %v13083_v34  ;;  %7300 = vmatprep.subr.bf16.mxu1 %v13086_v5  ;;  %v18549_v34 = vpack.c.bf16 %v8022_v36, %v8022_v36  ;;  %v13151_v5 = vld [vmem:[#allocation10 + $0x218] ss:$20 sps:$4 sm:$0xff]   ;;  %v13218_v36 = vld [vmem:[#allocation10 + $0x490] ss:$20 sps:$4 sm:$0xff]  }
 0x6dd   : > { %11234 = vmatmul.mubr.msk.bf16.vlgmr.msra.gmra.mrb[88].mxu0 %vm20332_vm5, %v18449_v33  ;;  %11273 = vmatmul.mubr.msk.bf16.vlgmr.msra.gmra.mrb[96].mxu1 %vm20333_vm12, %v18484_v49  ;;  %v13097_v33 = vld [vmem:[#allocation10 + $0xf8] ss:$20 sps:$4 sm:$0xff]   ;;  %vm20346_vm5 = vmmov %vm20301_vm0 }
 0x6de   : > { %6707 = vmatpush1.bf16.msra.mxu0 %v13081_v21  ;;  %7301 = vmatpush1.bf16.msra.mxu1 %v13084_v16  ;;  %v13155_v21 = vld [vmem:[#allocation10 + $0x23c] ss:$20 sps:$4 sm:$0xff]   ;;  %v13158_v16 = vld [vmem:[#allocation10 + $0x32c] ss:$20 sps:$4 sm:$0xff]   ;;  %vm20347_vm12 = vmmov %vm20301_vm0 }
 0x6df   : > { %6708 = vmatprep.subr.bf16.mxu0 %v13089_v25  ;;  %7302 = vmatprep.subr.bf16.mxu1 %v13092_v0  ;;  %v13156_v25 = vld [vmem:[#allocation10 + $0x328] ss:$20 sps:$4 sm:$0xff]   ;;  %v13161_v0 = vld [vmem:[#allocation10 + $0x264] ss:$20 sps:$4 sm:$0xff]  }
 0x6e0   : > { %6738 = vmatprep.mubr.bf16.mxu0 %v20311_v54  ;;  %7332 = vmatprep.mubr.bf16.mxu1 %v20311_v54 }
 0x6e2   : > { %6709 = vmatpush1.bf16.msra.mxu0 %v13087_v43  ;;  %7303 = vmatpush1.bf16.msra.mxu1 %v13090_v19  ;;  %v13164_v43 = vld [vmem:[#allocation10 + $0x354] ss:$20 sps:$4 sm:$0xff]  }
 0x6e3   : > { %11846 = vmatprep.subr.bf16.mxu0 %v20218_v51  ;;  %11870 = vmatprep.subr.bf16.mxu1 %v20218_v51  ;;  %v13159_v19 = vld [vmem:[#allocation10 + $0x260] ss:$20 sps:$4 sm:$0xff]  }
 0x6e5   : > { %11246 = vmatmul.mubr.msk.bf16.vlgmr.msra.gmra.mrb[92].mxu0 %vm20334_vm8, %v18457_v7  ;;  %11285 = vmatmul.mubr.msk.bf16.vlgmr.msra.gmra.mrb[100].mxu1 %vm20335_vm11, %v18493_v57  ;;  %vm20348_vm8 = vmmov %vm20301_vm0 }
 0x6e6   : > { %11847 = vmatpush3.bf16.msra.mxu0 %v13093_v12  ;;  %11871 = vmatpush3.bf16.msra.mxu1 %v13094_v23  ;;  %v13167_v12 = vld [vmem:[#allocation10 + $0x284] ss:$20 sps:$4 sm:$0xff]   ;;  %v13170_v23 = vld [vmem:[#allocation10 + $0x374] ss:$20 sps:$4 sm:$0xff]   ;;  %vm20349_vm11 = vmmov %vm20301_vm0 }
 0x6e7   : > { %11848 = vmatprep.subr.bf16.mxu0 %v20218_v51  ;;  %11872 = vmatprep.subr.bf16.mxu1 %v20218_v51 }
 0x6e8   : > { %11850 = vmatprep.mubr.msk.bf16.mxu0 %vm13598_vm2, %v20218_v51  ;;  %11874 = vmatprep.mubr.msk.bf16.mxu1 %vm13598_vm2, %v20218_v51 }
 0x6ea   : > { %11849 = vmatpush3.bf16.msra.mxu0 %v13095_v22  ;;  %11873 = vmatpush3.bf16.msra.mxu1 %v13096_v28  ;;  %v13165_v22 = vld [vmem:[#allocation10 + $0x280] ss:$20 sps:$4 sm:$0xff]   ;;  %v13168_v28 = vld [vmem:[#allocation10 + $0x370] ss:$20 sps:$4 sm:$0xff]  }
 0x6eb   : > { %6945 = vmatprep.subr.bf16.mxu0 %v13099_v2  ;;  %7539 = vmatprep.subr.bf16.mxu1 %v13102_v32  ;;  %v13173_v32 = vld [vmem:[#allocation10 + $0x2ac] ss:$20 sps:$4 sm:$0xff]  }
 0x6ed   : > { %11851 = vmatmul.mubr.msk.bf16.vlgmr.msra.gmra.mrb[96].mxu0 %vm20336_vm7, %v18457_v7  ;;  %11875 = vmatmul.mubr.msk.bf16.vlgmr.msra.gmra.mrb[104].mxu1 %vm20337_vm3, %v18493_v57  ;;  %v13130_v7 = vld [vmem:[#allocation10 + $0x28c] ss:$20 sps:$4 sm:$0xff]   ;;  %vm20350_vm7 = vmmov %vm20301_vm0 }
 0x6ee   : > { %6946 = vmatpush1.bf16.msra.mxu0 %v13097_v33  ;;  %7540 = vmatpush1.bf16.msra.mxu1 %v13100_v17  ;;  %v13176_v33 = vld [vmem:[#allocation10 + $0x39c] ss:$20 sps:$4 sm:$0xff]   ;;  %vm20351_vm3 = vmmov %vm20301_vm0 }
 0x6ef   : > { %6947 = vmatprep.subr.bf16.mxu0 %v13105_v61  ;;  %7541 = vmatprep.subr.bf16.mxu1 %v13108_v46  ;;  %v13171_v17 = vld [vmem:[#allocation10 + $0x2a8] ss:$20 sps:$4 sm:$0xff]   ;;  %v13174_v61 = vld [vmem:[#allocation10 + $0x398] ss:$20 sps:$4 sm:$0xff]  }
 0x6f0   : > { %6977 = vmatprep.mubr.bf16.mxu0 %v20311_v54  ;;  %7571 = vmatprep.mubr.bf16.mxu1 %v20311_v54  ;;  %v8418_v46 = vld [vmem:[#allocation9 + $0x11] ss:$32 sm:$0x1] }
 0x6f2   : > { %6948 = vmatpush1.bf16.msra.mxu0 %v13103_v35  ;;  %7542 = vmatpush1.bf16.msra.mxu1 %v13106_v15  ;;  %v13177_v35 = vld [vmem:[#allocation10 + $0x290] ss:$20 sps:$4 sm:$0xff]   ;;  %v13178_v15 = vld [vmem:[#allocation10 + $0x380] ss:$20 sps:$4 sm:$0xff]  }
 0x6f3   : > { %7102 = vmatprep.subr.bf16.mxu0 %v13111_v18  ;;  %7696 = vmatprep.subr.bf16.mxu1 %v13114_v3  ;;  %v18577_v18 = vpack.c.bf16 %v8418_v46, %v8418_v46  ;;  %v13179_v3 = vld [vmem:[#allocation10 + $0x2b8] ss:$20 sps:$4 sm:$0xff]   ;;  %v13246_v46 = vld [vmem:[#allocation10 + $0x530] ss:$20 sps:$4 sm:$0xff]  }
 0x6f5   : > { %11260 = vmatmul.mubr.msk.bf16.vlgmr.msra.gmra.mrb[100].mxu0 %vm20338_vm14, %v18468_v53  ;;  %11299 = vmatmul.mubr.msk.bf16.vlgmr.msra.gmra.mrb[108].mxu1 %vm20339_vm6, %v18512_v6  ;;  %v13142_v53 = vld [vmem:[#allocation10 + $0x2d4] ss:$20 sps:$4 sm:$0xff]   ;;  %vm20352_vm14 = vmmov %vm20301_vm0 }
 0x6f6   : > { %7103 = vmatpush1.bf16.msra.mxu0 %v13109_v56  ;;  %7697 = vmatpush1.bf16.msra.mxu1 %v13112_v31  ;;  %v13183_v56 = vld [vmem:[#allocation10 + $0x2dc] ss:$20 sps:$4 sm:$0xff]   ;;  %v13186_v31 = vld [vmem:[#allocation10 + $0x3cc] ss:$20 sps:$4 sm:$0xff]   ;;  %vm20353_vm6 = vmmov %vm20301_vm0 }
 0x6f7   : > { %7104 = vmatprep.subr.bf16.mxu0 %v13117_v9  ;;  %7698 = vmatprep.subr.bf16.mxu1 %v13120_v38  ;;  %v13184_v9 = vld [vmem:[#allocation10 + $0x3c8] ss:$20 sps:$4 sm:$0xff]   ;;  %v13189_v38 = vld [vmem:[#allocation10 + $0x304] ss:$20 sps:$4 sm:$0xff]  }
 0x6f8   : > { %7134 = vmatprep.mubr.bf16.mxu0 %v20311_v54  ;;  %7728 = vmatprep.mubr.bf16.mxu1 %v20311_v54 }
 0x6fa   : > { %7105 = vmatpush1.bf16.msra.mxu0 %v13115_v13  ;;  %7699 = vmatpush1.bf16.msra.mxu1 %v13118_v27  ;;  %v13192_v13 = vld [vmem:[#allocation10 + $0x3f4] ss:$20 sps:$4 sm:$0xff]  }
 0x6fb   : > { %11862 = vmatprep.subr.bf16.mxu0 %v20218_v51  ;;  %11886 = vmatprep.subr.bf16.mxu1 %v20218_v51  ;;  %v13187_v27 = vld [vmem:[#allocation10 + $0x300] ss:$20 sps:$4 sm:$0xff]  }
 0x6fd   : > { %11272 = vmatmul.mubr.msk.bf16.vlgmr.msra.gmra.mrb[104].mxu0 %vm20340_vm13, %v18484_v49  ;;  %11311 = vmatmul.mubr.msk.bf16.vlgmr.msra.gmra.mrb[112].mxu1 %vm20341_vm1, %v18521_v29  ;;  %vm20354_vm13 = vmmov %vm20301_vm0 }
 0x6fe   : > { %11863 = vmatpush3.bf16.msra.mxu0 %v13121_v60  ;;  %11887 = vmatpush3.bf16.msra.mxu1 %v13122_v48  ;;  %v13195_v60 = vld [vmem:[#allocation10 + $0x324] ss:$20 sps:$4 sm:$0xff]   ;;  %v13198_v48 = vld [vmem:[#allocation10 + $0x414] ss:$20 sps:$4 sm:$0xff]   ;;  %vm20355_vm1 = vmmov %vm20301_vm0 }
 0x6ff   : > { %11864 = vmatprep.subr.bf16.mxu0 %v20218_v51  ;;  %11888 = vmatprep.subr.bf16.mxu1 %v20218_v51 }
 0x700   : > { %11866 = vmatprep.mubr.msk.bf16.mxu0 %vm13598_vm2, %v20218_v51  ;;  %11890 = vmatprep.mubr.msk.bf16.mxu1 %vm13598_vm2, %v20218_v51 }
 0x702   : > { %11865 = vmatpush3.bf16.msra.mxu0 %v13123_v30  ;;  %11889 = vmatpush3.bf16.msra.mxu1 %v13124_v52  ;;  %v13193_v30 = vld [vmem:[#allocation10 + $0x320] ss:$20 sps:$4 sm:$0xff]   ;;  %v13196_v52 = vld [vmem:[#allocation10 + $0x410] ss:$20 sps:$4 sm:$0xff]  }
 0x703   : > { %7341 = vmatprep.subr.bf16.mxu0 %v13127_v20  ;;  %7935 = vmatprep.subr.bf16.mxu1 %v13130_v7  ;;  %v13201_v7 = vld [vmem:[#allocation10 + $0x34c] ss:$20 sps:$4 sm:$0xff]  }
 0x705   : > { %11867 = vmatmul.mubr.msk.bf16.vlgmr.msra.gmra.mrb[108].mxu0 %vm20342_vm15, %v18484_v49  ;;  %11891 = vmatmul.mubr.msk.bf16.vlgmr.msra.gmra.mrb[116].mxu1 %vm20343_vm4, %v18521_v29  ;;  %v13153_v49 = vld [vmem:[#allocation10 + $0x238] ss:$20 sps:$4 sm:$0xff]   ;;  %vm20356_vm15 = vmmov %vm20301_vm0 }
 0x706   : > { %7342 = vmatpush1.bf16.msra.mxu0 %v13125_v40  ;;  %7936 = vmatpush1.bf16.msra.mxu1 %v13128_v10  ;;  %v13204_v40 = vld [vmem:[#allocation10 + $0x43c] ss:$20 sps:$4 sm:$0xff]   ;;  %vm20357_vm4 = vmmov %vm20301_vm0 }
 0x707   : > { %7343 = vmatprep.subr.bf16.mxu0 %v13133_v26  ;;  %7937 = vmatprep.subr.bf16.mxu1 %v13136_v11  ;;  %v13199_v10 = vld [vmem:[#allocation10 + $0x348] ss:$20 sps:$4 sm:$0xff]   ;;  %v13202_v26 = vld [vmem:[#allocation10 + $0x438] ss:$20 sps:$4 sm:$0xff]  }
 0x708   : > { %7373 = vmatprep.mubr.bf16.mxu0 %v20311_v54  ;;  %7967 = vmatprep.mubr.bf16.mxu1 %v20311_v54  ;;  %v8814_v11 = vld [vmem:[#allocation9 + $0x13] ss:$32 sm:$0x1] }
 0x70a   : > { %7344 = vmatpush1.bf16.msra.mxu0 %v13131_v4  ;;  %7938 = vmatpush1.bf16.msra.mxu1 %v13134_v44  ;;  %v13205_v4 = vld [vmem:[#allocation10 + $0x330] ss:$20 sps:$4 sm:$0xff]   ;;  %v13206_v44 = vld [vmem:[#allocation10 + $0x420] ss:$20 sps:$4 sm:$0xff]  }
 0x70b   : > { %7498 = vmatprep.subr.bf16.mxu0 %v13139_v14  ;;  %8092 = vmatprep.subr.bf16.mxu1 %v13142_v53  ;;  %v18605_v14 = vpack.c.bf16 %v8814_v11, %v8814_v11  ;;  %v13207_v53 = vld [vmem:[#allocation10 + $0x358] ss:$20 sps:$4 sm:$0xff]   ;;  %v13274_v11 = vld [vmem:[#allocation10 + $0x5d0] ss:$20 sps:$4 sm:$0xff]  }
 0x70d   : > { %11286 = vmatmul.mubr.msk.bf16.vlgmr.msra.gmra.mrb[112].mxu0 %vm20344_vm9, %v18493_v57  ;;  %11325 = vmatmul.mubr.msk.bf16.vlgmr.msra.gmra.mrb[120].mxu1 %vm20301_vm0, %v18540_v55  ;;  %v8220_v57 = vld [vmem:[#allocation9 + $0x10] ss:$32 sm:$0x1]  ;;  %vm20358_vm9 = vmmov %vm20301_vm0 }
 0x70e   : > { %7499 = vmatpush1.bf16.msra.mxu0 %v13137_v39  ;;  %8093 = vmatpush1.bf16.msra.mxu1 %v13140_v24  ;;  %v18568_v2 = vpack.c.bf16 %v8220_v57, %v8220_v57  ;;  %v13211_v39 = vld [vmem:[#allocation10 + $0x37c] ss:$20 sps:$4 sm:$0xff]   ;;  %v13214_v24 = vld [vmem:[#allocation10 + $0x46c] ss:$20 sps:$4 sm:$0xff]  }
 0x70f   : > { %7500 = vmatprep.subr.bf16.mxu0 %v13145_v58  ;;  %8094 = vmatprep.subr.bf16.mxu1 %v13148_v8  ;;  %v13212_v58 = vld [vmem:[#allocation10 + $0x468] ss:$20 sps:$4 sm:$0xff]   ;;  %v13217_v8 = vld [vmem:[#allocation10 + $0x3a4] ss:$20 sps:$4 sm:$0xff]  }
 0x710   : > { %7530 = vmatprep.mubr.bf16.mxu0 %v20311_v54  ;;  %8124 = vmatprep.mubr.bf16.mxu1 %v20311_v54  ;;  %v13236_v57 = vld [vmem:[#allocation10 + $0x4e8] ss:$20 sps:$4 sm:$0xff]  }
 0x712   : > { %7501 = vmatpush1.bf16.msra.mxu0 %v13143_v41  ;;  %8095 = vmatpush1.bf16.msra.mxu1 %v13146_v63  ;;  %v13220_v41 = vld [vmem:[#allocation10 + $0x494] ss:$20 sps:$4 sm:$0xff]  }
 0x713   : > { %11878 = vmatprep.subr.bf16.mxu0 %v20218_v51  ;;  %11902 = vmatprep.subr.bf16.mxu1 %v20218_v51  ;;  %v13215_v63 = vld [vmem:[#allocation10 + $0x3a0] ss:$20 sps:$4 sm:$0xff]  }
 0x715   : > { %11298 = vmatmul.mubr.msk.bf16.vlgmr.msra.gmra.mrb[116].mxu0 %vm20345_vm10, %v18512_v6  ;;  %11337 = vmatmul.mubr.msk.bf16.vlgmr.msra.gmra.mrb[124].mxu1 %vm20346_vm5, %v18549_v34  ;;  %vm20359_vm10 = vmmov %vm20301_vm0 }
 0x716   : > { %11879 = vmatpush3.bf16.msra.mxu0 %v13149_v47  ;;  %11903 = vmatpush3.bf16.msra.mxu1 %v13150_v1  ;;  %v13223_v47 = vld [vmem:[#allocation10 + $0x3c4] ss:$20 sps:$4 sm:$0xff]   ;;  %v13226_v1 = vld [vmem:[#allocation10 + $0x4b4] ss:$20 sps:$4 sm:$0xff]   ;;  %vm20360_vm5 = vmmov %vm20301_vm0 }
 0x717   : > { %11880 = vmatprep.subr.bf16.mxu0 %v20218_v51  ;;  %11904 = vmatprep.subr.bf16.mxu1 %v20218_v51 }
 0x718   : > { %11882 = vmatprep.mubr.msk.bf16.mxu0 %vm13598_vm2, %v20218_v51  ;;  %11906 = vmatprep.mubr.msk.bf16.mxu1 %vm13598_vm2, %v20218_v51 }
 0x71a   : > { %11881 = vmatpush3.bf16.msra.mxu0 %v13151_v5  ;;  %11905 = vmatpush3.bf16.msra.mxu1 %v13152_v62  ;;  %v13221_v5 = vld [vmem:[#allocation10 + $0x3c0] ss:$20 sps:$4 sm:$0xff]   ;;  %v13224_v62 = vld [vmem:[#allocation10 + $0x4b0] ss:$20 sps:$4 sm:$0xff]  }
 0x71b   : > { %7737 = vmatprep.subr.bf16.mxu0 %v13155_v21  ;;  %8331 = vmatprep.subr.bf16.mxu1 %v13158_v16  ;;  %v13229_v16 = vld [vmem:[#allocation10 + $0x3ec] ss:$20 sps:$4 sm:$0xff]  }
 0x71d   : > { %11883 = vmatmul.mubr.msk.bf16.vlgmr.msra.gmra.mrb[120].mxu0 %vm20347_vm12, %v18512_v6  ;;  %11907 = vmatmul.mubr.msk.bf16.vlgmr.msra.gmra.mrb[128].mxu1 %vm20348_vm8, %v18549_v34  ;;  %v13181_v6 = vld [vmem:[#allocation10 + $0x2d8] ss:$20 sps:$4 sm:$0xff]   ;;  %vm20361_vm12 = vmmov %vm20301_vm0 }
 0x71e   : > { %7738 = vmatpush1.bf16.msra.mxu0 %v13153_v49  ;;  %8332 = vmatpush1.bf16.msra.mxu1 %v13156_v25  ;;  %v13232_v49 = vld [vmem:[#allocation10 + $0x4dc] ss:$20 sps:$4 sm:$0xff]   ;;  %vm20362_vm8 = vmmov %vm20301_vm0 }
 0x71f   : > { %7739 = vmatprep.subr.bf16.mxu0 %v13161_v0  ;;  %8333 = vmatprep.subr.bf16.mxu1 %v13164_v43  ;;  %v13227_v25 = vld [vmem:[#allocation10 + $0x3e8] ss:$20 sps:$4 sm:$0xff]   ;;  %v13230_v0 = vld [vmem:[#allocation10 + $0x4d8] ss:$20 sps:$4 sm:$0xff]  }
 0x720   : > { %7769 = vmatprep.mubr.bf16.mxu0 %v20311_v54  ;;  %8363 = vmatprep.mubr.bf16.mxu1 %v20311_v54  ;;  %v9210_v43 = vld [vmem:[#allocation9 + $0x15] ss:$32 sm:$0x1] }
 0x722   : > { %7740 = vmatpush1.bf16.msra.mxu0 %v13159_v19  ;;  %8334 = vmatpush1.bf16.msra.mxu1 %v13162_v50  ;;  %v13233_v19 = vld [vmem:[#allocation10 + $0x3d0] ss:$20 sps:$4 sm:$0xff]   ;;  %v13234_v50 = vld [vmem:[#allocation10 + $0x4c0] ss:$20 sps:$4 sm:$0xff]  }
 0x723   : > { %7894 = vmatprep.subr.bf16.mxu0 %v13167_v12  ;;  %8488 = vmatprep.subr.bf16.mxu1 %v13170_v23  ;;  %v18633_v12 = vpack.c.bf16 %v9210_v43, %v9210_v43  ;;  %v13235_v23 = vld [vmem:[#allocation10 + $0x3f8] ss:$20 sps:$4 sm:$0xff]  }
 0x724   : > { %v13293_v43 = vld [vmem:[#allocation10 + $0x558] ss:$20 sps:$4 sm:$0xff]  }
 0x725   : > { %11312 = vmatmul.mubr.msk.bf16.vlgmr.msra.gmra.mrb[124].mxu0 %vm20349_vm11, %v18521_v29  ;;  %11351 = vmatmul.mubr.msk.bf16.vlgmr.msra.gmra.mrb[132].mxu1 %vm20350_vm7, %v18568_v2  ;;  %v8616_v29 = vld [vmem:[#allocation9 + $0x12] ss:$32 sm:$0x1]  ;;  %vm20363_vm11 = vmmov %vm20301_vm0 }
 0x726   : > { %7895 = vmatpush1.bf16.msra.mxu0 %v13165_v22  ;;  %8489 = vmatpush1.bf16.msra.mxu1 %v13168_v28  ;;  %v18596_v20 = vpack.c.bf16 %v8616_v29, %v8616_v29  ;;  %v13239_v22 = vld [vmem:[#allocation10 + $0x41c] ss:$20 sps:$4 sm:$0xff]   ;;  %v13242_v28 = vld [vmem:[#allocation10 + $0x50c] ss:$20 sps:$4 sm:$0xff]   ;;  %vm20364_vm7 = vmmov %vm20301_vm0 }
 0x727   : > { %7896 = vmatprep.subr.bf16.mxu0 %v13173_v32  ;;  %8490 = vmatprep.subr.bf16.mxu1 %v13176_v33  ;;  %v13240_v32 = vld [vmem:[#allocation10 + $0x508] ss:$20 sps:$4 sm:$0xff]   ;;  %v13245_v33 = vld [vmem:[#allocation10 + $0x444] ss:$20 sps:$4 sm:$0xff]  }
 0x728   : > { %7926 = vmatprep.mubr.bf16.mxu0 %v20311_v54  ;;  %8520 = vmatprep.mubr.bf16.mxu1 %v20311_v54  ;;  %v13264_v29 = vld [vmem:[#allocation10 + $0x588] ss:$20 sps:$4 sm:$0xff]  }
 0x72a   : > { %7897 = vmatpush1.bf16.msra.mxu0 %v13171_v17  ;;  %8491 = vmatpush1.bf16.msra.mxu1 %v13174_v61  ;;  %v13248_v17 = vld [vmem:[#allocation10 + $0x534] ss:$20 sps:$4 sm:$0xff]  }
 0x72b   : > { %11894 = vmatprep.subr.bf16.mxu0 %v20218_v51  ;;  %11918 = vmatprep.subr.bf16.mxu1 %v20218_v51  ;;  %v13243_v61 = vld [vmem:[#allocation10 + $0x440] ss:$20 sps:$4 sm:$0xff]  }
 0x72d   : > { %11324 = vmatmul.mubr.msk.bf16.vlgmr.msra.gmra.mrb[128].mxu0 %vm20351_vm3, %v18540_v55  ;;  %11363 = vmatmul.mubr.msk.bf16.vlgmr.msra.gmra.mrb[136].mxu1 %vm20352_vm14, %v18577_v18  ;;  %vm20365_vm3 = vmmov %vm20301_vm0 }
 0x72e   : > { %11895 = vmatpush3.bf16.msra.mxu0 %v13177_v35  ;;  %11919 = vmatpush3.bf16.msra.mxu1 %v13178_v15  ;;  %v13251_v35 = vld [vmem:[#allocation10 + $0x464] ss:$20 sps:$4 sm:$0xff]   ;;  %v13254_v15 = vld [vmem:[#allocation10 + $0x554] ss:$20 sps:$4 sm:$0xff]   ;;  %vm20366_vm14 = vmmov %vm20301_vm0 }
 0x72f   : > { %11896 = vmatprep.subr.bf16.mxu0 %v20218_v51  ;;  %11920 = vmatprep.subr.bf16.mxu1 %v20218_v51 }
 0x730   : > { %11898 = vmatprep.mubr.msk.bf16.mxu0 %vm13598_vm2, %v20218_v51  ;;  %11922 = vmatprep.mubr.msk.bf16.mxu1 %vm13598_vm2, %v20218_v51 }
 0x732   : > { %11897 = vmatpush3.bf16.msra.mxu0 %v13179_v3  ;;  %11921 = vmatpush3.bf16.msra.mxu1 %v13180_v59  ;;  %v13249_v3 = vld [vmem:[#allocation10 + $0x460] ss:$20 sps:$4 sm:$0xff]   ;;  %v13252_v59 = vld [vmem:[#allocation10 + $0x550] ss:$20 sps:$4 sm:$0xff]  }
 0x733   : > { %8133 = vmatprep.subr.bf16.mxu0 %v13183_v56  ;;  %8727 = vmatprep.subr.bf16.mxu1 %v13186_v31  ;;  %v13257_v31 = vld [vmem:[#allocation10 + $0x48c] ss:$20 sps:$4 sm:$0xff]  }
 0x735   : > { %11899 = vmatmul.mubr.msk.bf16.vlgmr.msra.gmra.mrb[132].mxu0 %vm20353_vm6, %v18540_v55  ;;  %11923 = vmatmul.mubr.msk.bf16.vlgmr.msra.gmra.mrb[140].mxu1 %vm20354_vm13, %v18577_v18  ;;  %v13209_v55 = vld [vmem:[#allocation10 + $0x378] ss:$20 sps:$4 sm:$0xff]   ;;  %vm20367_vm6 = vmmov %vm20301_vm0 }
 0x736   : > { %8134 = vmatpush1.bf16.msra.mxu0 %v13181_v6  ;;  %8728 = vmatpush1.bf16.msra.mxu1 %v13184_v9  ;;  %v13260_v6 = vld [vmem:[#allocation10 + $0x57c] ss:$20 sps:$4 sm:$0xff]   ;;  %vm20368_vm13 = vmmov %vm20301_vm0 }
 0x737   : > { %8135 = vmatprep.subr.bf16.mxu0 %v13189_v38  ;;  %8729 = vmatprep.subr.bf16.mxu1 %v13192_v13  ;;  %v13255_v9 = vld [vmem:[#allocation10 + $0x488] ss:$20 sps:$4 sm:$0xff]   ;;  %v13258_v38 = vld [vmem:[#allocation10 + $0x578] ss:$20 sps:$4 sm:$0xff]  }
 0x738   : > { %8165 = vmatprep.mubr.bf16.mxu0 %v20311_v54  ;;  %8759 = vmatprep.mubr.bf16.mxu1 %v20311_v54  ;;  %v9606_v13 = vld [vmem:[#allocation9 + $0x17] ss:$32 sm:$0x1] }
 0x73a   : > { %8136 = vmatpush1.bf16.msra.mxu0 %v13187_v27  ;;  %8730 = vmatpush1.bf16.msra.mxu1 %v13190_v42  ;;  %v13261_v27 = vld [vmem:[#allocation10 + $0x470] ss:$20 sps:$4 sm:$0xff]   ;;  %v13262_v42 = vld [vmem:[#allocation10 + $0x560] ss:$20 sps:$4 sm:$0xff]  }
 0x73b   : > { %8290 = vmatprep.subr.bf16.mxu0 %v13195_v60  ;;  %8884 = vmatprep.subr.bf16.mxu1 %v13198_v48  ;;  %v18661_v60 = vpack.c.bf16 %v9606_v13, %v9606_v13  ;;  %v13263_v48 = vld [vmem:[#allocation10 + $0x498] ss:$20 sps:$4 sm:$0xff]   ;;  %v13305_v13 = vld [vmem:[#allocation10 + $0x5b0] ss:$20 sps:$4 sm:$0xff]  }
 0x73d   : > { %11338 = vmatmul.mubr.msk.bf16.vlgmr.msra.gmra.mrb[136].mxu0 %vm20355_vm1, %v18549_v34  ;;  %11377 = vmatmul.mubr.msk.bf16.vlgmr.msra.gmra.mrb[144].mxu1 %vm20356_vm15, %v18596_v20  ;;  %v9012_v34 = vld [vmem:[#allocation9 + $0x14] ss:$32 sm:$0x1]  ;;  %vm20369_vm1 = vmmov %vm20301_vm0 }
 0x73e   : > { %8291 = vmatpush1.bf16.msra.mxu0 %v13193_v30  ;;  %8885 = vmatpush1.bf16.msra.mxu1 %v13196_v52  ;;  %v18624_v21 = vpack.c.bf16 %v9012_v34, %v9012_v34  ;;  %v13267_v30 = vld [vmem:[#allocation10 + $0x4bc] ss:$20 sps:$4 sm:$0xff]   ;;  %v13270_v52 = vld [vmem:[#allocation10 + $0x5ac] ss:$20 sps:$4 sm:$0xff]   ;;  %vm20370_vm15 = vmmov %vm20301_vm0 }
 0x73f   : > { %8292 = vmatprep.subr.bf16.mxu0 %v13201_v7  ;;  %8886 = vmatprep.subr.bf16.mxu1 %v13204_v40  ;;  %v13268_v7 = vld [vmem:[#allocation10 + $0x5a8] ss:$20 sps:$4 sm:$0xff]   ;;  %v13273_v40 = vld [vmem:[#allocation10 + $0x4e4] ss:$20 sps:$4 sm:$0xff]  }
 0x740   : > { %8322 = vmatprep.mubr.bf16.mxu0 %v20311_v54  ;;  %8916 = vmatprep.mubr.bf16.mxu1 %v20311_v54  ;;  %v13292_v34 = vld [vmem:[#allocation10 + $0x628] ss:$20 sps:$4 sm:$0xff]  }
 0x742   : > { %8293 = vmatpush1.bf16.msra.mxu0 %v13199_v10  ;;  %8887 = vmatpush1.bf16.msra.mxu1 %v13202_v26  ;;  %v13276_v10 = vld [vmem:[#allocation10 + $0x5d4] ss:$20 sps:$4 sm:$0xff]  }
 0x743   : > { %11910 = vmatprep.subr.bf16.mxu0 %v20218_v51  ;;  %11934 = vmatprep.subr.bf16.mxu1 %v20218_v51  ;;  %v13271_v26 = vld [vmem:[#allocation10 + $0x4e0] ss:$20 sps:$4 sm:$0xff]  }
 0x745   : > { %11350 = vmatmul.mubr.msk.bf16.vlgmr.msra.gmra.mrb[140].mxu0 %vm20357_vm4, %v18568_v2  ;;  %11389 = vmatmul.mubr.msk.bf16.vlgmr.msra.gmra.mrb[148].mxu1 %vm20358_vm9, %v18605_v14  ;;  %vm20371_vm4 = vmmov %vm20301_vm0 }
 0x746   : > { %11911 = vmatpush3.bf16.msra.mxu0 %v13205_v4  ;;  %11935 = vmatpush3.bf16.msra.mxu1 %v13206_v44  ;;  %v13279_v4 = vld [vmem:[#allocation10 + $0x504] ss:$20 sps:$4 sm:$0xff]   ;;  %v13282_v44 = vld [vmem:[#allocation10 + $0x5f4] ss:$20 sps:$4 sm:$0xff]   ;;  %vm20372_vm9 = vmmov %vm20301_vm0 }
 0x747   : > { %11912 = vmatprep.subr.bf16.mxu0 %v20218_v51  ;;  %11936 = vmatprep.subr.bf16.mxu1 %v20218_v51 }
 0x748   : > { %11914 = vmatprep.mubr.msk.bf16.mxu0 %vm13598_vm2, %v20218_v51  ;;  %11938 = vmatprep.mubr.msk.bf16.mxu1 %vm13598_vm2, %v20218_v51 }
 0x74a   : > { %11913 = vmatpush3.bf16.msra.mxu0 %v13207_v53  ;;  %11937 = vmatpush3.bf16.msra.mxu1 %v13208_v37  ;;  %v13277_v53 = vld [vmem:[#allocation10 + $0x500] ss:$20 sps:$4 sm:$0xff]   ;;  %v13280_v37 = vld [vmem:[#allocation10 + $0x5f0] ss:$20 sps:$4 sm:$0xff]  }
 0x74b   : > { %8529 = vmatprep.subr.bf16.mxu0 %v13211_v39  ;;  %9123 = vmatprep.subr.bf16.mxu1 %v13214_v24  ;;  %v13285_v24 = vld [vmem:[#allocation10 + $0x52c] ss:$20 sps:$4 sm:$0xff]  }
 0x74d   : > { %11915 = vmatmul.mubr.msk.bf16.vlgmr.msra.gmra.mrb[144].mxu0 %vm20301_vm0, %v18568_v2  ;;  %11939 = vmatmul.mubr.msk.bf16.vlgmr.msra.gmra.mrb[152].mxu1 %vm20359_vm10, %v18605_v14  ;;  %v13237_v2 = vld [vmem:[#allocation10 + $0x418] ss:$20 sps:$4 sm:$0xff]   ;;  %vm20373_vm10 = vmmov %vm20301_vm0 }
 0x74e   : > { %8530 = vmatpush1.bf16.msra.mxu0 %v13209_v55  ;;  %9124 = vmatpush1.bf16.msra.mxu1 %v13212_v58  ;;  %v13288_v55 = vld [vmem:[#allocation10 + $0x61c] ss:$20 sps:$4 sm:$0xff]  }
 0x74f   : > { %8531 = vmatprep.subr.bf16.mxu0 %v13217_v8  ;;  %9125 = vmatprep.subr.bf16.mxu1 %v13220_v41  ;;  %v13283_v58 = vld [vmem:[#allocation10 + $0x528] ss:$20 sps:$4 sm:$0xff]   ;;  %v13286_v8 = vld [vmem:[#allocation10 + $0x618] ss:$20 sps:$4 sm:$0xff]  }
 0x750   : > { %8561 = vmatprep.mubr.bf16.mxu0 %v20311_v54  ;;  %9155 = vmatprep.mubr.bf16.mxu1 %v20311_v54  ;;  %v10002_v41 = vld [vmem:[#allocation9 + $0x19] ss:$32 sm:$0x1] }
 0x752   : > { %8532 = vmatpush1.bf16.msra.mxu0 %v13215_v63  ;;  %9126 = vmatpush1.bf16.msra.mxu1 %v13218_v36  ;;  %v13289_v63 = vld [vmem:[#allocation10 + $0x510] ss:$20 sps:$4 sm:$0xff]   ;;  %v13290_v36 = vld [vmem:[#allocation10 + $0x600] ss:$20 sps:$4 sm:$0xff]  }
 0x753   : > { %8686 = vmatprep.subr.bf16.mxu0 %v13223_v47  ;;  %9280 = vmatprep.subr.bf16.mxu1 %v13226_v1  ;;  %v18689_v47 = vpack.c.bf16 %v10002_v41, %v10002_v41  ;;  %v13291_v1 = vld [vmem:[#allocation10 + $0x538] ss:$20 sps:$4 sm:$0xff]  }
 0x755   : > { %11364 = vmatmul.mubr.msk.bf16.vlgmr.msra.gmra.mrb[148].mxu0 %vm20360_vm5, %v18577_v18  ;;  %11403 = vmatmul.mubr.msk.bf16.vlgmr.msra.gmra.mrb[156].mxu1 %vm20361_vm12, %v18624_v21  ;;  %v9408_v18 = vld [vmem:[#allocation9 + $0x16] ss:$32 sm:$0x1]  ;;  %vm20374_vm5 = vmmov %vm20301_vm0 }
 0x756   : > { %8687 = vmatpush1.bf16.msra.mxu0 %v13221_v5  ;;  %9281 = vmatpush1.bf16.msra.mxu1 %v13224_v62  ;;  %v18652_v56 = vpack.c.bf16 %v9408_v18, %v9408_v18  ;;  %v13295_v5 = vld [vmem:[#allocation10 + $0x55c] ss:$20 sps:$4 sm:$0xff]   ;;  %vm20375_vm12 = vmmov %vm20301_vm0 }
 0x757   : > { %8688 = vmatprep.subr.bf16.mxu0 %v13229_v16  ;;  %9282 = vmatprep.subr.bf16.mxu1 %v13232_v49  ;;  %v13302_v18 = vld [vmem:[#allocation10 + $0x5c8] ss:$20 sps:$4 sm:$0xff]  }
 0x758   : > { %8718 = vmatprep.mubr.bf16.mxu0 %v20311_v54  ;;  %9312 = vmatprep.mubr.bf16.mxu1 %v20311_v54 }
 0x75a   : > { %8689 = vmatpush1.bf16.msra.mxu0 %v13227_v25  ;;  %9283 = vmatpush1.bf16.msra.mxu1 %v13230_v0 }
 0x75b   : > { %11926 = vmatprep.subr.bf16.mxu0 %v20218_v51  ;;  %11950 = vmatprep.subr.bf16.mxu1 %v20218_v51 }
 0x75d   : > { %11376 = vmatmul.mubr.msk.bf16.vlgmr.msra.gmra.mrb[152].mxu0 %vm20362_vm8, %v18596_v20  ;;  %11415 = vmatmul.mubr.msk.bf16.vlgmr.msra.gmra.mrb[160].mxu1 %vm20363_vm11, %v18633_v12  ;;  %vm20376_vm8 = vmmov %vm20301_vm0 }
 0x75e   : > { %11927 = vmatpush3.bf16.msra.mxu0 %v13233_v19  ;;  %11951 = vmatpush3.bf16.msra.mxu1 %v13234_v50  ;;  %vm20377_vm11 = vmmov %vm20301_vm0 }
 0x75f   : > { %11928 = vmatprep.subr.bf16.mxu0 %v20218_v51  ;;  %11952 = vmatprep.subr.bf16.mxu1 %v20218_v51 }
 0x760   : > { %11930 = vmatprep.mubr.msk.bf16.mxu0 %vm13598_vm2, %v20218_v51  ;;  %11954 = vmatprep.mubr.msk.bf16.mxu1 %vm13598_vm2, %v20218_v51 }
 0x762   : > { %11929 = vmatpush3.bf16.msra.mxu0 %v13235_v23  ;;  %11953 = vmatpush3.bf16.msra.mxu1 %v13236_v57  ;;  %v13296_v23 = vld [vmem:[#allocation10 + $0x580] ss:$20 sps:$4 sm:$0xff]   ;;  %v13301_v57 = vld [vmem:[#allocation10 + $0x5a4] ss:$20 sps:$4 sm:$0xff]  }
 0x763   : > { %8925 = vmatprep.subr.bf16.mxu0 %v13239_v22  ;;  %9519 = vmatprep.subr.bf16.mxu1 %v13242_v28 }
 0x765   : > { %11931 = vmatmul.mubr.msk.bf16.vlgmr.msra.gmra.mrb[156].mxu0 %vm20364_vm7, %v18596_v20  ;;  %11955 = vmatmul.mubr.msk.bf16.vlgmr.msra.gmra.mrb[164].mxu1 %vm20365_vm3, %v18633_v12  ;;  %v13265_v20 = vld [vmem:[#allocation10 + $0x4b8] ss:$20 sps:$4 sm:$0xff]   ;;  %vm20378_vm7 = vmmov %vm20301_vm0 }
 0x766   : > { %8926 = vmatpush1.bf16.msra.mxu0 %v13237_v2  ;;  %9520 = vmatpush1.bf16.msra.mxu1 %v13240_v32  ;;  %vm20379_vm3 = vmmov %vm20301_vm0 }
 0x767   : > { %8927 = vmatprep.subr.bf16.mxu0 %v13245_v33  ;;  %9521 = vmatprep.subr.bf16.mxu1 %v13248_v17 }
 0x768   : > { %8957 = vmatprep.mubr.bf16.mxu0 %v20311_v54  ;;  %9551 = vmatprep.mubr.bf16.mxu1 %v20311_v54 }
 0x76a   : > { %8928 = vmatpush1.bf16.msra.mxu0 %v13243_v61  ;;  %9522 = vmatpush1.bf16.msra.mxu1 %v13246_v46  ;;  %v13299_v61 = vld [vmem:[#allocation10 + $0x5a0] ss:$20 sps:$4 sm:$0xff]  }
 0x76b   : > { %9082 = vmatprep.subr.bf16.mxu0 %v13251_v35  ;;  %9676 = vmatprep.subr.bf16.mxu1 %v13254_v15  ;;  %v13304_v15 = vld [vmem:[#allocation10 + $0x5cc] ss:$20 sps:$4 sm:$0xff]  }
 0x76d   : > { %11390 = vmatmul.mubr.msk.bf16.vlgmr.msra.gmra.mrb[160].mxu0 %vm20366_vm14, %v18605_v14  ;;  %11429 = vmatmul.mubr.msk.bf16.vlgmr.msra.gmra.mrb[168].mxu1 %vm20367_vm6, %v18652_v56  ;;  %v9804_v14 = vld [vmem:[#allocation9 + $0x18] ss:$32 sm:$0x1]  ;;  %vm11029_vm14 = vcmask 24576  }
 0x76e   : > { %9083 = vmatpush1.bf16.msra.mxu0 %v13249_v3  ;;  %9677 = vmatpush1.bf16.msra.mxu1 %v13252_v59  ;;  %v18680_v39 = vpack.c.bf16 %v9804_v14, %v9804_v14  ;;  %v13312_v14 = vld [vmem:[#allocation10 + $0x624] ss:$20 sps:$4 sm:$0xff]  }
 0x76f   : > { %9084 = vmatprep.subr.bf16.mxu0 %v13257_v31  ;;  %9678 = vmatprep.subr.bf16.mxu1 %v13260_v6 }
 0x770   : > { %9114 = vmatprep.mubr.bf16.mxu0 %v20311_v54  ;;  %9708 = vmatprep.mubr.bf16.mxu1 %v20311_v54 }
 0x772   : > { %9085 = vmatpush1.bf16.msra.mxu0 %v13255_v9  ;;  %9679 = vmatpush1.bf16.msra.mxu1 %v13258_v38 }
 0x773   : > { %11942 = vmatprep.subr.bf16.mxu0 %v20218_v51  ;;  %11966 = vmatprep.subr.bf16.mxu1 %v20218_v51 }
 0x775   : > { %11402 = vmatmul.mubr.msk.bf16.vlgmr.msra.gmra.mrb[164].mxu0 %vm20368_vm13, %v18624_v21  ;;  %11441 = vmatmul.mubr.msk.bf16.vlgmr.msra.gmra.mrb[172].mxu1 %vm20369_vm1, %v18661_v60 }
 0x776   : > { %11943 = vmatpush3.bf16.msra.mxu0 %v13261_v27  ;;  %11967 = vmatpush3.bf16.msra.mxu1 %v13262_v42 }
 0x777   : > { %11944 = vmatprep.subr.bf16.mxu0 %v20218_v51  ;;  %11968 = vmatprep.subr.bf16.mxu1 %v20218_v51 }
 0x778   : > { %11946 = vmatprep.mubr.msk.bf16.mxu0 %vm13598_vm2, %v20218_v51  ;;  %11970 = vmatprep.mubr.msk.bf16.mxu1 %vm13598_vm2, %v20218_v51 }
 0x77a   : > { %11945 = vmatpush3.bf16.msra.mxu0 %v13263_v48  ;;  %11969 = vmatpush3.bf16.msra.mxu1 %v13264_v29  ;;  %v13309_v48 = vld [vmem:[#allocation10 + $0x5fc] ss:$20 sps:$4 sm:$0xff]  }
 0x77b   : > { %9321 = vmatprep.subr.bf16.mxu0 %v13267_v30  ;;  %9915 = vmatprep.subr.bf16.mxu1 %v13270_v52 }
 0x77d   : > { %11947 = vmatmul.mubr.msk.bf16.vlgmr.msra.gmra.mrb[168].mxu0 %vm20370_vm15, %v18624_v21  ;;  %11971 = vmatmul.mubr.msk.bf16.vlgmr.msra.gmra.mrb[176].mxu1 %vm20371_vm4, %v18661_v60 }
 0x77e   : > { %9322 = vmatpush1.bf16.msra.mxu0 %v13265_v20  ;;  %9916 = vmatpush1.bf16.msra.mxu1 %v13268_v7 }
 0x77f   : > { %9323 = vmatprep.subr.bf16.mxu0 %v13273_v40  ;;  %9917 = vmatprep.subr.bf16.mxu1 %v13276_v10 }
 0x780   : > { %9353 = vmatprep.mubr.bf16.mxu0 %v20311_v54  ;;  %9947 = vmatprep.mubr.bf16.mxu1 %v20311_v54 }
 0x782   : > { %9324 = vmatpush1.bf16.msra.mxu0 %v13271_v26  ;;  %9918 = vmatpush1.bf16.msra.mxu1 %v13274_v11  ;;  %v13307_v11 = vld [vmem:[#allocation10 + $0x5f8] ss:$20 sps:$4 sm:$0xff]  }
 0x783   : > { %9478 = vmatprep.subr.bf16.mxu0 %v13279_v4  ;;  %10072 = vmatprep.subr.bf16.mxu1 %v13282_v44 }
 0x785   : > { %11416 = vmatmul.mubr.msk.bf16.vlgmr.msra.gmra.mrb[172].mxu0 %vm20372_vm9, %v18633_v12  ;;  %11455 = vmatmul.mubr.msk.bf16.vlgmr.msra.gmra.mrb[180].mxu1 %vm20301_vm0, %v18680_v39  ;;  %v13298_v12 = vld [vmem:[#allocation10 + $0x584] ss:$20 sps:$4 sm:$0xff]  }
 0x786   : > { %9479 = vmatpush1.bf16.msra.mxu0 %v13277_v53  ;;  %10073 = vmatpush1.bf16.msra.mxu1 %v13280_v37 }
 0x787   : > { %9480 = vmatprep.subr.bf16.mxu0 %v13285_v24  ;;  %10074 = vmatprep.subr.bf16.mxu1 %v13288_v55 }
 0x788   : > { %9510 = vmatprep.mubr.bf16.mxu0 %v20311_v54  ;;  %10104 = vmatprep.mubr.bf16.mxu1 %v20311_v54 }
 0x78a   : > { %9481 = vmatpush1.bf16.msra.mxu0 %v13283_v58  ;;  %10075 = vmatpush1.bf16.msra.mxu1 %v13286_v8 }
 0x78b   : > { %11958 = vmatprep.subr.bf16.mxu0 %v20218_v51  ;;  %11982 = vmatprep.subr.bf16.mxu1 %v20218_v51 }
 0x78d   : > { %11428 = vmatmul.mubr.msk.bf16.vlgmr.msra.gmra.mrb[176].mxu0 %vm20373_vm10, %v18652_v56  ;;  %11467 = vmatmul.mubr.msk.bf16.vlgmr.msra.gmra.mrb[184].mxu1 %vm20374_vm5, %v18689_v47 }
 0x78e   : > { %11959 = vmatpush3.bf16.msra.mxu0 %v13289_v63  ;;  %11983 = vmatpush3.bf16.msra.mxu1 %v13290_v36 }
 0x78f   : > { %11960 = vmatprep.subr.bf16.mxu0 %v20218_v51  ;;  %11984 = vmatprep.subr.bf16.mxu1 %v20218_v51 }
 0x790   : > { %v6370_v62 = vpop.f32.mrb[72].mxu0  ;;  %v6629_v21 = vpop.f32.mrb[80].mxu1  ;;  %11962 = vmatprep.mubr.msk.bf16.mxu0 %vm13598_vm2, %v20218_v51  ;;  %11986 = vmatprep.mubr.msk.bf16.mxu1 %vm13598_vm2, %v20218_v51 }
 0x791   : > { %v6372_v16 = vpop.f32.mrb[73].mxu0  ;;  %v11844_v49 = vpop.f32.mrb[81].mxu1 }
 0x792   : > { %11961 = vmatpush3.bf16.msra.mxu0 %v13291_v1  ;;  %v6374_v25 = vpop.f32.mrb[74].mxu0  ;;  %v6632_v0 = vpop.f32.mrb[82].mxu1  ;;  %11985 = vmatpush3.bf16.msra.mxu1 %v13292_v34 }
 0x793   : > { %v6375_v19 = vpop.f32.mrb[75].mxu0  ;;  %v11845_v50 = vpop.f32.mrb[83].mxu1  ;;  %9717 = vmatprep.subr.bf16.mxu0 %v13295_v5 }
 0x795   : > { %11963 = vmatmul.mubr.msk.bf16.vlgmr.msra.gmra.mrb[180].mxu0 %vm20375_vm12, %v18652_v56  ;;  %11987 = vmatmul.mubr.msk.bf16.vlgmr.msra.gmra.mrb[188].mxu1 %vm20376_vm8, %v18689_v47 }
 0x796   : > { %9718 = vmatpush1.bf16.msra.mxu0 %v13293_v43  ;;  %9749 = vmatprep.mubr.bf16.mxu0 %v20311_v54 }
 0x797   : > { %9719 = vmatprep.subr.bf16.mxu0 %v13298_v12 }
 0x798   : > { %v6411_v22 = vpop.f32.mrb[76].mxu0  ;;  %v18707_v28 = vpop.f32.mrb[84].mxu1 }
 0x799   : > { %v6413_v2 = vpop.f32.mrb[77].mxu0  ;;  %v18709_v32 = vpop.f32.mrb[85].mxu1 }
 0x79a   : > { %9720 = vmatpush1.bf16.msra.mxu0 %v13296_v23  ;;  %v6415_v33 = vpop.f32.mrb[78].mxu0  ;;  %v6785_v17 = vpop.f32.mrb[86].mxu1 }
 0x79b   : > { %v6416_v46 = vpop.f32.mrb[79].mxu0  ;;  %v6786_v35 = vpop.f32.mrb[87].mxu1  ;;  %9874 = vmatprep.subr.bf16.mxu0 %v13301_v57 }
 0x79c   : > { %v13313_v35 = vld [vmem:[%s19176_s15] ss:$8 sps:$4 sm:$0xff]  }
 0x79d   : > { %11442 = vmatmul.mubr.msk.bf16.vlgmr.msra.gmra.mrb[184].mxu0 %vm20377_vm11, %v18661_v60  ;;  %v13306_v60 = vld [vmem:[#allocation10 + $0x5d8] ss:$20 sps:$4 sm:$0xff]  }
 0x79e   : > { %9875 = vmatpush1.bf16.msra.mxu0 %v13299_v61  ;;  %9906 = vmatprep.mubr.bf16.mxu0 %v20311_v54 }
 0x79f   : > { %9876 = vmatprep.subr.bf16.mxu0 %v13304_v15  ;;  %v13315_v15 = vld [vmem:[%s19176_s15 + $0x4] ss:$8 sps:$4 sm:$0xff]  }
 0x7a0   : > { %v6452_v3 = vpop.f32.mrb[80].mxu0  ;;  %v6938_v59 = vpop.f32.mrb[88].mxu1  ;;  %10733 = vmatprep.subr.bf16.mxu1 %v13315_v15 }
 0x7a1   : > { %v18714_v56 = vadd.f32 %v6629_v21, %v6452_v3  ;;  %v11836_v31 = vpop.f32.mrb[81].mxu0  ;;  %v6940_v6 = vpop.f32.mrb[89].mxu1  ;;  %10734 = vmatpush1.bf16.msra.mxu1 %v13313_v35 }
 0x7a2   : > { %9877 = vmatpush1.bf16.msra.mxu0 %v13302_v18  ;;  %v6455_v9 = vpop.f32.mrb[82].mxu0  ;;  %v6942_v38 = vpop.f32.mrb[90].mxu1 }
 0x7a3   : > { %v11837_v27 = vpop.f32.mrb[83].mxu0  ;;  %v6943_v42 = vpop.f32.mrb[91].mxu1  ;;  %11974 = vmatprep.subr.bf16.mxu0 %v20218_v51 }
 0x7a4   : > { %v13318_v27 = vld [vmem:[%s19176_s15 + $0x14] ss:$8 sps:$4 sm:$0xff]  }
 0x7a5   : > { %11454 = vmatmul.mubr.msk.bf16.vlgmr.msra.gmra.mrb[188].mxu0 %vm20378_vm7, %v18680_v39  ;;  %10735 = vmatprep.subr.bf16.mxu1 %v13318_v27 }
 0x7a6   : > { %11975 = vmatpush3.bf16.msra.mxu0 %v13305_v13  ;;  %11978 = vmatprep.mubr.msk.bf16.mxu0 %vm13598_vm2, %v20218_v51  ;;  %vm20380_vm2 = vmmov %vm20301_vm0  ;;  %v13316_v13 = vld [vmem:[%s19176_s15 + $0x10] ss:$8 sps:$4 sm:$0xff]  }
 0x7a7   : > { %11976 = vmatprep.subr.bf16.mxu0 %v20218_v51  ;;  %v13310_v51 = vld [vmem:[#allocation10 + $0x620] ss:$20 sps:$4 sm:$0xff]   ;;  %10736 = vmatpush1.bf16.msra.mxu1 %v13316_v13 }
 0x7a8   : > { %v6547_v29 = vpop.f32.mrb[84].mxu0  ;;  %v7020_v30 = vpop.f32.mrb[92].mxu1  ;;  %v13351_v13 = vld [vmem:[%s19176_s15 + $0x144] ss:$8 sps:$4 sm:$0xff]  }
 0x7a9   : > { %v6548_v52 = vadd.f32 %v6547_v29, %v6370_v62  ;;  %v6549_v20 = vpop.f32.mrb[85].mxu0  ;;  %v11860_v7 = vpop.f32.mrb[93].mxu1  ;;  %v13321_v29 = vld [vmem:[%s19176_s15 + $0x24] ss:$8 sps:$4 sm:$0xff]  }
 0x7aa   : > { %v6550_v40 = vadd.f32 %v6549_v20, %v6372_v16  ;;  %11977 = vmatpush3.bf16.msra.mxu0 %v13306_v60  ;;  %v6551_v10 = vpop.f32.mrb[86].mxu0  ;;  %v7023_v26 = vpop.f32.mrb[94].mxu1  ;;  %10737 = vmatprep.subr.bf16.mxu1 %v13321_v29 }
 0x7ab   : > { %v6552_v4 = vpop.f32.mrb[87].mxu0  ;;  %v11861_v44 = vpop.f32.mrb[95].mxu1  ;;  %10113 = vmatprep.subr.bf16.mxu0 %v13309_v48 }
 0x7ac   : > { %v13324_v4 = vld [vmem:[%s19176_s15 + $0x34] ss:$8 sps:$4 sm:$0xff]  }
 0x7ad   : > { %11979 = vmatmul.mubr.msk.bf16.vlgmr.msra.gmra.mrb[192].mxu0 %vm20379_vm3, %v18680_v39 }
 0x7ae   : > { %10114 = vmatpush1.bf16.msra.mxu0 %v13307_v11  ;;  %10145 = vmatprep.mubr.bf16.mxu0 %v20311_v54  ;;  %v13322_v11 = vld [vmem:[%s19176_s15 + $0x30] ss:$8 sps:$4 sm:$0xff]  }
 0x7af   : > { %10115 = vmatprep.subr.bf16.mxu0 %v13312_v14 }
 0x7b0   : > { %v6588_v53 = vpop.f32.mrb[88].mxu0  ;;  %v7177_v37 = vpop.f32.mrb[96].mxu1 }
 0x7b1   : > { %v6589_v24 = vadd.f32 %v6588_v53, %v6411_v22  ;;  %v6590_v55 = vpop.f32.mrb[89].mxu0  ;;  %v7179_v58 = vpop.f32.mrb[97].mxu1  ;;  %v13325_v53 = vld [vmem:[%s19176_s15 + $0x100] ss:$8 sps:$4 sm:$0xff]  }
 0x7b2   : > { %v6591_v8 = vadd.f32 %v6590_v55, %v6413_v2  ;;  %10116 = vmatpush1.bf16.msra.mxu0 %v13310_v51  ;;  %v6592_v41 = vpop.f32.mrb[90].mxu0  ;;  %v7181_v63 = vpop.f32.mrb[98].mxu1 }
 0x7b3   : > { %v6593_v36 = vpop.f32.mrb[91].mxu0  ;;  %v7182_v1 = vpop.f32.mrb[99].mxu1  ;;  %v6830_v34 = vadd.f32 %v18707_v28, %v6589_v24  ;;  %v13333_v63 = vld [vmem:[%s19176_s15 + $0x114] ss:$8 sps:$4 sm:$0xff]  }
 0x7b4   : > { %v6831_v39 = vadd.f32 %v18709_v32, %v6591_v8  ;;  %v13330_v8 = vld [vmem:[%s19176_s15 + $0x44] ss:$8 sps:$4 sm:$0xff]   ;;  %v13328_v36 = vld [vmem:[%s19176_s15 + $0x40] ss:$8 sps:$4 sm:$0xff]   ;;  %v13331_v1 = vld [vmem:[%s19176_s15 + $0x110] ss:$8 sps:$4 sm:$0xff]  }
 0x7b5   : > { %11468 = vmatmul.mubr.msk.bf16.vlgmr.msra.gmra.mrb[196].mxu0 %vm20380_vm2, %v18689_v47 }
 0x7b8   : > { %v6740_v5 = vpop.f32.mrb[92].mxu0  ;;  %v7334_v62 = vpop.f32.mrb[100].mxu1 }
 0x7b9   : > { %v6828_v21 = vadd.f32 %v6740_v5, %v6548_v52  ;;  %v6742_v16 = vpop.f32.mrb[93].mxu0  ;;  %v7336_v49 = vpop.f32.mrb[101].mxu1  ;;  %v13319_v52 = vld [vmem:[%s19176_s15 + $0x20] ss:$8 sps:$4 sm:$0xff]  }
 0x7ba   : > { %v6829_v25 = vadd.f32 %v6742_v16, %v6550_v40  ;;  %v6744_v0 = vpop.f32.mrb[94].mxu0  ;;  %v7338_v43 = vpop.f32.mrb[102].mxu1  ;;  %10738 = vmatpush1.bf16.msra.mxu1 %v13319_v52 }
 0x7bb   : > { %v6745_v19 = vpop.f32.mrb[95].mxu0  ;;  %v7339_v50 = vpop.f32.mrb[103].mxu1  ;;  %v7026_v12 = vadd.f32 %v6938_v59, %v6828_v21  ;;  %10739 = vmatprep.subr.bf16.mxu1 %v13324_v4  ;;  %v13336_v0 = vld [vmem:[%s19176_s15 + $0x54] ss:$8 sps:$4 sm:$0xff]  }
 0x7bc   : > { %v7027_v23 = vadd.f32 %v6940_v6, %v6829_v25  ;;  %v13334_v25 = vld [vmem:[%s19176_s15 + $0x50] ss:$8 sps:$4 sm:$0xff]  }
 0x7be   : > { %10740 = vmatpush1.bf16.msra.mxu1 %v13322_v11 }
 0x7bf   : > { %10741 = vmatprep.subr.bf16.mxu1 %v13330_v8  ;;  %v13369_v8 = vld [vmem:[%s19176_s15 + $0x174] ss:$8 sps:$4 sm:$0xff]  }
 0x7c0   : > { %v6822_v57 = vpop.f32.mrb[96].mxu0  ;;  %v18729_v22 = vpop.f32.mrb[104].mxu1 }
 0x7c1   : > { %v6832_v28 = vadd.f32 %v6822_v57, %v18714_v56  ;;  %v11852_v2 = vpop.f32.mrb[97].mxu0  ;;  %v11876_v32 = vpop.f32.mrb[105].mxu1  ;;  %v13342_v57 = vld [vmem:[%s19176_s15 + $0x64] ss:$8 sps:$4 sm:$0xff]  }
 0x7c2   : > { %v6825_v47 = vpop.f32.mrb[98].mxu0  ;;  %v7419_v33 = vpop.f32.mrb[106].mxu1  ;;  %10742 = vmatpush1.bf16.msra.mxu1 %v13328_v36  ;;  %v13343_v2 = vld [vmem:[%s19176_s15 + $0x130] ss:$8 sps:$4 sm:$0xff]  }
 0x7c3   : > { %v11853_v17 = vpop.f32.mrb[99].mxu0  ;;  %v11877_v61 = vpop.f32.mrb[107].mxu1  ;;  %v7030_v46 = vadd.f32 %v7020_v30, %v6832_v28  ;;  %10743 = vmatprep.subr.bf16.mxu1 %v13336_v0  ;;  %v13345_v28 = vld [vmem:[%s19176_s15 + $0x134] ss:$8 sps:$4 sm:$0xff]  }
 0x7c6   : > { %10744 = vmatpush1.bf16.msra.mxu1 %v13334_v25 }
 0x7c7   : > { %10745 = vmatprep.subr.bf16.mxu1 %v13342_v57 }
 0x7c8   : > { %v6979_v18 = vpop.f32.mrb[100].mxu0  ;;  %v18738_v3 = vpop.f32.mrb[108].mxu1 }
 0x7c9   : > { %v7028_v59 = vadd.f32 %v6979_v18, %v6830_v34  ;;  %v6981_v56 = vpop.f32.mrb[101].mxu0  ;;  %v18740_v31 = vpop.f32.mrb[109].mxu1  ;;  %v13346_v18 = vld [vmem:[%s19176_s15 + $0x70] ss:$8 sps:$4 sm:$0xff]  }
 0x7ca   : > { %v7029_v6 = vadd.f32 %v6981_v56, %v6831_v39  ;;  %v6983_v9 = vpop.f32.mrb[102].mxu0  ;;  %v7577_v38 = vpop.f32.mrb[110].mxu1 }
 0x7cb   : > { %v6984_v42 = vpop.f32.mrb[103].mxu0  ;;  %v7578_v60 = vpop.f32.mrb[111].mxu1  ;;  %v7226_v48 = vadd.f32 %v7177_v37, %v7028_v59  ;;  %v13327_v37 = vld [vmem:[%s19176_s15 + $0x104] ss:$8 sps:$4 sm:$0xff]   ;;  %v13348_v59 = vld [vmem:[%s19176_s15 + $0x74] ss:$8 sps:$4 sm:$0xff]  }
 0x7cc   : > { %v18751_v30 = vadd.f32 %v7179_v58, %v7029_v6  ;;  %10774 = vmatprep.subr.bf16.mxu0 %v13327_v37  ;;  %v13349_v38 = vld [vmem:[%s19176_s15 + $0x140] ss:$8 sps:$4 sm:$0xff]   ;;  %v13354_v42 = vld [vmem:[%s19176_s15 + $0x84] ss:$8 sps:$4 sm:$0xff]   ;;  %v13357_v60 = vld [vmem:[%s19176_s15 + $0x154] ss:$8 sps:$4 sm:$0xff]  }
 0x7cd   : > { %10775 = vmatpush1.bf16.msra.mxu0 %v13325_v53 }
 0x7ce   : > { %10776 = vmatprep.subr.bf16.mxu0 %v13333_v63 }
 0x7d0   : > { %v7136_v20 = vpop.f32.mrb[104].mxu0  ;;  %v18756_v7 = vpop.f32.mrb[112].mxu1 }
 0x7d1   : > { %v7224_v40 = vadd.f32 %v7136_v20, %v7026_v12  ;;  %v7138_v10 = vpop.f32.mrb[105].mxu0  ;;  %v18758_v26 = vpop.f32.mrb[113].mxu1  ;;  %10777 = vmatpush1.bf16.msra.mxu0 %v13331_v1  ;;  %v13337_v12 = vld [vmem:[%s19176_s15 + $0x120] ss:$8 sps:$4 sm:$0xff]  }
 0x7d2   : > { %v7225_v44 = vadd.f32 %v7138_v10, %v7027_v23  ;;  %v7140_v14 = vpop.f32.mrb[106].mxu0  ;;  %v7734_v51 = vpop.f32.mrb[114].mxu1  ;;  %v13339_v23 = vld [vmem:[%s19176_s15 + $0x124] ss:$8 sps:$4 sm:$0xff]   ;;  %v13360_v10 = vld [vmem:[%s19176_s15 + $0x94] ss:$8 sps:$4 sm:$0xff]  }
 0x7d3   : > { %v7141_v24 = vpop.f32.mrb[107].mxu0  ;;  %v7735_v55 = vpop.f32.mrb[115].mxu1  ;;  %v18772_v58 = vadd.f32 %v7334_v62, %v7224_v40  ;;  %10778 = vmatprep.subr.bf16.mxu0 %v13339_v23  ;;  %v13358_v40 = vld [vmem:[%s19176_s15 + $0x90] ss:$8 sps:$4 sm:$0xff]   ;;  %v13361_v14 = vld [vmem:[%s19176_s15 + $0x160] ss:$8 sps:$4 sm:$0xff]  }
 0x7d4   : > { %v18777_v41 = vadd.f32 %v7336_v49, %v7225_v44  ;;  %v13363_v51 = vld [vmem:[%s19176_s15 + $0x164] ss:$8 sps:$4 sm:$0xff]   ;;  %v13379_v23 = vld [vmem:[%s19176_s15 + $0x190] ss:$8 sps:$4 sm:$0xff]  }
 0x7d5   : > { %10779 = vmatpush1.bf16.msra.mxu0 %v13337_v12  ;;  %v13366_v55 = vld [vmem:[%s19176_s15 + $0xa4] ss:$8 sps:$4 sm:$0xff]   ;;  %v13376_v12 = vld [vmem:[%s19176_s15 + $0xc0] ss:$8 sps:$4 sm:$0xff]  }
 0x7d6   : > { %10780 = vmatprep.subr.bf16.mxu0 %v13345_v28 }
 0x7d8   : > { %v7218_v34 = vpop.f32.mrb[108].mxu0  ;;  %v18788_v39 = vpop.f32.mrb[116].mxu1 }
 0x7d9   : > { %v7228_v5 = vadd.f32 %v7218_v34, %v7030_v46  ;;  %v11868_v62 = vpop.f32.mrb[109].mxu0  ;;  %v11892_v21 = vpop.f32.mrb[117].mxu1  ;;  %10781 = vmatpush1.bf16.msra.mxu0 %v13343_v2 }
 0x7da   : > { %v7221_v16 = vpop.f32.mrb[110].mxu0  ;;  %v7815_v49 = vpop.f32.mrb[118].mxu1  ;;  %10782 = vmatprep.subr.bf16.mxu0 %v13351_v13  ;;  %v13370_v21 = vld [vmem:[%s19176_s15 + $0xb0] ss:$8 sps:$4 sm:$0xff]  }
 0x7db   : > { %v11869_v43 = vpop.f32.mrb[111].mxu0  ;;  %v11893_v19 = vpop.f32.mrb[119].mxu1  ;;  %v18797_v50 = vadd.f32 %v18729_v22, %v7228_v5  ;;  %v13340_v22 = vld [vmem:[%s19176_s15 + $0x60] ss:$8 sps:$4 sm:$0xff]   ;;  %v13372_v16 = vld [vmem:[%s19176_s15 + $0xb4] ss:$8 sps:$4 sm:$0xff]  }
 0x7dc   : > { %10746 = vmatpush1.bf16.msra.mxu1 %v13340_v22  ;;  %v13373_v43 = vld [vmem:[%s19176_s15 + $0x180] ss:$8 sps:$4 sm:$0xff]   ;;  %v13375_v19 = vld [vmem:[%s19176_s15 + $0x184] ss:$8 sps:$4 sm:$0xff]  }
 0x7dd   : > { %10747 = vmatprep.subr.bf16.mxu1 %v13348_v59  ;;  %10783 = vmatpush1.bf16.msra.mxu0 %v13349_v38 }
 0x7de   : > { %10784 = vmatprep.subr.bf16.mxu0 %v13357_v60 }
 0x7e0   : > { %v7375_v32 = vpop.f32.mrb[112].mxu0  ;;  %v18817_v47 = vpop.f32.mrb[120].mxu1  ;;  %10748 = vmatpush1.bf16.msra.mxu1 %v13346_v18 }
 0x7e1   : > { %v7424_v33 = vadd.f32 %v7375_v32, %v7226_v48  ;;  %v7377_v17 = vpop.f32.mrb[113].mxu0  ;;  %v18819_v61 = vpop.f32.mrb[121].mxu1  ;;  %10749 = vmatprep.subr.bf16.mxu1 %v13354_v42 }
 0x7e2   : > { %v7425_v46 = vadd.f32 %v7377_v17, %v18751_v30  ;;  %v7379_v35 = vpop.f32.mrb[114].mxu0  ;;  %v7973_v15 = vpop.f32.mrb[122].mxu1 }
 0x7e3   : > { %v7380_v56 = vpop.f32.mrb[115].mxu0  ;;  %v7974_v6 = vpop.f32.mrb[123].mxu1  ;;  %v18829_v9 = vadd.f32 %v18738_v3, %v7424_v33  ;;  %v13352_v3 = vld [vmem:[%s19176_s15 + $0x80] ss:$8 sps:$4 sm:$0xff]  }
 0x7e4   : > { %v18838_v27 = vadd.f32 %v18740_v31, %v7425_v46  ;;  %v13355_v31 = vld [vmem:[%s19176_s15 + $0x150] ss:$8 sps:$4 sm:$0xff]   ;;  %10750 = vmatpush1.bf16.msra.mxu1 %v13352_v3 }
 0x7e5   : > { %10785 = vmatpush1.bf16.msra.mxu0 %v13355_v31  ;;  %10751 = vmatprep.subr.bf16.mxu1 %v13360_v10  ;;  %v13390_v10 = vld [vmem:[%s19176_s15 + $0xe4] ss:$8 sps:$4 sm:$0xff]  }
 0x7e6   : > { %10786 = vmatprep.subr.bf16.mxu0 %v13363_v51 }
 0x7e8   : > { %v7532_v48 = vpop.f32.mrb[116].mxu0  ;;  %v18852_v29 = vpop.f32.mrb[124].mxu1  ;;  %10752 = vmatpush1.bf16.msra.mxu1 %v13358_v40 }
 0x7e9   : > { %v7620_v30 = vadd.f32 %v7532_v48, %v18772_v58  ;;  %v7534_v52 = vpop.f32.mrb[117].mxu0  ;;  %v18855_v20 = vpop.f32.mrb[125].mxu1  ;;  %10787 = vmatpush1.bf16.msra.mxu0 %v13361_v14  ;;  %10753 = vmatprep.subr.bf16.mxu1 %v13366_v55 }
 0x7ea   : > { %v7621_v11 = vadd.f32 %v7534_v52, %v18777_v41  ;;  %v7536_v4 = vpop.f32.mrb[118].mxu0  ;;  %v8130_v44 = vpop.f32.mrb[126].mxu1  ;;  %v13364_v41 = vld [vmem:[%s19176_s15 + $0xa0] ss:$8 sps:$4 sm:$0xff]   ;;  %10788 = vmatprep.subr.bf16.mxu0 %v13369_v8  ;;  %v13387_v52 = vld [vmem:[%s19176_s15 + $0x1a4] ss:$8 sps:$4 sm:$0xff]  }
 0x7eb   : > { %v7537_v53 = vpop.f32.mrb[119].mxu0  ;;  %v8131_v37 = vpop.f32.mrb[127].mxu1  ;;  %v7818_v24 = vadd.f32 %v18756_v7, %v7620_v30  ;;  %v13367_v7 = vld [vmem:[%s19176_s15 + $0x170] ss:$8 sps:$4 sm:$0xff]   ;;  %v13397_v8 = vld [vmem:[%s19176_s15 + $0x1c0] ss:$8 sps:$4 sm:$0xff]  }
 0x7ec   : > { %v7819_v58 = vadd.f32 %v18758_v26, %v7621_v11  ;;  %10754 = vmatpush1.bf16.msra.mxu1 %v13364_v41  ;;  %v13393_v11 = vld [vmem:[%s19176_s15 + $0x1b4] ss:$8 sps:$4 sm:$0xff]   ;;  %v13394_v37 = vld [vmem:[%s19176_s15 + $0xf0] ss:$8 sps:$4 sm:$0xff]   ;;  %v13399_v41 = vld [vmem:[%s19176_s15 + $0x1c4] ss:$8 sps:$4 sm:$0xff]  }
 0x7ed   : > { %10789 = vmatpush1.bf16.msra.mxu0 %v13367_v7  ;;  %10755 = vmatprep.subr.bf16.mxu1 %v13372_v16 }
 0x7ee   : > { %10790 = vmatprep.subr.bf16.mxu0 %v13375_v19  ;;  %v13403_v19 = vld [vmem:[%s19176_s15 + $0x1e0] ss:$8 sps:$4 sm:$0xff]  }
 0x7f0   : > { %v7614_v63 = vpop.f32.mrb[120].mxu0  ;;  %v18884_v36 = vpop.f32.mrb[128].mxu1  ;;  %10756 = vmatpush1.bf16.msra.mxu1 %v13370_v21  ;;  %v13405_v21 = vld [vmem:[%s19176_s15 + $0x1e4] ss:$8 sps:$4 sm:$0xff]  }
 0x7f1   : > { %v7624_v26 = vadd.f32 %v7614_v63, %v18797_v50  ;;  %v11884_v1 = vpop.f32.mrb[121].mxu0  ;;  %v11908_v34 = vpop.f32.mrb[129].mxu1  ;;  %v13378_v50 = vld [vmem:[%s19176_s15 + $0xc4] ss:$8 sps:$4 sm:$0xff]   ;;  %10791 = vmatpush1.bf16.msra.mxu0 %v13373_v43 }
 0x7f2   : > { %v7617_v5 = vpop.f32.mrb[122].mxu0  ;;  %v8211_v62 = vpop.f32.mrb[130].mxu1  ;;  %10757 = vmatprep.subr.bf16.mxu1 %v13378_v50  ;;  %v13402_v1 = vld [vmem:[%s19176_s15 + $0x1d4] ss:$8 sps:$4 sm:$0xff]   ;;  %v13400_v34 = vld [vmem:[%s19176_s15 + $0x1d0] ss:$8 sps:$4 sm:$0xff]  }
 0x7f3   : > { %v11885_v49 = vpop.f32.mrb[123].mxu0  ;;  %v11909_v25 = vpop.f32.mrb[131].mxu1  ;;  %v7822_v0 = vadd.f32 %v18788_v39, %v7624_v26  ;;  %v13381_v39 = vld [vmem:[%s19176_s15 + $0x194] ss:$8 sps:$4 sm:$0xff]  }
 0x7f4   : > { %10792 = vmatprep.subr.bf16.mxu0 %v13381_v39  ;;  %10758 = vmatpush1.bf16.msra.mxu1 %v13376_v12 }
 0x7f5   : > { %10793 = vmatpush1.bf16.msra.mxu0 %v13379_v23  ;;  %v13408_v23 = vld [vmem:[%s19176_s15 + $0x1f4] ss:$8 sps:$4 sm:$0xff]  }
 0x7f6   : > { %10794 = vmatprep.subr.bf16.mxu0 %v13387_v52 }
 0x7f8   : > { %v7771_v57 = vpop.f32.mrb[124].mxu0  ;;  %v18912_v22 = vpop.f32.mrb[132].mxu1 }
 0x7f9   : > { %v7820_v28 = vadd.f32 %v7771_v57, %v18829_v9  ;;  %v7773_v2 = vpop.f32.mrb[125].mxu0  ;;  %v18915_v32 = vpop.f32.mrb[133].mxu1 }
 0x7fa   : > { %v7821_v33 = vadd.f32 %v7773_v2, %v18838_v27  ;;  %v7775_v17 = vpop.f32.mrb[126].mxu0  ;;  %v8369_v46 = vpop.f32.mrb[134].mxu1  ;;  %v13382_v27 = vld [vmem:[%s19176_s15 + $0xd0] ss:$8 sps:$4 sm:$0xff]   ;;  %v13411_v2 = vld [vmem:[%s19176_s15 + $0x204] ss:$8 sps:$4 sm:$0xff]  }
 0x7fb   : > { %v7776_v35 = vpop.f32.mrb[127].mxu0  ;;  %v8370_v15 = vpop.f32.mrb[135].mxu1  ;;  %v8018_v18 = vadd.f32 %v18817_v47, %v7820_v28  ;;  %v13384_v47 = vld [vmem:[%s19176_s15 + $0xd4] ss:$8 sps:$4 sm:$0xff]   ;;  %v13406_v28 = vld [vmem:[%s19176_s15 + $0x1f0] ss:$8 sps:$4 sm:$0xff]  }
 0x7fc   : > { %v8019_v59 = vadd.f32 %v18819_v61, %v7821_v33  ;;  %v13385_v61 = vld [vmem:[%s19176_s15 + $0x1a0] ss:$8 sps:$4 sm:$0xff]   ;;  %10759 = vmatprep.subr.bf16.mxu1 %v13384_v47 }
 0x7fd   : > { %10760 = vmatpush1.bf16.msra.mxu1 %v13382_v27  ;;  %10795 = vmatpush1.bf16.msra.mxu0 %v13385_v61 }
 0x7fe   : > { %10761 = vmatprep.subr.bf16.mxu1 %v13390_v10  ;;  %10796 = vmatprep.subr.bf16.mxu0 %v13393_v11 }
 0x800   : > { %v7928_v56 = vpop.f32.mrb[128].mxu0  ;;  %v18920_v6 = vpop.f32.mrb[136].mxu1 }
 0x801   : > { %v8016_v38 = vadd.f32 %v7928_v56, %v7818_v24  ;;  %v7930_v9 = vpop.f32.mrb[129].mxu0  ;;  %v18922_v13 = vpop.f32.mrb[137].mxu1  ;;  %v13396_v24 = vld [vmem:[%s19176_s15 + $0xf4] ss:$8 sps:$4 sm:$0xff]  }
 0x802   : > { %v8017_v42 = vadd.f32 %v7930_v9, %v7819_v58  ;;  %v7932_v3 = vpop.f32.mrb[130].mxu0  ;;  %v8526_v60 = vpop.f32.mrb[138].mxu1 }
 0x803   : > { %v7933_v31 = vpop.f32.mrb[131].mxu0  ;;  %v8527_v48 = vpop.f32.mrb[139].mxu1  ;;  %v8214_v30 = vadd.f32 %v18852_v29, %v8016_v38  ;;  %v13388_v29 = vld [vmem:[%s19176_s15 + $0xe0] ss:$8 sps:$4 sm:$0xff]  }
 0x804   : > { %v8215_v40 = vadd.f32 %v18855_v20, %v8017_v42  ;;  %v13391_v20 = vld [vmem:[%s19176_s15 + $0x1b0] ss:$8 sps:$4 sm:$0xff]   ;;  %10762 = vmatpush1.bf16.msra.mxu1 %v13388_v29 }
 0x805   : > { %10797 = vmatpush1.bf16.msra.mxu0 %v13391_v20  ;;  %10763 = vmatprep.subr.bf16.mxu1 %v13396_v24 }
 0x806   : > { %10798 = vmatprep.subr.bf16.mxu0 %v13399_v41 }
 0x808   : > { %v8010_v4 = vpop.f32.mrb[132].mxu0  ;;  %v18950_v44 = vpop.f32.mrb[140].mxu1  ;;  %10764 = vmatpush1.bf16.msra.mxu1 %v13394_v37 }
 0x809   : > { %v8020_v14 = vadd.f32 %v8010_v4, %v7822_v0  ;;  %v11900_v51 = vpop.f32.mrb[133].mxu0  ;;  %v11924_v53 = vpop.f32.mrb[141].mxu1  ;;  %10799 = vmatpush1.bf16.msra.mxu0 %v13397_v8 }
 0x80a   : > { %v8013_v55 = vpop.f32.mrb[134].mxu0  ;;  %v8607_v58 = vpop.f32.mrb[142].mxu1  ;;  %10800 = vmatprep.subr.bf16.mxu0 %v13402_v1 }
 0x80b   : > { %v11901_v7 = vpop.f32.mrb[135].mxu0  ;;  %v11925_v63 = vpop.f32.mrb[143].mxu1  ;;  %v8218_v26 = vadd.f32 %v18884_v36, %v8020_v14 }
 0x80d   : > { %10801 = vmatpush1.bf16.msra.mxu0 %v13400_v34 }
 0x80e   : > { %10802 = vmatprep.subr.bf16.mxu0 %v13405_v21 }
 0x810   : > { %v8167_v5 = vpop.f32.mrb[136].mxu0  ;;  %v8761_v62 = vpop.f32.mrb[144].mxu1 }
 0x811   : > { %v8216_v36 = vadd.f32 %v8167_v5, %v8018_v18  ;;  %v8169_v16 = vpop.f32.mrb[137].mxu0  ;;  %v8763_v49 = vpop.f32.mrb[145].mxu1  ;;  %10803 = vmatpush1.bf16.msra.mxu0 %v13403_v19 }
 0x812   : > { %v8217_v25 = vadd.f32 %v8169_v16, %v8019_v59  ;;  %v8171_v0 = vpop.f32.mrb[138].mxu0  ;;  %v8765_v43 = vpop.f32.mrb[146].mxu1  ;;  %10804 = vmatprep.subr.bf16.mxu0 %v13408_v23 }
 0x813   : > { %v8172_v50 = vpop.f32.mrb[139].mxu0  ;;  %v8766_v12 = vpop.f32.mrb[147].mxu1  ;;  %v8414_v39 = vadd.f32 %v18912_v22, %v8216_v36 }
 0x814   : > { %v8415_v57 = vadd.f32 %v18915_v32, %v8217_v25 }
 0x815   : > { %10805 = vmatpush1.bf16.msra.mxu0 %v13406_v28 }
 0x816   : > { %10815 = vmatprep.subr.bf16.mxu0 %v13411_v2 }
 0x818   : > { %v8324_v33 = vpop.f32.mrb[140].mxu0  ;;  %v8918_v17 = vpop.f32.mrb[148].mxu1 }
 0x819   : > { %v8412_v22 = vadd.f32 %v8324_v33, %v8214_v30  ;;  %v8326_v46 = vpop.f32.mrb[141].mxu0  ;;  %v8920_v35 = vpop.f32.mrb[149].mxu1 }
 0x81a   : > { %v8413_v15 = vadd.f32 %v8326_v46, %v8215_v40  ;;  %v8328_v18 = vpop.f32.mrb[142].mxu0  ;;  %v8922_v59 = vpop.f32.mrb[150].mxu1 }
 0x81b   : > { %v8329_v32 = vpop.f32.mrb[143].mxu0  ;;  %v8923_v56 = vpop.f32.mrb[151].mxu1  ;;  %v8610_v38 = vadd.f32 %v18920_v6, %v8412_v22 }
 0x81c   : > { %v8611_v9 = vadd.f32 %v18922_v13, %v8413_v15 }
 0x820   : > { %v8406_v27 = vpop.f32.mrb[144].mxu0  ;;  %v9000_v42 = vpop.f32.mrb[152].mxu1 }
 0x821   : > { %v8416_v3 = vadd.f32 %v8406_v27, %v8218_v26  ;;  %v11916_v60 = vpop.f32.mrb[145].mxu0  ;;  %v11940_v47 = vpop.f32.mrb[153].mxu1 }
 0x822   : > { %v8409_v61 = vpop.f32.mrb[146].mxu0  ;;  %v9003_v31 = vpop.f32.mrb[154].mxu1 }
 0x823   : > { %v11917_v48 = vpop.f32.mrb[147].mxu0  ;;  %v11941_v30 = vpop.f32.mrb[155].mxu1  ;;  %v8614_v52 = vadd.f32 %v18950_v44, %v8416_v3 }
 0x828   : > { %v8563_v40 = vpop.f32.mrb[148].mxu0  ;;  %v9157_v10 = vpop.f32.mrb[156].mxu1 }
 0x829   : > { %v8612_v11 = vadd.f32 %v8563_v40, %v8414_v39  ;;  %v8565_v29 = vpop.f32.mrb[149].mxu0  ;;  %v9159_v20 = vpop.f32.mrb[157].mxu1 }
 0x82a   : > { %v8613_v6 = vadd.f32 %v8565_v29, %v8415_v57  ;;  %v8567_v4 = vpop.f32.mrb[150].mxu0  ;;  %v9161_v14 = vpop.f32.mrb[158].mxu1 }
 0x82b   : > { %v8568_v13 = vpop.f32.mrb[151].mxu0  ;;  %v9162_v51 = vpop.f32.mrb[159].mxu1  ;;  %v8810_v53 = vadd.f32 %v8761_v62, %v8612_v11 }
 0x82c   : > { %v8811_v37 = vadd.f32 %v8763_v49, %v8613_v6 }
 0x830   : > { %v8720_v24 = vpop.f32.mrb[152].mxu0  ;;  %v9314_v55 = vpop.f32.mrb[160].mxu1 }
 0x831   : > { %v8808_v58 = vadd.f32 %v8720_v24, %v8610_v38  ;;  %v8722_v8 = vpop.f32.mrb[153].mxu0  ;;  %v9316_v41 = vpop.f32.mrb[161].mxu1 }
 0x832   : > { %v8809_v7 = vadd.f32 %v8722_v8, %v8611_v9  ;;  %v8724_v63 = vpop.f32.mrb[154].mxu0  ;;  %v9318_v44 = vpop.f32.mrb[162].mxu1 }
 0x833   : > { %v8725_v26 = vpop.f32.mrb[155].mxu0  ;;  %v9319_v1 = vpop.f32.mrb[163].mxu1  ;;  %v9006_v34 = vadd.f32 %v8918_v17, %v8808_v58 }
 0x834   : > { %v9007_v5 = vadd.f32 %v8920_v35, %v8809_v7 }
 0x838   : > { %v8802_v21 = vpop.f32.mrb[156].mxu0  ;;  %v9396_v36 = vpop.f32.mrb[164].mxu1 }
 0x839   : > { %v8812_v16 = vadd.f32 %v8802_v21, %v8614_v52  ;;  %v11932_v25 = vpop.f32.mrb[157].mxu0  ;;  %v11956_v0 = vpop.f32.mrb[165].mxu1 }
 0x83a   : > { %v8805_v43 = vpop.f32.mrb[158].mxu0  ;;  %v9399_v62 = vpop.f32.mrb[166].mxu1 }
 0x83b   : > { %v11933_v49 = vpop.f32.mrb[159].mxu0  ;;  %v11957_v19 = vpop.f32.mrb[167].mxu1  ;;  %v9010_v50 = vadd.f32 %v9000_v42, %v8812_v16 }
 0x840   : > { %v8959_v12 = vpop.f32.mrb[160].mxu0  ;;  %v9553_v39 = vpop.f32.mrb[168].mxu1 }
 0x841   : > { %v9008_v23 = vadd.f32 %v8959_v12, %v8810_v53  ;;  %v8961_v57 = vpop.f32.mrb[161].mxu0  ;;  %v9555_v28 = vpop.f32.mrb[169].mxu1 }
 0x842   : > { %v9009_v2 = vadd.f32 %v8961_v57, %v8811_v37  ;;  %v8963_v33 = vpop.f32.mrb[162].mxu0  ;;  %v9557_v22 = vpop.f32.mrb[170].mxu1 }
 0x843   : > { %v8964_v17 = vpop.f32.mrb[163].mxu0  ;;  %v9558_v46 = vpop.f32.mrb[171].mxu1  ;;  %v9206_v35 = vadd.f32 %v9157_v10, %v9008_v23 }
 0x844   : > { %v9207_v15 = vadd.f32 %v9159_v20, %v9009_v2 }
 0x848   : > { %v9116_v18 = vpop.f32.mrb[164].mxu0  ;;  %v9710_v59 = vpop.f32.mrb[172].mxu1 }
 0x849   : > { %v9204_v32 = vadd.f32 %v9116_v18, %v9006_v34  ;;  %v9118_v56 = vpop.f32.mrb[165].mxu0  ;;  %v9712_v38 = vpop.f32.mrb[173].mxu1 }
 0x84a   : > { %v9205_v9 = vadd.f32 %v9118_v56, %v9007_v5  ;;  %v9120_v27 = vpop.f32.mrb[166].mxu0  ;;  %v9714_v42 = vpop.f32.mrb[174].mxu1  ;;  %v18995_v56 = vld [vmem:[%s19175_s14] sm:$0x1f] }
 0x84b   : > { %v9121_v3 = vpop.f32.mrb[167].mxu0  ;;  %v9715_v60 = vpop.f32.mrb[175].mxu1  ;;  %v9402_v47 = vadd.f32 %v9314_v55, %v9204_v32 }
 0x84c   : > { %v9403_v61 = vadd.f32 %v9316_v41, %v9205_v9 }
 0x850   : > { %v9198_v31 = vpop.f32.mrb[168].mxu0  ;;  %v9792_v48 = vpop.f32.mrb[176].mxu1 }
 0x851   : > { %v9208_v30 = vadd.f32 %v9198_v31, %v9010_v50  ;;  %v11948_v52 = vpop.f32.mrb[169].mxu0  ;;  %v11972_v40 = vpop.f32.mrb[177].mxu1 }
 0x852   : > { %v9201_v11 = vpop.f32.mrb[170].mxu0  ;;  %v9795_v10 = vpop.f32.mrb[178].mxu1 }
 0x853   : > { %v11949_v29 = vpop.f32.mrb[171].mxu0  ;;  %v11973_v20 = vpop.f32.mrb[179].mxu1  ;;  %v9406_v6 = vadd.f32 %v9396_v36, %v9208_v30 }
 0x858   : > { %v9355_v4 = vpop.f32.mrb[172].mxu0  ;;  %v9949_v14 = vpop.f32.mrb[180].mxu1 }
 0x859   : > { %v9404_v13 = vadd.f32 %v9355_v4, %v9206_v35  ;;  %v9357_v51 = vpop.f32.mrb[173].mxu0  ;;  %v9951_v53 = vpop.f32.mrb[181].mxu1 }
 0x85a   : > { %v9405_v37 = vadd.f32 %v9357_v51, %v9207_v15  ;;  %v9359_v24 = vpop.f32.mrb[174].mxu0  ;;  %v9953_v58 = vpop.f32.mrb[182].mxu1 }
 0x85b   : > { %v9360_v55 = vpop.f32.mrb[175].mxu0  ;;  %v9954_v8 = vpop.f32.mrb[183].mxu1  ;;  %v9602_v41 = vadd.f32 %v9553_v39, %v9404_v13  ;;  %v10215_v24 = vsub.s32 3, %v20163_v45 }
 0x85c   : > { %v9603_v7 = vadd.f32 %v9555_v28, %v9405_v37  ;;  %v10211_v37 = vsub.s32 2, %v20163_v45 }
 0x85d   : > { %v10216_v8 = vrot.slane %v18995_v56, %v10215_v24 }
 0x85e   : > { %v10212_v58 = vrot.slane %v18995_v56, %v10211_v37 }
 0x860   : > { %v9512_v63 = vpop.f32.mrb[176].mxu0  ;;  %v10106_v44 = vpop.f32.mrb[184].mxu1 }
 0x861   : > { %v9600_v26 = vadd.f32 %v9512_v63, %v9402_v47  ;;  %v9514_v1 = vpop.f32.mrb[177].mxu0  ;;  %v10108_v34 = vpop.f32.mrb[185].mxu1 }
 0x862   : > { %v9601_v5 = vadd.f32 %v9514_v1, %v9403_v61  ;;  %v9516_v21 = vpop.f32.mrb[178].mxu0  ;;  %v10110_v36 = vpop.f32.mrb[186].mxu1 }
 0x863   : > { %v9517_v16 = vpop.f32.mrb[179].mxu0  ;;  %v10111_v25 = vpop.f32.mrb[187].mxu1  ;;  %v9798_v0 = vadd.f32 %v9710_v59, %v9600_v26  ;;  %v10203_v59 = vsub.s32 0, %v20163_v45 }
 0x864   : > { %v9799_v43 = vadd.f32 %v9712_v38, %v9601_v5  ;;  %v10207_v38 = vsub.s32 1, %v20163_v45  ;;  %v13409_v16 = vld [vmem:[%s19176_s15 + $0x200] ss:$8 sps:$4 sm:$0xff]  }
 0x865   : > { %v10204_v42 = vrot.slane %v18995_v56, %v10203_v59 }
 0x866   : > { %v10208_v47 = vrot.slane %v18995_v56, %v10207_v38 }
 0x868   : > { %v9594_v62 = vpop.f32.mrb[180].mxu0  ;;  %v10188_v49 = vpop.f32.mrb[188].mxu1 }
 0x869   : > { %v9604_v19 = vadd.f32 %v9594_v62, %v9406_v6  ;;  %v11964_v50 = vpop.f32.mrb[181].mxu0  ;;  %v11988_v12 = vpop.f32.mrb[189].mxu1  ;;  %v13417_v62 = vld [vmem:[%s19176_s15 + $0x224] ss:$8 sps:$4 sm:$0xff]  }
 0x86a   : > { %v9597_v23 = vpop.f32.mrb[182].mxu0  ;;  %v10191_v39 = vpop.f32.mrb[190].mxu1  ;;  %v13423_v50 = vld [vmem:[%s19176_s15 + $0x244] ss:$8 sps:$4 sm:$0xff]   ;;  %v13421_v12 = vld [vmem:[%s19176_s15 + $0x240] ss:$8 sps:$4 sm:$0xff]  }
 0x86b   : > { %v11965_v57 = vpop.f32.mrb[183].mxu0  ;;  %v11989_v28 = vpop.f32.mrb[191].mxu1  ;;  %v9802_v2 = vadd.f32 %v9792_v48, %v9604_v19  ;;  %v13420_v19 = vld [vmem:[%s19176_s15 + $0x234] ss:$8 sps:$4 sm:$0xff]   ;;  %v10219_v23 = vsub.s32 4, %v20163_v45 }
 0x86c   : > { %v13426_v39 = vld [vmem:[%s19176_s15 + $0x254] ss:$8 sps:$4 sm:$0xff]   ;;  %v13424_v57 = vld [vmem:[%s19176_s15 + $0x250] ss:$8 sps:$4 sm:$0xff]   ;;  %v10892_v45 = vld [vmem:[%s19179_s18] sm:$0x1] }
 0x86d   : > { %v10220_v28 = vrot.slane %v18995_v56, %v10219_v23  ;;  %v13435_v56 = vld [vmem:[%s19178_s17 + $0x48] sm:$0xff]  }
 0x870   : > { %v9751_v33 = vpop.f32.mrb[184].mxu0 }
 0x871   : > { %v9800_v22 = vadd.f32 %v9751_v33, %v9602_v41  ;;  %v9753_v17 = vpop.f32.mrb[185].mxu0  ;;  %v13427_v33 = vld [vmem:[%s19176_s15 + $0x260] ss:$8 sps:$4 sm:$0xff]  }
 0x872   : > { %v9801_v46 = vadd.f32 %v9753_v17, %v9603_v7  ;;  %v9755_v35 = vpop.f32.mrb[186].mxu0  ;;  %v13432_v17 = vld [vmem:[%s19176_s15 + $0x274] ss:$8 sps:$4 sm:$0xff]  }
 0x873   : > { %v9756_v15 = vpop.f32.mrb[187].mxu0  ;;  %v9998_v18 = vadd.f32 %v9949_v14, %v9800_v22 }
 0x874   : > { %v9999_v32 = vadd.f32 %v9951_v53, %v9801_v46  ;;  %v13430_v46 = vld [vmem:[%s19176_s15 + $0x270] ss:$8 sps:$4 sm:$0xff]  }
 0x878   : > { %v9908_v9 = vpop.f32.mrb[188].mxu0 }
 0x879   : > { %v9996_v27 = vadd.f32 %v9908_v9, %v9798_v0  ;;  %v9910_v3 = vpop.f32.mrb[189].mxu0  ;;  %v13414_v0 = vld [vmem:[%s19176_s15 + $0x214] ss:$8 sps:$4 sm:$0xff]   ;;  %v13436_v9 = vld [vmem:[%s19178_s17 + $0x8] sm:$0xff]  }
 0x87a   : > { %v9997_v60 = vadd.f32 %v9910_v3, %v9799_v43  ;;  %v9912_v61 = vpop.f32.mrb[190].mxu0  ;;  %v13412_v43 = vld [vmem:[%s19176_s15 + $0x210] ss:$8 sps:$4 sm:$0xff]  }
 0x87b   : > { %v10194_v31 = vadd.f32 %v10106_v44, %v9996_v27  ;;  %v9913_v48 = vpop.f32.mrb[191].mxu0  ;;  %v13437_v27 = vld [vmem:[%s19178_s17 + $0x50] sm:$0xff]   ;;  %v13439_v3 = vld [vmem:[%s19178_s17 + $0x58] sm:$0xff]   ;;  %v13442_v61 = vld [vmem:[%s19178_s17 + $0x20] sm:$0xff]  }
 0x87c   : > { %v10195_v30 = vadd.f32 %v10108_v34, %v9997_v60  ;;  %v13440_v60 = vld [vmem:[%s19178_s17 + $0x18] sm:$0xff]   ;;  %v13444_v48 = vld [vmem:[%s19178_s17 + $0x28] sm:$0xff]  }
 0x87d   : > { %v10226_v52 = vadd.f32 %v10204_v42, %v10194_v31  ;;  %v13438_v42 = vld [vmem:[%s19178_s17 + $0x10] sm:$0xff]   ;;  %v13443_v31 = vld [vmem:[%s19178_s17 + $0x68] sm:$0xff]  }
 0x87e   : > { %v10227_v40 = vadd.f32 %v10208_v47, %v10195_v30  ;;  %v13441_v47 = vld [vmem:[%s19178_s17 + $0x60] sm:$0xff]   ;;  %v13445_v30 = vld [vmem:[%s19178_s17 + $0x70] sm:$0xff]  }
 0x87f   : > { %v10231_v11 = vmax.f32 %v10226_v52, 0.0  ;;  %v13446_v52 = vld [vmem:[%s19178_s17 + $0x30] sm:$0xff]  }
 0x880   : > { %v9990_v10 = vpop.f32.mrb[192].mxu0  ;;  %v10232_v29 = vmax.f32 %v10227_v40, 0.0  ;;  %v13447_v40 = vld [vmem:[%s19178_s17 + $0x78] sm:$0xff]  }
 0x881   : > { %v10000_v20 = vadd.f32 %v9990_v10, %v9802_v2  ;;  %v11980_v6 = vpop.f32.mrb[193].mxu0  ;;  %v10236_v13 = vpack.c.bf16 %v10231_v11, %v10231_v11  ;;  %v13429_v2 = vld [vmem:[%s19176_s15 + $0x264] ss:$8 sps:$4 sm:$0xff]   ;;  %v13448_v11 = vld [vmem:[%s19178_s17 + $0x38] sm:$0xff]   ;;  %v10321_v10 = vld [vmem:[%s19177_s16] sm:$0x3] }
 0x882   : > { %v9993_v4 = vpop.f32.mrb[194].mxu0  ;;  %v10237_v14 = vpack.c.bf16 %v10232_v29, %v10232_v29  ;;  %v10726_v29 = vrot.slane %v10321_v10, %v10203_v59 }
 0x883   : > { %v10198_v51 = vadd.f32 %v10188_v49, %v10000_v20  ;;  %v11981_v53 = vpop.f32.mrb[195].mxu0  ;;  %v13415_v49 = vld [vmem:[%s19176_s15 + $0x220] ss:$8 sps:$4 sm:$0xff]  }
 0x884   : > { %10765 = vmatprep.mubr.bf16.mxu1 %v10237_v14 }
 0x885   : > { %10766 = vmatmul.mubr.bf16.vlgmr.msra.gmra.mrb[192].mxu1 %v10236_v13  ;;  %v10230_v22 = vadd.f32 %v10220_v28, %v10198_v51  ;;  %v10730_v51 = vrot.slane %v10321_v10, %v10207_v38 }
 0x887   : > { %v10235_v35 = vmax.f32 %v10230_v22, 0.0 }
 0x888   : > { %v10147_v55 = vpop.f32.mrb[196].mxu0 }
 0x889   : > { %v10196_v41 = vadd.f32 %v10147_v55, %v9998_v18  ;;  %v10149_v7 = vpop.f32.mrb[197].mxu0  ;;  %v10240_v15 = vpack.c.bf16 %v10235_v35, %v10235_v35  ;;  %v13433_v18 = vld [vmem:[%s19178_s17 + $0x40] sm:$0xff]  }
 0x88a   : > { %v10197_v63 = vadd.f32 %v10149_v7, %v9999_v32  ;;  %v10151_v44 = vpop.f32.mrb[198].mxu0  ;;  %v13434_v32 = vld [vmem:[%s19178_s17] sm:$0xff]   ;;  %11722 = vmatprep.subr.bf16.mxu1 %v13433_v18 }
 0x88b   : > { %v10228_v26 = vadd.f32 %v10212_v58, %v10196_v41  ;;  %v10152_v1 = vpop.f32.mrb[199].mxu0  ;;  %11723 = vmatpush3.bf16.msra.mxu1 %v13434_v32 }
 0x88c   : > { %v10229_v34 = vadd.f32 %v10216_v8, %v10197_v63  ;;  %11724 = vmatprep.subr.bf16.mxu1 %v13435_v56 }
 0x88d   : > { %v10233_v5 = vmax.f32 %v10228_v26, 0.0 }
 0x88e   : > { %v10234_v21 = vmax.f32 %v10229_v34, 0.0 }
 0x88f   : > { %v10238_v25 = vpack.c.bf16 %v10233_v5, %v10233_v5  ;;  %11725 = vmatpush3.bf16.msra.mxu1 %v13436_v9 }
 0x890   : > { %v10239_v36 = vpack.c.bf16 %v10234_v21, %v10234_v21  ;;  %11726 = vmatprep.subr.bf16.mxu1 %v13437_v27 }
 0x892   : > { %10806 = vmatprep.mubr.bf16.mxu0 %v10239_v36 }
 0x893   : > { %10807 = vmatmul.mubr.bf16.vlgmr.msra.gmra.mrb[200].mxu0 %v10238_v25  ;;  %11727 = vmatpush3.bf16.msra.mxu1 %v13438_v42 }
 0x894   : > { %10816 = vmatpush1.bf16.msra.mxu0 %v13409_v16  ;;  %10847 = vmatprep.mubr.bf16.mxu0 %v20311_v54  ;;  %v13418_v54 = vld [vmem:[%s19176_s15 + $0x230] ss:$8 sps:$4 sm:$0xff]  }
 0x895   : > { %10817 = vmatprep.subr.bf16.mxu0 %v13414_v0  ;;  %11728 = vmatprep.subr.bf16.mxu1 %v13439_v3 }
 0x897   : > { %11729 = vmatpush3.bf16.msra.mxu1 %v13440_v60 }
 0x898   : > { %10818 = vmatpush1.bf16.msra.mxu0 %v13412_v43  ;;  %11730 = vmatprep.subr.bf16.mxu1 %v13441_v47 }
 0x899   : > { %10819 = vmatprep.subr.bf16.mxu0 %v13417_v62 }
 0x89b   : > { %11731 = vmatpush3.bf16.msra.mxu1 %v13442_v61 }
 0x89c   : > { %10820 = vmatpush1.bf16.msra.mxu0 %v13415_v49  ;;  %11732 = vmatprep.subr.bf16.mxu1 %v13443_v31 }
 0x89d   : > { %10821 = vmatprep.subr.bf16.mxu0 %v13420_v19 }
 0x89f   : > { %11733 = vmatpush3.bf16.msra.mxu1 %v13444_v48 }
 0x8a0   : > { %10822 = vmatpush1.bf16.msra.mxu0 %v13418_v54  ;;  %11734 = vmatprep.subr.bf16.mxu1 %v13445_v30 }
 0x8a1   : > { %10823 = vmatprep.subr.bf16.mxu0 %v13423_v50 }
 0x8a3   : > { %11735 = vmatpush3.bf16.msra.mxu1 %v13446_v52 }
 0x8a4   : > { %10824 = vmatpush1.bf16.msra.mxu0 %v13421_v12  ;;  %11736 = vmatprep.subr.bf16.mxu1 %v13447_v40 }
 0x8a5   : > { %10825 = vmatprep.subr.bf16.mxu0 %v13426_v39 }
 0x8a7   : > { %11737 = vmatpush3.bf16.msra.mxu1 %v13448_v11 }
 0x8a8   : > { %10826 = vmatpush1.bf16.msra.mxu0 %v13424_v57 }
 0x8a9   : > { %10827 = vmatprep.subr.bf16.mxu0 %v13429_v2 }
 0x8ac   : > { %10828 = vmatpush1.bf16.msra.mxu0 %v13427_v33 }
 0x8ad   : > { %10829 = vmatprep.subr.bf16.mxu0 %v13432_v17 }
 0x8b0   : > { %10830 = vmatpush1.bf16.msra.mxu0 %v13430_v46 }
 0x8b3   : > { %10848 = vmatmul.mubr.bf16.vlgmr.msra.gmra.mrb[200].mxu0 %v10240_v15 }
 0x958   : > { %v10767_v20 = vpop.f32.mrb[192].mxu1 }
 0x959   : > { %v10768_v6 = vadd.f32 %v10767_v20, %v10726_v29  ;;  %v10769_v4 = vpop.f32.mrb[193].mxu1 }
 0x95a   : > { %v10771_v14 = vpop.f32.mrb[194].mxu1  ;;  %v10770_v53 = vadd.f32 %v10769_v4, %v10730_v51 }
 0x95b   : > { %v10772_v13 = vpop.f32.mrb[195].mxu1 }
 0x986   : > { %v10849_v37 = vpop.f32.mrb[200].mxu0 }
 0x987   : > { %v12003_v24 = vadd.f32 %v10849_v37, %v10768_v6  ;;  %v10851_v58 = vpop.f32.mrb[201].mxu0 }
 0x988   : > { %v12005_v55 = vadd.f32 %v10851_v58, %v10770_v53  ;;  %v10853_v8 = vpop.f32.mrb[202].mxu0 }
 0x989   : > { %v10856_v41 = vmax.f32 %v12003_v24, 0.0  ;;  %v10854_v7 = vpop.f32.mrb[203].mxu0 }
 0x98a   : > { %v10857_v63 = vmax.f32 %v12005_v55, 0.0 }
 0x98b   : > { %v10858_v44 = vpack.c.bf16 %v10856_v41, %v10856_v41 }
 0x98c   : > { %v10859_v59 = vpack.c.bf16 %v10857_v63, %v10857_v63 }
 0x98e   : > { %11021 = vmatprep.mubr.bf16.mxu1 %v10859_v59 }
 0x98f   : > { %11022 = vmatmul.mubr.bf16.vlgmr.msra.gmra.mrb[196].mxu1 %v10858_v44 }
 0xa62   : > { %v11738_v26 = vpop.f32.mrb[196].mxu1 }
 0xa63   : > { %v11739_v38 = vpop.f32.mrb[197].mxu1 }
 0xa64   : > { %v11740_v1 = vadd.f32 %v11739_v38, %v11738_v26  ;;  %v11741_v34 = vpop.f32.mrb[198].mxu1 }
 0xa65   : > { %v11742_v5 = vpop.f32.mrb[199].mxu1 }
 0xa66   : > { %v11024_v21 = vadd.f32 %v11740_v1, %v10892_v45 }
 0xa68   : > { %11030 = vst.msk [vmem:[%s609_s20] sm:$0x1] %vm11029_vm14, %v11024_v21 }
 0xa69   : > { %13529 = shalt.err (!%p13526_p7)
}
 0xa6a   : > { %s13530_s13 = scalar_lea.hbm %s19119_s2, 16  ;;  %s13534_s25 = scalar_lea.hbm %s19180_s19, 32 }
 0xa6b   : > { %p13531_p8 = scmp.ne.s32.totalorder %s19119_s2, %s13530_s13  ;;  %p13535_p1 = scmp.lt.u32.totalorder %s19119_s2, %s19180_s19 }
 0xa6c   : > { %p13536_p0 = scmp.lt.u32.totalorder %s13534_s25, %s13530_s13  ;;  %p13538_p6 = scmp.lt.u32.totalorder %s13530_s13, %s19119_s2 }
 0xa6d   : > { %p13532_p11 = pnand %p13531_p8, %p20381_p9 }
 0xa6e   : > { %p13537_p5 = por %p13536_p0, %p13535_p1 }
 0xa6f   : > { %p13533_p13 = pneg %p13532_p11 }
 0xa70   : > { %p13539_p10 = por %p13538_p6, %p13537_p5 }
 0xa72   : > { %p13540_p12 = pnand %p13539_p10, %p13533_p13 }
 0xa74   : > { %13543 = shalt.err (!%p13540_p12)
}
 0xa75   : > { %12094 = dma.vmem_to_hbm [thread:$0]  (%p20381_p9), %s19121_s27, 16, %s19119_s2, %s11032_s29  }
 0xa76 PF: > { %s20382_s4 = sld [smem:[#allocation16_spill]]  ;;  %s20383_s1 = sld [smem:[#allocation20_spill]] }
 0xa77   : > { %p12106_p2 = scmp.ge.s32.totalorder %s13582_s21, 2 }
 0xa7c   : > { %s11056_s28 = sand.u32 1, %s20382_s4   ;;  %p20384_p3 = scmp.ne.s32.totalorder %s20383_s1, 0 }
 0xa7d   : > { %s11057_s0 = scalar_lea.sflag [#allocation12], %s11056_s28 }
 0xa7e   : > { %p12101_p4 = pnand %p12106_p2, %p20384_p3 }
 0xa80   : > { %13565 = dma.done.wait (!%p12101_p4), %s11057_s0, 16  }
 0xa81   : > { %13567 = vsyncadd (!%p12101_p4), %s11057_s0, 4294967280  ;;  %s20385_s21 = sld [smem:[#allocation18_spill]]  ;;  %s20386_s13 = sld [smem:[#allocation17_spill]] }
 0xa82   : > { %s20387_s20 = sld [smem:[#allocation19_spill]]  ;;  %s20388_s0 = smov %s13574_s30 }
 0xa87   : > { %p30_p7 = scmp.ge.s32.totalorder %s20385_s21, 4   ;;  %s20389_s30 = smov %s20386_s13 }
 0xa89   :  { %32 = sbr.rel (!%p30_p7) target bundleno = 11 (0xb), region = 245 }
 0xa90   :  { %11061 = vsyncpa [#allocation11], 1 }
 0xa91   :  { %11063 = vsyncpa [#allocation11 + $0x1], 1 }
 0xa92   :  { %11064 = vsyncpa [#allocation12], 1 }
 0xa93   :  { %11066 = vsyncpa [#allocation12 + $0x1], 1 }

</bundles_post_ra>
